<compile_context>
chip_gen: v6e
topology: v6e:2x2x1
jax: 0.10.0
libtpu: 0.0.40
codegen_flags: <defaults>
</compile_context>

<pallas_src>
import jax
import jax.numpy as jnp
import numpy as np
from jax.experimental import pallas as pl
from jax.experimental.pallas import tpu as pltpu

H = 128            # LSTM hidden size per direction
D_LOW = 312        # fc_low input features
D_LOW_PAD = 384    # fc_low input padded to a multiple of 128
D_PROJ = 256       # fc_low output / LSTM input / bi-LSTM output
D_HIGH = 768       # attention output / x_high features
NUM_CLASS_PAD = 128  # padded output width (lane-dense stores)

PARAM_ORDER = [
    "w_fc", "b_fc",
    "w_ih_f", "w_hh_f", "b_f",
    "w_ih_b", "w_hh_b", "b_b",
    "w_att", "b_att",
    "w_cat", "b_cat",
]


# ----------------------------------------------------------------------------
# Pallas kernel
# ----------------------------------------------------------------------------
def tiam_kernel(x_low_ref, xhs_ref,
                w_fc_ref, b_fc_ref,
                w_ih2_ref, b2_ref, w_hh2_ref,
                w_att_ref, b_att_ref,
                w_cat_low_ref, w_cat_high_ref, b_cat_ref,
                out_ref,
                gin_sc, lstm_sc):
    # TODO(synk): dropout1/dropout2 are implemented as identity (eval-mode semantics).
    T = out_ref.shape[0]
    f32 = jnp.float32
    bf16 = jnp.bfloat16

    # ---- fc_low: (T, 384) @ (384, 256), bf16 operands, f32 accumulate -------------
    xp = (jnp.dot(x_low_ref[...], w_fc_ref[...], preferred_element_type=f32)
          + b_fc_ref[...])                                              # (T, 256) f32

    # ---- hoisted LSTM input-to-hidden matmul, both directions at once -------------
    # xp2 row t = [xp(t) | xp(T-1-t)]; w_ih2 routes the first half to the forward
    # gate lanes and the second half to the backward lanes.  Gate-grouped layout:
    # [i_f,i_b, f_f,f_b, g_f,g_b, o_f,o_b], each block H wide.
    xp_rev = jnp.concatenate([xp[t:t + 1, :] for t in range(T - 1, -1, -1)], axis=0)
    xp2 = jnp.concatenate([xp, xp_rev], axis=1).astype(bf16)            # (T, 512)
    gin_sc[...] = (jnp.dot(xp2, w_ih2_ref[...], preferred_element_type=f32)
                   + b2_ref[...])                                       # (T, 1024) f32

    # ---- fused bidirectional LSTM recurrence: ONE matmul per serial step ----------
    # State layout: h = [h_fwd(t) | h_bwd(T-1-t)], c likewise; cell math stays f32.
    h = jnp.zeros((1, 2 * H), f32)
    c = jnp.zeros((1, 2 * H), f32)
    for s in range(T):  # statically unrolled (T is small and known at trace time)
        rec = jnp.dot(h.astype(bf16), w_hh2_ref[...], preferred_element_type=f32)
        g = gin_sc[s:s + 1, :] + rec                                    # (1, 1024)
        i_g = jax.nn.sigmoid(g[:, 0 * 2 * H:1 * 2 * H])
        f_g = jax.nn.sigmoid(g[:, 1 * 2 * H:2 * 2 * H])
        g_g = jnp.tanh(g[:, 2 * 2 * H:3 * 2 * H])
        o_g = jax.nn.sigmoid(g[:, 3 * 2 * H:4 * 2 * H])
        c = f_g * c + i_g * g_g
        h = o_g * jnp.tanh(c)
        # Write hidden states straight into the VMEM scratch (no concats later).
        lstm_sc[s:s + 1, 0:H] = h[:, 0:H]                   # forward dir, time s
        lstm_sc[T - 1 - s:T - s, H:2 * H] = h[:, H:2 * H]   # backward dir, time T-1-s

    # ---- tanh -> dropout1 (identity) -> relu --------------------------------------
    act = jnp.maximum(jnp.tanh(lstm_sc[...]), 0.0)                      # (T, 256) f32
    act_bf = act.astype(bf16)

    # ---- attention linear + softmax over the feature axis (dim=1 on 2-D input) ----
    logits = (jnp.dot(act_bf, w_att_ref[...], preferred_element_type=f32)
              + b_att_ref[...])                                         # (T, 768)
    logits = logits - jnp.max(logits, axis=1, keepdims=True)
    e = jnp.exp(logits)
    attn = e * pl.reciprocal(jnp.sum(e, axis=1, keepdims=True), approx=True)

    # ---- sum_S(attn ⊗ x_high) == attn * sum_S(x_high); relu2; dropout2 identity ---
    xh = jnp.maximum(attn * xhs_ref[...], 0.0)                          # (T, 768)

    # ---- fc_concat, split to avoid the (T, 1024) concat; output padded to 128 -----
    out = (jnp.dot(act_bf, w_cat_low_ref[...], preferred_element_type=f32)
           + jnp.dot(xh.astype(bf16), w_cat_high_ref[...], preferred_element_type=f32)
           + b_cat_ref[...])                                            # (T, 128)
    out_ref[...] = out.astype(out_ref.dtype)


# ----------------------------------------------------------------------------
# Wrapper: parameter packing (pure layout algebra) + pallas_call
# ----------------------------------------------------------------------------
def _pack_params(params):
    """Fold module weights into kernel-friendly, gate-grouped / padded layouts."""

    def gate_group(w, direction):
        # Scatter PyTorch-ordered gate columns [i|f|g|o] (each H wide) of one direction
        # into the fused layout [i_f,i_b, f_f,f_b, g_f,g_b, o_f,o_b].
        out = jnp.zeros((w.shape[0], 8 * H), w.dtype)
        for g in range(4):
            c0 = g * 2 * H + direction * H
            out = out.at[:, c0:c0 + H].set(w[:, g * H:(g + 1) * H])
        return out

    num_class = params["w_cat"].shape[1]
    pad_n = NUM_CLASS_PAD - num_class

    w_fc = jnp.pad(params["w_fc"], ((0, D_LOW_PAD - D_LOW), (0, 0))).astype(jnp.bfloat16)
    # Combined input-to-hidden weight: rows 0:256 act on xp(t), rows 256:512 on xp(T-1-t).
    w_ih2 = jnp.concatenate([gate_group(params["w_ih_f"], 0),
                             gate_group(params["w_ih_b"], 1)], axis=0).astype(jnp.bfloat16)
    b2 = gate_group(params["b_f"], 0) + gate_group(params["b_b"], 1)
    # Block-diagonal hidden-to-hidden weight: rows 0:H act on h_fwd, rows H:2H on h_bwd.
    w_hh2 = jnp.concatenate([gate_group(params["w_hh_f"], 0),
                             gate_group(params["w_hh_b"], 1)], axis=0).astype(jnp.bfloat16)

    w_cat_low = jnp.pad(params["w_cat"][:D_PROJ], ((0, 0), (0, pad_n))).astype(jnp.bfloat16)
    w_cat_high = jnp.pad(params["w_cat"][D_PROJ:], ((0, 0), (0, pad_n))).astype(jnp.bfloat16)
    b_cat = jnp.pad(params["b_cat"], ((0, 0), (0, pad_n)))

    return dict(
        w_fc=w_fc, b_fc=params["b_fc"],
        w_ih2=w_ih2, b2=b2, w_hh2=w_hh2,
        w_att=params["w_att"].astype(jnp.bfloat16), b_att=params["b_att"],
        w_cat_low=w_cat_low, w_cat_high=w_cat_high, b_cat=b_cat,
    )


def tiam_forward(x_low, x_high, params):
    T = x_low.shape[0]
    num_class = params["w_cat"].shape[1]
    pk = _pack_params(params)

    # Pre-reduce x_high over S in the wrapper: attn does not depend on S, so
    # sum_S(attn ⊗ x_high) == attn * sum_S(x_high).  Shrinks the kernel DMA by S×.
    xhs = jnp.sum(x_high, axis=1)                                        # (T, 768) f32
    # Pad fc_low's K dim 312 -> 384 (lane-dense, unmasked loads); cast operand to bf16.
    x_low_p = jnp.pad(x_low, ((0, 0), (0, D_LOW_PAD - D_LOW))).astype(jnp.bfloat16)

    args = [x_low_p, xhs,
            pk["w_fc"], pk["b_fc"],
            pk["w_ih2"], pk["b2"], pk["w_hh2"],
            pk["w_att"], pk["b_att"],
            pk["w_cat_low"], pk["w_cat_high"], pk["b_cat"]]

    in_specs = [pl.BlockSpec(memory_space=pltpu.MemorySpace.VMEM) for _ in args]
    out_specs = pl.BlockSpec(memory_space=pltpu.MemorySpace.VMEM)

    out_pad = pl.pallas_call(
        tiam_kernel,
        out_shape=jax.ShapeDtypeStruct((T, NUM_CLASS_PAD), jnp.float32),
        in_specs=in_specs,
        out_specs=out_specs,
        scratch_shapes=[
            pltpu.VMEM((T, 8 * H), jnp.float32),   # gate pre-activations (both dirs)
            pltpu.VMEM((T, 2 * H), jnp.float32),   # bi-LSTM hidden states
        ],
    )(*args)
    return out_pad[:, :num_class]


# ----------------------------------------------------------------------------
# Pure-JAX f32 reference (mirrors TIAM.forward in eval mode, no Pallas)
# ----------------------------------------------------------------------------
def _tiam_reference(x_low, x_high, p):
    T = x_low.shape[0]
    xp = jnp.dot(x_low, p["w_fc"], preferred_element_type=jnp.float32) + p["b_fc"]

    def run_dir(w_ih, w_hh, b, reverse):
        h = jnp.zeros((1, H), jnp.float32)
        c = jnp.zeros((1, H), jnp.float32)
        outs = [None] * T
        order = range(T - 1, -1, -1) if reverse else range(T)
        for t in order:
            g = (jnp.dot(xp[t:t + 1, :], w_ih, preferred_element_type=jnp.float32)
                 + jnp.dot(h, w_hh, preferred_element_type=jnp.float32) + b)
            i_g = jax.nn.sigmoid(g[:, 0 * H:1 * H])
            f_g = jax.nn.sigmoid(g[:, 1 * H:2 * H])
            g_g = jnp.tanh(g[:, 2 * H:3 * H])
            o_g = jax.nn.sigmoid(g[:, 3 * H:4 * H])
            c = f_g * c + i_g * g_g
            h = o_g * jnp.tanh(c)
            outs[t] = h
        return jnp.concatenate(outs, axis=0)

    h_fwd = run_dir(p["w_ih_f"], p["w_hh_f"], p["b_f"], reverse=False)
    h_bwd = run_dir(p["w_ih_b"], p["w_hh_b"], p["b_b"], reverse=True)
    lstm_out = jnp.concatenate([h_fwd, h_bwd], axis=1)

    act = jnp.maximum(jnp.tanh(lstm_out), 0.0)
    logits = jnp.dot(act, p["w_att"], preferred_element_type=jnp.float32) + p["b_att"]
    logits = logits - jnp.max(logits, axis=1, keepdims=True)
    e = jnp.exp(logits)
    attn = e / jnp.sum(e, axis=1, keepdims=True)
    xh = jnp.sum(attn[:, None, :] * x_high, axis=1)
    xh = jnp.maximum(xh, 0.0)
    x_cat = jnp.concatenate([act, xh], axis=1)
    return jnp.dot(x_cat, p["w_cat"], preferred_element_type=jnp.float32) + p["b_cat"]


# ----------------------------------------------------------------------------
# Deterministic synthetic parameters (module-faithful shapes, stored (in, out))
# ----------------------------------------------------------------------------
def init_params(key, num_class=2):
    ks = jax.random.split(key, len(PARAM_ORDER))
    s = 0.05

    def rn(k, shape):
        return jax.random.normal(k, shape, jnp.float32) * s

    shapes = {
        "w_fc": (D_LOW, D_PROJ), "b_fc": (1, D_PROJ),
        "w_ih_f": (D_PROJ, 4 * H), "w_hh_f": (H, 4 * H), "b_f": (1, 4 * H),
        "w_ih_b": (D_PROJ, 4 * H), "w_hh_b": (H, 4 * H), "b_b": (1, 4 * H),
        "w_att": (D_PROJ, D_HIGH), "b_att": (1, D_HIGH),
        "w_cat": (D_PROJ + D_HIGH, num_class), "b_cat": (1, num_class),
    }
    return {name: rn(k, shapes[name]) for name, k in zip(PARAM_ORDER, ks)}


if __name__ == "__main__":
    T, S, num_class = 8, 4, 2
    key = jax.random.PRNGKey(0)
    k_low, k_high, k_par = jax.random.split(key, 3)

    x_low = jax.random.normal(k_low, (T, D_LOW), jnp.float32)
    x_high = jax.random.normal(k_high, (T, S, D_HIGH), jnp.float32)
    params = init_params(k_par, num_class)

    out = jax.jit(tiam_forward)(x_low, x_high, params)
    jax.block_until_ready(out)

    ref = jax.jit(_tiam_reference)(x_low, x_high, params)
    np.testing.assert_allclose(np.asarray(out), np.asarray(ref), rtol=2e-2, atol=2e-2)

    print("KERNEL_OK")
</pallas_src>

<mosaic_0001>
module attributes {stable_mosaic.version = 11 : i64} {
  func.func @tiam_kernel(%arg0: memref<8x384xbf16, #tpu.memory_space<vmem>>, %arg1: memref<8x768xf32, #tpu.memory_space<vmem>>, %arg2: memref<384x256xbf16, #tpu.memory_space<vmem>>, %arg3: memref<1x256xf32, #tpu.memory_space<vmem>>, %arg4: memref<512x1024xbf16, #tpu.memory_space<vmem>>, %arg5: memref<1x1024xf32, #tpu.memory_space<vmem>>, %arg6: memref<256x1024xbf16, #tpu.memory_space<vmem>>, %arg7: memref<256x768xbf16, #tpu.memory_space<vmem>>, %arg8: memref<1x768xf32, #tpu.memory_space<vmem>>, %arg9: memref<256x128xbf16, #tpu.memory_space<vmem>>, %arg10: memref<768x128xbf16, #tpu.memory_space<vmem>>, %arg11: memref<1x128xf32, #tpu.memory_space<vmem>>, %arg12: memref<8x128xf32, #tpu.memory_space<vmem>>, %arg13: memref<8x1024xf32, #tpu.memory_space<vmem>>, %arg14: memref<8x256xf32, #tpu.memory_space<vmem>>) attributes {dimension_semantics = [], scalar_prefetch = 0 : i64, scratch_operands = 2 : i64, tpu.core_type = #tpu.core_type<tc>} {
    %c0 = arith.constant 0 : index
    %c0_0 = arith.constant 0 : index
    %0 = vector.load %arg0[%c0, %c0_0] : memref<8x384xbf16, #tpu.memory_space<vmem>>, vector<8x384xbf16>
    %c0_1 = arith.constant 0 : index
    %c0_2 = arith.constant 0 : index
    %1 = vector.load %arg2[%c0_1, %c0_2] : memref<384x256xbf16, #tpu.memory_space<vmem>>, vector<384x256xbf16>
    %cst = arith.constant dense<0.000000e+00> : vector<8x256xf32>
    %2 = tpu.matmul %0, %1, %cst {dimension_numbers = #tpu.dot_dimension_numbers<[1], [0], [0], [1], [0, 0, 1, 1], [], []>} : vector<8x384xbf16>, vector<384x256xbf16>, vector<8x256xf32> -> vector<8x256xf32>
    %c0_3 = arith.constant 0 : index
    %c0_4 = arith.constant 0 : index
    %3 = vector.load %arg3[%c0_3, %c0_4] : memref<1x256xf32, #tpu.memory_space<vmem>>, vector<1x256xf32>
    %4 = vector.broadcast %3 : vector<1x256xf32> to vector<8x256xf32>
    %5 = arith.addf %2, %4 : vector<8x256xf32>
    %6 = vector.extract_strided_slice %5 {offsets = [7, 0], sizes = [1, 256], strides = [1, 1]} : vector<8x256xf32> to vector<1x256xf32>
    %7 = vector.extract_strided_slice %5 {offsets = [6, 0], sizes = [1, 256], strides = [1, 1]} : vector<8x256xf32> to vector<1x256xf32>
    %8 = vector.extract_strided_slice %5 {offsets = [5, 0], sizes = [1, 256], strides = [1, 1]} : vector<8x256xf32> to vector<1x256xf32>
    %9 = vector.extract_strided_slice %5 {offsets = [4, 0], sizes = [1, 256], strides = [1, 1]} : vector<8x256xf32> to vector<1x256xf32>
    %10 = vector.extract_strided_slice %5 {offsets = [3, 0], sizes = [1, 256], strides = [1, 1]} : vector<8x256xf32> to vector<1x256xf32>
    %11 = vector.extract_strided_slice %5 {offsets = [2, 0], sizes = [1, 256], strides = [1, 1]} : vector<8x256xf32> to vector<1x256xf32>
    %12 = vector.extract_strided_slice %5 {offsets = [1, 0], sizes = [1, 256], strides = [1, 1]} : vector<8x256xf32> to vector<1x256xf32>
    %13 = vector.extract_strided_slice %5 {offsets = [0, 0], sizes = [1, 256], strides = [1, 1]} : vector<8x256xf32> to vector<1x256xf32>
    %14 = tpu.concatenate %6, %7, %8, %9, %10, %11, %12, %13 in 0 : vector<1x256xf32>, vector<1x256xf32>, vector<1x256xf32>, vector<1x256xf32>, vector<1x256xf32>, vector<1x256xf32>, vector<1x256xf32>, vector<1x256xf32> -> vector<8x256xf32>
    %15 = tpu.concatenate %5, %14 in 1 : vector<8x256xf32>, vector<8x256xf32> -> vector<8x512xf32>
    %16 = arith.truncf %15 : vector<8x512xf32> to vector<8x512xbf16>
    %c0_5 = arith.constant 0 : index
    %c0_6 = arith.constant 0 : index
    %17 = vector.load %arg4[%c0_5, %c0_6] : memref<512x1024xbf16, #tpu.memory_space<vmem>>, vector<512x1024xbf16>
    %cst_7 = arith.constant dense<0.000000e+00> : vector<8x1024xf32>
    %18 = tpu.matmul %16, %17, %cst_7 {dimension_numbers = #tpu.dot_dimension_numbers<[1], [0], [0], [1], [0, 0, 1, 1], [], []>} : vector<8x512xbf16>, vector<512x1024xbf16>, vector<8x1024xf32> -> vector<8x1024xf32>
    %c0_8 = arith.constant 0 : index
    %c0_9 = arith.constant 0 : index
    %19 = vector.load %arg5[%c0_8, %c0_9] : memref<1x1024xf32, #tpu.memory_space<vmem>>, vector<1x1024xf32>
    %20 = vector.broadcast %19 : vector<1x1024xf32> to vector<8x1024xf32>
    %21 = arith.addf %18, %20 : vector<8x1024xf32>
    %c0_10 = arith.constant 0 : index
    %c0_11 = arith.constant 0 : index
    %22 = vector.load %arg13[%c0_10, %c0_11] : memref<8x1024xf32, #tpu.memory_space<vmem>>, vector<8x1024xf32>
    tpu.vector_store %arg13[%c0_10, %c0_11], %21 {strides = array<i32>} : memref<8x1024xf32, #tpu.memory_space<vmem>>, vector<8x1024xf32>,
    %cst_12 = arith.constant 0.000000e+00 : f32
    %23 = vector.broadcast %cst_12 : f32 to vector<1x256xf32>
    %cst_13 = arith.constant 0.000000e+00 : f32
    %24 = vector.broadcast %cst_13 : f32 to vector<1x256xf32>
    %25 = arith.truncf %23 : vector<1x256xf32> to vector<1x256xbf16>
    %c0_14 = arith.constant 0 : index
    %c0_15 = arith.constant 0 : index
    %26 = vector.load %arg6[%c0_14, %c0_15] : memref<256x1024xbf16, #tpu.memory_space<vmem>>, vector<256x1024xbf16>
    %cst_16 = arith.constant dense<0.000000e+00> : vector<1x1024xf32>
    %27 = tpu.matmul %25, %26, %cst_16 {dimension_numbers = #tpu.dot_dimension_numbers<[1], [0], [0], [1], [0, 0, 1, 1], [], []>} : vector<1x256xbf16>, vector<256x1024xbf16>, vector<1x1024xf32> -> vector<1x1024xf32>
    %c0_17 = arith.constant 0 : index
    %c0_18 = arith.constant 0 : index
    %28 = vector.load %arg13[%c0_17, %c0_18] : memref<8x1024xf32, #tpu.memory_space<vmem>>, vector<1x1024xf32>
    %29 = arith.addf %28, %27 : vector<1x1024xf32>
    %30 = vector.extract_strided_slice %29 {offsets = [0, 0], sizes = [1, 256], strides = [1, 1]} : vector<1x1024xf32> to vector<1x256xf32>
    %31 = arith.negf %30 : vector<1x256xf32>
    %32 = math.exp %31 : vector<1x256xf32>
    %cst_19 = arith.constant 1.000000e+00 : f32
    %33 = vector.broadcast %cst_19 : f32 to vector<1x256xf32>
    %34 = arith.addf %33, %32 : vector<1x256xf32>
    %35 = arith.divf %33, %34 : vector<1x256xf32>
    %36 = vector.extract_strided_slice %29 {offsets = [0, 256], sizes = [1, 256], strides = [1, 1]} : vector<1x1024xf32> to vector<1x256xf32>
    %37 = arith.negf %36 : vector<1x256xf32>
    %38 = math.exp %37 : vector<1x256xf32>
    %cst_20 = arith.constant 1.000000e+00 : f32
    %39 = vector.broadcast %cst_20 : f32 to vector<1x256xf32>
    %40 = arith.addf %39, %38 : vector<1x256xf32>
    %41 = arith.divf %39, %40 : vector<1x256xf32>
    %42 = vector.extract_strided_slice %29 {offsets = [0, 512], sizes = [1, 256], strides = [1, 1]} : vector<1x1024xf32> to vector<1x256xf32>
    %43 = math.tanh %42 : vector<1x256xf32>
    %44 = vector.extract_strided_slice %29 {offsets = [0, 768], sizes = [1, 256], strides = [1, 1]} : vector<1x1024xf32> to vector<1x256xf32>
    %45 = arith.negf %44 : vector<1x256xf32>
    %46 = math.exp %45 : vector<1x256xf32>
    %cst_21 = arith.constant 1.000000e+00 : f32
    %47 = vector.broadcast %cst_21 : f32 to vector<1x256xf32>
    %48 = arith.addf %47, %46 : vector<1x256xf32>
    %49 = arith.divf %47, %48 : vector<1x256xf32>
    %50 = arith.mulf %41, %24 : vector<1x256xf32>
    %51 = arith.mulf %35, %43 : vector<1x256xf32>
    %52 = arith.addf %50, %51 : vector<1x256xf32>
    %53 = math.tanh %52 : vector<1x256xf32>
    %54 = arith.mulf %49, %53 : vector<1x256xf32>
    %55 = vector.extract_strided_slice %54 {offsets = [0, 0], sizes = [1, 128], strides = [1, 1]} : vector<1x256xf32> to vector<1x128xf32>
    %c0_22 = arith.constant 0 : index
    %c0_23 = arith.constant 0 : index
    %56 = vector.load %arg14[%c0_22, %c0_23] : memref<8x256xf32, #tpu.memory_space<vmem>>, vector<1x128xf32>
    tpu.vector_store %arg14[%c0_22, %c0_23], %55 {strides = array<i32>} : memref<8x256xf32, #tpu.memory_space<vmem>>, vector<1x128xf32>,
    %57 = vector.extract_strided_slice %54 {offsets = [0, 128], sizes = [1, 128], strides = [1, 1]} : vector<1x256xf32> to vector<1x128xf32>
    %c7 = arith.constant 7 : index
    %c128 = arith.constant 128 : index
    %58 = vector.load %arg14[%c7, %c128] : memref<8x256xf32, #tpu.memory_space<vmem>>, vector<1x128xf32>
    tpu.vector_store %arg14[%c7, %c128], %57 {strides = array<i32>} : memref<8x256xf32, #tpu.memory_space<vmem>>, vector<1x128xf32>,
    %59 = arith.truncf %54 : vector<1x256xf32> to vector<1x256xbf16>
    %c0_24 = arith.constant 0 : index
    %c0_25 = arith.constant 0 : index
    %60 = vector.load %arg6[%c0_24, %c0_25] : memref<256x1024xbf16, #tpu.memory_space<vmem>>, vector<256x1024xbf16>
    %cst_26 = arith.constant dense<0.000000e+00> : vector<1x1024xf32>
    %61 = tpu.matmul %59, %60, %cst_26 {dimension_numbers = #tpu.dot_dimension_numbers<[1], [0], [0], [1], [0, 0, 1, 1], [], []>} : vector<1x256xbf16>, vector<256x1024xbf16>, vector<1x1024xf32> -> vector<1x1024xf32>
    %c1 = arith.constant 1 : index
    %c0_27 = arith.constant 0 : index
    %62 = vector.load %arg13[%c1, %c0_27] : memref<8x1024xf32, #tpu.memory_space<vmem>>, vector<1x1024xf32>
    %63 = arith.addf %62, %61 : vector<1x1024xf32>
    %64 = vector.extract_strided_slice %63 {offsets = [0, 0], sizes = [1, 256], strides = [1, 1]} : vector<1x1024xf32> to vector<1x256xf32>
    %65 = arith.negf %64 : vector<1x256xf32>
    %66 = math.exp %65 : vector<1x256xf32>
    %cst_28 = arith.constant 1.000000e+00 : f32
    %67 = vector.broadcast %cst_28 : f32 to vector<1x256xf32>
    %68 = arith.addf %67, %66 : vector<1x256xf32>
    %69 = arith.divf %67, %68 : vector<1x256xf32>
    %70 = vector.extract_strided_slice %63 {offsets = [0, 256], sizes = [1, 256], strides = [1, 1]} : vector<1x1024xf32> to vector<1x256xf32>
    %71 = arith.negf %70 : vector<1x256xf32>
    %72 = math.exp %71 : vector<1x256xf32>
    %cst_29 = arith.constant 1.000000e+00 : f32
    %73 = vector.broadcast %cst_29 : f32 to vector<1x256xf32>
    %74 = arith.addf %73, %72 : vector<1x256xf32>
    %75 = arith.divf %73, %74 : vector<1x256xf32>
    %76 = vector.extract_strided_slice %63 {offsets = [0, 512], sizes = [1, 256], strides = [1, 1]} : vector<1x1024xf32> to vector<1x256xf32>
    %77 = math.tanh %76 : vector<1x256xf32>
    %78 = vector.extract_strided_slice %63 {offsets = [0, 768], sizes = [1, 256], strides = [1, 1]} : vector<1x1024xf32> to vector<1x256xf32>
    %79 = arith.negf %78 : vector<1x256xf32>
    %80 = math.exp %79 : vector<1x256xf32>
    %cst_30 = arith.constant 1.000000e+00 : f32
    %81 = vector.broadcast %cst_30 : f32 to vector<1x256xf32>
    %82 = arith.addf %81, %80 : vector<1x256xf32>
    %83 = arith.divf %81, %82 : vector<1x256xf32>
    %84 = arith.mulf %75, %52 : vector<1x256xf32>
    %85 = arith.mulf %69, %77 : vector<1x256xf32>
    %86 = arith.addf %84, %85 : vector<1x256xf32>
    %87 = math.tanh %86 : vector<1x256xf32>
    %88 = arith.mulf %83, %87 : vector<1x256xf32>
    %89 = vector.extract_strided_slice %88 {offsets = [0, 0], sizes = [1, 128], strides = [1, 1]} : vector<1x256xf32> to vector<1x128xf32>
    %c1_31 = arith.constant 1 : index
    %c0_32 = arith.constant 0 : index
    %90 = vector.load %arg14[%c1_31, %c0_32] : memref<8x256xf32, #tpu.memory_space<vmem>>, vector<1x128xf32>
    tpu.vector_store %arg14[%c1_31, %c0_32], %89 {strides = array<i32>} : memref<8x256xf32, #tpu.memory_space<vmem>>, vector<1x128xf32>,
    %91 = vector.extract_strided_slice %88 {offsets = [0, 128], sizes = [1, 128], strides = [1, 1]} : vector<1x256xf32> to vector<1x128xf32>
    %c6 = arith.constant 6 : index
    %c128_33 = arith.constant 128 : index
    %92 = vector.load %arg14[%c6, %c128_33] : memref<8x256xf32, #tpu.memory_space<vmem>>, vector<1x128xf32>
    tpu.vector_store %arg14[%c6, %c128_33], %91 {strides = array<i32>} : memref<8x256xf32, #tpu.memory_space<vmem>>, vector<1x128xf32>,
    %93 = arith.truncf %88 : vector<1x256xf32> to vector<1x256xbf16>
    %c0_34 = arith.constant 0 : index
    %c0_35 = arith.constant 0 : index
    %94 = vector.load %arg6[%c0_34, %c0_35] : memref<256x1024xbf16, #tpu.memory_space<vmem>>, vector<256x1024xbf16>
    %cst_36 = arith.constant dense<0.000000e+00> : vector<1x1024xf32>
    %95 = tpu.matmul %93, %94, %cst_36 {dimension_numbers = #tpu.dot_dimension_numbers<[1], [0], [0], [1], [0, 0, 1, 1], [], []>} : vector<1x256xbf16>, vector<256x1024xbf16>, vector<1x1024xf32> -> vector<1x1024xf32>
    %c2 = arith.constant 2 : index
    %c0_37 = arith.constant 0 : index
    %96 = vector.load %arg13[%c2, %c0_37] : memref<8x1024xf32, #tpu.memory_space<vmem>>, vector<1x1024xf32>
    %97 = arith.addf %96, %95 : vector<1x1024xf32>
    %98 = vector.extract_strided_slice %97 {offsets = [0, 0], sizes = [1, 256], strides = [1, 1]} : vector<1x1024xf32> to vector<1x256xf32>
    %99 = arith.negf %98 : vector<1x256xf32>
    %100 = math.exp %99 : vector<1x256xf32>
    %cst_38 = arith.constant 1.000000e+00 : f32
    %101 = vector.broadcast %cst_38 : f32 to vector<1x256xf32>
    %102 = arith.addf %101, %100 : vector<1x256xf32>
    %103 = arith.divf %101, %102 : vector<1x256xf32>
    %104 = vector.extract_strided_slice %97 {offsets = [0, 256], sizes = [1, 256], strides = [1, 1]} : vector<1x1024xf32> to vector<1x256xf32>
    %105 = arith.negf %104 : vector<1x256xf32>
    %106 = math.exp %105 : vector<1x256xf32>
    %cst_39 = arith.constant 1.000000e+00 : f32
    %107 = vector.broadcast %cst_39 : f32 to vector<1x256xf32>
    %108 = arith.addf %107, %106 : vector<1x256xf32>
    %109 = arith.divf %107, %108 : vector<1x256xf32>
    %110 = vector.extract_strided_slice %97 {offsets = [0, 512], sizes = [1, 256], strides = [1, 1]} : vector<1x1024xf32> to vector<1x256xf32>
    %111 = math.tanh %110 : vector<1x256xf32>
    %112 = vector.extract_strided_slice %97 {offsets = [0, 768], sizes = [1, 256], strides = [1, 1]} : vector<1x1024xf32> to vector<1x256xf32>
    %113 = arith.negf %112 : vector<1x256xf32>
    %114 = math.exp %113 : vector<1x256xf32>
    %cst_40 = arith.constant 1.000000e+00 : f32
    %115 = vector.broadcast %cst_40 : f32 to vector<1x256xf32>
    %116 = arith.addf %115, %114 : vector<1x256xf32>
    %117 = arith.divf %115, %116 : vector<1x256xf32>
    %118 = arith.mulf %109, %86 : vector<1x256xf32>
    %119 = arith.mulf %103, %111 : vector<1x256xf32>
    %120 = arith.addf %118, %119 : vector<1x256xf32>
    %121 = math.tanh %120 : vector<1x256xf32>
    %122 = arith.mulf %117, %121 : vector<1x256xf32>
    %123 = vector.extract_strided_slice %122 {offsets = [0, 0], sizes = [1, 128], strides = [1, 1]} : vector<1x256xf32> to vector<1x128xf32>
    %c2_41 = arith.constant 2 : index
    %c0_42 = arith.constant 0 : index
    %124 = vector.load %arg14[%c2_41, %c0_42] : memref<8x256xf32, #tpu.memory_space<vmem>>, vector<1x128xf32>
    tpu.vector_store %arg14[%c2_41, %c0_42], %123 {strides = array<i32>} : memref<8x256xf32, #tpu.memory_space<vmem>>, vector<1x128xf32>,
    %125 = vector.extract_strided_slice %122 {offsets = [0, 128], sizes = [1, 128], strides = [1, 1]} : vector<1x256xf32> to vector<1x128xf32>
    %c5 = arith.constant 5 : index
    %c128_43 = arith.constant 128 : index
    %126 = vector.load %arg14[%c5, %c128_43] : memref<8x256xf32, #tpu.memory_space<vmem>>, vector<1x128xf32>
    tpu.vector_store %arg14[%c5, %c128_43], %125 {strides = array<i32>} : memref<8x256xf32, #tpu.memory_space<vmem>>, vector<1x128xf32>,
    %127 = arith.truncf %122 : vector<1x256xf32> to vector<1x256xbf16>
    %c0_44 = arith.constant 0 : index
    %c0_45 = arith.constant 0 : index
    %128 = vector.load %arg6[%c0_44, %c0_45] : memref<256x1024xbf16, #tpu.memory_space<vmem>>, vector<256x1024xbf16>
    %cst_46 = arith.constant dense<0.000000e+00> : vector<1x1024xf32>
    %129 = tpu.matmul %127, %128, %cst_46 {dimension_numbers = #tpu.dot_dimension_numbers<[1], [0], [0], [1], [0, 0, 1, 1], [], []>} : vector<1x256xbf16>, vector<256x1024xbf16>, vector<1x1024xf32> -> vector<1x1024xf32>
    %c3 = arith.constant 3 : index
    %c0_47 = arith.constant 0 : index
    %130 = vector.load %arg13[%c3, %c0_47] : memref<8x1024xf32, #tpu.memory_space<vmem>>, vector<1x1024xf32>
    %131 = arith.addf %130, %129 : vector<1x1024xf32>
    %132 = vector.extract_strided_slice %131 {offsets = [0, 0], sizes = [1, 256], strides = [1, 1]} : vector<1x1024xf32> to vector<1x256xf32>
    %133 = arith.negf %132 : vector<1x256xf32>
    %134 = math.exp %133 : vector<1x256xf32>
    %cst_48 = arith.constant 1.000000e+00 : f32
    %135 = vector.broadcast %cst_48 : f32 to vector<1x256xf32>
    %136 = arith.addf %135, %134 : vector<1x256xf32>
    %137 = arith.divf %135, %136 : vector<1x256xf32>
    %138 = vector.extract_strided_slice %131 {offsets = [0, 256], sizes = [1, 256], strides = [1, 1]} : vector<1x1024xf32> to vector<1x256xf32>
    %139 = arith.negf %138 : vector<1x256xf32>
    %140 = math.exp %139 : vector<1x256xf32>
    %cst_49 = arith.constant 1.000000e+00 : f32
    %141 = vector.broadcast %cst_49 : f32 to vector<1x256xf32>
    %142 = arith.addf %141, %140 : vector<1x256xf32>
    %143 = arith.divf %141, %142 : vector<1x256xf32>
    %144 = vector.extract_strided_slice %131 {offsets = [0, 512], sizes = [1, 256], strides = [1, 1]} : vector<1x1024xf32> to vector<1x256xf32>
    %145 = math.tanh %144 : vector<1x256xf32>
    %146 = vector.extract_strided_slice %131 {offsets = [0, 768], sizes = [1, 256], strides = [1, 1]} : vector<1x1024xf32> to vector<1x256xf32>
    %147 = arith.negf %146 : vector<1x256xf32>
    %148 = math.exp %147 : vector<1x256xf32>
    %cst_50 = arith.constant 1.000000e+00 : f32
    %149 = vector.broadcast %cst_50 : f32 to vector<1x256xf32>
    %150 = arith.addf %149, %148 : vector<1x256xf32>
    %151 = arith.divf %149, %150 : vector<1x256xf32>
    %152 = arith.mulf %143, %120 : vector<1x256xf32>
    %153 = arith.mulf %137, %145 : vector<1x256xf32>
    %154 = arith.addf %152, %153 : vector<1x256xf32>
    %155 = math.tanh %154 : vector<1x256xf32>
    %156 = arith.mulf %151, %155 : vector<1x256xf32>
    %157 = vector.extract_strided_slice %156 {offsets = [0, 0], sizes = [1, 128], strides = [1, 1]} : vector<1x256xf32> to vector<1x128xf32>
    %c3_51 = arith.constant 3 : index
    %c0_52 = arith.constant 0 : index
    %158 = vector.load %arg14[%c3_51, %c0_52] : memref<8x256xf32, #tpu.memory_space<vmem>>, vector<1x128xf32>
    tpu.vector_store %arg14[%c3_51, %c0_52], %157 {strides = array<i32>} : memref<8x256xf32, #tpu.memory_space<vmem>>, vector<1x128xf32>,
    %159 = vector.extract_strided_slice %156 {offsets = [0, 128], sizes = [1, 128], strides = [1, 1]} : vector<1x256xf32> to vector<1x128xf32>
    %c4 = arith.constant 4 : index
    %c128_53 = arith.constant 128 : index
    %160 = vector.load %arg14[%c4, %c128_53] : memref<8x256xf32, #tpu.memory_space<vmem>>, vector<1x128xf32>
    tpu.vector_store %arg14[%c4, %c128_53], %159 {strides = array<i32>} : memref<8x256xf32, #tpu.memory_space<vmem>>, vector<1x128xf32>,
    %161 = arith.truncf %156 : vector<1x256xf32> to vector<1x256xbf16>
    %c0_54 = arith.constant 0 : index
    %c0_55 = arith.constant 0 : index
    %162 = vector.load %arg6[%c0_54, %c0_55] : memref<256x1024xbf16, #tpu.memory_space<vmem>>, vector<256x1024xbf16>
    %cst_56 = arith.constant dense<0.000000e+00> : vector<1x1024xf32>
    %163 = tpu.matmul %161, %162, %cst_56 {dimension_numbers = #tpu.dot_dimension_numbers<[1], [0], [0], [1], [0, 0, 1, 1], [], []>} : vector<1x256xbf16>, vector<256x1024xbf16>, vector<1x1024xf32> -> vector<1x1024xf32>
    %c4_57 = arith.constant 4 : index
    %c0_58 = arith.constant 0 : index
    %164 = vector.load %arg13[%c4_57, %c0_58] : memref<8x1024xf32, #tpu.memory_space<vmem>>, vector<1x1024xf32>
    %165 = arith.addf %164, %163 : vector<1x1024xf32>
    %166 = vector.extract_strided_slice %165 {offsets = [0, 0], sizes = [1, 256], strides = [1, 1]} : vector<1x1024xf32> to vector<1x256xf32>
    %167 = arith.negf %166 : vector<1x256xf32>
    %168 = math.exp %167 : vector<1x256xf32>
    %cst_59 = arith.constant 1.000000e+00 : f32
    %169 = vector.broadcast %cst_59 : f32 to vector<1x256xf32>
    %170 = arith.addf %169, %168 : vector<1x256xf32>
    %171 = arith.divf %169, %170 : vector<1x256xf32>
    %172 = vector.extract_strided_slice %165 {offsets = [0, 256], sizes = [1, 256], strides = [1, 1]} : vector<1x1024xf32> to vector<1x256xf32>
    %173 = arith.negf %172 : vector<1x256xf32>
    %174 = math.exp %173 : vector<1x256xf32>
    %cst_60 = arith.constant 1.000000e+00 : f32
    %175 = vector.broadcast %cst_60 : f32 to vector<1x256xf32>
    %176 = arith.addf %175, %174 : vector<1x256xf32>
    %177 = arith.divf %175, %176 : vector<1x256xf32>
    %178 = vector.extract_strided_slice %165 {offsets = [0, 512], sizes = [1, 256], strides = [1, 1]} : vector<1x1024xf32> to vector<1x256xf32>
    %179 = math.tanh %178 : vector<1x256xf32>
    %180 = vector.extract_strided_slice %165 {offsets = [0, 768], sizes = [1, 256], strides = [1, 1]} : vector<1x1024xf32> to vector<1x256xf32>
    %181 = arith.negf %180 : vector<1x256xf32>
    %182 = math.exp %181 : vector<1x256xf32>
    %cst_61 = arith.constant 1.000000e+00 : f32
    %183 = vector.broadcast %cst_61 : f32 to vector<1x256xf32>
    %184 = arith.addf %183, %182 : vector<1x256xf32>
    %185 = arith.divf %183, %184 : vector<1x256xf32>
    %186 = arith.mulf %177, %154 : vector<1x256xf32>
    %187 = arith.mulf %171, %179 : vector<1x256xf32>
    %188 = arith.addf %186, %187 : vector<1x256xf32>
    %189 = math.tanh %188 : vector<1x256xf32>
    %190 = arith.mulf %185, %189 : vector<1x256xf32>
    %191 = vector.extract_strided_slice %190 {offsets = [0, 0], sizes = [1, 128], strides = [1, 1]} : vector<1x256xf32> to vector<1x128xf32>
    %c4_62 = arith.constant 4 : index
    %c0_63 = arith.constant 0 : index
    %192 = vector.load %arg14[%c4_62, %c0_63] : memref<8x256xf32, #tpu.memory_space<vmem>>, vector<1x128xf32>
    tpu.vector_store %arg14[%c4_62, %c0_63], %191 {strides = array<i32>} : memref<8x256xf32, #tpu.memory_space<vmem>>, vector<1x128xf32>,
    %193 = vector.extract_strided_slice %190 {offsets = [0, 128], sizes = [1, 128], strides = [1, 1]} : vector<1x256xf32> to vector<1x128xf32>
    %c3_64 = arith.constant 3 : index
    %c128_65 = arith.constant 128 : index
    %194 = vector.load %arg14[%c3_64, %c128_65] : memref<8x256xf32, #tpu.memory_space<vmem>>, vector<1x128xf32>
    tpu.vector_store %arg14[%c3_64, %c128_65], %193 {strides = array<i32>} : memref<8x256xf32, #tpu.memory_space<vmem>>, vector<1x128xf32>,
    %195 = arith.truncf %190 : vector<1x256xf32> to vector<1x256xbf16>
    %c0_66 = arith.constant 0 : index
    %c0_67 = arith.constant 0 : index
    %196 = vector.load %arg6[%c0_66, %c0_67] : memref<256x1024xbf16, #tpu.memory_space<vmem>>, vector<256x1024xbf16>
    %cst_68 = arith.constant dense<0.000000e+00> : vector<1x1024xf32>
    %197 = tpu.matmul %195, %196, %cst_68 {dimension_numbers = #tpu.dot_dimension_numbers<[1], [0], [0], [1], [0, 0, 1, 1], [], []>} : vector<1x256xbf16>, vector<256x1024xbf16>, vector<1x1024xf32> -> vector<1x1024xf32>
    %c5_69 = arith.constant 5 : index
    %c0_70 = arith.constant 0 : index
    %198 = vector.load %arg13[%c5_69, %c0_70] : memref<8x1024xf32, #tpu.memory_space<vmem>>, vector<1x1024xf32>
    %199 = arith.addf %198, %197 : vector<1x1024xf32>
    %200 = vector.extract_strided_slice %199 {offsets = [0, 0], sizes = [1, 256], strides = [1, 1]} : vector<1x1024xf32> to vector<1x256xf32>
    %201 = arith.negf %200 : vector<1x256xf32>
    %202 = math.exp %201 : vector<1x256xf32>
    %cst_71 = arith.constant 1.000000e+00 : f32
    %203 = vector.broadcast %cst_71 : f32 to vector<1x256xf32>
    %204 = arith.addf %203, %202 : vector<1x256xf32>
    %205 = arith.divf %203, %204 : vector<1x256xf32>
    %206 = vector.extract_strided_slice %199 {offsets = [0, 256], sizes = [1, 256], strides = [1, 1]} : vector<1x1024xf32> to vector<1x256xf32>
    %207 = arith.negf %206 : vector<1x256xf32>
    %208 = math.exp %207 : vector<1x256xf32>
    %cst_72 = arith.constant 1.000000e+00 : f32
    %209 = vector.broadcast %cst_72 : f32 to vector<1x256xf32>
    %210 = arith.addf %209, %208 : vector<1x256xf32>
    %211 = arith.divf %209, %210 : vector<1x256xf32>
    %212 = vector.extract_strided_slice %199 {offsets = [0, 512], sizes = [1, 256], strides = [1, 1]} : vector<1x1024xf32> to vector<1x256xf32>
    %213 = math.tanh %212 : vector<1x256xf32>
    %214 = vector.extract_strided_slice %199 {offsets = [0, 768], sizes = [1, 256], strides = [1, 1]} : vector<1x1024xf32> to vector<1x256xf32>
    %215 = arith.negf %214 : vector<1x256xf32>
    %216 = math.exp %215 : vector<1x256xf32>
    %cst_73 = arith.constant 1.000000e+00 : f32
    %217 = vector.broadcast %cst_73 : f32 to vector<1x256xf32>
    %218 = arith.addf %217, %216 : vector<1x256xf32>
    %219 = arith.divf %217, %218 : vector<1x256xf32>
    %220 = arith.mulf %211, %188 : vector<1x256xf32>
    %221 = arith.mulf %205, %213 : vector<1x256xf32>
    %222 = arith.addf %220, %221 : vector<1x256xf32>
    %223 = math.tanh %222 : vector<1x256xf32>
    %224 = arith.mulf %219, %223 : vector<1x256xf32>
    %225 = vector.extract_strided_slice %224 {offsets = [0, 0], sizes = [1, 128], strides = [1, 1]} : vector<1x256xf32> to vector<1x128xf32>
    %c5_74 = arith.constant 5 : index
    %c0_75 = arith.constant 0 : index
    %226 = vector.load %arg14[%c5_74, %c0_75] : memref<8x256xf32, #tpu.memory_space<vmem>>, vector<1x128xf32>
    tpu.vector_store %arg14[%c5_74, %c0_75], %225 {strides = array<i32>} : memref<8x256xf32, #tpu.memory_space<vmem>>, vector<1x128xf32>,
    %227 = vector.extract_strided_slice %224 {offsets = [0, 128], sizes = [1, 128], strides = [1, 1]} : vector<1x256xf32> to vector<1x128xf32>
    %c2_76 = arith.constant 2 : index
    %c128_77 = arith.constant 128 : index
    %228 = vector.load %arg14[%c2_76, %c128_77] : memref<8x256xf32, #tpu.memory_space<vmem>>, vector<1x128xf32>
    tpu.vector_store %arg14[%c2_76, %c128_77], %227 {strides = array<i32>} : memref<8x256xf32, #tpu.memory_space<vmem>>, vector<1x128xf32>,
    %229 = arith.truncf %224 : vector<1x256xf32> to vector<1x256xbf16>
    %c0_78 = arith.constant 0 : index
    %c0_79 = arith.constant 0 : index
    %230 = vector.load %arg6[%c0_78, %c0_79] : memref<256x1024xbf16, #tpu.memory_space<vmem>>, vector<256x1024xbf16>
    %cst_80 = arith.constant dense<0.000000e+00> : vector<1x1024xf32>
    %231 = tpu.matmul %229, %230, %cst_80 {dimension_numbers = #tpu.dot_dimension_numbers<[1], [0], [0], [1], [0, 0, 1, 1], [], []>} : vector<1x256xbf16>, vector<256x1024xbf16>, vector<1x1024xf32> -> vector<1x1024xf32>
    %c6_81 = arith.constant 6 : index
    %c0_82 = arith.constant 0 : index
    %232 = vector.load %arg13[%c6_81, %c0_82] : memref<8x1024xf32, #tpu.memory_space<vmem>>, vector<1x1024xf32>
    %233 = arith.addf %232, %231 : vector<1x1024xf32>
    %234 = vector.extract_strided_slice %233 {offsets = [0, 0], sizes = [1, 256], strides = [1, 1]} : vector<1x1024xf32> to vector<1x256xf32>
    %235 = arith.negf %234 : vector<1x256xf32>
    %236 = math.exp %235 : vector<1x256xf32>
    %cst_83 = arith.constant 1.000000e+00 : f32
    %237 = vector.broadcast %cst_83 : f32 to vector<1x256xf32>
    %238 = arith.addf %237, %236 : vector<1x256xf32>
    %239 = arith.divf %237, %238 : vector<1x256xf32>
    %240 = vector.extract_strided_slice %233 {offsets = [0, 256], sizes = [1, 256], strides = [1, 1]} : vector<1x1024xf32> to vector<1x256xf32>
    %241 = arith.negf %240 : vector<1x256xf32>
    %242 = math.exp %241 : vector<1x256xf32>
    %cst_84 = arith.constant 1.000000e+00 : f32
    %243 = vector.broadcast %cst_84 : f32 to vector<1x256xf32>
    %244 = arith.addf %243, %242 : vector<1x256xf32>
    %245 = arith.divf %243, %244 : vector<1x256xf32>
    %246 = vector.extract_strided_slice %233 {offsets = [0, 512], sizes = [1, 256], strides = [1, 1]} : vector<1x1024xf32> to vector<1x256xf32>
    %247 = math.tanh %246 : vector<1x256xf32>
    %248 = vector.extract_strided_slice %233 {offsets = [0, 768], sizes = [1, 256], strides = [1, 1]} : vector<1x1024xf32> to vector<1x256xf32>
    %249 = arith.negf %248 : vector<1x256xf32>
    %250 = math.exp %249 : vector<1x256xf32>
    %cst_85 = arith.constant 1.000000e+00 : f32
    %251 = vector.broadcast %cst_85 : f32 to vector<1x256xf32>
    %252 = arith.addf %251, %250 : vector<1x256xf32>
    %253 = arith.divf %251, %252 : vector<1x256xf32>
    %254 = arith.mulf %245, %222 : vector<1x256xf32>
    %255 = arith.mulf %239, %247 : vector<1x256xf32>
    %256 = arith.addf %254, %255 : vector<1x256xf32>
    %257 = math.tanh %256 : vector<1x256xf32>
    %258 = arith.mulf %253, %257 : vector<1x256xf32>
    %259 = vector.extract_strided_slice %258 {offsets = [0, 0], sizes = [1, 128], strides = [1, 1]} : vector<1x256xf32> to vector<1x128xf32>
    %c6_86 = arith.constant 6 : index
    %c0_87 = arith.constant 0 : index
    %260 = vector.load %arg14[%c6_86, %c0_87] : memref<8x256xf32, #tpu.memory_space<vmem>>, vector<1x128xf32>
    tpu.vector_store %arg14[%c6_86, %c0_87], %259 {strides = array<i32>} : memref<8x256xf32, #tpu.memory_space<vmem>>, vector<1x128xf32>,
    %261 = vector.extract_strided_slice %258 {offsets = [0, 128], sizes = [1, 128], strides = [1, 1]} : vector<1x256xf32> to vector<1x128xf32>
    %c1_88 = arith.constant 1 : index
    %c128_89 = arith.constant 128 : index
    %262 = vector.load %arg14[%c1_88, %c128_89] : memref<8x256xf32, #tpu.memory_space<vmem>>, vector<1x128xf32>
    tpu.vector_store %arg14[%c1_88, %c128_89], %261 {strides = array<i32>} : memref<8x256xf32, #tpu.memory_space<vmem>>, vector<1x128xf32>,
    %263 = arith.truncf %258 : vector<1x256xf32> to vector<1x256xbf16>
    %c0_90 = arith.constant 0 : index
    %c0_91 = arith.constant 0 : index
    %264 = vector.load %arg6[%c0_90, %c0_91] : memref<256x1024xbf16, #tpu.memory_space<vmem>>, vector<256x1024xbf16>
    %cst_92 = arith.constant dense<0.000000e+00> : vector<1x1024xf32>
    %265 = tpu.matmul %263, %264, %cst_92 {dimension_numbers = #tpu.dot_dimension_numbers<[1], [0], [0], [1], [0, 0, 1, 1], [], []>} : vector<1x256xbf16>, vector<256x1024xbf16>, vector<1x1024xf32> -> vector<1x1024xf32>
    %c7_93 = arith.constant 7 : index
    %c0_94 = arith.constant 0 : index
    %266 = vector.load %arg13[%c7_93, %c0_94] : memref<8x1024xf32, #tpu.memory_space<vmem>>, vector<1x1024xf32>
    %267 = arith.addf %266, %265 : vector<1x1024xf32>
    %268 = vector.extract_strided_slice %267 {offsets = [0, 0], sizes = [1, 256], strides = [1, 1]} : vector<1x1024xf32> to vector<1x256xf32>
    %269 = arith.negf %268 : vector<1x256xf32>
    %270 = math.exp %269 : vector<1x256xf32>
    %cst_95 = arith.constant 1.000000e+00 : f32
    %271 = vector.broadcast %cst_95 : f32 to vector<1x256xf32>
    %272 = arith.addf %271, %270 : vector<1x256xf32>
    %273 = arith.divf %271, %272 : vector<1x256xf32>
    %274 = vector.extract_strided_slice %267 {offsets = [0, 256], sizes = [1, 256], strides = [1, 1]} : vector<1x1024xf32> to vector<1x256xf32>
    %275 = arith.negf %274 : vector<1x256xf32>
    %276 = math.exp %275 : vector<1x256xf32>
    %cst_96 = arith.constant 1.000000e+00 : f32
    %277 = vector.broadcast %cst_96 : f32 to vector<1x256xf32>
    %278 = arith.addf %277, %276 : vector<1x256xf32>
    %279 = arith.divf %277, %278 : vector<1x256xf32>
    %280 = vector.extract_strided_slice %267 {offsets = [0, 512], sizes = [1, 256], strides = [1, 1]} : vector<1x1024xf32> to vector<1x256xf32>
    %281 = math.tanh %280 : vector<1x256xf32>
    %282 = vector.extract_strided_slice %267 {offsets = [0, 768], sizes = [1, 256], strides = [1, 1]} : vector<1x1024xf32> to vector<1x256xf32>
    %283 = arith.negf %282 : vector<1x256xf32>
    %284 = math.exp %283 : vector<1x256xf32>
    %cst_97 = arith.constant 1.000000e+00 : f32
    %285 = vector.broadcast %cst_97 : f32 to vector<1x256xf32>
    %286 = arith.addf %285, %284 : vector<1x256xf32>
    %287 = arith.divf %285, %286 : vector<1x256xf32>
    %288 = arith.mulf %279, %256 : vector<1x256xf32>
    %289 = arith.mulf %273, %281 : vector<1x256xf32>
    %290 = arith.addf %288, %289 : vector<1x256xf32>
    %291 = math.tanh %290 : vector<1x256xf32>
    %292 = arith.mulf %287, %291 : vector<1x256xf32>
    %293 = vector.extract_strided_slice %292 {offsets = [0, 0], sizes = [1, 128], strides = [1, 1]} : vector<1x256xf32> to vector<1x128xf32>
    %c7_98 = arith.constant 7 : index
    %c0_99 = arith.constant 0 : index
    %294 = vector.load %arg14[%c7_98, %c0_99] : memref<8x256xf32, #tpu.memory_space<vmem>>, vector<1x128xf32>
    tpu.vector_store %arg14[%c7_98, %c0_99], %293 {strides = array<i32>} : memref<8x256xf32, #tpu.memory_space<vmem>>, vector<1x128xf32>,
    %295 = vector.extract_strided_slice %292 {offsets = [0, 128], sizes = [1, 128], strides = [1, 1]} : vector<1x256xf32> to vector<1x128xf32>
    %c0_100 = arith.constant 0 : index
    %c128_101 = arith.constant 128 : index
    %296 = vector.load %arg14[%c0_100, %c128_101] : memref<8x256xf32, #tpu.memory_space<vmem>>, vector<1x128xf32>
    tpu.vector_store %arg14[%c0_100, %c128_101], %295 {strides = array<i32>} : memref<8x256xf32, #tpu.memory_space<vmem>>, vector<1x128xf32>,
    %c0_102 = arith.constant 0 : index
    %c0_103 = arith.constant 0 : index
    %297 = vector.load %arg14[%c0_102, %c0_103] : memref<8x256xf32, #tpu.memory_space<vmem>>, vector<8x256xf32>
    %298 = math.tanh %297 : vector<8x256xf32>
    %cst_104 = arith.constant 0.000000e+00 : f32
    %299 = vector.broadcast %cst_104 : f32 to vector<8x256xf32>
    %300 = arith.maximumf %298, %299 : vector<8x256xf32>
    %301 = arith.truncf %300 : vector<8x256xf32> to vector<8x256xbf16>
    %c0_105 = arith.constant 0 : index
    %c0_106 = arith.constant 0 : index
    %302 = vector.load %arg7[%c0_105, %c0_106] : memref<256x768xbf16, #tpu.memory_space<vmem>>, vector<256x768xbf16>
    %cst_107 = arith.constant dense<0.000000e+00> : vector<8x768xf32>
    %303 = tpu.matmul %301, %302, %cst_107 {dimension_numbers = #tpu.dot_dimension_numbers<[1], [0], [0], [1], [0, 0, 1, 1], [], []>} : vector<8x256xbf16>, vector<256x768xbf16>, vector<8x768xf32> -> vector<8x768xf32>
    %c0_108 = arith.constant 0 : index
    %c0_109 = arith.constant 0 : index
    %304 = vector.load %arg8[%c0_108, %c0_109] : memref<1x768xf32, #tpu.memory_space<vmem>>, vector<1x768xf32>
    %305 = vector.broadcast %304 : vector<1x768xf32> to vector<8x768xf32>
    %306 = arith.addf %303, %305 : vector<8x768xf32>
    %cst_110 = arith.constant dense<0xFF800000> : vector<8xf32>
    %307 = vector.multi_reduction <maximumf>, %306, %cst_110 [1] : vector<8x768xf32> to vector<8xf32>
    %308 = vector.shape_cast %307 : vector<8xf32> to vector<8x1xf32>
    %309 = vector.broadcast %308 : vector<8x1xf32> to vector<8x768xf32>
    %310 = arith.subf %306, %309 : vector<8x768xf32>
    %311 = math.exp %310 : vector<8x768xf32>
    %cst_111 = arith.constant dense<0.000000e+00> : vector<8xf32>
    %312 = vector.multi_reduction <add>, %311, %cst_111 [1] : vector<8x768xf32> to vector<8xf32>
    %313 = vector.shape_cast %312 : vector<8xf32> to vector<8x1xf32>
    %314 = tpu.reciprocal %313 {approx = true} : vector<8x1xf32> -> vector<8x1xf32>
    %315 = vector.broadcast %314 : vector<8x1xf32> to vector<8x768xf32>
    %316 = arith.mulf %311, %315 : vector<8x768xf32>
    %c0_112 = arith.constant 0 : index
    %c0_113 = arith.constant 0 : index
    %317 = vector.load %arg1[%c0_112, %c0_113] : memref<8x768xf32, #tpu.memory_space<vmem>>, vector<8x768xf32>
    %318 = arith.mulf %316, %317 : vector<8x768xf32>
    %cst_114 = arith.constant 0.000000e+00 : f32
    %319 = vector.broadcast %cst_114 : f32 to vector<8x768xf32>
    %320 = arith.maximumf %318, %319 : vector<8x768xf32>
    %c0_115 = arith.constant 0 : index
    %c0_116 = arith.constant 0 : index
    %321 = vector.load %arg9[%c0_115, %c0_116] : memref<256x128xbf16, #tpu.memory_space<vmem>>, vector<256x128xbf16>
    %cst_117 = arith.constant dense<0.000000e+00> : vector<8x128xf32>
    %322 = tpu.matmul %301, %321, %cst_117 {dimension_numbers = #tpu.dot_dimension_numbers<[1], [0], [0], [1], [0, 0, 1, 1], [], []>} : vector<8x256xbf16>, vector<256x128xbf16>, vector<8x128xf32> -> vector<8x128xf32>
    %323 = arith.truncf %320 : vector<8x768xf32> to vector<8x768xbf16>
    %c0_118 = arith.constant 0 : index
    %c0_119 = arith.constant 0 : index
    %324 = vector.load %arg10[%c0_118, %c0_119] : memref<768x128xbf16, #tpu.memory_space<vmem>>, vector<768x128xbf16>
    %cst_120 = arith.constant dense<0.000000e+00> : vector<8x128xf32>
    %325 = tpu.matmul %323, %324, %cst_120 {dimension_numbers = #tpu.dot_dimension_numbers<[1], [0], [0], [1], [0, 0, 1, 1], [], []>} : vector<8x768xbf16>, vector<768x128xbf16>, vector<8x128xf32> -> vector<8x128xf32>
    %326 = arith.addf %322, %325 : vector<8x128xf32>
    %c0_121 = arith.constant 0 : index
    %c0_122 = arith.constant 0 : index
    %327 = vector.load %arg11[%c0_121, %c0_122] : memref<1x128xf32, #tpu.memory_space<vmem>>, vector<1x128xf32>
    %328 = vector.broadcast %327 : vector<1x128xf32> to vector<8x128xf32>
    %329 = arith.addf %326, %328 : vector<8x128xf32>
    %c0_123 = arith.constant 0 : index
    %c0_124 = arith.constant 0 : index
    %330 = vector.load %arg12[%c0_123, %c0_124] : memref<8x128xf32, #tpu.memory_space<vmem>>, vector<8x128xf32>
    tpu.vector_store %arg12[%c0_123, %c0_124], %329 {strides = array<i32>} : memref<8x128xf32, #tpu.memory_space<vmem>>, vector<8x128xf32>,
    return
  }
}

</mosaic_0001>

<bundles_post_ra>
// kernel: tiam_forward.1
= control target key start
LH: loop header
LB: loop body
LE: loop exit
PB: predicated region body
PF: predicated region fallthrough
CT: control target
= control target key end

     0   :  { %v19619_v1 = vmov 0   ;;  %vm455_vm0 = vcmask 1040384   ;;  %vm458_vm1 = vcmask 1041408   ;;  %vm461_vm2 = vcmask 1042432   ;;  %s19606_s2 = inlined_call_operand.vmem [shape: bf16[384,256], index: 2, kind: input, shape index: {}]   ;;  %s19607_s0 = inlined_call_operand.vmem [shape: bf16[8,384], index: 0, kind: input, shape index: {}]   ;;  %s19608_s4 = inlined_call_operand.vmem [shape: bf16[512,1024], index: 4, kind: input, shape index: {}]   ;;  %s19609_s3 = inlined_call_operand.vmem [shape: f32[1,256], index: 3, kind: input, shape index: {}]   ;;  %s19610_s6 = inlined_call_operand.vmem [shape: bf16[256,1024], index: 6, kind: input, shape index: {}]   ;;  %s19611_s5 = inlined_call_operand.vmem [shape: f32[1,1024], index: 5, kind: input, shape index: {}]   ;;  %s19612_s7 = inlined_call_operand.vmem [shape: bf16[256,768], index: 7, kind: input, shape index: {}]   ;;  %s19613_s8 = inlined_call_operand.vmem [shape: f32[1,768], index: 8, kind: input, shape index: {}]   ;;  %s19614_s10 = inlined_call_operand.vmem [shape: bf16[768,128], index: 10, kind: input, shape index: {}]   ;;  %s19615_s9 = inlined_call_operand.vmem [shape: bf16[256,128], index: 9, kind: input, shape index: {}]   ;;  %s19616_s1 = inlined_call_operand.vmem [shape: f32[8,768], index: 1, kind: input, shape index: {}]   ;;  %s19617_s11 = inlined_call_operand.vmem [shape: f32[1,128], index: 11, kind: input, shape index: {}]   ;;  %s19618_s12 = inlined_call_operand.vmem [shape: f32[8,128], index: 12, kind: output, shape index: {}]  }
   0x1   :  { %v13807_v0 = vld [vmem:[%s19606_s2 + $0x74] ss:$8 sps:$4 sm:$0xff]   ;;  %428 = vmatprep.mubr.bf16.mxu1 %v19619_v1  ;;  %v13809_v2 = vld [vmem:[%s19606_s2 + $0x70] ss:$8 sps:$4 sm:$0xff]   ;;  %v13810_v3 = vld [vmem:[%s19606_s2 + $0x64] ss:$8 sps:$4 sm:$0xff]  }
   0x2   :  { %355 = vmatprep.subr.bf16.mxu0 %v13807_v0  ;;  %v13812_v4 = vld [vmem:[%s19606_s2 + $0x60] ss:$8 sps:$4 sm:$0xff]   ;;  %v13813_v5 = vld [vmem:[%s19606_s2 + $0x54] ss:$8 sps:$4 sm:$0xff]   ;;  %v13815_v6 = vld [vmem:[%s19606_s2 + $0x50] ss:$8 sps:$4 sm:$0xff]  }
   0x3   :  { %356 = vmatpush1.bf16.msra.mxu0 %v13809_v2  ;;  %v13816_v7 = vld [vmem:[%s19606_s2 + $0x44] ss:$8 sps:$4 sm:$0xff]   ;;  %v13818_v8 = vld [vmem:[%s19606_s2 + $0x40] ss:$8 sps:$4 sm:$0xff]   ;;  %v13830_v9 = vld [vmem:[%s19606_s2 + $0x174] ss:$8 sps:$4 sm:$0xff]  }
   0x4   :  { %357 = vmatprep.subr.bf16.mxu0 %v13810_v3  ;;  %v13833_v10 = vld [vmem:[%s19606_s2 + $0x170] ss:$8 sps:$4 sm:$0xff]   ;;  %v13819_v11 = vld [vmem:[%s19606_s2 + $0x34] ss:$8 sps:$4 sm:$0xff]   ;;  %396 = vmatprep.subr.bf16.mxu1 %v13830_v9  ;;  %v13836_v12 = vld [vmem:[%s19606_s2 + $0x164] ss:$8 sps:$4 sm:$0xff]  }
   0x5   :  { %397 = vmatpush1.bf16.msra.mxu1 %v13833_v10  ;;  %v13839_v13 = vld [vmem:[%s19606_s2 + $0x160] ss:$8 sps:$4 sm:$0xff]   ;;  %v13821_v14 = vld [vmem:[%s19606_s2 + $0x30] ss:$8 sps:$4 sm:$0xff]   ;;  %v13822_v15 = vld [vmem:[%s19606_s2 + $0x24] ss:$8 sps:$4 sm:$0xff]  }
   0x6   :  { %398 = vmatprep.subr.bf16.mxu1 %v13836_v12  ;;  %v13842_v16 = vld [vmem:[%s19606_s2 + $0x154] ss:$8 sps:$4 sm:$0xff]   ;;  %v13845_v17 = vld [vmem:[%s19606_s2 + $0x150] ss:$8 sps:$4 sm:$0xff]   ;;  %v13824_v18 = vld [vmem:[%s19606_s2 + $0x20] ss:$8 sps:$4 sm:$0xff]  }
   0x7   :  { %358 = vmatpush1.bf16.msra.mxu0 %v13812_v4  ;;  %v13848_v19 = vld [vmem:[%s19606_s2 + $0x144] ss:$8 sps:$4 sm:$0xff]   ;;  %v13825_v20 = vld [vmem:[%s19606_s2 + $0x14] ss:$8 sps:$4 sm:$0xff]   ;;  %v13827_v21 = vld [vmem:[%s19606_s2 + $0x10] ss:$8 sps:$4 sm:$0xff]  }
   0x8   :  { %359 = vmatprep.subr.bf16.mxu0 %v13813_v5  ;;  %v13851_v22 = vld [vmem:[%s19606_s2 + $0x140] ss:$8 sps:$4 sm:$0xff]   ;;  %v13854_v23 = vld [vmem:[%s19606_s2 + $0x134] ss:$8 sps:$4 sm:$0xff]   ;;  %v13828_v24 = vld [vmem:[%s19606_s2 + $0x4] ss:$8 sps:$4 sm:$0xff]  }
   0x9   :  { %399 = vmatpush1.bf16.msra.mxu1 %v13839_v13  ;;  %v13857_v25 = vld [vmem:[%s19606_s2 + $0x130] ss:$8 sps:$4 sm:$0xff]   ;;  %v13832_v26 = vld [vmem:[%s19606_s2] ss:$8 sps:$4 sm:$0xff]   ;;  %v13860_v27 = vld [vmem:[%s19606_s2 + $0x124] ss:$8 sps:$4 sm:$0xff]  }
   0xa   :  { %400 = vmatprep.subr.bf16.mxu1 %v13842_v16  ;;  %v13834_v28 = vld [vmem:[%s19606_s2 + $0xf4] ss:$8 sps:$4 sm:$0xff]   ;;  %v13838_v29 = vld [vmem:[%s19606_s2 + $0xf0] ss:$8 sps:$4 sm:$0xff]   ;;  %v13863_v30 = vld [vmem:[%s19606_s2 + $0x120] ss:$8 sps:$4 sm:$0xff]  }
   0xb   :  { %360 = vmatpush1.bf16.msra.mxu0 %v13815_v6  ;;  %v13866_v31 = vld [vmem:[%s19606_s2 + $0x114] ss:$8 sps:$4 sm:$0xff]   ;;  %v13840_v32 = vld [vmem:[%s19606_s2 + $0xe4] ss:$8 sps:$4 sm:$0xff]   ;;  %v13869_v35 = vld [vmem:[%s19606_s2 + $0x110] ss:$8 sps:$4 sm:$0xff]  }
   0xc   :  { %361 = vmatprep.subr.bf16.mxu0 %v13816_v7  ;;  %v14403_v33 = vld [vmem:[%s19607_s0] sm:$0xff]  ;;  %v13846_v38 = vld [vmem:[%s19606_s2 + $0xd4] ss:$8 sps:$4 sm:$0xff]   ;;  %v13850_v42 = vld [vmem:[%s19606_s2 + $0xd0] ss:$8 sps:$4 sm:$0xff]   ;;  %vm464_vm3 = vcmask 1043456  }
   0xd   :  { %401 = vmatpush1.bf16.msra.mxu1 %v13845_v17  ;;  %v12202_v34 = vcombine.high %v14403_v33, %v14403_v33  ;;  %v13844_v36 = vld [vmem:[%s19606_s2 + $0xe0] ss:$8 sps:$4 sm:$0xff]   ;;  %v13872_v37 = vld [vmem:[%s19606_s2 + $0x104] ss:$8 sps:$4 sm:$0xff]   ;;  %v13858_v51 = vld [vmem:[%s19606_s2 + $0xb4] ss:$8 sps:$4 sm:$0xff]  }
   0xe   :  { %402 = vmatprep.subr.bf16.mxu1 %v13848_v19  ;;  %v536_v39 = vld [vmem:[%s19608_s4 + $0x1c0] sm:$0xff]  ;;  %v13878_v47 = vld [vmem:[%s19607_s0 + $0x8] ss:$0 sps:$4 sm:$0xff]   ;;  %v13862_v55 = vld [vmem:[%s19606_s2 + $0xb0] ss:$8 sps:$4 sm:$0xff]   ;;  %v12201_v19 = vcombine.low %v14403_v33, %v14403_v33  ;;  %vm467_vm4 = vcmask 1044480  }
   0xf   :  { %362 = vmatpush1.bf16.msra.mxu0 %v13818_v8  ;;  %387 = vmatprep.mubr.bf16.mxu0 %v12202_v34  ;;  %v540_v40 = vld [vmem:[%s19608_s4 + $0x1e0] sm:$0xff]  ;;  %v13870_v63 = vld [vmem:[%s19606_s2 + $0x94] ss:$8 sps:$4 sm:$0xff]   ;;  %v13874_v4 = vld [vmem:[%s19606_s2 + $0x90] ss:$8 sps:$4 sm:$0xff]   ;;  %vm470_vm5 = vcmask 1045504  }
  0x10   :  { %363 = vmatprep.subr.bf16.mxu0 %v13819_v11  ;;  %v13875_v41 = vld [vmem:[%s19606_s2 + $0x100] ss:$8 sps:$4 sm:$0xff]   ;;  %v12309_v43 = vcombine.high %v536_v39, %v540_v40  ;;  %v13852_v44 = vld [vmem:[%s19606_s2 + $0xc4] ss:$8 sps:$4 sm:$0xff]   ;;  %v12308_v48 = vcombine.low %v536_v39, %v540_v40  ;;  %vm473_vm6 = vcmask 1046528  }
  0x11   :  { %403 = vmatpush1.bf16.msra.mxu1 %v13851_v22  ;;  %v528_v45 = vld [vmem:[%s19608_s4 + $0x180] sm:$0xff] }
  0x12   :  { %404 = vmatprep.subr.bf16.mxu1 %v13854_v23  ;;  %v532_v46 = vld [vmem:[%s19608_s4 + $0x1a0] sm:$0xff] }
  0x13   :  { %364 = vmatpush1.bf16.msra.mxu0 %v13821_v14  ;;  %v13856_v49 = vld [vmem:[%s19606_s2 + $0xc0] ss:$8 sps:$4 sm:$0xff]   ;;  %v12301_v50 = vcombine.high %v528_v45, %v532_v46  ;;  %v12300_v54 = vcombine.low %v528_v45, %v532_v46  ;;  %v13864_v57 = vld [vmem:[%s19606_s2 + $0xa4] ss:$8 sps:$4 sm:$0xff]  }
  0x14   :  { %365 = vmatprep.subr.bf16.mxu0 %v13822_v15  ;;  %v520_v52 = vld [vmem:[%s19608_s4 + $0x140] sm:$0xff] }
  0x15   :  { %405 = vmatpush1.bf16.msra.mxu1 %v13857_v25  ;;  %v524_v53 = vld [vmem:[%s19608_s4 + $0x160] sm:$0xff] }
  0x16   :  { %406 = vmatprep.subr.bf16.mxu1 %v13860_v27  ;;  %v12293_v56 = vcombine.high %v520_v52, %v524_v53  ;;  %v512_v58 = vld [vmem:[%s19608_s4 + $0x100] sm:$0xff]  ;;  %v12292_v60 = vcombine.low %v520_v52, %v524_v53 }
  0x17   :  { %366 = vmatpush1.bf16.msra.mxu0 %v13824_v18  ;;  %v516_v59 = vld [vmem:[%s19608_s4 + $0x120] sm:$0xff] }
  0x18   :  { %367 = vmatprep.subr.bf16.mxu0 %v13825_v20  ;;  %v13868_v61 = vld [vmem:[%s19606_s2 + $0xa0] ss:$8 sps:$4 sm:$0xff]   ;;  %v12285_v62 = vcombine.high %v512_v58, %v516_v59  ;;  %v12284_v3 = vcombine.low %v512_v58, %v516_v59  ;;  %v13876_v6 = vld [vmem:[%s19606_s2 + $0x84] ss:$8 sps:$4 sm:$0xff]  }
  0x19   :  { %407 = vmatpush1.bf16.msra.mxu1 %v13863_v30  ;;  %v504_v0 = vld [vmem:[%s19608_s4 + $0xc0] sm:$0xff] }
  0x1a   :  { %408 = vmatprep.subr.bf16.mxu1 %v13866_v31  ;;  %v508_v2 = vld [vmem:[%s19608_s4 + $0xe0] sm:$0xff] }
  0x1b   :  { %368 = vmatpush1.bf16.msra.mxu0 %v13827_v21  ;;  %v12277_v5 = vcombine.high %v504_v0, %v508_v2  ;;  %v496_v7 = vld [vmem:[%s19608_s4 + $0x80] sm:$0xff]  ;;  %v12276_v11 = vcombine.low %v504_v0, %v508_v2 }
  0x1c   :  { %369 = vmatprep.subr.bf16.mxu0 %v13828_v24  ;;  %v500_v8 = vld [vmem:[%s19608_s4 + $0xa0] sm:$0xff] }
  0x1d   :  { %409 = vmatpush1.bf16.msra.mxu1 %v13869_v35  ;;  %v664_v9 = vld [vmem:[%s19608_s4 + $0x5c0] sm:$0xff]  ;;  %v12269_v13 = vcombine.high %v496_v7, %v500_v8  ;;  %v12268_v20 = vcombine.low %v496_v7, %v500_v8 }
  0x1e   :  { %410 = vmatprep.subr.bf16.mxu1 %v13872_v37  ;;  %v668_v10 = vld [vmem:[%s19608_s4 + $0x5e0] sm:$0xff] }
  0x1f   :  { %370 = vmatpush1.bf16.msra.mxu0 %v13832_v26  ;;  %v13879_v12 = vld [vmem:[%s19606_s2 + $0x80] ss:$8 sps:$4 sm:$0xff]   ;;  %v12437_v14 = vcombine.high %v664_v9, %v668_v10  ;;  %v12436_v21 = vcombine.low %v664_v9, %v668_v10 }
  0x20   :  { %371 = vmatprep.subr.bf16.mxu0 %v13834_v28  ;;  %v488_v15 = vld [vmem:[%s19608_s4 + $0x40] sm:$0xff] }
  0x21   :  { %411 = vmatpush1.bf16.msra.mxu1 %v13875_v41  ;;  %v492_v16 = vld [vmem:[%s19608_s4 + $0x60] sm:$0xff] }
  0x22   :  { %2058 = vmatprep.subr.bf16.mxu1 %v12309_v43  ;;  %v656_v17 = vld [vmem:[%s19608_s4 + $0x580] sm:$0xff]  ;;  %v12261_v22 = vcombine.high %v488_v15, %v492_v16  ;;  %v12260_v28 = vcombine.low %v488_v15, %v492_v16 }
  0x23   :  { %372 = vmatpush2.bf16.msra.mxu0 %v13838_v29  ;;  %v660_v18 = vld [vmem:[%s19608_s4 + $0x5a0] sm:$0xff] }
  0x24   :  { %373 = vmatprep.subr.bf16.mxu0 %v13840_v32  ;;  %429 = vmatmul.mubr.bf16.vlgmr.msra.gmra.mxu1 %v13878_v47  ;;  %v12429_v23 = vcombine.high %v656_v17, %v660_v18  ;;  %v480_v24 = vld [vmem:[%s19608_s4] sm:$0xff]  ;;  %v12428_v29 = vcombine.low %v656_v17, %v660_v18 }
  0x25   :  { %2059 = vmatpush1.bf16.msra.mxu1 %v12308_v48  ;;  %v484_v25 = vld [vmem:[%s19608_s4 + $0x20] sm:$0xff] }
  0x26   :  { %2060 = vmatprep.subr.bf16.mxu1 %v12301_v50  ;;  %v648_v26 = vld [vmem:[%s19608_s4 + $0x540] sm:$0xff]  ;;  %v12253_v30 = vcombine.high %v480_v24, %v484_v25 }
  0x27   :  { %374 = vmatpush2.bf16.msra.mxu0 %v13844_v36  ;;  %v652_v27 = vld [vmem:[%s19608_s4 + $0x560] sm:$0xff]  ;;  %v12252_v36 = vcombine.low %v480_v24, %v484_v25 }
  0x28   :  { %375 = vmatprep.subr.bf16.mxu0 %v13846_v38  ;;  %v12421_v31 = vcombine.high %v648_v26, %v652_v27  ;;  %v600_v32 = vld [vmem:[%s19608_s4 + $0x3c0] sm:$0xff]  ;;  %v12420_v37 = vcombine.low %v648_v26, %v652_v27 }
  0x29   :  { %2061 = vmatpush1.bf16.msra.mxu1 %v12300_v54  ;;  %v604_v33 = vld [vmem:[%s19608_s4 + $0x3e0] sm:$0xff] }
  0x2a   :  { %2062 = vmatprep.subr.bf16.mxu1 %v12293_v56  ;;  %v640_v34 = vld [vmem:[%s19608_s4 + $0x500] sm:$0xff]  ;;  %v12373_v38 = vcombine.high %v600_v32, %v604_v33 }
  0x2b   :  { %376 = vmatpush2.bf16.msra.mxu0 %v13850_v42  ;;  %v644_v35 = vld [vmem:[%s19608_s4 + $0x520] sm:$0xff] }
  0x2c   :  { %377 = vmatprep.subr.bf16.mxu0 %v13852_v44  ;;  %v12413_v39 = vcombine.high %v640_v34, %v644_v35  ;;  %v592_v40 = vld [vmem:[%s19608_s4 + $0x380] sm:$0xff]  ;;  %v12372_v44 = vcombine.low %v600_v32, %v604_v33  ;;  %v12412_v45 = vcombine.low %v640_v34, %v644_v35 }
  0x2d   :  { %2063 = vmatpush1.bf16.msra.mxu1 %v12292_v60  ;;  %v596_v41 = vld [vmem:[%s19608_s4 + $0x3a0] sm:$0xff] }
  0x2e   :  { %2064 = vmatprep.subr.bf16.mxu1 %v12285_v62  ;;  %v632_v42 = vld [vmem:[%s19608_s4 + $0x4c0] sm:$0xff]  ;;  %v12365_v46 = vcombine.high %v592_v40, %v596_v41  ;;  %v12364_v52 = vcombine.low %v592_v40, %v596_v41 }
  0x2f   :  { %378 = vmatpush2.bf16.msra.mxu0 %v13856_v49  ;;  %v636_v43 = vld [vmem:[%s19608_s4 + $0x4e0] sm:$0xff] }
  0x30   :  { %379 = vmatprep.subr.bf16.mxu0 %v13858_v51  ;;  %v12405_v47 = vcombine.high %v632_v42, %v636_v43  ;;  %v584_v48 = vld [vmem:[%s19608_s4 + $0x340] sm:$0xff]  ;;  %v12404_v53 = vcombine.low %v632_v42, %v636_v43 }
  0x31   :  { %2065 = vmatpush1.bf16.msra.mxu1 %v12284_v3  ;;  %v588_v49 = vld [vmem:[%s19608_s4 + $0x360] sm:$0xff] }
  0x32   :  { %2066 = vmatprep.subr.bf16.mxu1 %v12277_v5  ;;  %v624_v50 = vld [vmem:[%s19608_s4 + $0x480] sm:$0xff]  ;;  %v12357_v54 = vcombine.high %v584_v48, %v588_v49  ;;  %v12356_v60 = vcombine.low %v584_v48, %v588_v49  ;;  %v14648_v48 = vld [vmem:[%s19608_s4 + $0x1e8] sm:$0xff] }
  0x33   :  { %380 = vmatpush2.bf16.msra.mxu0 %v13862_v55  ;;  %v628_v51 = vld [vmem:[%s19608_s4 + $0x4a0] sm:$0xff] }
  0x34   :  { %381 = vmatprep.subr.bf16.mxu0 %v13864_v57  ;;  %v12397_v55 = vcombine.high %v624_v50, %v628_v51  ;;  %v576_v56 = vld [vmem:[%s19608_s4 + $0x300] sm:$0xff] }
  0x35   :  { %2067 = vmatpush1.bf16.msra.mxu1 %v12276_v11  ;;  %v580_v57 = vld [vmem:[%s19608_s4 + $0x320] sm:$0xff] }
  0x36   :  { %2068 = vmatprep.subr.bf16.mxu1 %v12269_v13  ;;  %v616_v58 = vld [vmem:[%s19608_s4 + $0x440] sm:$0xff]  ;;  %v12349_v62 = vcombine.high %v576_v56, %v580_v57  ;;  %v12348_v5 = vcombine.low %v576_v56, %v580_v57 }
  0x37   :  { %382 = vmatpush2.bf16.msra.mxu0 %v13868_v61  ;;  %v620_v59 = vld [vmem:[%s19608_s4 + $0x460] sm:$0xff]  ;;  %v12396_v61 = vcombine.low %v624_v50, %v628_v51 }
  0x38   :  { %383 = vmatprep.subr.bf16.mxu0 %v13870_v63  ;;  %v12389_v63 = vcombine.high %v616_v58, %v620_v59  ;;  %v568_v0 = vld [vmem:[%s19608_s4 + $0x2c0] sm:$0xff] }
  0x39   :  { %2069 = vmatpush1.bf16.msra.mxu1 %v12268_v20  ;;  %v572_v2 = vld [vmem:[%s19608_s4 + $0x2e0] sm:$0xff] }
  0x3a   :  { %2070 = vmatprep.subr.bf16.mxu1 %v12261_v22  ;;  %v608_v3 = vld [vmem:[%s19608_s4 + $0x400] sm:$0xff]  ;;  %v12341_v7 = vcombine.high %v568_v0, %v572_v2  ;;  %v12340_v11 = vcombine.low %v568_v0, %v572_v2 }
  0x3b   :  { %384 = vmatpush2.bf16.msra.mxu0 %v13874_v4  ;;  %v612_v4 = vld [vmem:[%s19608_s4 + $0x420] sm:$0xff] }
  0x3c   :  { %385 = vmatprep.subr.bf16.mxu0 %v13876_v6  ;;  %v12388_v6 = vcombine.low %v616_v58, %v620_v59  ;;  %v12381_v8 = vcombine.high %v608_v3, %v612_v4  ;;  %v728_v9 = vld [vmem:[%s19608_s4 + $0x7c0] sm:$0xff]  ;;  %v14669_v59 = vld [vmem:[%s19608_s4 + $0x5c8] sm:$0xff] }
  0x3d   :  { %2071 = vmatpush1.bf16.msra.mxu1 %v12260_v28  ;;  %v732_v10 = vld [vmem:[%s19608_s4 + $0x7e0] sm:$0xff] }
  0x3e   :  { %2072 = vmatprep.subr.bf16.mxu1 %v12253_v30  ;;  %v12501_v13 = vcombine.high %v728_v9, %v732_v10  ;;  %v724_v15 = vld [vmem:[%s19608_s4 + $0x7a0] sm:$0xff]  ;;  %v12500_v16 = vcombine.low %v728_v9, %v732_v10 }
  0x3f   :  { %386 = vmatpush2.bf16.msra.mxu0 %v13879_v12  ;;  %v12380_v12 = vcombine.low %v608_v3, %v612_v4  ;;  %v712_v18 = vld [vmem:[%s19608_s4 + $0x740] sm:$0xff]  ;;  %v94_v3 = vlaneseq }
  0x40   :  { %2099 = vmatprep.subr.bf16.mxu0 %v12437_v14  ;;  %v720_v14 = vld [vmem:[%s19608_s4 + $0x780] sm:$0xff] }
  0x41   :  { %2073 = vmatpush1.bf16.msra.mxu1 %v12252_v36  ;;  %v12493_v17 = vcombine.high %v720_v14, %v724_v15  ;;  %v12492_v20 = vcombine.low %v720_v14, %v724_v15  ;;  %v564_v24 = vld [vmem:[%s19608_s4 + $0x2a0] sm:$0xff] }
  0x42   :  { %388 = vmatmul.mubr.bf16.vlgmr.msra.gmra.mxu0 %v12201_v19  ;;  %2074 = vmatprep.subr.bf16.mxu1 %v12373_v38  ;;  %v716_v19 = vld [vmem:[%s19608_s4 + $0x760] sm:$0xff] }
  0x43   :  { %2100 = vmatpush1.bf16.msra.mxu0 %v12436_v21  ;;  %v12485_v21 = vcombine.high %v712_v18, %v716_v19  ;;  %v12484_v22 = vcombine.low %v712_v18, %v716_v19  ;;  %v704_v27 = vld [vmem:[%s19608_s4 + $0x700] sm:$0xff] }
  0x44   :  { %2101 = vmatprep.subr.bf16.mxu0 %v12429_v23  ;;  %v560_v23 = vld [vmem:[%s19608_s4 + $0x280] sm:$0xff] }
  0x45   :  { %2075 = vmatpush2.bf16.msra.mxu1 %v12372_v44  ;;  %v12332_v25 = vcombine.low %v560_v23, %v564_v24  ;;  %v12333_v26 = vcombine.high %v560_v23, %v564_v24  ;;  %v708_v28 = vld [vmem:[%s19608_s4 + $0x720] sm:$0xff] }
  0x46   :  { %2076 = vmatprep.subr.bf16.mxu1 %v12365_v46  ;;  %v12477_v30 = vcombine.high %v704_v27, %v708_v28  ;;  %v556_v32 = vld [vmem:[%s19608_s4 + $0x260] sm:$0xff] }
  0x47   :  { %2102 = vmatpush1.bf16.msra.mxu0 %v12428_v29  ;;  %v12476_v29 = vcombine.low %v704_v27, %v708_v28  ;;  %v696_v34 = vld [vmem:[%s19608_s4 + $0x6c0] sm:$0xff] }
  0x48   :  { %2103 = vmatprep.subr.bf16.mxu0 %v12421_v31  ;;  %v552_v31 = vld [vmem:[%s19608_s4 + $0x240] sm:$0xff] }
  0x49   :  { %2077 = vmatpush2.bf16.msra.mxu1 %v12364_v52  ;;  %v12325_v33 = vcombine.high %v552_v31, %v556_v32  ;;  %v700_v35 = vld [vmem:[%s19608_s4 + $0x6e0] sm:$0xff]  ;;  %v12324_v36 = vcombine.low %v552_v31, %v556_v32 }
  0x4a   :  { %2078 = vmatprep.subr.bf16.mxu1 %v12357_v54  ;;  %v12468_v38 = vcombine.low %v696_v34, %v700_v35  ;;  %v548_v40 = vld [vmem:[%s19608_s4 + $0x220] sm:$0xff] }
  0x4b   :  { %2104 = vmatpush1.bf16.msra.mxu0 %v12420_v37  ;;  %v12469_v37 = vcombine.high %v696_v34, %v700_v35  ;;  %v688_v42 = vld [vmem:[%s19608_s4 + $0x680] sm:$0xff]  ;;  %v521_v34 = vld [vmem:[%s19608_s4 + $0x148] sm:$0xff] }
  0x4c   :  { %2105 = vmatprep.subr.bf16.mxu0 %v12413_v39  ;;  %v544_v39 = vld [vmem:[%s19608_s4 + $0x200] sm:$0xff]  ;;  %v525_v35 = vld [vmem:[%s19608_s4 + $0x168] sm:$0xff] }
  0x4d   :  { %2079 = vmatpush2.bf16.msra.mxu1 %v12356_v60  ;;  %v12317_v41 = vcombine.high %v544_v39, %v548_v40  ;;  %v692_v43 = vld [vmem:[%s19608_s4 + $0x6a0] sm:$0xff]  ;;  %v12316_v44 = vcombine.low %v544_v39, %v548_v40  ;;  %v14674_v60 = vld [vmem:[%s19608_s4 + $0x5e8] sm:$0xff] }
  0x4e   :  { %2080 = vmatprep.subr.bf16.mxu1 %v12349_v62  ;;  %v12460_v46 = vcombine.low %v688_v42, %v692_v43  ;;  %v680_v50 = vld [vmem:[%s19608_s4 + $0x640] sm:$0xff]  ;;  %v12438_v62 = vcombine.low %v14669_v59, %v14674_v60 }
  0x4f   :  { %2106 = vmatpush1.bf16.msra.mxu0 %v12412_v45  ;;  %v12461_v45 = vcombine.high %v688_v42, %v692_v43  ;;  %v684_v51 = vld [vmem:[%s19608_s4 + $0x660] sm:$0xff]  ;;  %v12295_v43 = vcombine.high %v521_v34, %v525_v35 }
  0x50   :  { %2107 = vmatprep.subr.bf16.mxu0 %v12405_v47  ;;  %v14643_v47 = vld [vmem:[%s19608_s4 + $0x1c8] sm:$0xff]  ;;  %v12452_v54 = vcombine.low %v680_v50, %v684_v51  ;;  %v676_v56 = vld [vmem:[%s19608_s4 + $0x620] sm:$0xff] }
  0x51   :  { %2081 = vmatpush2.bf16.msra.mxu1 %v12348_v5  ;;  %v12311_v49 = vcombine.high %v14643_v47, %v14648_v48  ;;  %v12310_v52 = vcombine.low %v14643_v47, %v14648_v48  ;;  %v14680_v5 = vshrl.u32 %v94_v3, 7  ;;  %v513_v47 = vld [vmem:[%s19608_s4 + $0x108] sm:$0xff] }
  0x52   :  { %2082 = vmatprep.subr.bf16.mxu1 %v12341_v7  ;;  %v92_v7 = vld [vmem:[%s19609_s3] sm:$0x3] }
  0x53   :  { %2108 = vmatpush1.bf16.msra.mxu0 %v12404_v53  ;;  %v12453_v53 = vcombine.high %v680_v50, %v684_v51  ;;  %19924 = vst [vmem:[#allocation4_spill] sm:$0xff] %v14680_v5  ;;  %v517_v50 = vld [vmem:[%s19608_s4 + $0x128] sm:$0xff] }
  0x54   :  { %2109 = vmatprep.subr.bf16.mxu0 %v12397_v55  ;;  %v672_v55 = vld [vmem:[%s19608_s4 + $0x600] sm:$0xff]  ;;  %v657_v51 = vld [vmem:[%s19608_s4 + $0x588] sm:$0xff]  ;;  %v12286_v3 = vcombine.low %v513_v47, %v517_v50 }
  0x55   :  { %2083 = vmatpush2.bf16.msra.mxu1 %v12340_v11  ;;  %v12444_v57 = vcombine.low %v672_v55, %v676_v56  ;;  %v12445_v58 = vcombine.high %v672_v55, %v676_v56 }
  0x56   :  { %2084 = vmatprep.subr.bf16.mxu1 %v12333_v26 }
  0x57   :  { %2110 = vmatpush1.bf16.msra.mxu0 %v12396_v61  ;;  %v12439_v61 = vcombine.high %v14669_v59, %v14674_v60  ;;  %v641_v59 = vld [vmem:[%s19608_s4 + $0x508] sm:$0xff] }
  0x58   :  { %2111 = vmatprep.subr.bf16.mxu0 %v12389_v63  ;;  %v645_v60 = vld [vmem:[%s19608_s4 + $0x528] sm:$0xff] }
  0x59   :  { %2085 = vmatpush2.bf16.msra.mxu1 %v12332_v25 }
  0x5a   :  { %2086 = vmatprep.subr.bf16.mxu1 %v12325_v33 }
  0x5b   :  { %2112 = vmatpush1.bf16.msra.mxu0 %v12388_v6  ;;  %v14683_v6 = vsub.s32 0, %v14680_v5 }
  0x5c   :  { %2113 = vmatprep.subr.bf16.mxu0 %v12381_v8  ;;  %v14689_v8 = vsub.s32 1, %v14680_v5 }
  0x5d   :  { %2087 = vmatpush2.bf16.msra.mxu1 %v12324_v36  ;;  %19925 = vst [vmem:[#allocation5_spill] sm:$0xff] %v14683_v6  ;;  %v97_v9 = vrot.slane %v92_v7, %v14683_v6 }
  0x5e   :  { %2088 = vmatprep.subr.bf16.mxu1 %v12317_v41  ;;  %19926 = vst [vmem:[#allocation6_spill] sm:$0xff] %v14689_v8  ;;  %v101_v10 = vrot.slane %v92_v7, %v14689_v8 }
  0x5f   :  { %2114 = vmatpush1.bf16.msra.mxu0 %v12380_v12 }
  0x60   :  { %2115 = vmatprep.subr.bf16.mxu0 %v12501_v13 }
  0x61   :  { %2089 = vmatpush2.bf16.msra.mxu1 %v12316_v44 }
  0x62   :  { %2140 = vmatprep.subr.bf16.mxu1 %v12311_v49 }
  0x63   :  { %2116 = vmatpush2.bf16.msra.mxu0 %v12500_v16 }
  0x64   :  { %2117 = vmatprep.subr.bf16.mxu0 %v12493_v17 }
  0x67   :  { %2118 = vmatpush2.bf16.msra.mxu0 %v12492_v20  ;;  %v529_v20 = vld [vmem:[%s19608_s4 + $0x188] sm:$0xff] }
  0x68   :  { %2119 = vmatprep.subr.bf16.mxu0 %v12485_v21  ;;  %v533_v21 = vld [vmem:[%s19608_s4 + $0x1a8] sm:$0xff] }
  0x69   :  { %v12302_v40 = vcombine.low %v529_v20, %v533_v21 }
  0x6b   :  { %2120 = vmatpush2.bf16.msra.mxu0 %v12484_v22 }
  0x6c   :  { %2121 = vmatprep.subr.bf16.mxu0 %v12477_v30  ;;  %v12303_v30 = vcombine.high %v529_v20, %v533_v21  ;;  %v12414_v20 = vcombine.low %v641_v59, %v645_v60 }
  0x6f   :  { %2122 = vmatpush2.bf16.msra.mxu0 %v12476_v29 }
  0x70   :  { %2123 = vmatprep.subr.bf16.mxu0 %v12469_v37 }
  0x73   :  { %2124 = vmatpush2.bf16.msra.mxu0 %v12468_v38 }
  0x74   :  { %2125 = vmatprep.subr.bf16.mxu0 %v12461_v45 }
  0x77   :  { %2126 = vmatpush2.bf16.msra.mxu0 %v12460_v46 }
  0x78   :  { %2127 = vmatprep.subr.bf16.mxu0 %v12453_v53  ;;  %v12294_v53 = vcombine.low %v521_v34, %v525_v35  ;;  %v605_v34 = vld [vmem:[%s19608_s4 + $0x3e8] sm:$0xff] }
  0x79   :  { %v617_v35 = vld [vmem:[%s19608_s4 + $0x448] sm:$0xff] }
  0x7b   :  { %2128 = vmatpush2.bf16.msra.mxu0 %v12452_v54 }
  0x7c   :  { %2129 = vmatprep.subr.bf16.mxu0 %v12445_v58 }
  0x7f   :  { %2130 = vmatpush2.bf16.msra.mxu0 %v12444_v57  ;;  %v12287_v57 = vcombine.high %v513_v47, %v517_v50  ;;  %v589_v50 = vld [vmem:[%s19608_s4 + $0x368] sm:$0xff] }
  0x80   :  { %2181 = vmatprep.subr.bf16.mxu0 %v12439_v61  ;;  %v505_v61 = vld [vmem:[%s19608_s4 + $0xc8] sm:$0xff] }
  0xe4   :  { %v430_v63 = vpop.f32.mrf.mxu1 }
  0xe6   :  { %v432_v0 = vpop.f32.mrf.mxu1 }
  0xe8   :  { %v434_v2 = vpop.f32.mrf.mxu1 }
  0xe9   :  { %v653_v2 = vld [vmem:[%s19608_s4 + $0x568] sm:$0xff] }
  0xea   :  { %v435_v4 = vpop.f32.mrf.mxu1 }
 0x102   :  { %v389_v11 = vpop.f32.mrf.mxu0 }
 0x103   :  { %v390_v12 = vadd.f32 %v389_v11, %v97_v9  ;;  %v501_v11 = vld [vmem:[%s19608_s4 + $0xa8] sm:$0xff] }
 0x104   :  { %v391_v13 = vpop.f32.mrf.mxu0 }
 0x105   :  { %v431_v14 = vadd.f32 %v430_v63, %v390_v12  ;;  %v392_v15 = vadd.f32 %v391_v13, %v101_v10  ;;  %v509_v63 = vld [vmem:[%s19608_s4 + $0xe8] sm:$0xff] }
 0x106   :  { %v393_v16 = vpop.f32.mrf.mxu0  ;;  %v12279_v7 = vcombine.high %v505_v61, %v509_v63  ;;  %v497_v10 = vld [vmem:[%s19608_s4 + $0x88] sm:$0xff] }
 0x107   :  { %v439_v17 = vrot.slane %v431_v14, 7  ;;  %v443_v18 = vrot.slane %v431_v14, 5  ;;  %v433_v19 = vadd.f32 %v432_v0, %v392_v15  ;;  %v447_v23 = vrot.slane %v431_v14, 3  ;;  %v649_v0 = vld [vmem:[%s19608_s4 + $0x548] sm:$0xff] }
 0x108   :  { %v394_v22 = vpop.f32.mrf.mxu0  ;;  %v451_v24 = vrot.slane %v431_v14, 1  ;;  %v14702_v29 = vpack.c.bf16 %v431_v14, %v431_v14  ;;  %v12423_v9 = vcombine.high %v649_v0, %v653_v2  ;;  %v12422_v12 = vcombine.low %v649_v0, %v653_v2  ;;  %v489_v15 = vld [vmem:[%s19608_s4 + $0x48] sm:$0xff] }
 0x109   :  { %v456_v25 = vsel %vm455_vm0, %v439_v17, %v443_v18  ;;  %v440_v26 = vrot.slane %v433_v19, 7  ;;  %v444_v27 = vrot.slane %v433_v19, 5  ;;  %v14700_v28 = vpack.c.bf16 %v433_v19, %v433_v19  ;;  %v493_v16 = vld [vmem:[%s19608_s4 + $0x68] sm:$0xff] }
 0x10a   :  { %v448_v31 = vrot.slane %v433_v19, 3  ;;  %v459_v32 = vsel %vm458_vm1, %v456_v25, %v447_v23  ;;  %v452_v36 = vrot.slane %v433_v19, 1  ;;  %v12271_v13 = vcombine.high %v497_v10, %v501_v11  ;;  %v625_v25 = vld [vmem:[%s19608_s4 + $0x488] sm:$0xff] }
 0x10b   :  { %v457_v33 = vsel %vm455_vm0, %v440_v26, %v444_v27  ;;  %2090 = vmatprep.mubr.bf16.mxu1 %v14700_v28  ;;  %v462_v37 = vsel %vm461_vm2, %v459_v32, %v451_v24  ;;  %v12415_v14 = vcombine.high %v641_v59, %v645_v60  ;;  %v12270_v19 = vcombine.low %v497_v10, %v501_v11  ;;  %v721_v0 = vld [vmem:[%s19608_s4 + $0x788] sm:$0xff] }
 0x10c   :  { %2091 = vmatmul.mubr.bf16.vlgmr.msra.gmra.mxu1 %v14702_v29  ;;  %v460_v38 = vsel %vm458_vm1, %v457_v33, %v448_v31  ;;  %v465_v39 = vsel %vm464_vm3, %v462_v37, %v439_v17  ;;  %v633_v17 = vld [vmem:[%s19608_s4 + $0x4c8] sm:$0xff]  ;;  %v12263_v21 = vcombine.high %v489_v15, %v493_v16 }
 0x10d   :  { %2141 = vmatpush1.bf16.msra.mxu1 %v12310_v52  ;;  %2172 = vmatprep.mubr.bf16.mxu1 %v14700_v28  ;;  %v463_v41 = vsel %vm461_vm2, %v460_v38, %v452_v36  ;;  %v468_v42 = vsel %vm467_vm4, %v465_v39, %v443_v18  ;;  %v661_v52 = vld [vmem:[%s19608_s4 + $0x5a8] sm:$0xff] }
 0x10e   :  { %2142 = vmatprep.subr.bf16.mxu1 %v12303_v30  ;;  %v466_v44 = vsel %vm464_vm3, %v463_v41, %v440_v26  ;;  %v471_v45 = vsel %vm470_vm5, %v468_v42, %v447_v23  ;;  %v12431_v58 = vcombine.high %v657_v51, %v661_v52  ;;  %v12430_v4 = vcombine.low %v657_v51, %v661_v52  ;;  %v637_v18 = vld [vmem:[%s19608_s4 + $0x4e8] sm:$0xff] }
 0x10f   :  { %v469_v46 = vsel %vm467_vm4, %v466_v44, %v444_v27  ;;  %v474_v49 = vsel %vm473_vm6, %v471_v45, %v451_v24  ;;  %v12407_v22 = vcombine.high %v633_v17, %v637_v18  ;;  %v481_v23 = vld [vmem:[%s19608_s4 + $0x8] sm:$0xff]  ;;  %v12262_v27 = vcombine.low %v489_v15, %v493_v16 }
 0x110   :  { %v472_v48 = vsel %vm470_vm5, %v469_v46, %v448_v31  ;;  %v14741_v56 = vpack.c.bf16 %v474_v49, %v474_v49  ;;  %v485_v24 = vld [vmem:[%s19608_s4 + $0x28] sm:$0xff]  ;;  %v12406_v30 = vcombine.low %v633_v17, %v637_v18 }
 0x111   :  { %2143 = vmatpush1.bf16.msra.mxu1 %v12302_v40  ;;  %v475_v54 = vsel %vm473_vm6, %v472_v48, %v452_v36  ;;  %v629_v26 = vld [vmem:[%s19608_s4 + $0x4a8] sm:$0xff]  ;;  %v12255_v31 = vcombine.high %v481_v23, %v485_v24  ;;  %v12254_v37 = vcombine.low %v481_v23, %v485_v24 }
 0x112   :  { %2144 = vmatprep.subr.bf16.mxu1 %v12295_v43  ;;  %v14739_v55 = vpack.c.bf16 %v475_v54, %v475_v54  ;;  %v12399_v32 = vcombine.high %v625_v25, %v629_v26  ;;  %v601_v33 = vld [vmem:[%s19608_s4 + $0x3c8] sm:$0xff]  ;;  %v12398_v38 = vcombine.low %v625_v25, %v629_v26 }
 0x113   :  { %v621_v36 = vld [vmem:[%s19608_s4 + $0x468] sm:$0xff]  ;;  %v12375_v39 = vcombine.high %v601_v33, %v605_v34  ;;  %v12374_v45 = vcombine.low %v601_v33, %v605_v34 }
 0x114   :  { %2131 = vmatprep.mubr.bf16.mxu0 %v14739_v55  ;;  %v12391_v40 = vcombine.high %v617_v35, %v621_v36  ;;  %v593_v41 = vld [vmem:[%s19608_s4 + $0x388] sm:$0xff]  ;;  %v12390_v46 = vcombine.low %v617_v35, %v621_v36 }
 0x115   :  { %2145 = vmatpush1.bf16.msra.mxu1 %v12294_v53  ;;  %2132 = vmatmul.mubr.bf16.vlgmr.msra.gmra.mxu0 %v14741_v56  ;;  %v597_v42 = vld [vmem:[%s19608_s4 + $0x3a8] sm:$0xff] }
 0x116   :  { %2182 = vmatpush1.bf16.msra.mxu0 %v12438_v62  ;;  %2213 = vmatprep.mubr.bf16.mxu0 %v14739_v55  ;;  %v12278_v62 = vcombine.low %v505_v61, %v509_v63  ;;  %v609_v43 = vld [vmem:[%s19608_s4 + $0x408] sm:$0xff]  ;;  %v12367_v47 = vcombine.high %v593_v41, %v597_v42  ;;  %v12366_v53 = vcombine.low %v593_v41, %v597_v42  ;;  %v538_v41 = vld [vmem:[%s19608_s4 + $0x1d0] sm:$0xff] }
 0x117   :  { %2146 = vmatprep.subr.bf16.mxu1 %v12287_v57  ;;  %2183 = vmatprep.subr.bf16.mxu0 %v12431_v58  ;;  %v613_v44 = vld [vmem:[%s19608_s4 + $0x428] sm:$0xff]  ;;  %v542_v42 = vld [vmem:[%s19608_s4 + $0x1f0] sm:$0xff] }
 0x118   :  { %v12383_v48 = vcombine.high %v609_v43, %v613_v44  ;;  %v585_v49 = vld [vmem:[%s19608_s4 + $0x348] sm:$0xff]  ;;  %v12382_v54 = vcombine.low %v609_v43, %v613_v44 }
 0x119   :  { %2147 = vmatpush1.bf16.msra.mxu1 %v12286_v3  ;;  %v729_v51 = vld [vmem:[%s19608_s4 + $0x7c8] sm:$0xff]  ;;  %v12359_v57 = vcombine.high %v585_v49, %v589_v50  ;;  %v12358_v3 = vcombine.low %v585_v49, %v589_v50  ;;  %v530_v49 = vld [vmem:[%s19608_s4 + $0x190] sm:$0xff] }
 0x11a   :  { %2184 = vmatpush1.bf16.msra.mxu0 %v12430_v4  ;;  %2148 = vmatprep.subr.bf16.mxu1 %v12279_v7  ;;  %v733_v52 = vld [vmem:[%s19608_s4 + $0x7e8] sm:$0xff]  ;;  %v534_v50 = vld [vmem:[%s19608_s4 + $0x1b0] sm:$0xff] }
 0x11b   :  { %2185 = vmatprep.subr.bf16.mxu0 %v12423_v9  ;;  %v12503_v58 = vcombine.high %v729_v51, %v733_v52  ;;  %v577_v61 = vld [vmem:[%s19608_s4 + $0x308] sm:$0xff]  ;;  %v12502_v4 = vcombine.low %v729_v51, %v733_v52 }
 0x11c   :  { %v581_v63 = vld [vmem:[%s19608_s4 + $0x328] sm:$0xff] }
 0x11d   :  { %2149 = vmatpush1.bf16.msra.mxu1 %v12278_v62  ;;  %v725_v2 = vld [vmem:[%s19608_s4 + $0x7a8] sm:$0xff]  ;;  %v12351_v7 = vcombine.high %v577_v61, %v581_v63  ;;  %v12350_v62 = vcombine.low %v577_v61, %v581_v63  ;;  %v522_v61 = vld [vmem:[%s19608_s4 + $0x150] sm:$0xff] }
 0x11e   :  { %2186 = vmatpush1.bf16.msra.mxu0 %v12422_v12  ;;  %2150 = vmatprep.subr.bf16.mxu1 %v12271_v13  ;;  %v12495_v9 = vcombine.high %v721_v0, %v725_v2  ;;  %v569_v10 = vld [vmem:[%s19608_s4 + $0x2c8] sm:$0xff]  ;;  %v12494_v12 = vcombine.low %v721_v0, %v725_v2  ;;  %v526_v63 = vld [vmem:[%s19608_s4 + $0x170] sm:$0xff] }
 0x11f   :  { %2187 = vmatprep.subr.bf16.mxu0 %v12415_v14  ;;  %v573_v11 = vld [vmem:[%s19608_s4 + $0x2e8] sm:$0xff]  ;;  %v666_v0 = vld [vmem:[%s19608_s4 + $0x5d0] sm:$0xff] }
 0x120   :  { %v713_v59 = vld [vmem:[%s19608_s4 + $0x748] sm:$0xff]  ;;  %v12343_v13 = vcombine.high %v569_v10, %v573_v11  ;;  %v670_v2 = vld [vmem:[%s19608_s4 + $0x5f0] sm:$0xff] }
 0x121   :  { %2151 = vmatpush1.bf16.msra.mxu1 %v12270_v19  ;;  %v717_v60 = vld [vmem:[%s19608_s4 + $0x768] sm:$0xff]  ;;  %v12342_v19 = vcombine.low %v569_v10, %v573_v11  ;;  %v514_v10 = vld [vmem:[%s19608_s4 + $0x110] sm:$0xff] }
 0x122   :  { %2188 = vmatpush1.bf16.msra.mxu0 %v12414_v20  ;;  %2152 = vmatprep.subr.bf16.mxu1 %v12263_v21  ;;  %v12487_v14 = vcombine.high %v713_v59, %v717_v60  ;;  %v561_v15 = vld [vmem:[%s19608_s4 + $0x288] sm:$0xff]  ;;  %v12486_v20 = vcombine.low %v713_v59, %v717_v60  ;;  %v518_v11 = vld [vmem:[%s19608_s4 + $0x130] sm:$0xff] }
 0x123   :  { %2189 = vmatprep.subr.bf16.mxu0 %v12407_v22  ;;  %v565_v16 = vld [vmem:[%s19608_s4 + $0x2a8] sm:$0xff]  ;;  %v658_v59 = vld [vmem:[%s19608_s4 + $0x590] sm:$0xff] }
 0x124   :  { %v705_v17 = vld [vmem:[%s19608_s4 + $0x708] sm:$0xff]  ;;  %v12335_v21 = vcombine.high %v561_v15, %v565_v16  ;;  %v662_v60 = vld [vmem:[%s19608_s4 + $0x5b0] sm:$0xff] }
 0x125   :  { %2153 = vmatpush1.bf16.msra.mxu1 %v12262_v27  ;;  %v709_v18 = vld [vmem:[%s19608_s4 + $0x728] sm:$0xff]  ;;  %v12334_v27 = vcombine.low %v561_v15, %v565_v16  ;;  %v506_v15 = vld [vmem:[%s19608_s4 + $0xd0] sm:$0xff] }
 0x126   :  { %2190 = vmatpush1.bf16.msra.mxu0 %v12406_v30  ;;  %2154 = vmatprep.subr.bf16.mxu1 %v12255_v31  ;;  %v12479_v22 = vcombine.high %v705_v17, %v709_v18  ;;  %v553_v23 = vld [vmem:[%s19608_s4 + $0x248] sm:$0xff]  ;;  %v12478_v30 = vcombine.low %v705_v17, %v709_v18  ;;  %v510_v16 = vld [vmem:[%s19608_s4 + $0xf0] sm:$0xff] }
 0x127   :  { %2191 = vmatprep.subr.bf16.mxu0 %v12399_v32  ;;  %v557_v24 = vld [vmem:[%s19608_s4 + $0x268] sm:$0xff]  ;;  %v650_v17 = vld [vmem:[%s19608_s4 + $0x550] sm:$0xff] }
 0x128   :  { %v697_v25 = vld [vmem:[%s19608_s4 + $0x6c8] sm:$0xff]  ;;  %v12327_v31 = vcombine.high %v553_v23, %v557_v24  ;;  %v654_v18 = vld [vmem:[%s19608_s4 + $0x570] sm:$0xff] }
 0x129   :  { %2155 = vmatpush1.bf16.msra.mxu1 %v12254_v37  ;;  %v701_v26 = vld [vmem:[%s19608_s4 + $0x6e8] sm:$0xff]  ;;  %v12326_v37 = vcombine.low %v553_v23, %v557_v24  ;;  %v498_v23 = vld [vmem:[%s19608_s4 + $0x90] sm:$0xff] }
 0x12a   :  { %2192 = vmatpush1.bf16.msra.mxu0 %v12398_v38  ;;  %2156 = vmatprep.subr.bf16.mxu1 %v12375_v39  ;;  %v12471_v32 = vcombine.high %v697_v25, %v701_v26  ;;  %v545_v33 = vld [vmem:[%s19608_s4 + $0x208] sm:$0xff]  ;;  %v12470_v38 = vcombine.low %v697_v25, %v701_v26  ;;  %v502_v24 = vld [vmem:[%s19608_s4 + $0xb0] sm:$0xff] }
 0x12b   :  { %2193 = vmatprep.subr.bf16.mxu0 %v12391_v40  ;;  %v549_v34 = vld [vmem:[%s19608_s4 + $0x228] sm:$0xff]  ;;  %v642_v25 = vld [vmem:[%s19608_s4 + $0x510] sm:$0xff] }
 0x12c   :  { %v689_v35 = vld [vmem:[%s19608_s4 + $0x688] sm:$0xff]  ;;  %v12319_v39 = vcombine.high %v545_v33, %v549_v34  ;;  %v646_v26 = vld [vmem:[%s19608_s4 + $0x530] sm:$0xff] }
 0x12d   :  { %2157 = vmatpush2.bf16.msra.mxu1 %v12374_v45  ;;  %v693_v36 = vld [vmem:[%s19608_s4 + $0x6a8] sm:$0xff]  ;;  %v12318_v45 = vcombine.low %v545_v33, %v549_v34  ;;  %v490_v33 = vld [vmem:[%s19608_s4 + $0x50] sm:$0xff] }
 0x12e   :  { %2194 = vmatpush1.bf16.msra.mxu0 %v12390_v46  ;;  %2158 = vmatprep.subr.bf16.mxu1 %v12367_v47  ;;  %v12463_v40 = vcombine.high %v689_v35, %v693_v36  ;;  %v681_v43 = vld [vmem:[%s19608_s4 + $0x648] sm:$0xff]  ;;  %v12462_v46 = vcombine.low %v689_v35, %v693_v36  ;;  %v12313_v47 = vcombine.high %v538_v41, %v542_v42  ;;  %v494_v34 = vld [vmem:[%s19608_s4 + $0x70] sm:$0xff] }
 0x12f   :  { %2195 = vmatprep.subr.bf16.mxu0 %v12383_v48  ;;  %v685_v44 = vld [vmem:[%s19608_s4 + $0x668] sm:$0xff]  ;;  %v634_v35 = vld [vmem:[%s19608_s4 + $0x4d0] sm:$0xff] }
 0x130   :  { %v12455_v48 = vcombine.high %v681_v43, %v685_v44  ;;  %v673_v51 = vld [vmem:[%s19608_s4 + $0x608] sm:$0xff]  ;;  %v638_v36 = vld [vmem:[%s19608_s4 + $0x4f0] sm:$0xff] }
 0x131   :  { %2159 = vmatpush2.bf16.msra.mxu1 %v12366_v53  ;;  %v677_v52 = vld [vmem:[%s19608_s4 + $0x628] sm:$0xff]  ;;  %v12312_v53 = vcombine.low %v538_v41, %v542_v42  ;;  %v482_v41 = vld [vmem:[%s19608_s4 + $0x10] sm:$0xff] }
 0x132   :  { %2196 = vmatpush1.bf16.msra.mxu0 %v12382_v54  ;;  %2160 = vmatprep.subr.bf16.mxu1 %v12359_v57  ;;  %v12454_v54 = vcombine.low %v681_v43, %v685_v44  ;;  %v12305_v57 = vcombine.high %v530_v49, %v534_v50  ;;  %v486_v42 = vld [vmem:[%s19608_s4 + $0x30] sm:$0xff] }
 0x133   :  { %2197 = vmatprep.subr.bf16.mxu0 %v12503_v58  ;;  %v12447_v58 = vcombine.high %v673_v51, %v677_v52  ;;  %v626_v43 = vld [vmem:[%s19608_s4 + $0x490] sm:$0xff] }
 0x134   :  { %v630_v44 = vld [vmem:[%s19608_s4 + $0x4b0] sm:$0xff] }
 0x135   :  { %2161 = vmatpush2.bf16.msra.mxu1 %v12358_v3  ;;  %v12304_v3 = vcombine.low %v530_v49, %v534_v50  ;;  %v602_v49 = vld [vmem:[%s19608_s4 + $0x3d0] sm:$0xff] }
 0x136   :  { %2198 = vmatpush2.bf16.msra.mxu0 %v12502_v4  ;;  %2162 = vmatprep.subr.bf16.mxu1 %v12351_v7  ;;  %v12446_v4 = vcombine.low %v673_v51, %v677_v52  ;;  %v12297_v7 = vcombine.high %v522_v61, %v526_v63  ;;  %v606_v50 = vld [vmem:[%s19608_s4 + $0x3f0] sm:$0xff] }
 0x137   :  { %2199 = vmatprep.subr.bf16.mxu0 %v12495_v9  ;;  %v12441_v9 = vcombine.high %v666_v0, %v670_v2  ;;  %v618_v51 = vld [vmem:[%s19608_s4 + $0x450] sm:$0xff] }
 0x138   :  { %v622_v52 = vld [vmem:[%s19608_s4 + $0x470] sm:$0xff] }
 0x139   :  { %2163 = vmatpush2.bf16.msra.mxu1 %v12350_v62  ;;  %v12296_v62 = vcombine.low %v522_v61, %v526_v63  ;;  %v594_v61 = vld [vmem:[%s19608_s4 + $0x390] sm:$0xff] }
 0x13a   :  { %2200 = vmatpush2.bf16.msra.mxu0 %v12494_v12  ;;  %2164 = vmatprep.subr.bf16.mxu1 %v12343_v13  ;;  %v12440_v12 = vcombine.low %v666_v0, %v670_v2  ;;  %v12289_v13 = vcombine.high %v514_v10, %v518_v11  ;;  %v598_v63 = vld [vmem:[%s19608_s4 + $0x3b0] sm:$0xff] }
 0x13b   :  { %2201 = vmatprep.subr.bf16.mxu0 %v12487_v14  ;;  %v12433_v14 = vcombine.high %v658_v59, %v662_v60  ;;  %v610_v0 = vld [vmem:[%s19608_s4 + $0x410] sm:$0xff] }
 0x13c   :  { %v614_v2 = vld [vmem:[%s19608_s4 + $0x430] sm:$0xff] }
 0x13d   :  { %2165 = vmatpush2.bf16.msra.mxu1 %v12342_v19  ;;  %v12288_v19 = vcombine.low %v514_v10, %v518_v11  ;;  %v586_v10 = vld [vmem:[%s19608_s4 + $0x350] sm:$0xff] }
 0x13e   :  { %2202 = vmatpush2.bf16.msra.mxu0 %v12486_v20  ;;  %2166 = vmatprep.subr.bf16.mxu1 %v12335_v21  ;;  %v12432_v20 = vcombine.low %v658_v59, %v662_v60  ;;  %v12281_v21 = vcombine.high %v506_v15, %v510_v16  ;;  %v590_v11 = vld [vmem:[%s19608_s4 + $0x370] sm:$0xff] }
 0x13f   :  { %2203 = vmatprep.subr.bf16.mxu0 %v12479_v22  ;;  %v12425_v22 = vcombine.high %v650_v17, %v654_v18  ;;  %v730_v59 = vld [vmem:[%s19608_s4 + $0x7d0] sm:$0xff] }
 0x140   :  { %v734_v60 = vld [vmem:[%s19608_s4 + $0x7f0] sm:$0xff] }
 0x141   :  { %2167 = vmatpush2.bf16.msra.mxu1 %v12334_v27  ;;  %v12280_v27 = vcombine.low %v506_v15, %v510_v16  ;;  %v578_v15 = vld [vmem:[%s19608_s4 + $0x310] sm:$0xff] }
 0x142   :  { %2204 = vmatpush2.bf16.msra.mxu0 %v12478_v30  ;;  %2168 = vmatprep.subr.bf16.mxu1 %v12327_v31  ;;  %v12424_v30 = vcombine.low %v650_v17, %v654_v18  ;;  %v12273_v31 = vcombine.high %v498_v23, %v502_v24  ;;  %v582_v16 = vld [vmem:[%s19608_s4 + $0x330] sm:$0xff] }
 0x143   :  { %2205 = vmatprep.subr.bf16.mxu0 %v12471_v32  ;;  %v12417_v32 = vcombine.high %v642_v25, %v646_v26  ;;  %v722_v17 = vld [vmem:[%s19608_s4 + $0x790] sm:$0xff] }
 0x144   :  { %v726_v18 = vld [vmem:[%s19608_s4 + $0x7b0] sm:$0xff] }
 0x145   :  { %2169 = vmatpush2.bf16.msra.mxu1 %v12326_v37  ;;  %v12272_v37 = vcombine.low %v498_v23, %v502_v24  ;;  %v570_v23 = vld [vmem:[%s19608_s4 + $0x2d0] sm:$0xff] }
 0x146   :  { %2206 = vmatpush2.bf16.msra.mxu0 %v12470_v38  ;;  %2170 = vmatprep.subr.bf16.mxu1 %v12319_v39  ;;  %v12416_v38 = vcombine.low %v642_v25, %v646_v26  ;;  %v12265_v39 = vcombine.high %v490_v33, %v494_v34  ;;  %v574_v24 = vld [vmem:[%s19608_s4 + $0x2f0] sm:$0xff] }
 0x147   :  { %2207 = vmatprep.subr.bf16.mxu0 %v12463_v40  ;;  %v12409_v40 = vcombine.high %v634_v35, %v638_v36  ;;  %v714_v25 = vld [vmem:[%s19608_s4 + $0x750] sm:$0xff] }
 0x148   :  { %v718_v26 = vld [vmem:[%s19608_s4 + $0x770] sm:$0xff] }
 0x149   :  { %2171 = vmatpush2.bf16.msra.mxu1 %v12318_v45  ;;  %v12264_v45 = vcombine.low %v490_v33, %v494_v34  ;;  %v562_v33 = vld [vmem:[%s19608_s4 + $0x290] sm:$0xff] }
 0x14a   :  { %2208 = vmatpush2.bf16.msra.mxu0 %v12462_v46  ;;  %2222 = vmatprep.subr.bf16.mxu1 %v12313_v47  ;;  %v12408_v46 = vcombine.low %v634_v35, %v638_v36  ;;  %v12257_v47 = vcombine.high %v482_v41, %v486_v42  ;;  %v566_v34 = vld [vmem:[%s19608_s4 + $0x2b0] sm:$0xff] }
 0x14b   :  { %2209 = vmatprep.subr.bf16.mxu0 %v12455_v48  ;;  %v12401_v48 = vcombine.high %v626_v43, %v630_v44  ;;  %v706_v35 = vld [vmem:[%s19608_s4 + $0x710] sm:$0xff] }
 0x14c   :  { %2173 = vmatmul.mubr.bf16.vlgmr.msra.gmra.mxu1 %v14702_v29  ;;  %v710_v36 = vld [vmem:[%s19608_s4 + $0x730] sm:$0xff] }
 0x14d   :  { %2223 = vmatpush1.bf16.msra.mxu1 %v12312_v53  ;;  %2254 = vmatprep.mubr.bf16.mxu1 %v14700_v28  ;;  %v12256_v53 = vcombine.low %v482_v41, %v486_v42  ;;  %v554_v41 = vld [vmem:[%s19608_s4 + $0x250] sm:$0xff] }
 0x14e   :  { %2210 = vmatpush2.bf16.msra.mxu0 %v12454_v54  ;;  %2224 = vmatprep.subr.bf16.mxu1 %v12305_v57  ;;  %v12400_v54 = vcombine.low %v626_v43, %v630_v44  ;;  %v12377_v57 = vcombine.high %v602_v49, %v606_v50  ;;  %v558_v42 = vld [vmem:[%s19608_s4 + $0x270] sm:$0xff] }
 0x14f   :  { %2211 = vmatprep.subr.bf16.mxu0 %v12447_v58  ;;  %v12393_v58 = vcombine.high %v618_v51, %v622_v52  ;;  %v698_v43 = vld [vmem:[%s19608_s4 + $0x6d0] sm:$0xff] }
 0x150   :  { %v702_v44 = vld [vmem:[%s19608_s4 + $0x6f0] sm:$0xff] }
 0x151   :  { %2225 = vmatpush1.bf16.msra.mxu1 %v12304_v3  ;;  %v12376_v3 = vcombine.low %v602_v49, %v606_v50  ;;  %v546_v49 = vld [vmem:[%s19608_s4 + $0x210] sm:$0xff] }
 0x152   :  { %2212 = vmatpush2.bf16.msra.mxu0 %v12446_v4  ;;  %2226 = vmatprep.subr.bf16.mxu1 %v12297_v7  ;;  %v12392_v4 = vcombine.low %v618_v51, %v622_v52  ;;  %v12369_v7 = vcombine.high %v594_v61, %v598_v63  ;;  %v550_v50 = vld [vmem:[%s19608_s4 + $0x230] sm:$0xff] }
 0x153   :  { %2263 = vmatprep.subr.bf16.mxu0 %v12441_v9  ;;  %v12385_v9 = vcombine.high %v610_v0, %v614_v2  ;;  %v690_v51 = vld [vmem:[%s19608_s4 + $0x690] sm:$0xff] }
 0x154   :  { %v694_v52 = vld [vmem:[%s19608_s4 + $0x6b0] sm:$0xff] }
 0x155   :  { %2214 = vmatmul.mubr.bf16.vlgmr.msra.gmra.mxu0 %v14741_v56  ;;  %2227 = vmatpush1.bf16.msra.mxu1 %v12296_v62  ;;  %v12368_v62 = vcombine.low %v594_v61, %v598_v63  ;;  %v539_v61 = vld [vmem:[%s19608_s4 + $0x1d8] sm:$0xff] }
 0x156   :  { %2264 = vmatpush1.bf16.msra.mxu0 %v12440_v12  ;;  %2295 = vmatprep.mubr.bf16.mxu0 %v14739_v55  ;;  %v12384_v12 = vcombine.low %v610_v0, %v614_v2  ;;  %v543_v63 = vld [vmem:[%s19608_s4 + $0x1f8] sm:$0xff]  ;;  %v682_v0 = vld [vmem:[%s19608_s4 + $0x650] sm:$0xff] }
 0x157   :  { %2228 = vmatprep.subr.bf16.mxu1 %v12289_v13  ;;  %2265 = vmatprep.subr.bf16.mxu0 %v12433_v14  ;;  %v12361_v13 = vcombine.high %v586_v10, %v590_v11  ;;  %v12505_v14 = vcombine.high %v730_v59, %v734_v60  ;;  %v686_v2 = vld [vmem:[%s19608_s4 + $0x670] sm:$0xff] }
 0x159   :  { %2229 = vmatpush1.bf16.msra.mxu1 %v12288_v19  ;;  %v12360_v19 = vcombine.low %v586_v10, %v590_v11  ;;  %v531_v10 = vld [vmem:[%s19608_s4 + $0x198] sm:$0xff] }
 0x15a   :  { %2266 = vmatpush1.bf16.msra.mxu0 %v12432_v20  ;;  %2230 = vmatprep.subr.bf16.mxu1 %v12281_v21  ;;  %v12504_v20 = vcombine.low %v730_v59, %v734_v60  ;;  %v12353_v21 = vcombine.high %v578_v15, %v582_v16  ;;  %v535_v11 = vld [vmem:[%s19608_s4 + $0x1b8] sm:$0xff]  ;;  %v674_v59 = vld [vmem:[%s19608_s4 + $0x610] sm:$0xff] }
 0x15b   :  { %2267 = vmatprep.subr.bf16.mxu0 %v12425_v22  ;;  %v12497_v22 = vcombine.high %v722_v17, %v726_v18  ;;  %v678_v60 = vld [vmem:[%s19608_s4 + $0x630] sm:$0xff] }
 0x15d   :  { %2231 = vmatpush1.bf16.msra.mxu1 %v12280_v27  ;;  %v12352_v27 = vcombine.low %v578_v15, %v582_v16  ;;  %v523_v15 = vld [vmem:[%s19608_s4 + $0x158] sm:$0xff] }
 0x15e   :  { %2268 = vmatpush1.bf16.msra.mxu0 %v12424_v30  ;;  %2232 = vmatprep.subr.bf16.mxu1 %v12273_v31  ;;  %v12496_v30 = vcombine.low %v722_v17, %v726_v18  ;;  %v12345_v31 = vcombine.high %v570_v23, %v574_v24  ;;  %v527_v16 = vld [vmem:[%s19608_s4 + $0x178] sm:$0xff] }
 0x15f   :  { %2269 = vmatprep.subr.bf16.mxu0 %v12417_v32  ;;  %v12489_v32 = vcombine.high %v714_v25, %v718_v26  ;;  %v667_v17 = vld [vmem:[%s19608_s4 + $0x5d8] sm:$0xff] }
 0x160   :  { %v671_v18 = vld [vmem:[%s19608_s4 + $0x5f8] sm:$0xff] }
 0x161   :  { %2233 = vmatpush1.bf16.msra.mxu1 %v12272_v37  ;;  %v12344_v37 = vcombine.low %v570_v23, %v574_v24  ;;  %v515_v23 = vld [vmem:[%s19608_s4 + $0x118] sm:$0xff] }
 0x162   :  { %2270 = vmatpush1.bf16.msra.mxu0 %v12416_v38  ;;  %2234 = vmatprep.subr.bf16.mxu1 %v12265_v39  ;;  %v12488_v38 = vcombine.low %v714_v25, %v718_v26  ;;  %v12337_v39 = vcombine.high %v562_v33, %v566_v34  ;;  %v519_v24 = vld [vmem:[%s19608_s4 + $0x138] sm:$0xff]  ;;  %v12298_v26 = vcombine.low %v523_v15, %v527_v16 }
 0x163   :  { %2271 = vmatprep.subr.bf16.mxu0 %v12409_v40  ;;  %v12481_v40 = vcombine.high %v706_v35, %v710_v36  ;;  %v659_v25 = vld [vmem:[%s19608_s4 + $0x598] sm:$0xff] }
 0x165   :  { %2235 = vmatpush1.bf16.msra.mxu1 %v12264_v45  ;;  %v12336_v45 = vcombine.low %v562_v33, %v566_v34  ;;  %v511_v33 = vld [vmem:[%s19608_s4 + $0xf8] sm:$0xff] }
 0x166   :  { %2272 = vmatpush1.bf16.msra.mxu0 %v12408_v46  ;;  %2236 = vmatprep.subr.bf16.mxu1 %v12257_v47  ;;  %v12480_v46 = vcombine.low %v706_v35, %v710_v36  ;;  %v12329_v47 = vcombine.high %v554_v41, %v558_v42  ;;  %v651_v34 = vld [vmem:[%s19608_s4 + $0x558] sm:$0xff]  ;;  %v12290_v36 = vcombine.low %v515_v23, %v519_v24 }
 0x167   :  { %2273 = vmatprep.subr.bf16.mxu0 %v12401_v48  ;;  %v12473_v48 = vcombine.high %v698_v43, %v702_v44  ;;  %v655_v35 = vld [vmem:[%s19608_s4 + $0x578] sm:$0xff] }
 0x169   :  { %2237 = vmatpush1.bf16.msra.mxu1 %v12256_v53  ;;  %v12328_v53 = vcombine.low %v554_v41, %v558_v42  ;;  %v503_v41 = vld [vmem:[%s19608_s4 + $0xb8] sm:$0xff] }
 0x16a   :  { %2274 = vmatpush1.bf16.msra.mxu0 %v12400_v54  ;;  %2238 = vmatprep.subr.bf16.mxu1 %v12377_v57  ;;  %v12472_v54 = vcombine.low %v698_v43, %v702_v44  ;;  %v12321_v57 = vcombine.high %v546_v49, %v550_v50  ;;  %v643_v42 = vld [vmem:[%s19608_s4 + $0x518] sm:$0xff]  ;;  %v12426_v44 = vcombine.low %v651_v34, %v655_v35 }
 0x16b   :  { %2275 = vmatprep.subr.bf16.mxu0 %v12393_v58  ;;  %v12465_v58 = vcombine.high %v690_v51, %v694_v52 }
 0x16d   :  { %2239 = vmatpush2.bf16.msra.mxu1 %v12376_v3  ;;  %v12320_v3 = vcombine.low %v546_v49, %v550_v50  ;;  %v635_v49 = vld [vmem:[%s19608_s4 + $0x4d8] sm:$0xff] }
 0x16e   :  { %2276 = vmatpush1.bf16.msra.mxu0 %v12392_v4  ;;  %2240 = vmatprep.subr.bf16.mxu1 %v12369_v7  ;;  %v12464_v4 = vcombine.low %v690_v51, %v694_v52  ;;  %v12315_v7 = vcombine.high %v539_v61, %v543_v63  ;;  %v639_v50 = vld [vmem:[%s19608_s4 + $0x4f8] sm:$0xff] }
 0x16f   :  { %2277 = vmatprep.subr.bf16.mxu0 %v12385_v9  ;;  %v12457_v9 = vcombine.high %v682_v0, %v686_v2 }
 0x171   :  { %2241 = vmatpush2.bf16.msra.mxu1 %v12368_v62  ;;  %v12314_v62 = vcombine.low %v539_v61, %v543_v63  ;;  %v627_v61 = vld [vmem:[%s19608_s4 + $0x498] sm:$0xff] }
 0x172   :  { %2278 = vmatpush1.bf16.msra.mxu0 %v12384_v12  ;;  %2242 = vmatprep.subr.bf16.mxu1 %v12361_v13  ;;  %v12456_v12 = vcombine.low %v682_v0, %v686_v2  ;;  %v12307_v13 = vcombine.high %v531_v10, %v535_v11  ;;  %v631_v63 = vld [vmem:[%s19608_s4 + $0x4b8] sm:$0xff]  ;;  %v12410_v2 = vcombine.low %v635_v49, %v639_v50 }
 0x173   :  { %2279 = vmatprep.subr.bf16.mxu0 %v12505_v14  ;;  %v12449_v14 = vcombine.high %v674_v59, %v678_v60 }
 0x175   :  { %2243 = vmatpush2.bf16.msra.mxu1 %v12360_v19  ;;  %v12306_v19 = vcombine.low %v531_v10, %v535_v11  ;;  %v619_v10 = vld [vmem:[%s19608_s4 + $0x458] sm:$0xff] }
 0x176   :  { %2280 = vmatpush2.bf16.msra.mxu0 %v12504_v20  ;;  %2244 = vmatprep.subr.bf16.mxu1 %v12353_v21  ;;  %v12448_v20 = vcombine.low %v674_v59, %v678_v60  ;;  %v12299_v21 = vcombine.high %v523_v15, %v527_v16  ;;  %v623_v11 = vld [vmem:[%s19608_s4 + $0x478] sm:$0xff]  ;;  %v12402_v60 = vcombine.low %v627_v61, %v631_v63 }
 0x177   :  { %2281 = vmatprep.subr.bf16.mxu0 %v12497_v22  ;;  %v12443_v22 = vcombine.high %v667_v17, %v671_v18  ;;  %v611_v15 = vld [vmem:[%s19608_s4 + $0x418] sm:$0xff] }
 0x178   :  { %v615_v16 = vld [vmem:[%s19608_s4 + $0x438] sm:$0xff] }
 0x179   :  { %2245 = vmatpush2.bf16.msra.mxu1 %v12352_v27  ;;  %v12442_v27 = vcombine.low %v667_v17, %v671_v18  ;;  %v12394_v18 = vcombine.low %v619_v10, %v623_v11 }
 0x17a   :  { %2282 = vmatpush2.bf16.msra.mxu0 %v12496_v30  ;;  %2246 = vmatprep.subr.bf16.mxu1 %v12345_v31  ;;  %v12291_v30 = vcombine.high %v515_v23, %v519_v24  ;;  %v731_v23 = vld [vmem:[%s19608_s4 + $0x7d8] sm:$0xff] }
 0x17b   :  { %2283 = vmatprep.subr.bf16.mxu0 %v12489_v32  ;;  %v507_v32 = vld [vmem:[%s19608_s4 + $0xd8] sm:$0xff] }
 0x17c   :  { %v12282_v43 = vcombine.low %v507_v32, %v511_v33  ;;  %v735_v24 = vld [vmem:[%s19608_s4 + $0x7f8] sm:$0xff] }
 0x17d   :  { %2247 = vmatpush2.bf16.msra.mxu1 %v12344_v37 }
 0x17e   :  { %2284 = vmatpush2.bf16.msra.mxu0 %v12488_v38  ;;  %2248 = vmatprep.subr.bf16.mxu1 %v12337_v39  ;;  %v12283_v38 = vcombine.high %v507_v32, %v511_v33  ;;  %v12427_v39 = vcombine.high %v651_v34, %v655_v35  ;;  %v723_v32 = vld [vmem:[%s19608_s4 + $0x798] sm:$0xff]  ;;  %v12506_v35 = vcombine.low %v731_v23, %v735_v24 }
 0x17f   :  { %2285 = vmatprep.subr.bf16.mxu0 %v12481_v40  ;;  %v499_v40 = vld [vmem:[%s19608_s4 + $0x98] sm:$0xff] }
 0x180   :  { %v12274_v51 = vcombine.low %v499_v40, %v503_v41  ;;  %v727_v33 = vld [vmem:[%s19608_s4 + $0x7b8] sm:$0xff] }
 0x181   :  { %2249 = vmatpush2.bf16.msra.mxu1 %v12336_v45  ;;  %v12275_v45 = vcombine.high %v499_v40, %v503_v41  ;;  %v715_v40 = vld [vmem:[%s19608_s4 + $0x758] sm:$0xff] }
 0x182   :  { %2286 = vmatpush2.bf16.msra.mxu0 %v12480_v46  ;;  %2250 = vmatprep.subr.bf16.mxu1 %v12329_v47  ;;  %v491_v47 = vld [vmem:[%s19608_s4 + $0x58] sm:$0xff] }
 0x183   :  { %2287 = vmatprep.subr.bf16.mxu0 %v12473_v48  ;;  %v495_v48 = vld [vmem:[%s19608_s4 + $0x78] sm:$0xff] }
 0x184   :  { %v12266_v0 = vcombine.low %v491_v47, %v495_v48  ;;  %v719_v41 = vld [vmem:[%s19608_s4 + $0x778] sm:$0xff] }
 0x185   :  { %2251 = vmatpush2.bf16.msra.mxu1 %v12328_v53  ;;  %v12267_v53 = vcombine.high %v491_v47, %v495_v48  ;;  %v707_v47 = vld [vmem:[%s19608_s4 + $0x718] sm:$0xff] }
 0x186   :  { %2288 = vmatpush2.bf16.msra.mxu0 %v12472_v54  ;;  %2252 = vmatprep.subr.bf16.mxu1 %v12321_v57  ;;  %v12411_v54 = vcombine.high %v635_v49, %v639_v50  ;;  %v483_v57 = vld [vmem:[%s19608_s4 + $0x18] sm:$0xff]  ;;  %v12490_v50 = vcombine.low %v715_v40, %v719_v41 }
 0x187   :  { %2289 = vmatprep.subr.bf16.mxu0 %v12465_v58  ;;  %v487_v58 = vld [vmem:[%s19608_s4 + $0x38] sm:$0xff] }
 0x188   :  { %v12258_v59 = vcombine.low %v483_v57, %v487_v58  ;;  %v711_v48 = vld [vmem:[%s19608_s4 + $0x738] sm:$0xff] }
 0x189   :  { %2253 = vmatpush2.bf16.msra.mxu1 %v12320_v3  ;;  %v12259_v3 = vcombine.high %v483_v57, %v487_v58  ;;  %v699_v57 = vld [vmem:[%s19608_s4 + $0x6d8] sm:$0xff] }
 0x18a   :  { %2290 = vmatpush2.bf16.msra.mxu0 %v12464_v4  ;;  %2304 = vmatprep.subr.bf16.mxu1 %v12315_v7  ;;  %v12403_v4 = vcombine.high %v627_v61, %v631_v63  ;;  %v603_v7 = vld [vmem:[%s19608_s4 + $0x3d8] sm:$0xff]  ;;  %v12482_v63 = vcombine.low %v707_v47, %v711_v48 }
 0x18b   :  { %2291 = vmatprep.subr.bf16.mxu0 %v12457_v9  ;;  %v607_v9 = vld [vmem:[%s19608_s4 + $0x3f8] sm:$0xff] }
 0x18c   :  { %2255 = vmatmul.mubr.bf16.vlgmr.msra.gmra.mxu1 %v14702_v29  ;;  %v12378_v17 = vcombine.low %v603_v7, %v607_v9  ;;  %v703_v58 = vld [vmem:[%s19608_s4 + $0x6f8] sm:$0xff] }
 0x18d   :  { %2305 = vmatpush1.bf16.msra.mxu1 %v12314_v62  ;;  %2336 = vmatprep.mubr.bf16.mxu1 %v14700_v28  ;;  %v663_v28 = vld [vmem:[%s19608_s4 + $0x5b8] sm:$0xff]  ;;  %v12379_v62 = vcombine.high %v603_v7, %v607_v9 }
 0x18e   :  { %2292 = vmatpush2.bf16.msra.mxu0 %v12456_v12  ;;  %2306 = vmatprep.subr.bf16.mxu1 %v12307_v13  ;;  %v12435_v31 = vcombine.high %v659_v25, %v663_v28  ;;  %v12434_v37 = vcombine.low %v659_v25, %v663_v28  ;;  %v12395_v12 = vcombine.high %v619_v10, %v623_v11  ;;  %v595_v13 = vld [vmem:[%s19608_s4 + $0x398] sm:$0xff] }
 0x18f   :  { %2293 = vmatprep.subr.bf16.mxu0 %v12449_v14  ;;  %v599_v14 = vld [vmem:[%s19608_s4 + $0x3b8] sm:$0xff]  ;;  %v12386_v28 = vcombine.low %v611_v15, %v615_v16  ;;  %v12474_v11 = vcombine.low %v699_v57, %v703_v58 }
 0x190   :  { %v12370_v25 = vcombine.low %v595_v13, %v599_v14  ;;  %v691_v7 = vld [vmem:[%s19608_s4 + $0x698] sm:$0xff] }
 0x191   :  { %2307 = vmatpush1.bf16.msra.mxu1 %v12306_v19  ;;  %v12371_v19 = vcombine.high %v595_v13, %v599_v14  ;;  %v695_v9 = vld [vmem:[%s19608_s4 + $0x6b8] sm:$0xff] }
 0x192   :  { %2294 = vmatpush2.bf16.msra.mxu0 %v12448_v20  ;;  %2308 = vmatprep.subr.bf16.mxu1 %v12299_v21  ;;  %v12387_v20 = vcombine.high %v611_v15, %v615_v16  ;;  %v587_v21 = vld [vmem:[%s19608_s4 + $0x358] sm:$0xff]  ;;  %v12466_v16 = vcombine.low %v691_v7, %v695_v9 }
 0x193   :  { %2345 = vmatprep.subr.bf16.mxu0 %v12443_v22  ;;  %v591_v22 = vld [vmem:[%s19608_s4 + $0x378] sm:$0xff] }
 0x194   :  { %v12362_v34 = vcombine.low %v587_v21, %v591_v22  ;;  %v683_v13 = vld [vmem:[%s19608_s4 + $0x658] sm:$0xff] }
 0x195   :  { %2296 = vmatmul.mubr.bf16.vlgmr.msra.gmra.mxu0 %v14741_v56  ;;  %2309 = vmatpush1.bf16.msra.mxu1 %v12298_v26  ;;  %v12363_v26 = vcombine.high %v587_v21, %v591_v22  ;;  %v687_v14 = vld [vmem:[%s19608_s4 + $0x678] sm:$0xff] }
 0x196   :  { %2346 = vmatpush1.bf16.msra.mxu0 %v12442_v27  ;;  %2377 = vmatprep.mubr.bf16.mxu0 %v14739_v55  ;;  %v647_v55 = vld [vmem:[%s19608_s4 + $0x538] sm:$0xff]  ;;  %v12507_v27 = vcombine.high %v731_v23, %v735_v24  ;;  %v12458_v24 = vcombine.low %v683_v13, %v687_v14 }
 0x197   :  { %2310 = vmatprep.subr.bf16.mxu1 %v12291_v30  ;;  %2347 = vmatprep.subr.bf16.mxu0 %v12435_v31  ;;  %v12419_v46 = vcombine.high %v643_v42, %v647_v55  ;;  %v12418_v52 = vcombine.low %v643_v42, %v647_v55  ;;  %v579_v30 = vld [vmem:[%s19608_s4 + $0x318] sm:$0xff]  ;;  %v12498_v55 = vcombine.low %v723_v32, %v727_v33 }
 0x198   :  { %v583_v31 = vld [vmem:[%s19608_s4 + $0x338] sm:$0xff] }
 0x199   :  { %2311 = vmatpush1.bf16.msra.mxu1 %v12290_v36  ;;  %v12355_v36 = vcombine.high %v579_v30, %v583_v31  ;;  %v12354_v42 = vcombine.low %v579_v30, %v583_v31  ;;  %v675_v21 = vld [vmem:[%s19608_s4 + $0x618] sm:$0xff]  ;;  %v2451_v31 = vld [vmem:[%s19610_s6 + $0x1c8] sm:$0xff] }
 0x19a   :  { %2348 = vmatpush1.bf16.msra.mxu0 %v12434_v37  ;;  %2312 = vmatprep.subr.bf16.mxu1 %v12283_v38  ;;  %v12499_v37 = vcombine.high %v723_v32, %v727_v33  ;;  %v571_v38 = vld [vmem:[%s19608_s4 + $0x2d8] sm:$0xff]  ;;  %v2455_v32 = vld [vmem:[%s19610_s6 + $0x1e8] sm:$0xff]  ;;  %v15325_v33 = vld [vmem:[%s19611_s5] sm:$0xff] }
 0x19b   :  { %2349 = vmatprep.subr.bf16.mxu0 %v12427_v39  ;;  %v575_v39 = vld [vmem:[%s19608_s4 + $0x2f8] sm:$0xff] }
 0x19c   :  { %v12346_v49 = vcombine.low %v571_v38, %v575_v39  ;;  %v679_v22 = vld [vmem:[%s19608_s4 + $0x638] sm:$0xff] }
 0x19d   :  { %2313 = vmatpush1.bf16.msra.mxu1 %v12282_v43  ;;  %v12347_v43 = vcombine.high %v571_v38, %v575_v39  ;;  %v2426_v38 = vld [vmem:[%s19610_s6 + $0x100] sm:$0xff] }
 0x19e   :  { %2350 = vmatpush1.bf16.msra.mxu0 %v12426_v44  ;;  %2314 = vmatprep.subr.bf16.mxu1 %v12275_v45  ;;  %v12491_v44 = vcombine.high %v715_v40, %v719_v41  ;;  %v563_v45 = vld [vmem:[%s19608_s4 + $0x298] sm:$0xff]  ;;  %v2430_v39 = vld [vmem:[%s19610_s6 + $0x120] sm:$0xff]  ;;  %v741_v40 = vrot.slane %v15325_v33, %v14683_v6 }
 0x19f   :  { %2351 = vmatprep.subr.bf16.mxu0 %v12419_v46  ;;  %v567_v46 = vld [vmem:[%s19608_s4 + $0x2b8] sm:$0xff] }
 0x1a0   :  { %v12338_v61 = vcombine.low %v563_v45, %v567_v46 }
 0x1a1   :  { %2315 = vmatpush1.bf16.msra.mxu1 %v12274_v51  ;;  %v12339_v51 = vcombine.high %v563_v45, %v567_v46  ;;  %v15350_v46 = vcombine.low %v2451_v31, %v2455_v32 }
 0x1a2   :  { %2352 = vmatpush1.bf16.msra.mxu0 %v12418_v52  ;;  %2316 = vmatprep.subr.bf16.mxu1 %v12267_v53  ;;  %v12483_v52 = vcombine.high %v707_v47, %v711_v48  ;;  %v555_v53 = vld [vmem:[%s19608_s4 + $0x258] sm:$0xff]  ;;  %v15353_v47 = vcombine.high %v2426_v38, %v2430_v39 }
 0x1a3   :  { %2353 = vmatprep.subr.bf16.mxu0 %v12411_v54  ;;  %v559_v54 = vld [vmem:[%s19608_s4 + $0x278] sm:$0xff] }
 0x1a4   :  { %v12330_v10 = vcombine.low %v555_v53, %v559_v54 }
 0x1a5   :  { %2317 = vmatpush1.bf16.msra.mxu1 %v12266_v0  ;;  %v12331_v0 = vcombine.high %v555_v53, %v559_v54  ;;  %v2439_v53 = vld [vmem:[%s19610_s6 + $0x168] sm:$0xff] }
 0x1a6   :  { %2354 = vmatpush1.bf16.msra.mxu0 %v12410_v2  ;;  %2318 = vmatprep.subr.bf16.mxu1 %v12259_v3  ;;  %v12475_v2 = vcombine.high %v699_v57, %v703_v58  ;;  %v547_v3 = vld [vmem:[%s19608_s4 + $0x218] sm:$0xff]  ;;  %v15374_v58 = vcombine.low %v2426_v38, %v2430_v39 }
 0x1a7   :  { %2355 = vmatprep.subr.bf16.mxu0 %v12403_v4  ;;  %v551_v4 = vld [vmem:[%s19608_s4 + $0x238] sm:$0xff] }
 0x1a8   :  { %v12322_v15 = vcombine.low %v547_v3, %v551_v4 }
 0x1a9   :  { %2319 = vmatpush1.bf16.msra.mxu1 %v12258_v59  ;;  %v12323_v59 = vcombine.high %v547_v3, %v551_v4  ;;  %v2414_v4 = vld [vmem:[%s19610_s6 + $0xa0] sm:$0xff] }
 0x1aa   :  { %2356 = vmatpush1.bf16.msra.mxu0 %v12402_v60  ;;  %2320 = vmatprep.subr.bf16.mxu1 %v12379_v62  ;;  %v12467_v60 = vcombine.high %v691_v7, %v695_v9  ;;  %v2450_v62 = vld [vmem:[%s19610_s6 + $0x1c0] sm:$0xff]  ;;  %v2427_v9 = vld [vmem:[%s19610_s6 + $0x108] sm:$0xff] }
 0x1ab   :  { %2357 = vmatprep.subr.bf16.mxu0 %v12395_v12  ;;  %v2454_v12 = vld [vmem:[%s19610_s6 + $0x1e0] sm:$0xff] }
 0x1ac   :  { %v12564_v23 = vcombine.low %v2450_v62, %v2454_v12 }
 0x1ad   :  { %2321 = vmatpush2.bf16.msra.mxu1 %v12378_v17  ;;  %v12565_v17 = vcombine.high %v2450_v62, %v2454_v12 }
 0x1ae   :  { %2358 = vmatpush1.bf16.msra.mxu0 %v12394_v18  ;;  %2322 = vmatprep.subr.bf16.mxu1 %v12371_v19  ;;  %v12459_v18 = vcombine.high %v683_v13, %v687_v14  ;;  %v2442_v19 = vld [vmem:[%s19610_s6 + $0x180] sm:$0xff] }
 0x1af   :  { %2359 = vmatprep.subr.bf16.mxu0 %v12387_v20  ;;  %v2446_v20 = vld [vmem:[%s19610_s6 + $0x1a0] sm:$0xff] }
 0x1b0   :  { %v2402_v14 = vld [vmem:[%s19610_s6 + $0x40] sm:$0xff] }
 0x1b1   :  { %2323 = vmatpush2.bf16.msra.mxu1 %v12370_v25  ;;  %v12557_v25 = vcombine.high %v2442_v19, %v2446_v20 }
 0x1b2   :  { %2360 = vmatpush1.bf16.msra.mxu0 %v12386_v28  ;;  %2324 = vmatprep.subr.bf16.mxu1 %v12363_v26  ;;  %v12451_v28 = vcombine.high %v675_v21, %v679_v22  ;;  %v2434_v26 = vld [vmem:[%s19610_s6 + $0x140] sm:$0xff] }
 0x1b3   :  { %2361 = vmatprep.subr.bf16.mxu0 %v12507_v27  ;;  %v2438_v27 = vld [vmem:[%s19610_s6 + $0x160] sm:$0xff] }
 0x1b5   :  { %2325 = vmatpush2.bf16.msra.mxu1 %v12362_v34  ;;  %v12556_v34 = vcombine.low %v2442_v19, %v2446_v20 }
 0x1b6   :  { %2362 = vmatpush2.bf16.msra.mxu0 %v12506_v35  ;;  %2326 = vmatprep.subr.bf16.mxu1 %v12355_v36  ;;  %v12450_v35 = vcombine.low %v675_v21, %v679_v22  ;;  %v15328_v36 = vcombine.high %v2434_v26, %v2438_v27  ;;  %v2394_v22 = vld [vmem:[%s19610_s6] sm:$0xff] }
 0x1b7   :  { %2363 = vmatprep.subr.bf16.mxu0 %v12499_v37  ;;  %v15330_v37 = vcombine.high %v2451_v31, %v2455_v32  ;;  %v2514_v31 = vld [vmem:[%s19610_s6 + $0x3c0] sm:$0xff] }
 0x1b8   :  { %v2518_v32 = vld [vmem:[%s19610_s6 + $0x3e0] sm:$0xff] }
 0x1b9   :  { %2327 = vmatpush2.bf16.msra.mxu1 %v12354_v42  ;;  %v2443_v42 = vld [vmem:[%s19610_s6 + $0x188] sm:$0xff]  ;;  %v15475_v39 = vcombine.high %v2514_v31, %v2518_v32 }
 0x1ba   :  { %2364 = vmatpush2.bf16.msra.mxu0 %v12498_v55  ;;  %2328 = vmatprep.subr.bf16.mxu1 %v12347_v43  ;;  %v2447_v55 = vld [vmem:[%s19610_s6 + $0x1a8] sm:$0xff]  ;;  %v15346_v43 = vcombine.low %v2434_v26, %v2438_v27 }
 0x1bb   :  { %2365 = vmatprep.subr.bf16.mxu0 %v12491_v44  ;;  %v745_v44 = vrot.slane %v15325_v33, %v14689_v8  ;;  %v15356_v48 = vcombine.high %v2443_v42, %v2447_v55  ;;  %v15372_v57 = vcombine.low %v2443_v42, %v2447_v55  ;;  %19934 = vst [vmem:[#allocation14_spill] sm:$0xff] %v15475_v39  ;;  %v2510_v42 = vld [vmem:[%s19610_s6 + $0x3a0] sm:$0xff]  ;;  %v2395_v55 = vld [vmem:[%s19610_s6 + $0x8] sm:$0xff] }
 0x1bd   :  { %2329 = vmatpush2.bf16.msra.mxu1 %v12346_v49  ;;  %v2418_v49 = vld [vmem:[%s19610_s6 + $0xc0] sm:$0xff] }
 0x1be   :  { %2366 = vmatpush2.bf16.msra.mxu0 %v12490_v50  ;;  %2330 = vmatprep.subr.bf16.mxu1 %v12339_v51  ;;  %v2422_v50 = vld [vmem:[%s19610_s6 + $0xe0] sm:$0xff] }
 0x1bf   :  { %2367 = vmatprep.subr.bf16.mxu0 %v12483_v52  ;;  %v2435_v52 = vld [vmem:[%s19610_s6 + $0x148] sm:$0xff] }
 0x1c0   :  { %v15381_v3 = vcombine.high %v2435_v52, %v2439_v53 }
 0x1c1   :  { %2331 = vmatpush2.bf16.msra.mxu1 %v12338_v61 }
 0x1c2   :  { %2368 = vmatpush2.bf16.msra.mxu0 %v12482_v63  ;;  %2332 = vmatprep.subr.bf16.mxu1 %v12331_v0  ;;  %v15378_v0 = vcombine.high %v2418_v49, %v2422_v50 }
 0x1c3   :  { %2369 = vmatprep.subr.bf16.mxu0 %v12475_v2 }
 0x1c5   :  { %2333 = vmatpush2.bf16.msra.mxu1 %v12330_v10  ;;  %v2431_v10 = vld [vmem:[%s19610_s6 + $0x128] sm:$0xff] }
 0x1c6   :  { %2370 = vmatpush2.bf16.msra.mxu0 %v12474_v11  ;;  %2334 = vmatprep.subr.bf16.mxu1 %v12323_v59  ;;  %v15397_v59 = vcombine.low %v2418_v49, %v2422_v50  ;;  %v15406_v13 = vcombine.high %v2427_v9, %v2431_v10  ;;  %v15424_v19 = vcombine.low %v2427_v9, %v2431_v10  ;;  %v2494_v9 = vld [vmem:[%s19610_s6 + $0x320] sm:$0xff]  ;;  %v2507_v10 = vld [vmem:[%s19610_s6 + $0x388] sm:$0xff] }
 0x1c7   :  { %2371 = vmatprep.subr.bf16.mxu0 %v12467_v60  ;;  %v15400_v60 = vcombine.low %v2435_v52, %v2439_v53  ;;  %v2498_v52 = vld [vmem:[%s19610_s6 + $0x340] sm:$0xff] }
 0x1c8   :  { %19927 = vst [vmem:[#allocation7_spill] sm:$0xff] %v15397_v59  ;;  %v2502_v53 = vld [vmem:[%s19610_s6 + $0x360] sm:$0xff] }
 0x1c9   :  { %2335 = vmatpush2.bf16.msra.mxu1 %v12322_v15  ;;  %v2406_v15 = vld [vmem:[%s19610_s6 + $0x60] sm:$0xff] }
 0x1ca   :  { %2372 = vmatpush2.bf16.msra.mxu0 %v12466_v16  ;;  %3162 = vmatprep.subr.bf16.mxu1 %v12565_v17  ;;  %v2419_v16 = vld [vmem:[%s19610_s6 + $0xc8] sm:$0xff]  ;;  %v15427_v20 = vcombine.high %v2402_v14, %v2406_v15 }
 0x1cb   :  { %2373 = vmatprep.subr.bf16.mxu0 %v12459_v18  ;;  %v2423_v17 = vld [vmem:[%s19610_s6 + $0xe8] sm:$0xff] }
 0x1cc   :  { %2337 = vmatmul.mubr.bf16.vlgmr.msra.gmra.mxu1 %v14702_v29  ;;  %v2092_v30 = vpop.f32.mrf.mxu1  ;;  %19930 = vst [vmem:[#allocation10_spill] sm:$0xff] %v15427_v20  ;;  %v15430_v21 = vcombine.high %v2419_v16, %v2423_v17  ;;  %v15448_v26 = vcombine.low %v2419_v16, %v2423_v17  ;;  %v2482_v17 = vld [vmem:[%s19610_s6 + $0x2c0] sm:$0xff] }
 0x1cd   :  { %3163 = vmatpush1.bf16.msra.mxu1 %v12564_v23  ;;  %3194 = vmatprep.mubr.bf16.mxu1 %v19619_v1  ;;  %v2093_v51 = vadd.f32 %v2092_v30, %v741_v40  ;;  %v2398_v23 = vld [vmem:[%s19610_s6 + $0x20] sm:$0xff] }
 0x1ce   :  { %2374 = vmatpush2.bf16.msra.mxu0 %v12458_v24  ;;  %v2094_v29 = vpop.f32.mrf.mxu1  ;;  %3164 = vmatprep.subr.bf16.mxu1 %v12557_v25  ;;  %v2411_v24 = vld [vmem:[%s19610_s6 + $0x88] sm:$0xff]  ;;  %v15451_v27 = vcombine.high %v2394_v22, %v2398_v23 }
 0x1cf   :  { %2375 = vmatprep.subr.bf16.mxu0 %v12451_v28  ;;  %v2095_v61 = vadd.f32 %v2094_v29, %v745_v44  ;;  %v2415_v25 = vld [vmem:[%s19610_s6 + $0xa8] sm:$0xff]  ;;  %v15445_v28 = vcombine.low %v2402_v14, %v2406_v15 }
 0x1d0   :  { %v2096_v41 = vpop.f32.mrf.mxu1  ;;  %19932 = vst [vmem:[#allocation12_spill] sm:$0xff] %v15451_v27  ;;  %v15454_v30 = vcombine.high %v2411_v24, %v2415_v25  ;;  %v2407_v29 = vld [vmem:[%s19610_s6 + $0x68] sm:$0xff]  ;;  %v15472_v38 = vcombine.low %v2411_v24, %v2415_v25 }
 0x1d1   :  { %3165 = vmatpush1.bf16.msra.mxu1 %v12556_v34  ;;  %19931 = vst [vmem:[#allocation11_spill] sm:$0xff] %v15445_v28  ;;  %v2403_v34 = vld [vmem:[%s19610_s6 + $0x48] sm:$0xff]  ;;  %v2506_v41 = vld [vmem:[%s19610_s6 + $0x380] sm:$0xff] }
 0x1d2   :  { %2376 = vmatpush2.bf16.msra.mxu0 %v12450_v35  ;;  %v2097_v45 = vpop.f32.mrf.mxu1  ;;  %3166 = vmatprep.subr.bf16.mxu1 %v15328_v36  ;;  %v15469_v35 = vcombine.low %v2394_v22, %v2398_v23  ;;  %v15478_v40 = vcombine.high %v2403_v34, %v2407_v29  ;;  %v2399_v44 = vld [vmem:[%s19610_s6 + $0x28] sm:$0xff]  ;;  %v15496_v49 = vcombine.low %v2403_v34, %v2407_v29  ;;  %v2486_v22 = vld [vmem:[%s19610_s6 + $0x2e0] sm:$0xff] }
 0x1d3   :  { %3203 = vmatprep.subr.bf16.mxu0 %v15330_v37  ;;  %v15493_v45 = vcombine.low %v2514_v31, %v2518_v32  ;;  %v15499_v50 = vcombine.high %v2506_v41, %v2510_v42  ;;  %v2499_v23 = vld [vmem:[%s19610_s6 + $0x348] sm:$0xff]  ;;  %v15571_v32 = vcombine.high %v2482_v17, %v2486_v22  ;;  %v2474_v29 = vld [vmem:[%s19610_s6 + $0x280] sm:$0xff] }
 0x1d4   :  { %19933 = vst [vmem:[#allocation13_spill] sm:$0xff] %v15469_v35  ;;  %v2503_v24 = vld [vmem:[%s19610_s6 + $0x368] sm:$0xff] }
 0x1d5   :  { %2378 = vmatmul.mubr.bf16.vlgmr.msra.gmra.mxu0 %v14741_v56  ;;  %v2133_v54 = vpop.f32.mrf.mxu0  ;;  %3167 = vmatpush1.bf16.msra.mxu1 %v15346_v43  ;;  %v2410_v56 = vld [vmem:[%s19610_s6 + $0x80] sm:$0xff]  ;;  %19935 = vst [vmem:[#allocation15_spill] sm:$0xff] %v15493_v45  ;;  %19936 = vst [vmem:[#allocation16_spill] sm:$0xff] %v15499_v50  ;;  %v15574_v34 = vcombine.high %v2499_v23, %v2503_v24 }
 0x1d6   :  { %v2134_v63 = vadd.f32 %v2133_v54, %v2093_v51  ;;  %3204 = vmatpush1.bf16.msra.mxu0 %v15350_v46  ;;  %3168 = vmatprep.subr.bf16.mxu1 %v15353_v47  ;;  %v15403_v62 = vcombine.high %v2410_v56, %v2414_v4  ;;  %v15421_v18 = vcombine.low %v2410_v56, %v2414_v4  ;;  %v2515_v54 = vld [vmem:[%s19610_s6 + $0x3c8] sm:$0xff] }
 0x1d7   :  { %v2135_v2 = vpop.f32.mrf.mxu0  ;;  %3205 = vmatprep.subr.bf16.mxu0 %v15356_v48  ;;  %3235 = vmatprep.mubr.bf16.mxu0 %v19619_v1  ;;  %v15502_v51 = vcombine.high %v2395_v55, %v2399_v44  ;;  %v15523_v56 = vcombine.high %v2498_v52, %v2502_v53  ;;  %19942 = vst [vmem:[#allocation22_spill] sm:$0xff] %v15571_v32 }
 0x1d8   :  { %2386 = vst [vmem:[#allocation2] sm:$0xff] %v2134_v63  ;;  %v2136_v7 = vadd.f32 %v2135_v2, %v2095_v61  ;;  %19928 = vst [vmem:[#allocation8_spill] sm:$0xff] %v15403_v62  ;;  %v2519_v61 = vld [vmem:[%s19610_s6 + $0x3e8] sm:$0xff]  ;;  %v15517_v63 = vcombine.low %v2506_v41, %v2510_v42  ;;  %v15520_v2 = vcombine.low %v2395_v55, %v2399_v44  ;;  %v2478_v41 = vld [vmem:[%s19610_s6 + $0x2a0] sm:$0xff] }
 0x1d9   :  { %v2137_v11 = vpop.f32.mrf.mxu0  ;;  %3169 = vmatpush1.bf16.msra.mxu1 %v15374_v58  ;;  %19929 = vst [vmem:[#allocation9_spill] sm:$0xff] %v15421_v18  ;;  %19938 = vst [vmem:[#allocation18_spill] sm:$0xff] %v15523_v56  ;;  %v15526_v4 = vcombine.high %v2515_v54, %v2519_v61  ;;  %v15544_v14 = vcombine.low %v2515_v54, %v2519_v61  ;;  %v2491_v42 = vld [vmem:[%s19610_s6 + $0x308] sm:$0xff]  ;;  %v15589_v44 = vcombine.low %v2482_v17, %v2486_v22  ;;  %v2466_v61 = vld [vmem:[%s19610_s6 + $0x240] sm:$0xff] }
 0x1da   :  { %2387 = vst [vmem:[#allocation2 + $0x8] sm:$0xff] %v2136_v7  ;;  %3206 = vmatpush1.bf16.msra.mxu0 %v15372_v57  ;;  %3170 = vmatprep.subr.bf16.mxu1 %v15378_v0  ;;  %19937 = vst [vmem:[#allocation17_spill] sm:$0xff] %v15517_v63  ;;  %v2490_v7 = vld [vmem:[%s19610_s6 + $0x300] sm:$0xff]  ;;  %v2511_v11 = vld [vmem:[%s19610_s6 + $0x3a8] sm:$0xff] }
 0x1db   :  { %v2138_v12 = vpop.f32.mrf.mxu0  ;;  %3207 = vmatprep.subr.bf16.mxu0 %v15381_v3  ;;  %v15547_v15 = vcombine.high %v2490_v7, %v2494_v9  ;;  %v15550_v16 = vcombine.high %v2507_v10, %v2511_v11  ;;  %v15565_v25 = vcombine.low %v2490_v7, %v2494_v9  ;;  %v15568_v31 = vcombine.low %v2507_v10, %v2511_v11  ;;  %v2495_v55 = vld [vmem:[%s19610_s6 + $0x328] sm:$0xff]  ;;  %v2470_v7 = vld [vmem:[%s19610_s6 + $0x260] sm:$0xff] }
 0x1dc   :  { %v15541_v12 = vcombine.low %v2498_v52, %v2502_v53  ;;  %19943 = vst [vmem:[#allocation23_spill] sm:$0xff] %v15589_v44  ;;  %v15592_v52 = vcombine.low %v2499_v23, %v2503_v24  ;;  %v15595_v53 = vcombine.high %v2474_v29, %v2478_v41  ;;  %v15598_v54 = vcombine.high %v2491_v42, %v2495_v55  ;;  %v2483_v9 = vld [vmem:[%s19610_s6 + $0x2c8] sm:$0xff]  ;;  %v2458_v24 = vld [vmem:[%s19610_s6 + $0x200] sm:$0xff] }
 0x1dd   :  { %3171 = vmatpush1.bf16.msra.mxu1 %v15397_v59  ;;  %19940 = vst [vmem:[#allocation20_spill] sm:$0xff] %v15547_v15  ;;  %19941 = vst [vmem:[#allocation21_spill] sm:$0xff] %v15565_v25  ;;  %v2487_v10 = vld [vmem:[%s19610_s6 + $0x2e8] sm:$0xff]  ;;  %v15613_v11 = vcombine.low %v2474_v29, %v2478_v41  ;;  %v15616_v17 = vcombine.low %v2491_v42, %v2495_v55  ;;  %v15619_v22 = vcombine.high %v2466_v61, %v2470_v7  ;;  %v2462_v29 = vld [vmem:[%s19610_s6 + $0x220] sm:$0xff] }
 0x1de   :  { %3208 = vmatpush1.bf16.msra.mxu0 %v15400_v60  ;;  %3172 = vmatprep.subr.bf16.mxu1 %v15403_v62  ;;  %19939 = vst [vmem:[#allocation19_spill] sm:$0xff] %v15541_v12  ;;  %19944 = vst [vmem:[#allocation24_spill] sm:$0xff] %v15595_v53  ;;  %v15622_v23 = vcombine.high %v2483_v9, %v2487_v10  ;;  %v2475_v41 = vld [vmem:[%s19610_s6 + $0x288] sm:$0xff]  ;;  %v15637_v55 = vcombine.low %v2466_v61, %v2470_v7  ;;  %v2456_v61 = vld [vmem:[%s19610_s6 + $0x1f0] sm:$0xff] }
 0x1df   :  { %3209 = vmatprep.subr.bf16.mxu0 %v15406_v13  ;;  %19945 = vst [vmem:[#allocation25_spill] sm:$0xff] %v15613_v11  ;;  %19946 = vst [vmem:[#allocation26_spill] sm:$0xff] %v15619_v22  ;;  %v2479_v42 = vld [vmem:[%s19610_s6 + $0x2a8] sm:$0xff]  ;;  %v15640_v1 = vcombine.low %v2483_v9, %v2487_v10  ;;  %v15643_v6 = vcombine.high %v2458_v24, %v2462_v29  ;;  %v15661_v10 = vcombine.low %v2458_v24, %v2462_v29  ;;  %v2448_v24 = vld [vmem:[%s19610_s6 + $0x1b0] sm:$0xff] }
 0x1e0   :  { %19947 = vst [vmem:[#allocation27_spill] sm:$0xff] %v15637_v55  ;;  %v15646_v8 = vcombine.high %v2475_v41, %v2479_v42  ;;  %v2467_v7 = vld [vmem:[%s19610_s6 + $0x248] sm:$0xff] }
 0x1e1   :  { %3173 = vmatpush1.bf16.msra.mxu1 %v15421_v18  ;;  %19948 = vst [vmem:[#allocation28_spill] sm:$0xff] %v15643_v6  ;;  %v2471_v9 = vld [vmem:[%s19610_s6 + $0x268] sm:$0xff]  ;;  %19949 = vst [vmem:[#allocation29_spill] sm:$0xff] %v15661_v10 }
 0x1e2   :  { %3210 = vmatpush1.bf16.msra.mxu0 %v15424_v19  ;;  %3174 = vmatprep.subr.bf16.mxu1 %v15427_v20  ;;  %v2459_v29 = vld [vmem:[%s19610_s6 + $0x208] sm:$0xff] }
 0x1e3   :  { %3211 = vmatprep.subr.bf16.mxu0 %v15430_v21 }
 0x1e5   :  { %3175 = vmatpush1.bf16.msra.mxu1 %v15445_v28 }
 0x1e6   :  { %3212 = vmatpush1.bf16.msra.mxu0 %v15448_v26  ;;  %3176 = vmatprep.subr.bf16.mxu1 %v15451_v27 }
 0x1e7   :  { %3213 = vmatprep.subr.bf16.mxu0 %v15454_v30 }
 0x1e9   :  { %3177 = vmatpush1.bf16.msra.mxu1 %v15469_v35  ;;  %v19957_v35 = vsub.s32 3, %v14680_v5 }
 0x1ea   :  { %3214 = vmatpush1.bf16.msra.mxu0 %v15472_v38  ;;  %3178 = vmatprep.subr.bf16.mxu1 %v15475_v39 }
 0x1eb   :  { %3215 = vmatprep.subr.bf16.mxu0 %v15478_v40  ;;  %v753_v27 = vrot.slane %v15325_v33, %v19957_v35 }
 0x1ed   :  { %3179 = vmatpush2.bf16.msra.mxu1 %v15493_v45 }
 0x1ee   :  { %3216 = vmatpush1.bf16.msra.mxu0 %v15496_v49  ;;  %3180 = vmatprep.subr.bf16.mxu1 %v15499_v50 }
 0x1ef   :  { %3217 = vmatprep.subr.bf16.mxu0 %v15502_v51 }
 0x1f1   :  { %3181 = vmatpush2.bf16.msra.mxu1 %v15517_v63 }
 0x1f2   :  { %3218 = vmatpush1.bf16.msra.mxu0 %v15520_v2  ;;  %3182 = vmatprep.subr.bf16.mxu1 %v15523_v56  ;;  %v19956_v56 = vsub.s32 2, %v14680_v5 }
 0x1f3   :  { %3219 = vmatprep.subr.bf16.mxu0 %v15526_v4 }
 0x1f5   :  { %3183 = vmatpush2.bf16.msra.mxu1 %v15541_v12 }
 0x1f6   :  { %3220 = vmatpush2.bf16.msra.mxu0 %v15544_v14  ;;  %3184 = vmatprep.subr.bf16.mxu1 %v15547_v15  ;;  %v2436_v15 = vld [vmem:[%s19610_s6 + $0x150] sm:$0xff] }
 0x1f7   :  { %3221 = vmatprep.subr.bf16.mxu0 %v15550_v16 }
 0x1f9   :  { %3185 = vmatpush2.bf16.msra.mxu1 %v15565_v25 }
 0x1fa   :  { %3222 = vmatpush2.bf16.msra.mxu0 %v15568_v31  ;;  %3186 = vmatprep.subr.bf16.mxu1 %v15571_v32  ;;  %v2444_v32 = vld [vmem:[%s19610_s6 + $0x190] sm:$0xff] }
 0x1fb   :  { %3223 = vmatprep.subr.bf16.mxu0 %v15574_v34  ;;  %v15711_v12 = vcombine.low %v2444_v32, %v2448_v24 }
 0x1fd   :  { %3187 = vmatpush2.bf16.msra.mxu1 %v15589_v44  ;;  %v15670_v44 = vcombine.high %v2467_v7, %v2471_v9  ;;  %19954 = vst [vmem:[#allocation33_spill] sm:$0xff] %v15711_v12 }
 0x1fe   :  { %3224 = vmatpush2.bf16.msra.mxu0 %v15592_v52  ;;  %3188 = vmatprep.subr.bf16.mxu1 %v15595_v53  ;;  %v2452_v53 = vld [vmem:[%s19610_s6 + $0x1d0] sm:$0xff] }
 0x1ff   :  { %3225 = vmatprep.subr.bf16.mxu0 %v15598_v54 }
 0x201   :  { %3189 = vmatpush2.bf16.msra.mxu1 %v15613_v11  ;;  %v15667_v11 = vcombine.high %v2452_v53, %v2456_v61 }
 0x202   :  { %3226 = vmatpush2.bf16.msra.mxu0 %v15616_v17  ;;  %3190 = vmatprep.subr.bf16.mxu1 %v15619_v22  ;;  %v15664_v22 = vcombine.low %v2475_v41, %v2479_v42  ;;  %v2463_v41 = vld [vmem:[%s19610_s6 + $0x228] sm:$0xff]  ;;  %v15685_v42 = vcombine.low %v2452_v53, %v2456_v61  ;;  %v2440_v53 = vld [vmem:[%s19610_s6 + $0x170] sm:$0xff] }
 0x203   :  { %3227 = vmatprep.subr.bf16.mxu0 %v15622_v23  ;;  %19950 = vst [vmem:[#allocation30_spill] sm:$0xff] %v15667_v11  ;;  %v15694_v25 = vcombine.high %v2459_v29, %v2463_v41  ;;  %v15716_v63 = vcombine.low %v2459_v29, %v2463_v41  ;;  %v15719_v50 = vcombine.high %v2436_v15, %v2440_v53 }
 0x204   :  { %19951 = vst [vmem:[#allocation31_spill] sm:$0xff] %v15685_v42  ;;  %v749_v29 = vrot.slane %v15325_v33, %v19956_v56  ;;  %v15740_v39 = vcombine.low %v2436_v15, %v2440_v53  ;;  %v2420_v15 = vld [vmem:[%s19610_s6 + $0xd0] sm:$0xff] }
 0x205   :  { %3191 = vmatpush2.bf16.msra.mxu1 %v15637_v55  ;;  %v15691_v55 = vcombine.high %v2444_v32, %v2448_v24  ;;  %19955 = vst [vmem:[#allocation34_spill] sm:$0xff] %v15719_v50  ;;  %v2428_v32 = vld [vmem:[%s19610_s6 + $0x110] sm:$0xff] }
 0x206   :  { %3228 = vmatpush2.bf16.msra.mxu0 %v15640_v1  ;;  %3192 = vmatprep.subr.bf16.mxu1 %v15643_v6  ;;  %v15688_v6 = vcombine.low %v2467_v7, %v2471_v9  ;;  %v19953_v9 = vmov 0   ;;  %v2432_v24 = vld [vmem:[%s19610_s6 + $0x130] sm:$0xff] }
 0x207   :  { %3229 = vmatprep.subr.bf16.mxu0 %v15646_v8  ;;  %19952 = vst [vmem:[#allocation32_spill] sm:$0xff] %v15691_v55 }
 0x209   :  { %3193 = vmatpush2.bf16.msra.mxu1 %v15661_v10  ;;  %v2457_v10 = vld [vmem:[%s19610_s6 + $0x1f8] sm:$0xff] }
 0x20a   :  { %3230 = vmatpush2.bf16.msra.mxu0 %v15664_v22  ;;  %3244 = vmatprep.subr.bf16.mxu1 %v15667_v11  ;;  %v2453_v11 = vld [vmem:[%s19610_s6 + $0x1d8] sm:$0xff] }
 0x20b   :  { %3231 = vmatprep.subr.bf16.mxu0 %v15670_v44  ;;  %v15722_v45 = vcombine.high %v2453_v11, %v2457_v10  ;;  %v15746_v56 = vcombine.low %v2453_v11, %v2457_v10  ;;  %v2437_v11 = vld [vmem:[%s19610_s6 + $0x158] sm:$0xff] }
 0x20c   :  { %v2174_v7 = vpop.f32.mrf.mxu1  ;;  %3195 = vmatmul.mubr.bf16.vlgmr.msra.gmra.mxu1 %v19953_v9  ;;  %v2441_v10 = vld [vmem:[%s19610_s6 + $0x178] sm:$0xff] }
 0x20d   :  { %3245 = vmatpush1.bf16.msra.mxu1 %v15685_v42  ;;  %3276 = vmatprep.mubr.bf16.mxu1 %v19953_v9  ;;  %v2449_v42 = vld [vmem:[%s19610_s6 + $0x1b8] sm:$0xff]  ;;  %v2175_v35 = vadd.f32 %v2174_v7, %v749_v29  ;;  %v15777_v59 = vcombine.high %v2437_v11, %v2441_v10 }
 0x20e   :  { %v2176_v61 = vpop.f32.mrf.mxu1  ;;  %3232 = vmatpush2.bf16.msra.mxu0 %v15688_v6  ;;  %3246 = vmatprep.subr.bf16.mxu1 %v15691_v55  ;;  %v2445_v55 = vld [vmem:[%s19610_s6 + $0x198] sm:$0xff] }
 0x20f   :  { %3233 = vmatprep.subr.bf16.mxu0 %v15694_v25  ;;  %v15752_v20 = vcombine.high %v2445_v55, %v2449_v42  ;;  %v2177_v18 = vadd.f32 %v2176_v61, %v753_v27  ;;  %v2416_v27 = vld [vmem:[%s19610_s6 + $0xb0] sm:$0xff]  ;;  %v2429_v61 = vld [vmem:[%s19610_s6 + $0x118] sm:$0xff] }
 0x210   :  { %v2178_v41 = vpop.f32.mrf.mxu1 }
 0x211   :  { %3247 = vmatpush1.bf16.msra.mxu1 %v15711_v12  ;;  %v15749_v41 = vcombine.high %v2428_v32, %v2432_v24  ;;  %v15770_v12 = vcombine.low %v2428_v32, %v2432_v24  ;;  %v2433_v32 = vld [vmem:[%s19610_s6 + $0x138] sm:$0xff] }
 0x212   :  { %v2179_v28 = vpop.f32.mrf.mxu1  ;;  %3234 = vmatpush2.bf16.msra.mxu0 %v15716_v63  ;;  %3248 = vmatprep.subr.bf16.mxu1 %v15719_v50  ;;  %v15768_v50 = vcombine.low %v2445_v55, %v2449_v42  ;;  %v2412_v55 = vld [vmem:[%s19610_s6 + $0x90] sm:$0xff] }
 0x213   :  { %19958 = vst [vmem:[#allocation35_spill] sm:$0xff] %v15749_v41  ;;  %3285 = vmatprep.subr.bf16.mxu0 %v15722_v45  ;;  %v2424_v28 = vld [vmem:[%s19610_s6 + $0xf0] sm:$0xff]  ;;  %19959 = vst [vmem:[#allocation36_spill] sm:$0xff] %v15770_v12 }
 0x214   :  { %v15774_v7 = vcombine.high %v2420_v15, %v2424_v28 }
 0x215   :  { %v2215_v53 = vpop.f32.mrf.mxu0  ;;  %3236 = vmatmul.mubr.bf16.vlgmr.msra.gmra.mxu0 %v19953_v9  ;;  %3249 = vmatpush1.bf16.msra.mxu1 %v15740_v39 }
 0x216   :  { %v2216_v62 = vadd.f32 %v2215_v53, %v2175_v35  ;;  %3286 = vmatpush1.bf16.msra.mxu0 %v15746_v56  ;;  %3250 = vmatprep.subr.bf16.mxu1 %v15749_v41  ;;  %19960 = vst [vmem:[#allocation37_spill] sm:$0xff] %v15774_v7  ;;  %v15793_v35 = vcombine.low %v2420_v15, %v2424_v28  ;;  %v2408_v15 = vld [vmem:[%s19610_s6 + $0x70] sm:$0xff]  ;;  %v2421_v28 = vld [vmem:[%s19610_s6 + $0xd8] sm:$0xff] }
 0x217   :  { %v2217_v29 = vpop.f32.mrf.mxu0  ;;  %3287 = vmatprep.subr.bf16.mxu0 %v15752_v20  ;;  %3317 = vmatprep.mubr.bf16.mxu0 %v19953_v9  ;;  %v15796_v53 = vcombine.low %v2437_v11, %v2441_v10  ;;  %v2425_v11 = vld [vmem:[%s19610_s6 + $0xf8] sm:$0xff]  ;;  %v15817_v10 = vcombine.low %v2412_v55, %v2416_v27  ;;  %v2516_v41 = vld [vmem:[%s19610_s6 + $0x3d0] sm:$0xff] }
 0x218   :  { %2388 = vst [vmem:[#allocation2 + $0x10] sm:$0xff] %v2216_v62  ;;  %v2218_v42 = vadd.f32 %v2217_v29, %v2177_v18  ;;  %19961 = vst [vmem:[#allocation38_spill] sm:$0xff] %v15793_v35  ;;  %v15799_v62 = vcombine.high %v2412_v55, %v2416_v27  ;;  %v15802_v29 = vcombine.high %v2429_v61, %v2433_v32  ;;  %v2400_v55 = vld [vmem:[%s19610_s6 + $0x30] sm:$0xff]  ;;  %v2413_v27 = vld [vmem:[%s19610_s6 + $0x98] sm:$0xff] }
 0x219   :  { %v2219_v24 = vpop.f32.mrf.mxu0  ;;  %3251 = vmatpush1.bf16.msra.mxu1 %v15770_v12  ;;  %19964 = vst [vmem:[#allocation41_spill] sm:$0xff] %v15817_v10  ;;  %v2396_v12 = vld [vmem:[%s19610_s6 + $0x10] sm:$0xff] }
 0x21a   :  { %2389 = vst [vmem:[#allocation2 + $0x18] sm:$0xff] %v2218_v42  ;;  %3288 = vmatpush1.bf16.msra.mxu0 %v15768_v50  ;;  %3252 = vmatprep.subr.bf16.mxu1 %v15774_v7  ;;  %19962 = vst [vmem:[#allocation39_spill] sm:$0xff] %v15799_v62  ;;  %v2404_v24 = vld [vmem:[%s19610_s6 + $0x50] sm:$0xff]  ;;  %v15820_v42 = vcombine.low %v2429_v61, %v2433_v32  ;;  %v15826_v7 = vcombine.high %v2421_v28, %v2425_v11  ;;  %v2417_v61 = vld [vmem:[%s19610_s6 + $0xb8] sm:$0xff] }
 0x21b   :  { %v2220_v18 = vpop.f32.mrf.mxu0  ;;  %3289 = vmatprep.subr.bf16.mxu0 %v15777_v59  ;;  %19963 = vst [vmem:[#allocation40_spill] sm:$0xff] %v15802_v29  ;;  %v15841_v32 = vcombine.low %v2404_v24, %v2408_v15 }
 0x21c   :  { %19965 = vst [vmem:[#allocation42_spill] sm:$0xff] %v15820_v42  ;;  %v15823_v18 = vcombine.high %v2404_v24, %v2408_v15  ;;  %19967 = vst [vmem:[#allocation44_spill] sm:$0xff] %v15826_v7  ;;  %v2520_v24 = vld [vmem:[%s19610_s6 + $0x3f0] sm:$0xff]  ;;  %v2405_v15 = vld [vmem:[%s19610_s6 + $0x58] sm:$0xff] }
 0x21d   :  { %3253 = vmatpush1.bf16.msra.mxu1 %v15793_v35  ;;  %19968 = vst [vmem:[#allocation45_spill] sm:$0xff] %v15841_v32  ;;  %v15847_v35 = vcombine.high %v2396_v12, %v2400_v55 }
 0x21e   :  { %3290 = vmatpush1.bf16.msra.mxu0 %v15796_v53  ;;  %3254 = vmatprep.subr.bf16.mxu1 %v15799_v62  ;;  %19966 = vst [vmem:[#allocation43_spill] sm:$0xff] %v15823_v18  ;;  %v15844_v62 = vcombine.low %v2421_v28, %v2425_v11  ;;  %v2409_v28 = vld [vmem:[%s19610_s6 + $0x78] sm:$0xff]  ;;  %v15865_v11 = vcombine.low %v2396_v12, %v2400_v55  ;;  %v2512_v12 = vld [vmem:[%s19610_s6 + $0x3b0] sm:$0xff] }
 0x21f   :  { %3291 = vmatprep.subr.bf16.mxu0 %v15802_v29  ;;  %19970 = vst [vmem:[#allocation47_spill] sm:$0xff] %v15847_v35  ;;  %v15850_v29 = vcombine.high %v2413_v27, %v2417_v61  ;;  %v2397_v55 = vld [vmem:[%s19610_s6 + $0x18] sm:$0xff] }
 0x220   :  { %19969 = vst [vmem:[#allocation46_spill] sm:$0xff] %v15844_v62  ;;  %19972 = vst [vmem:[#allocation49_spill] sm:$0xff] %v15865_v11 }
 0x221   :  { %3255 = vmatpush1.bf16.msra.mxu1 %v15817_v10  ;;  %19971 = vst [vmem:[#allocation48_spill] sm:$0xff] %v15850_v29  ;;  %v15871_v10 = vcombine.high %v2516_v41, %v2520_v24 }
 0x222   :  { %3292 = vmatpush1.bf16.msra.mxu0 %v15820_v42  ;;  %3256 = vmatprep.subr.bf16.mxu1 %v15823_v18  ;;  %v15868_v18 = vcombine.low %v2413_v27, %v2417_v61  ;;  %v2508_v42 = vld [vmem:[%s19610_s6 + $0x390] sm:$0xff]  ;;  %v2401_v27 = vld [vmem:[%s19610_s6 + $0x38] sm:$0xff]  ;;  %v15889_v61 = vcombine.low %v2516_v41, %v2520_v24 }
 0x223   :  { %3293 = vmatprep.subr.bf16.mxu0 %v15826_v7  ;;  %19974 = vst [vmem:[#allocation51_spill] sm:$0xff] %v15871_v10  ;;  %v15874_v7 = vcombine.high %v2405_v15, %v2409_v28  ;;  %v2504_v41 = vld [vmem:[%s19610_s6 + $0x370] sm:$0xff]  ;;  %v2517_v24 = vld [vmem:[%s19610_s6 + $0x3d8] sm:$0xff] }
 0x224   :  { %19973 = vst [vmem:[#allocation50_spill] sm:$0xff] %v15868_v18  ;;  %19976 = vst [vmem:[#allocation53_spill] sm:$0xff] %v15889_v61 }
 0x225   :  { %3257 = vmatpush1.bf16.msra.mxu1 %v15841_v32  ;;  %19975 = vst [vmem:[#allocation52_spill] sm:$0xff] %v15874_v7  ;;  %v15895_v32 = vcombine.high %v2508_v42, %v2512_v12 }
 0x226   :  { %3294 = vmatpush1.bf16.msra.mxu0 %v15844_v62  ;;  %3258 = vmatprep.subr.bf16.mxu1 %v15847_v35  ;;  %v15892_v35 = vcombine.low %v2405_v15, %v2409_v28  ;;  %v2500_v62 = vld [vmem:[%s19610_s6 + $0x350] sm:$0xff]  ;;  %v2521_v15 = vld [vmem:[%s19610_s6 + $0x3f8] sm:$0xff]  ;;  %v15913_v28 = vcombine.low %v2508_v42, %v2512_v12 }
 0x227   :  { %3295 = vmatprep.subr.bf16.mxu0 %v15850_v29  ;;  %19978 = vst [vmem:[#allocation55_spill] sm:$0xff] %v15895_v32  ;;  %v15898_v29 = vcombine.high %v2397_v55, %v2401_v27  ;;  %v2496_v42 = vld [vmem:[%s19610_s6 + $0x330] sm:$0xff]  ;;  %v2509_v12 = vld [vmem:[%s19610_s6 + $0x398] sm:$0xff] }
 0x228   :  { %19977 = vst [vmem:[#allocation54_spill] sm:$0xff] %v15892_v35  ;;  %19980 = vst [vmem:[#allocation57_spill] sm:$0xff] %v15913_v28 }
 0x229   :  { %3259 = vmatpush1.bf16.msra.mxu1 %v15865_v11  ;;  %19979 = vst [vmem:[#allocation56_spill] sm:$0xff] %v15898_v29  ;;  %v15919_v11 = vcombine.high %v2500_v62, %v2504_v41 }
 0x22a   :  { %3296 = vmatpush1.bf16.msra.mxu0 %v15868_v18  ;;  %3260 = vmatprep.subr.bf16.mxu1 %v15871_v10  ;;  %v15916_v10 = vcombine.low %v2397_v55, %v2401_v27  ;;  %v2492_v18 = vld [vmem:[%s19610_s6 + $0x310] sm:$0xff]  ;;  %v2513_v55 = vld [vmem:[%s19610_s6 + $0x3b8] sm:$0xff]  ;;  %v15937_v27 = vcombine.low %v2500_v62, %v2504_v41 }
 0x22b   :  { %3297 = vmatprep.subr.bf16.mxu0 %v15874_v7  ;;  %19982 = vst [vmem:[#allocation59_spill] sm:$0xff] %v15919_v11  ;;  %v15922_v7 = vcombine.high %v2517_v24, %v2521_v15  ;;  %v2488_v62 = vld [vmem:[%s19610_s6 + $0x2f0] sm:$0xff]  ;;  %v2501_v41 = vld [vmem:[%s19610_s6 + $0x358] sm:$0xff] }
 0x22c   :  { %19981 = vst [vmem:[#allocation58_spill] sm:$0xff] %v15916_v10  ;;  %19984 = vst [vmem:[#allocation61_spill] sm:$0xff] %v15937_v27 }
 0x22d   :  { %3261 = vmatpush2.bf16.msra.mxu1 %v15889_v61  ;;  %19983 = vst [vmem:[#allocation60_spill] sm:$0xff] %v15922_v7  ;;  %v15943_v61 = vcombine.high %v2492_v18, %v2496_v42 }
 0x22e   :  { %3298 = vmatpush1.bf16.msra.mxu0 %v15892_v35  ;;  %3262 = vmatprep.subr.bf16.mxu1 %v15895_v32  ;;  %v15940_v32 = vcombine.low %v2517_v24, %v2521_v15  ;;  %v2484_v35 = vld [vmem:[%s19610_s6 + $0x2d0] sm:$0xff]  ;;  %v2505_v24 = vld [vmem:[%s19610_s6 + $0x378] sm:$0xff]  ;;  %v15961_v15 = vcombine.low %v2492_v18, %v2496_v42 }
 0x22f   :  { %3299 = vmatprep.subr.bf16.mxu0 %v15898_v29  ;;  %19986 = vst [vmem:[#allocation63_spill] sm:$0xff] %v15943_v61  ;;  %v15946_v29 = vcombine.high %v2509_v12, %v2513_v55  ;;  %v2480_v18 = vld [vmem:[%s19610_s6 + $0x2b0] sm:$0xff]  ;;  %v2493_v42 = vld [vmem:[%s19610_s6 + $0x318] sm:$0xff] }
 0x230   :  { %19985 = vst [vmem:[#allocation62_spill] sm:$0xff] %v15940_v32  ;;  %19988 = vst [vmem:[#allocation65_spill] sm:$0xff] %v15961_v15 }
 0x231   :  { %3263 = vmatpush2.bf16.msra.mxu1 %v15913_v28  ;;  %19987 = vst [vmem:[#allocation64_spill] sm:$0xff] %v15946_v29  ;;  %v15967_v28 = vcombine.high %v2484_v35, %v2488_v62 }
 0x232   :  { %3300 = vmatpush1.bf16.msra.mxu0 %v15916_v10  ;;  %3264 = vmatprep.subr.bf16.mxu1 %v15919_v11  ;;  %v15964_v11 = vcombine.low %v2509_v12, %v2513_v55  ;;  %v2476_v10 = vld [vmem:[%s19610_s6 + $0x290] sm:$0xff]  ;;  %v2497_v12 = vld [vmem:[%s19610_s6 + $0x338] sm:$0xff]  ;;  %v15985_v55 = vcombine.low %v2484_v35, %v2488_v62 }
 0x233   :  { %3301 = vmatprep.subr.bf16.mxu0 %v15922_v7  ;;  %19990 = vst [vmem:[#allocation67_spill] sm:$0xff] %v15967_v28  ;;  %v15970_v7 = vcombine.high %v2501_v41, %v2505_v24  ;;  %v2472_v35 = vld [vmem:[%s19610_s6 + $0x270] sm:$0xff]  ;;  %v2485_v62 = vld [vmem:[%s19610_s6 + $0x2d8] sm:$0xff] }
 0x234   :  { %19989 = vst [vmem:[#allocation66_spill] sm:$0xff] %v15964_v11  ;;  %19992 = vst [vmem:[#allocation69_spill] sm:$0xff] %v15985_v55 }
 0x235   :  { %3265 = vmatpush2.bf16.msra.mxu1 %v15937_v27  ;;  %19991 = vst [vmem:[#allocation68_spill] sm:$0xff] %v15970_v7  ;;  %v15991_v27 = vcombine.high %v2476_v10, %v2480_v18 }
 0x236   :  { %3302 = vmatpush2.bf16.msra.mxu0 %v15940_v32  ;;  %3266 = vmatprep.subr.bf16.mxu1 %v15943_v61  ;;  %v15988_v61 = vcombine.low %v2501_v41, %v2505_v24  ;;  %v2468_v32 = vld [vmem:[%s19610_s6 + $0x250] sm:$0xff]  ;;  %v2489_v41 = vld [vmem:[%s19610_s6 + $0x2f8] sm:$0xff]  ;;  %v16009_v24 = vcombine.low %v2476_v10, %v2480_v18 }
 0x237   :  { %3303 = vmatprep.subr.bf16.mxu0 %v15946_v29  ;;  %19994 = vst [vmem:[#allocation71_spill] sm:$0xff] %v15991_v27  ;;  %v15994_v29 = vcombine.high %v2493_v42, %v2497_v12  ;;  %v2464_v10 = vld [vmem:[%s19610_s6 + $0x230] sm:$0xff]  ;;  %v2477_v18 = vld [vmem:[%s19610_s6 + $0x298] sm:$0xff] }
 0x238   :  { %19993 = vst [vmem:[#allocation70_spill] sm:$0xff] %v15988_v61  ;;  %19996 = vst [vmem:[#allocation73_spill] sm:$0xff] %v16009_v24 }
 0x239   :  { %3267 = vmatpush2.bf16.msra.mxu1 %v15961_v15  ;;  %19995 = vst [vmem:[#allocation72_spill] sm:$0xff] %v15994_v29  ;;  %v16015_v15 = vcombine.high %v2468_v32, %v2472_v35 }
 0x23a   :  { %3304 = vmatpush2.bf16.msra.mxu0 %v15964_v11  ;;  %3268 = vmatprep.subr.bf16.mxu1 %v15967_v28  ;;  %v16012_v28 = vcombine.low %v2493_v42, %v2497_v12  ;;  %v2460_v11 = vld [vmem:[%s19610_s6 + $0x210] sm:$0xff]  ;;  %v2481_v42 = vld [vmem:[%s19610_s6 + $0x2b8] sm:$0xff]  ;;  %v16033_v12 = vcombine.low %v2468_v32, %v2472_v35 }
 0x23b   :  { %3305 = vmatprep.subr.bf16.mxu0 %v15970_v7  ;;  %19997 = vst [vmem:[#allocation74_spill] sm:$0xff] %v16015_v15  ;;  %v16018_v7 = vcombine.high %v2485_v62, %v2489_v41  ;;  %v2473_v32 = vld [vmem:[%s19610_s6 + $0x278] sm:$0xff]  ;;  %v16051_v35 = vcombine.low %v2460_v11, %v2464_v10 }
 0x23c   :  { %19998 = vst [vmem:[#allocation75_spill] sm:$0xff] %v16033_v12 }
 0x23d   :  { %3269 = vmatpush2.bf16.msra.mxu1 %v15985_v55  ;;  %v16039_v55 = vcombine.high %v2460_v11, %v2464_v10  ;;  %20001 = vst [vmem:[#allocation78_spill] sm:$0xff] %v16051_v35 }
 0x23e   :  { %3306 = vmatpush2.bf16.msra.mxu0 %v15988_v61  ;;  %3270 = vmatprep.subr.bf16.mxu1 %v15991_v27  ;;  %v16036_v27 = vcombine.low %v2485_v62, %v2489_v41  ;;  %v2469_v61 = vld [vmem:[%s19610_s6 + $0x258] sm:$0xff]  ;;  %v16054_v62 = vcombine.low %v2477_v18, %v2481_v42 }
 0x23f   :  { %3307 = vmatprep.subr.bf16.mxu0 %v15994_v29  ;;  %19999 = vst [vmem:[#allocation76_spill] sm:$0xff] %v16039_v55  ;;  %v16042_v29 = vcombine.high %v2477_v18, %v2481_v42  ;;  %v16058_v41 = vcombine.high %v2469_v61, %v2473_v32  ;;  %v16068_v11 = vcombine.low %v2469_v61, %v2473_v32  ;;  %v19701_v18 = vsub.s32 4, %v14680_v5 }
 0x240   :  { %20002 = vst [vmem:[#allocation79_spill] sm:$0xff] %v16054_v62 }
 0x241   :  { %3271 = vmatpush2.bf16.msra.mxu1 %v16009_v24  ;;  %20000 = vst [vmem:[#allocation77_spill] sm:$0xff] %v16042_v29  ;;  %20003 = vst [vmem:[#allocation80_spill] sm:$0xff] %v16058_v41  ;;  %v757_v61 = vrot.slane %v15325_v33, %v19701_v18 }
 0x242   :  { %3308 = vmatpush2.bf16.msra.mxu0 %v16012_v28  ;;  %3272 = vmatprep.subr.bf16.mxu1 %v16015_v15  ;;  %v2461_v15 = vld [vmem:[%s19610_s6 + $0x218] sm:$0xff]  ;;  %20004 = vst [vmem:[#allocation81_spill] sm:$0xff] %v16068_v11 }
 0x243   :  { %3309 = vmatprep.subr.bf16.mxu0 %v16018_v7 }
 0x245   :  { %3273 = vmatpush2.bf16.msra.mxu1 %v16033_v12  ;;  %v2465_v12 = vld [vmem:[%s19610_s6 + $0x238] sm:$0xff] }
 0x246   :  { %3310 = vmatpush2.bf16.msra.mxu0 %v16036_v27  ;;  %3274 = vmatprep.subr.bf16.mxu1 %v16039_v55  ;;  %v16071_v10 = vcombine.high %v2461_v15, %v2465_v12  ;;  %v19702_v55 = vsub.s32 5, %v14680_v5 }
 0x247   :  { %3311 = vmatprep.subr.bf16.mxu0 %v16042_v29  ;;  %v16077_v29 = vcombine.low %v2461_v15, %v2465_v12 }
 0x248   :  { %20005 = vst [vmem:[#allocation82_spill] sm:$0xff] %v16071_v10 }
 0x249   :  { %3275 = vmatpush2.bf16.msra.mxu1 %v16051_v35  ;;  %v761_v35 = vrot.slane %v15325_v33, %v19702_v55  ;;  %v4547_v55 = vld [vmem:[%s19610_s6 + $0x240] sm:$0xff] }
 0x24a   :  { %3312 = vmatpush2.bf16.msra.mxu0 %v16054_v62 }
 0x24b   :  { %3313 = vmatprep.subr.bf16.mxu0 %v16058_v41 }
 0x24c   :  { %v2256_v42 = vpop.f32.mrf.mxu1  ;;  %3277 = vmatmul.mubr.bf16.vlgmr.msra.gmra.mxu1 %v19953_v9 }
 0x24d   :  { %v2257_v62 = vadd.f32 %v2256_v42, %v757_v61  ;;  %v20022_v61 = vld [vmem:[#allocation23_spill] sm:$0xff] }
 0x24e   :  { %v2258_v24 = vpop.f32.mrf.mxu1  ;;  %3314 = vmatpush2.bf16.msra.mxu0 %v16068_v11 }
 0x24f   :  { %3315 = vmatprep.subr.bf16.mxu0 %v16071_v10  ;;  %v2259_v15 = vadd.f32 %v2258_v24, %v761_v35  ;;  %v20020_v35 = vld [vmem:[#allocation21_spill] sm:$0xff] }
 0x250   :  { %v2260_v32 = vpop.f32.mrf.mxu1 }
 0x252   :  { %v2261_v41 = vpop.f32.mrf.mxu1  ;;  %3316 = vmatpush2.bf16.msra.mxu0 %v16077_v29 }
 0x253   :  { %4243 = vmatprep.subr.bf16.mxu0 %v15330_v37  ;;  %v764_v37 = vsub.s32 6, %v14680_v5 }
 0x255   :  { %v2297_v11 = vpop.f32.mrf.mxu0  ;;  %3318 = vmatmul.mubr.bf16.vlgmr.msra.gmra.mxu0 %v19953_v9 }
 0x256   :  { %v2298_v12 = vadd.f32 %v2297_v11, %v2257_v62  ;;  %4244 = vmatpush1.bf16.msra.mxu0 %v15350_v46  ;;  %v20021_v62 = vld [vmem:[#allocation22_spill] sm:$0xff] }
 0x257   :  { %v2299_v10 = vpop.f32.mrf.mxu0  ;;  %4245 = vmatprep.subr.bf16.mxu0 %v15356_v48  ;;  %v768_v48 = vsub.s32 7, %v14680_v5 }
 0x258   :  { %2390 = vst [vmem:[#allocation2 + $0x20] sm:$0xff] %v2298_v12  ;;  %v2300_v32 = vadd.f32 %v2299_v10, %v2259_v15  ;;  %v20023_v15 = vld [vmem:[#allocation24_spill] sm:$0xff] }
 0x259   :  { %v2301_v18 = vpop.f32.mrf.mxu0 }
 0x25a   :  { %2391 = vst [vmem:[#allocation2 + $0x28] sm:$0xff] %v2300_v32  ;;  %4246 = vmatpush1.bf16.msra.mxu0 %v15372_v57 }
 0x25b   :  { %v2302_v41 = vpop.f32.mrf.mxu0  ;;  %4247 = vmatprep.subr.bf16.mxu0 %v15381_v3  ;;  %v765_v3 = vrot.slane %v15325_v33, %v764_v37 }
 0x25c   :  { %v20024_v41 = vld [vmem:[#allocation25_spill] sm:$0xff] }
 0x25e   :  { %4248 = vmatpush1.bf16.msra.mxu0 %v15400_v60 }
 0x25f   :  { %4249 = vmatprep.subr.bf16.mxu0 %v15406_v13 }
 0x262   :  { %4250 = vmatpush1.bf16.msra.mxu0 %v15424_v19 }
 0x263   :  { %4251 = vmatprep.subr.bf16.mxu0 %v15430_v21 }
 0x266   :  { %4252 = vmatpush1.bf16.msra.mxu0 %v15448_v26 }
 0x267   :  { %4253 = vmatprep.subr.bf16.mxu0 %v15454_v30 }
 0x26a   :  { %4254 = vmatpush1.bf16.msra.mxu0 %v15472_v38 }
 0x26b   :  { %4255 = vmatprep.subr.bf16.mxu0 %v15478_v40 }
 0x26e   :  { %4256 = vmatpush1.bf16.msra.mxu0 %v15496_v49  ;;  %v3490_v49 = vld [vmem:[%s19610_s6 + $0x1c0] sm:$0xff] }
 0x26f   :  { %4257 = vmatprep.subr.bf16.mxu0 %v15502_v51 }
 0x272   :  { %4258 = vmatpush1.bf16.msra.mxu0 %v15520_v2  ;;  %v3486_v2 = vld [vmem:[%s19610_s6 + $0x1a0] sm:$0xff] }
 0x273   :  { %4259 = vmatprep.subr.bf16.mxu0 %v15526_v4 }
 0x276   :  { %4260 = vmatpush2.bf16.msra.mxu0 %v15544_v14 }
 0x277   :  { %4261 = vmatprep.subr.bf16.mxu0 %v15550_v16  ;;  %v20006_v16 = vld [vmem:[#allocation7_spill] sm:$0xff] }
 0x27a   :  { %4262 = vmatpush2.bf16.msra.mxu0 %v15568_v31  ;;  %v20008_v31 = vld [vmem:[#allocation9_spill] sm:$0xff] }
 0x27b   :  { %4263 = vmatprep.subr.bf16.mxu0 %v15574_v34  ;;  %v20009_v34 = vld [vmem:[#allocation10_spill] sm:$0xff] }
 0x27e   :  { %4264 = vmatpush2.bf16.msra.mxu0 %v15592_v52  ;;  %v20011_v52 = vld [vmem:[#allocation12_spill] sm:$0xff] }
 0x27f   :  { %4265 = vmatprep.subr.bf16.mxu0 %v15598_v54  ;;  %v20017_v54 = vld [vmem:[#allocation18_spill] sm:$0xff] }
 0x282   :  { %4266 = vmatpush2.bf16.msra.mxu0 %v15616_v17  ;;  %v20018_v17 = vld [vmem:[#allocation19_spill] sm:$0xff] }
 0x283   :  { %4267 = vmatprep.subr.bf16.mxu0 %v15622_v23  ;;  %v14237_v23 = vmov 1966171168  }
 0x284   :  { %v3342_v9 = vunpack.c.l.s4 %v14237_v23 }
 0x286   :  { %4268 = vmatpush2.bf16.msra.mxu0 %v15640_v1  ;;  %v769_v1 = vrot.slane %v15325_v33, %v768_v48  ;;  %v3494_v33 = vld [vmem:[%s19610_s6 + $0x1e0] sm:$0xff]  ;;  %v3343_v18 = vunpack.c.0.s8 %v3342_v9 }
 0x287   :  { %4269 = vmatprep.subr.bf16.mxu0 %v15646_v8  ;;  %v16131_v51 = vcombine.high %v3490_v49, %v3494_v33 }
 0x288   :  { %v16173_v32 = vsub.s32 %v3343_v18, %v14680_v5 }
 0x289   :  { %4202 = vmatprep.subr.bf16.mxu1 %v16131_v51 }
 0x28a   :  { %4270 = vmatpush2.bf16.msra.mxu0 %v15664_v22  ;;  %v20019_v22 = vld [vmem:[#allocation20_spill] sm:$0xff] }
 0x28b   :  { %4271 = vmatprep.subr.bf16.mxu0 %v15670_v44  ;;  %v20010_v44 = vld [vmem:[#allocation11_spill] sm:$0xff] }
 0x28c   :  { %v2338_v46 = vpop.f32.mrf.mxu1 }
 0x28d   :  { %v2339_v13 = vadd.f32 %v2338_v46, %v765_v3  ;;  %v20025_v46 = vld [vmem:[#allocation26_spill] sm:$0xff] }
 0x28e   :  { %v2340_v57 = vpop.f32.mrf.mxu1  ;;  %4272 = vmatpush2.bf16.msra.mxu0 %v15688_v6 }
 0x28f   :  { %4273 = vmatprep.subr.bf16.mxu0 %v15694_v25  ;;  %v2341_v21 = vadd.f32 %v2340_v57, %v769_v1  ;;  %v20007_v25 = vld [vmem:[#allocation8_spill] sm:$0xff] }
 0x290   :  { %v2342_v60 = vpop.f32.mrf.mxu1 }
 0x291   :  { %v20026_v60 = vld [vmem:[#allocation27_spill] sm:$0xff] }
 0x292   :  { %v2343_v8 = vpop.f32.mrf.mxu1  ;;  %4274 = vmatpush2.bf16.msra.mxu0 %v15716_v63  ;;  %v3482_v63 = vld [vmem:[%s19610_s6 + $0x180] sm:$0xff] }
 0x293   :  { %4325 = vmatprep.subr.bf16.mxu0 %v15722_v45  ;;  %v16133_v45 = vcombine.low %v3490_v49, %v3494_v33  ;;  %v16143_v4 = vcombine.high %v3482_v63, %v3486_v2  ;;  %v16145_v14 = vcombine.low %v3482_v63, %v3486_v2  ;;  %v20027_v8 = vld [vmem:[#allocation28_spill] sm:$0xff] }
 0x295   :  { %v2379_v19 = vpop.f32.mrf.mxu0  ;;  %4203 = vmatpush1.bf16.msra.mxu1 %v16133_v45 }
 0x296   :  { %v2380_v26 = vadd.f32 %v2379_v19, %v2339_v13  ;;  %4204 = vmatprep.subr.bf16.mxu1 %v16143_v4 }
 0x297   :  { %v2381_v30 = vpop.f32.mrf.mxu0 }
 0x298   :  { %2392 = vst [vmem:[#allocation2 + $0x30] sm:$0xff] %v2380_v26  ;;  %v2382_v38 = vadd.f32 %v2381_v30, %v2341_v21  ;;  %v20028_v26 = vld [vmem:[#allocation29_spill] sm:$0xff]  ;;  %v20029_v30 = vld [vmem:[#allocation30_spill] sm:$0xff] }
 0x299   :  { %v2383_v6 = vpop.f32.mrf.mxu0  ;;  %4205 = vmatpush1.bf16.msra.mxu1 %v16145_v14 }
 0x29a   :  { %2393 = vst [vmem:[#allocation2 + $0x38] sm:$0xff] %v2382_v38  ;;  %4206 = vmatprep.subr.bf16.mxu1 %v15328_v36  ;;  %v20012_v36 = vld [vmem:[#allocation13_spill] sm:$0xff] }
 0x29b   :  { %v2384_v40 = vpop.f32.mrf.mxu0 }
 0x29d   :  { %4207 = vmatpush1.bf16.msra.mxu1 %v15346_v43  ;;  %v20013_v43 = vld [vmem:[#allocation14_spill] sm:$0xff] }
 0x29e   :  { %4208 = vmatprep.subr.bf16.mxu1 %v15353_v47  ;;  %v20014_v47 = vld [vmem:[#allocation15_spill] sm:$0xff] }
 0x2a1   :  { %4209 = vmatpush1.bf16.msra.mxu1 %v15374_v58  ;;  %v20015_v58 = vld [vmem:[#allocation16_spill] sm:$0xff] }
 0x2a2   :  { %4210 = vmatprep.subr.bf16.mxu1 %v15378_v0  ;;  %v20016_v0 = vld [vmem:[#allocation17_spill] sm:$0xff] }
 0x2a5   :  { %4211 = vmatpush1.bf16.msra.mxu1 %v20006_v16 }
 0x2a6   :  { %4212 = vmatprep.subr.bf16.mxu1 %v20007_v25 }
 0x2a9   :  { %4213 = vmatpush1.bf16.msra.mxu1 %v20008_v31 }
 0x2aa   :  { %4214 = vmatprep.subr.bf16.mxu1 %v20009_v34 }
 0x2ad   :  { %4215 = vmatpush1.bf16.msra.mxu1 %v20010_v44 }
 0x2ae   :  { %4216 = vmatprep.subr.bf16.mxu1 %v20011_v52 }
 0x2b1   :  { %4217 = vmatpush1.bf16.msra.mxu1 %v20012_v36  ;;  %v3327_v36 = vld [vmem:[#allocation2] ss:$8 sm:$0xf0] }
 0x2b2   :  { %4218 = vmatprep.subr.bf16.mxu1 %v20013_v43 }
 0x2b5   :  { %4219 = vmatpush2.bf16.msra.mxu1 %v20014_v47 }
 0x2b6   :  { %4220 = vmatprep.subr.bf16.mxu1 %v20015_v58  ;;  %v3326_v58 = vld [vmem:[#allocation2] ss:$8 sm:$0xf] }
 0x2b9   :  { %4221 = vmatpush2.bf16.msra.mxu1 %v20016_v0  ;;  %v3328_v0 = vor.u32 %v3327_v36, %v3326_v58  ;;  %v20051_v36 = vld [vmem:[#allocation54_spill] sm:$0xff]  ;;  %v20054_v58 = vld [vmem:[#allocation49_spill] sm:$0xff] }
 0x2ba   :  { %4222 = vmatprep.subr.bf16.mxu1 %v20017_v54 }
 0x2bd   :  { %4223 = vmatpush2.bf16.msra.mxu1 %v20018_v17 }
 0x2be   :  { %4224 = vmatprep.subr.bf16.mxu1 %v20019_v22 }
 0x2c1   :  { %4225 = vmatpush2.bf16.msra.mxu1 %v20020_v35 }
 0x2c2   :  { %4226 = vmatprep.subr.bf16.mxu1 %v20021_v62 }
 0x2c5   :  { %4227 = vmatpush2.bf16.msra.mxu1 %v20022_v61 }
 0x2c6   :  { %4228 = vmatprep.subr.bf16.mxu1 %v20023_v15 }
 0x2c9   :  { %4229 = vmatpush2.bf16.msra.mxu1 %v20024_v41 }
 0x2ca   :  { %4230 = vmatprep.subr.bf16.mxu1 %v20025_v46 }
 0x2cc   :  { %v3196_v24 = vpop.f32.mrf.mxu1 }
 0x2cd   :  { %4231 = vmatpush2.bf16.msra.mxu1 %v20026_v60 }
 0x2ce   :  { %v3198_v11 = vpop.f32.mrf.mxu1  ;;  %4232 = vmatprep.subr.bf16.mxu1 %v20027_v8  ;;  %v20030_v8 = vld [vmem:[#allocation6_spill] sm:$0xff] }
 0x2cf   :  { %v3337_v10 = vcombine.low %v3196_v24, %v3198_v11 }
 0x2d0   :  { %v3200_v42 = vpop.f32.mrf.mxu1 }
 0x2d1   :  { %v3347_v57 = vrot.slane %v3337_v10, %v16173_v32  ;;  %4233 = vmatpush2.bf16.msra.mxu1 %v20028_v26 }
 0x2d2   :  { %v3201_v12 = vpop.f32.mrf.mxu1  ;;  %4284 = vmatprep.subr.bf16.mxu1 %v20029_v30 }
 0x2d5   :  { %v3237_v37 = vpop.f32.mrf.mxu0 }
 0x2d7   :  { %v3239_v48 = vpop.f32.mrf.mxu0 }
 0x2d8   :  { %v3338_v3 = vcombine.low %v3237_v37, %v3239_v48 }
 0x2d9   :  { %v3241_v1 = vpop.f32.mrf.mxu0 }
 0x2da   :  { %v3354_v13 = vrot.slane %v3338_v3, %v16173_v32 }
 0x2db   :  { %v3242_v19 = vpop.f32.mrf.mxu0 }
 0x2dc   :  { %v3369_v21 = vcombine.low %v3347_v57, %v3354_v13  ;;  %v20031_v19 = vld [vmem:[#allocation5_spill] sm:$0xff] }
 0x2de   :  { %v3377_v43 = vrot.slane %v3369_v21, %v16173_v32 }
 0x30c   :  { %v3278_v38 = vpop.f32.mrf.mxu1 }
 0x30e   :  { %v3280_v6 = vpop.f32.mrf.mxu1 }
 0x30f   :  { %v3339_v63 = vcombine.low %v3278_v38, %v3280_v6  ;;  %v20032_v38 = vld [vmem:[#allocation31_spill] sm:$0xff]  ;;  %v20033_v6 = vld [vmem:[#allocation32_spill] sm:$0xff] }
 0x310   :  { %v3282_v40 = vpop.f32.mrf.mxu1 }
 0x311   :  { %v3361_v31 = vrot.slane %v3339_v63, %v16173_v32  ;;  %v20034_v40 = vld [vmem:[#allocation33_spill] sm:$0xff]  ;;  %v20038_v63 = vld [vmem:[#allocation36_spill] sm:$0xff] }
 0x312   :  { %v3283_v49 = vpop.f32.mrf.mxu1 }
 0x313   :  { %v20035_v49 = vld [vmem:[#allocation34_spill] sm:$0xff] }
 0x315   :  { %v3319_v33 = vpop.f32.mrf.mxu0 }
 0x317   :  { %v3321_v2 = vpop.f32.mrf.mxu0 }
 0x318   :  { %v3340_v16 = vcombine.low %v3319_v33, %v3321_v2  ;;  %v20036_v33 = vld [vmem:[#allocation35_spill] sm:$0xff]  ;;  %v20039_v2 = vld [vmem:[#allocation42_spill] sm:$0xff] }
 0x319   :  { %v3323_v25 = vpop.f32.mrf.mxu0 }
 0x31a   :  { %v3368_v34 = vrot.slane %v3340_v16, %v16173_v32  ;;  %v20041_v16 = vld [vmem:[#allocation44_spill] sm:$0xff]  ;;  %v20043_v25 = vld [vmem:[#allocation46_spill] sm:$0xff] }
 0x31b   :  { %v3324_v44 = vpop.f32.mrf.mxu0 }
 0x31c   :  { %v3370_v52 = vcombine.low %v3361_v31, %v3368_v34  ;;  %v20047_v31 = vld [vmem:[#allocation50_spill] sm:$0xff]  ;;  %v20048_v34 = vld [vmem:[#allocation43_spill] sm:$0xff]  ;;  %v20049_v44 = vld [vmem:[#allocation52_spill] sm:$0xff] }
 0x31e   :  { %v3384_v47 = vrot.slane %v3370_v52, %v16173_v32  ;;  %v20050_v52 = vld [vmem:[#allocation45_spill] sm:$0xff] }
 0x320   :  { %v3385_v54 = vcombine.low %v3377_v43, %v3384_v47  ;;  %v20052_v43 = vld [vmem:[#allocation47_spill] sm:$0xff]  ;;  %v20053_v47 = vld [vmem:[#allocation56_spill] sm:$0xff] }
 0x322   :  { %v3387_v17 = vadd.f32 %v3385_v54, %v3328_v0  ;;  %v20055_v0 = vld [vmem:[#allocation58_spill] sm:$0xff]  ;;  %v20056_v54 = vld [vmem:[#allocation51_spill] sm:$0xff] }
 0x324   :  { %v12636_v22 = vmul.f32 -1.442695, %v3387_v17  ;;  %v3395_v23 = vrot.slane %v3387_v17, 2  ;;  %v3406_v24 = vrot.slane %v3387_v17, 6  ;;  %v3403_v11 = vrot.slane %v3387_v17, 4  ;;  %v20057_v17 = vld [vmem:[#allocation60_spill] sm:$0xff] }
 0x326   :  { %14090 = vpow2.f32 %v12636_v22  ;;  %v12637_v9 = vmul.f32 -1.442695, %v3395_v23  ;;  %v12638_v35 = vmul.f32 -1.442695, %v3406_v24  ;;  %v20058_v22 = vld [vmem:[#allocation53_spill] sm:$0xff]  ;;  %v20059_v23 = vld [vmem:[#allocation62_spill] sm:$0xff] }
 0x327   :  { %v20061_v24 = vld [vmem:[#allocation64_spill] sm:$0xff] }
 0x328   :  { %14092 = vpow2.f32 %v12637_v9  ;;  %v20060_v9 = vld [vmem:[#allocation55_spill] sm:$0xff] }
 0x329   :  { %14094 = vpow2.f32 %v12638_v35  ;;  %v20062_v35 = vld [vmem:[#allocation57_spill] sm:$0xff] }
 0x333   :  { %v14091_v62 = vpop.eup %14090 }
 0x334   :  { %v3391_v10 = vadd.f32 1.0, %v14091_v62  ;;  %v20063_v62 = vld [vmem:[#allocation66_spill] sm:$0xff] }
 0x335   :  { %v14093_v18 = vpop.eup %14092 }
 0x336   :  { %14096 = vrcp.f32 %v3391_v10  ;;  %v3400_v42 = vadd.f32 1.0, %v14093_v18  ;;  %v14095_v61 = vpop.eup %14094  ;;  %v20065_v10 = vld [vmem:[#allocation68_spill] sm:$0xff]  ;;  %v20066_v18 = vld [vmem:[#allocation61_spill] sm:$0xff] }
 0x337   :  { %14098 = vtanh.f32 %v3403_v11  ;;  %v3411_v37 = vadd.f32 1.0, %v14095_v61  ;;  %v20064_v11 = vld [vmem:[#allocation59_spill] sm:$0xff] }
 0x338   :  { %14100 = vrcp.f32 %v3400_v42  ;;  %v20067_v42 = vld [vmem:[#allocation70_spill] sm:$0xff]  ;;  %v20068_v61 = vld [vmem:[#allocation63_spill] sm:$0xff] }
 0x339   :  { %14102 = vrcp.f32 %v3411_v37  ;;  %v20072_v37 = vld [vmem:[#allocation69_spill] sm:$0xff] }
 0x343   :  { %v14097_v15 = vpop.eup %14096 }
 0x344   :  { %v14099_v12 = vpop.eup %14098 }
 0x345   :  { %v14101_v41 = vpop.eup %14100  ;;  %v3415_v48 = vmul.f32 %v14099_v12, %v14097_v15  ;;  %v20069_v15 = vld [vmem:[#allocation72_spill] sm:$0xff]  ;;  %v20070_v12 = vld [vmem:[#allocation65_spill] sm:$0xff] }
 0x346   :  { %v3414_v46 = vmul.f32 0.0, %v14101_v41  ;;  %v14103_v3 = vpop.eup %14102  ;;  %v20071_v41 = vld [vmem:[#allocation67_spill] sm:$0xff] }
 0x348   :  { %v16187_v57 = vadd.f32 %v3415_v48, %v3414_v46  ;;  %v20073_v46 = vld [vmem:[#allocation71_spill] sm:$0xff]  ;;  %v20074_v48 = vld [vmem:[#allocation77_spill] sm:$0xff] }
 0x34a   :  { %14104 = vtanh.f32 %v16187_v57 }
 0x357   :  { %v14105_v60 = vpop.eup %14104 }
 0x358   :  { %v3418_v1 = vmul.f32 %v14105_v60, %v14103_v3  ;;  %v20075_v3 = vld [vmem:[#allocation73_spill] sm:$0xff]  ;;  %v20076_v60 = vld [vmem:[#allocation79_spill] sm:$0xff] }
 0x35a   :  { %3419 = vst [vmem:[#allocation3] sm:$0x1] %v3418_v1  ;;  %v3424_v13 = vrot.slane %v3418_v1, %v20030_v8  ;;  %v3430_v21 = vrot.slane %v3418_v1, %v20031_v19  ;;  %v20077_v1 = vld [vmem:[#allocation74_spill] sm:$0xff] }
 0x35c   :  { %3426 = vst [vmem:[#allocation3 + $0xf] sm:$0x1] %v3424_v13  ;;  %v3433_v26 = vpack.c.bf16 %v3424_v13, %v3424_v13  ;;  %v16192_v30 = vpack.c.bf16 %v3430_v21, %v3430_v21  ;;  %v20078_v13 = vld [vmem:[#allocation80_spill] sm:$0xff]  ;;  %v20080_v21 = vld [vmem:[#allocation81_spill] sm:$0xff] }
 0x35e   :  { %4234 = vmatprep.mubr.bf16.mxu1 %v3433_v26  ;;  %4275 = vmatprep.mubr.bf16.mxu0 %v3433_v26 }
 0x35f   :  { %4235 = vmatmul.mubr.bf16.vlgmr.msra.gmra.mxu1 %v16192_v30  ;;  %4276 = vmatmul.mubr.bf16.vlgmr.msra.gmra.mxu0 %v16192_v30 }
 0x360   :  { %4285 = vmatpush1.bf16.msra.mxu1 %v20032_v38  ;;  %4326 = vmatpush1.bf16.msra.mxu0 %v15746_v56  ;;  %v20037_v56 = vld [vmem:[#allocation40_spill] sm:$0xff]  ;;  %v4532_v38 = vld [vmem:[%s19610_s6 + $0x1c8] sm:$0xff] }
 0x361   :  { %4316 = vmatprep.mubr.bf16.mxu1 %v3433_v26  ;;  %4357 = vmatprep.mubr.bf16.mxu0 %v3433_v26  ;;  %v20082_v26 = vld [vmem:[#allocation82_spill] sm:$0xff] }
 0x362   :  { %4286 = vmatprep.subr.bf16.mxu1 %v20033_v6  ;;  %4327 = vmatprep.subr.bf16.mxu0 %v15752_v20  ;;  %v20040_v20 = vld [vmem:[#allocation37_spill] sm:$0xff] }
 0x364   :  { %4287 = vmatpush1.bf16.msra.mxu1 %v20034_v40  ;;  %4328 = vmatpush1.bf16.msra.mxu0 %v15768_v50  ;;  %v20042_v50 = vld [vmem:[#allocation38_spill] sm:$0xff] }
 0x365   :  { %4288 = vmatprep.subr.bf16.mxu1 %v20035_v49  ;;  %4329 = vmatprep.subr.bf16.mxu0 %v15777_v59  ;;  %v20044_v59 = vld [vmem:[#allocation39_spill] sm:$0xff]  ;;  %v4515_v40 = vld [vmem:[%s19610_s6 + $0x140] sm:$0xff] }
 0x366   :  { %v4519_v49 = vld [vmem:[%s19610_s6 + $0x160] sm:$0xff] }
 0x368   :  { %4289 = vmatpush1.bf16.msra.mxu1 %v15740_v39  ;;  %4330 = vmatpush1.bf16.msra.mxu0 %v15796_v53  ;;  %v20045_v39 = vld [vmem:[#allocation48_spill] sm:$0xff]  ;;  %v20046_v53 = vld [vmem:[#allocation41_spill] sm:$0xff] }
 0x369   :  { %4290 = vmatprep.subr.bf16.mxu1 %v20036_v33  ;;  %4331 = vmatprep.subr.bf16.mxu0 %v20037_v56  ;;  %v4516_v33 = vld [vmem:[%s19610_s6 + $0x148] sm:$0xff]  ;;  %v16297_v56 = vcombine.high %v4515_v40, %v4519_v49 }
 0x36c   :  { %4291 = vmatpush1.bf16.msra.mxu1 %v20038_v63  ;;  %4332 = vmatpush1.bf16.msra.mxu0 %v20039_v2  ;;  %v4520_v63 = vld [vmem:[%s19610_s6 + $0x168] sm:$0xff]  ;;  %v16302_v2 = vcombine.low %v4515_v40, %v4519_v49  ;;  %v4591_v49 = vld [vmem:[%s19610_s6 + $0x3a0] sm:$0xff] }
 0x36d   :  { %4292 = vmatprep.subr.bf16.mxu1 %v20040_v20  ;;  %4333 = vmatprep.subr.bf16.mxu0 %v20041_v16  ;;  %v16304_v20 = vcombine.low %v4516_v33, %v4520_v63  ;;  %v16306_v16 = vcombine.high %v4516_v33, %v4520_v63  ;;  %v4588_v33 = vld [vmem:[%s19610_s6 + $0x388] sm:$0xff] }
 0x36e   :  { %v4592_v63 = vld [vmem:[%s19610_s6 + $0x3a8] sm:$0xff] }
 0x370   :  { %4293 = vmatpush1.bf16.msra.mxu1 %v20042_v50  ;;  %4334 = vmatpush1.bf16.msra.mxu0 %v20043_v25  ;;  %v4507_v50 = vld [vmem:[%s19610_s6 + $0x100] sm:$0xff] }
 0x371   :  { %4294 = vmatprep.subr.bf16.mxu1 %v20044_v59  ;;  %4335 = vmatprep.subr.bf16.mxu0 %v20045_v39  ;;  %v4511_v25 = vld [vmem:[%s19610_s6 + $0x120] sm:$0xff]  ;;  %v4508_v59 = vld [vmem:[%s19610_s6 + $0x108] sm:$0xff] }
 0x372   :  { %v16321_v39 = vcombine.high %v4507_v50, %v4511_v25 }
 0x374   :  { %4295 = vmatpush1.bf16.msra.mxu1 %v20046_v53  ;;  %4336 = vmatpush1.bf16.msra.mxu0 %v20047_v31  ;;  %v4512_v53 = vld [vmem:[%s19610_s6 + $0x128] sm:$0xff]  ;;  %v16326_v31 = vcombine.low %v4507_v50, %v4511_v25 }
 0x375   :  { %4296 = vmatprep.subr.bf16.mxu1 %v20048_v34  ;;  %4337 = vmatprep.subr.bf16.mxu0 %v20049_v44  ;;  %v16328_v34 = vcombine.low %v4508_v59, %v4512_v53  ;;  %v16330_v44 = vcombine.high %v4508_v59, %v4512_v53  ;;  %v16468_v53 = vcombine.high %v4588_v33, %v4592_v63 }
 0x378   :  { %4297 = vmatpush1.bf16.msra.mxu1 %v20050_v52  ;;  %4338 = vmatpush1.bf16.msra.mxu0 %v20051_v36  ;;  %v4499_v52 = vld [vmem:[%s19610_s6 + $0xc0] sm:$0xff] }
 0x379   :  { %4298 = vmatprep.subr.bf16.mxu1 %v20052_v43  ;;  %4339 = vmatprep.subr.bf16.mxu0 %v20053_v47  ;;  %v4503_v36 = vld [vmem:[%s19610_s6 + $0xe0] sm:$0xff]  ;;  %v4500_v43 = vld [vmem:[%s19610_s6 + $0xc8] sm:$0xff] }
 0x37a   :  { %v16345_v47 = vcombine.high %v4499_v52, %v4503_v36 }
 0x37c   :  { %4299 = vmatpush1.bf16.msra.mxu1 %v20054_v58  ;;  %4340 = vmatpush1.bf16.msra.mxu0 %v20055_v0  ;;  %20084 = vst [vmem:[#allocation7_spill] sm:$0xff] %v16345_v47  ;;  %v4504_v58 = vld [vmem:[%s19610_s6 + $0xe8] sm:$0xff]  ;;  %v16350_v0 = vcombine.low %v4499_v52, %v4503_v36  ;;  %v4579_v52 = vld [vmem:[%s19610_s6 + $0x340] sm:$0xff] }
 0x37d   :  { %4300 = vmatprep.subr.bf16.mxu1 %v20056_v54  ;;  %4341 = vmatprep.subr.bf16.mxu0 %v20057_v17  ;;  %v16352_v54 = vcombine.low %v4500_v43, %v4504_v58  ;;  %v16354_v17 = vcombine.high %v4500_v43, %v4504_v58  ;;  %v4583_v36 = vld [vmem:[%s19610_s6 + $0x360] sm:$0xff]  ;;  %v4580_v43 = vld [vmem:[%s19610_s6 + $0x348] sm:$0xff] }
 0x37e   :  { %20085 = vst [vmem:[#allocation8_spill] sm:$0xff] %v16350_v0  ;;  %v4584_v58 = vld [vmem:[%s19610_s6 + $0x368] sm:$0xff] }
 0x380   :  { %4301 = vmatpush2.bf16.msra.mxu1 %v20058_v22  ;;  %4342 = vmatpush2.bf16.msra.mxu0 %v20059_v23  ;;  %v4491_v22 = vld [vmem:[%s19610_s6 + $0x80] sm:$0xff] }
 0x381   :  { %4302 = vmatprep.subr.bf16.mxu1 %v20060_v9  ;;  %4343 = vmatprep.subr.bf16.mxu0 %v20061_v24  ;;  %v4495_v23 = vld [vmem:[%s19610_s6 + $0xa0] sm:$0xff]  ;;  %v4492_v9 = vld [vmem:[%s19610_s6 + $0x88] sm:$0xff] }
 0x382   :  { %v16369_v24 = vcombine.high %v4491_v22, %v4495_v23 }
 0x384   :  { %4303 = vmatpush2.bf16.msra.mxu1 %v20062_v35  ;;  %4344 = vmatpush2.bf16.msra.mxu0 %v20063_v62  ;;  %20086 = vst [vmem:[#allocation9_spill] sm:$0xff] %v16369_v24  ;;  %v4496_v35 = vld [vmem:[%s19610_s6 + $0xa8] sm:$0xff]  ;;  %v16374_v62 = vcombine.low %v4491_v22, %v4495_v23  ;;  %v16487_v23 = vcombine.low %v4588_v33, %v4592_v63 }
 0x385   :  { %4304 = vmatprep.subr.bf16.mxu1 %v20064_v11  ;;  %4345 = vmatprep.subr.bf16.mxu0 %v20065_v10  ;;  %v16376_v11 = vcombine.low %v4492_v9, %v4496_v35  ;;  %v16378_v10 = vcombine.high %v4492_v9, %v4496_v35  ;;  %v16489_v9 = vcombine.high %v4579_v52, %v4583_v36 }
 0x386   :  { %20087 = vst [vmem:[#allocation10_spill] sm:$0xff] %v16374_v62  ;;  %v16492_v35 = vcombine.high %v4580_v43, %v4584_v58 }
 0x387   :  { %20096 = vst [vmem:[#allocation19_spill] sm:$0xff] %v16489_v9 }
 0x388   :  { %4305 = vmatpush2.bf16.msra.mxu1 %v20066_v18  ;;  %4346 = vmatpush2.bf16.msra.mxu0 %v20067_v42  ;;  %v4483_v18 = vld [vmem:[%s19610_s6 + $0x40] sm:$0xff] }
 0x389   :  { %4306 = vmatprep.subr.bf16.mxu1 %v20068_v61  ;;  %4347 = vmatprep.subr.bf16.mxu0 %v20069_v15  ;;  %v4487_v42 = vld [vmem:[%s19610_s6 + $0x60] sm:$0xff]  ;;  %v4484_v61 = vld [vmem:[%s19610_s6 + $0x48] sm:$0xff] }
 0x38a   :  { %v16393_v15 = vcombine.high %v4483_v18, %v4487_v42 }
 0x38c   :  { %4307 = vmatpush2.bf16.msra.mxu1 %v20070_v12  ;;  %4348 = vmatpush2.bf16.msra.mxu0 %v16012_v28  ;;  %v20079_v28 = vld [vmem:[#allocation75_spill] sm:$0xff]  ;;  %20088 = vst [vmem:[#allocation11_spill] sm:$0xff] %v16393_v15 }
 0x38d   :  { %4308 = vmatprep.subr.bf16.mxu1 %v20071_v41  ;;  %4349 = vmatprep.subr.bf16.mxu0 %v16018_v7  ;;  %v20081_v7 = vld [vmem:[#allocation76_spill] sm:$0xff]  ;;  %v4488_v12 = vld [vmem:[%s19610_s6 + $0x68] sm:$0xff]  ;;  %v16398_v41 = vcombine.low %v4483_v18, %v4487_v42  ;;  %v4571_v18 = vld [vmem:[%s19610_s6 + $0x300] sm:$0xff] }
 0x38e   :  { %v4575_v42 = vld [vmem:[%s19610_s6 + $0x320] sm:$0xff] }
 0x38f   :  { %20089 = vst [vmem:[#allocation12_spill] sm:$0xff] %v16398_v41 }
 0x390   :  { %4309 = vmatpush2.bf16.msra.mxu1 %v20072_v37  ;;  %4350 = vmatpush2.bf16.msra.mxu0 %v16036_v27  ;;  %v20083_v27 = vld [vmem:[#allocation78_spill] sm:$0xff]  ;;  %v16400_v37 = vcombine.low %v4484_v61, %v4488_v12 }
 0x391   :  { %4310 = vmatprep.subr.bf16.mxu1 %v20073_v46  ;;  %4351 = vmatprep.subr.bf16.mxu0 %v20074_v48  ;;  %v16402_v46 = vcombine.high %v4484_v61, %v4488_v12  ;;  %v4475_v48 = vld [vmem:[%s19610_s6] sm:$0xff]  ;;  %v4572_v61 = vld [vmem:[%s19610_s6 + $0x308] sm:$0xff] }
 0x392   :  { %v4576_v12 = vld [vmem:[%s19610_s6 + $0x328] sm:$0xff] }
 0x394   :  { %4311 = vmatpush2.bf16.msra.mxu1 %v20075_v3  ;;  %4352 = vmatpush2.bf16.msra.mxu0 %v20076_v60  ;;  %v4479_v3 = vld [vmem:[%s19610_s6 + $0x20] sm:$0xff]  ;;  %v4476_v60 = vld [vmem:[%s19610_s6 + $0x8] sm:$0xff] }
 0x395   :  { %4312 = vmatprep.subr.bf16.mxu1 %v20077_v1  ;;  %4353 = vmatprep.subr.bf16.mxu0 %v20078_v13  ;;  %v16417_v1 = vcombine.low %v4475_v48, %v4479_v3  ;;  %v16419_v13 = vcombine.high %v4475_v48, %v4479_v3  ;;  %v16507_v48 = vcombine.low %v4579_v52, %v4583_v36  ;;  %v4555_v52 = vld [vmem:[%s19610_s6 + $0x280] sm:$0xff] }
 0x396   :  { %v16511_v3 = vcombine.low %v4580_v43, %v4584_v58  ;;  %v4559_v36 = vld [vmem:[%s19610_s6 + $0x2a0] sm:$0xff]  ;;  %v4556_v43 = vld [vmem:[%s19610_s6 + $0x288] sm:$0xff] }
 0x397   :  { %20090 = vst [vmem:[#allocation13_spill] sm:$0xff] %v16417_v1  ;;  %20091 = vst [vmem:[#allocation14_spill] sm:$0xff] %v16419_v13  ;;  %v4560_v58 = vld [vmem:[%s19610_s6 + $0x2a8] sm:$0xff] }
 0x398   :  { %4313 = vmatpush2.bf16.msra.mxu1 %v20079_v28  ;;  %4354 = vmatpush2.bf16.msra.mxu0 %v20080_v21  ;;  %v4480_v28 = vld [vmem:[%s19610_s6 + $0x28] sm:$0xff]  ;;  %v4595_v21 = vld [vmem:[%s19610_s6 + $0x3c0] sm:$0xff]  ;;  %20097 = vst [vmem:[#allocation20_spill] sm:$0xff] %v16507_v48  ;;  %v16583_v5 = vcombine.low %v4556_v43, %v4560_v58 }
 0x399   :  { %4314 = vmatprep.subr.bf16.mxu1 %v20081_v7  ;;  %4355 = vmatprep.subr.bf16.mxu0 %v20082_v26  ;;  %v4599_v7 = vld [vmem:[%s19610_s6 + $0x3e0] sm:$0xff]  ;;  %v16430_v26 = vcombine.low %v4476_v60, %v4480_v28 }
 0x39a   :  { %v16459_v50 = vcombine.low %v4595_v21, %v4599_v7 }
 0x39c   :  { %4315 = vmatpush2.bf16.msra.mxu1 %v20083_v27  ;;  %4356 = vmatpush2.bf16.msra.mxu0 %v16077_v29  ;;  %v4536_v29 = vld [vmem:[%s19610_s6 + $0x1e8] sm:$0xff]  ;;  %v16432_v27 = vcombine.high %v4476_v60, %v4480_v28  ;;  %20093 = vst [vmem:[#allocation16_spill] sm:$0xff] %v16459_v50  ;;  %v16513_v60 = vcombine.high %v4571_v18, %v4575_v42 }
 0x39d   :  { %5243 = vmatprep.subr.bf16.mxu1 %v16131_v51  ;;  %v16270_v6 = vcombine.high %v4532_v38, %v4536_v29  ;;  %v16272_v51 = vcombine.low %v4532_v38, %v4536_v29  ;;  %v16434_v38 = vcombine.high %v4595_v21, %v4599_v7  ;;  %v4596_v29 = vld [vmem:[%s19610_s6 + $0x3c8] sm:$0xff]  ;;  %v16516_v28 = vcombine.high %v4572_v61, %v4576_v12  ;;  %v4563_v21 = vld [vmem:[%s19610_s6 + $0x2c0] sm:$0xff] }
 0x39e   :  { %20098 = vst [vmem:[#allocation21_spill] sm:$0xff] %v16513_v60  ;;  %v4567_v7 = vld [vmem:[%s19610_s6 + $0x2e0] sm:$0xff] }
 0x39f   :  { %4317 = vmatmul.mubr.bf16.vlgmr.msra.gmra.mxu1 %v16192_v30  ;;  %4358 = vmatmul.mubr.bf16.vlgmr.msra.gmra.mxu0 %v16192_v30  ;;  %20092 = vst [vmem:[#allocation15_spill] sm:$0xff] %v16434_v38  ;;  %v16537_v33 = vcombine.high %v4563_v21, %v4567_v7 }
 0x3a0   :  { %5244 = vmatpush1.bf16.msra.mxu1 %v16133_v45  ;;  %5284 = vmatprep.subr.bf16.mxu0 %v16270_v6  ;;  %v4524_v45 = vld [vmem:[%s19610_s6 + $0x188] sm:$0xff] }
 0x3a1   :  { %5245 = vmatprep.subr.bf16.mxu1 %v16143_v4  ;;  %5285 = vmatpush1.bf16.msra.mxu0 %v16272_v51  ;;  %v4528_v4 = vld [vmem:[%s19610_s6 + $0x1a8] sm:$0xff]  ;;  %20100 = vst [vmem:[#allocation23_spill] sm:$0xff] %v16537_v33 }
 0x3a2   :  { %v16284_v30 = vcombine.low %v4524_v45, %v4528_v4 }
 0x3a4   :  { %5246 = vmatpush1.bf16.msra.mxu1 %v16145_v14  ;;  %v16282_v14 = vcombine.high %v4524_v45, %v4528_v4  ;;  %v4600_v45 = vld [vmem:[%s19610_s6 + $0x3e8] sm:$0xff]  ;;  %v4587_v4 = vld [vmem:[%s19610_s6 + $0x380] sm:$0xff] }
 0x3a5   :  { %5247 = vmatprep.subr.bf16.mxu1 %v16297_v56  ;;  %v16446_v40 = vcombine.high %v4596_v29, %v4600_v45  ;;  %v16463_v25 = vcombine.low %v4596_v29, %v4600_v45  ;;  %v16465_v59 = vcombine.high %v4587_v4, %v4591_v49  ;;  %v16483_v22 = vcombine.low %v4587_v4, %v4591_v49  ;;  %v4564_v29 = vld [vmem:[%s19610_s6 + $0x2c8] sm:$0xff] }
 0x3a6   :  { %5286 = vmatprep.subr.bf16.mxu0 %v16282_v14  ;;  %v4568_v45 = vld [vmem:[%s19610_s6 + $0x2e8] sm:$0xff]  ;;  %v16531_v4 = vcombine.low %v4571_v18, %v4575_v42  ;;  %v16535_v49 = vcombine.low %v4572_v61, %v4576_v12  ;;  %v16555_v18 = vcombine.low %v4563_v21, %v4567_v7  ;;  %v16561_v61 = vcombine.high %v4555_v52, %v4559_v36  ;;  %v4551_v21 = vld [vmem:[%s19610_s6 + $0x260] sm:$0xff] }
 0x3a7   :  { %5287 = vmatpush1.bf16.msra.mxu0 %v16284_v30  ;;  %20094 = vst [vmem:[#allocation17_spill] sm:$0xff] %v16465_v59  ;;  %20095 = vst [vmem:[#allocation18_spill] sm:$0xff] %v16483_v22  ;;  %v16540_v63 = vcombine.high %v4564_v29, %v4568_v45  ;;  %v16559_v42 = vcombine.low %v4564_v29, %v4568_v45  ;;  %v16564_v12 = vcombine.high %v4556_v43, %v4560_v58  ;;  %v4548_v7 = vld [vmem:[%s19610_s6 + $0x248] sm:$0xff] }
 0x3a8   :  { %5288 = vmatprep.subr.bf16.mxu0 %v16306_v16  ;;  %5248 = vmatpush1.bf16.msra.mxu1 %v16302_v2  ;;  %20099 = vst [vmem:[#allocation22_spill] sm:$0xff] %v16531_v4  ;;  %20101 = vst [vmem:[#allocation24_spill] sm:$0xff] %v16555_v18  ;;  %v4552_v29 = vld [vmem:[%s19610_s6 + $0x268] sm:$0xff]  ;;  %v16579_v45 = vcombine.low %v4555_v52, %v4559_v36  ;;  %v4543_v52 = vld [vmem:[%s19610_s6 + $0x220] sm:$0xff]  ;;  %v16603_v58 = vcombine.low %v4547_v55, %v4551_v21 }
 0x3a9   :  { %5249 = vmatprep.subr.bf16.mxu1 %v16321_v39  ;;  %20102 = vst [vmem:[#allocation25_spill] sm:$0xff] %v16561_v61  ;;  %v4540_v36 = vld [vmem:[%s19610_s6 + $0x208] sm:$0xff] }
 0x3aa   :  { %20103 = vst [vmem:[#allocation26_spill] sm:$0xff] %v16579_v45  ;;  %v4544_v43 = vld [vmem:[%s19610_s6 + $0x228] sm:$0xff]  ;;  %20105 = vst [vmem:[#allocation28_spill] sm:$0xff] %v16603_v58 }
 0x3ab   :  { %5289 = vmatpush1.bf16.msra.mxu0 %v16304_v20 }
 0x3ac   :  { %5290 = vmatprep.subr.bf16.mxu0 %v16330_v44  ;;  %5250 = vmatpush1.bf16.msra.mxu1 %v16326_v31 }
 0x3ad   :  { %5251 = vmatprep.subr.bf16.mxu1 %v16345_v47 }
 0x3af   :  { %5291 = vmatpush1.bf16.msra.mxu0 %v16328_v34 }
 0x3b0   :  { %5292 = vmatprep.subr.bf16.mxu0 %v16354_v17  ;;  %5252 = vmatpush1.bf16.msra.mxu1 %v16350_v0 }
 0x3b1   :  { %5253 = vmatprep.subr.bf16.mxu1 %v16369_v24 }
 0x3b3   :  { %5293 = vmatpush1.bf16.msra.mxu0 %v16352_v54 }
 0x3b4   :  { %5294 = vmatprep.subr.bf16.mxu0 %v16378_v10  ;;  %5254 = vmatpush1.bf16.msra.mxu1 %v16374_v62  ;;  %v4367_v62 = vld [vmem:[#allocation2 + $0x1] ss:$8 sm:$0xf] }
 0x3b5   :  { %5255 = vmatprep.subr.bf16.mxu1 %v16393_v15 }
 0x3b7   :  { %5295 = vmatpush1.bf16.msra.mxu0 %v16376_v11 }
 0x3b8   :  { %5296 = vmatprep.subr.bf16.mxu0 %v16402_v46  ;;  %5256 = vmatpush1.bf16.msra.mxu1 %v16398_v41 }
 0x3b9   :  { %5257 = vmatprep.subr.bf16.mxu1 %v16419_v13 }
 0x3bb   :  { %5297 = vmatpush1.bf16.msra.mxu0 %v16400_v37 }
 0x3bc   :  { %5298 = vmatprep.subr.bf16.mxu0 %v16432_v27  ;;  %5258 = vmatpush1.bf16.msra.mxu1 %v16417_v1 }
 0x3bd   :  { %5259 = vmatprep.subr.bf16.mxu1 %v16434_v38 }
 0x3bf   :  { %5299 = vmatpush1.bf16.msra.mxu0 %v16430_v26 }
 0x3c0   :  { %5300 = vmatprep.subr.bf16.mxu0 %v16446_v40  ;;  %5260 = vmatpush2.bf16.msra.mxu1 %v16459_v50 }
 0x3c1   :  { %5261 = vmatprep.subr.bf16.mxu1 %v16465_v59 }
 0x3c3   :  { %5301 = vmatpush2.bf16.msra.mxu0 %v16463_v25 }
 0x3c4   :  { %5302 = vmatprep.subr.bf16.mxu0 %v16468_v53  ;;  %5262 = vmatpush2.bf16.msra.mxu1 %v16483_v22  ;;  %v16612_v22 = vcombine.high %v4540_v36, %v4544_v43 }
 0x3c5   :  { %5263 = vmatprep.subr.bf16.mxu1 %v16489_v9 }
 0x3c7   :  { %5303 = vmatpush2.bf16.msra.mxu0 %v16487_v23 }
 0x3c8   :  { %5304 = vmatprep.subr.bf16.mxu0 %v16492_v35  ;;  %5264 = vmatpush2.bf16.msra.mxu1 %v16507_v48  ;;  %v16607_v48 = vcombine.low %v4548_v7, %v4552_v29 }
 0x3c9   :  { %5265 = vmatprep.subr.bf16.mxu1 %v16513_v60  ;;  %v4539_v60 = vld [vmem:[%s19610_s6 + $0x200] sm:$0xff] }
 0x3ca   :  { %v16609_v9 = vcombine.high %v4539_v60, %v4543_v52 }
 0x3cb   :  { %5305 = vmatpush2.bf16.msra.mxu0 %v16511_v3 }
 0x3cc   :  { %5306 = vmatprep.subr.bf16.mxu0 %v16516_v28  ;;  %5266 = vmatpush2.bf16.msra.mxu1 %v16531_v4  ;;  %v16588_v4 = vcombine.high %v4548_v7, %v4552_v29  ;;  %20106 = vst [vmem:[#allocation29_spill] sm:$0xff] %v16609_v9  ;;  %v16619_v7 = vcombine.low %v4540_v36, %v4544_v43 }
 0x3cd   :  { %5267 = vmatprep.subr.bf16.mxu1 %v16537_v33  ;;  %v16585_v33 = vcombine.high %v4547_v55, %v4551_v21  ;;  %v16615_v55 = vcombine.low %v4539_v60, %v4543_v52  ;;  %v4537_v60 = vld [vmem:[%s19610_s6 + $0x1f0] sm:$0xff] }
 0x3cf   :  { %5307 = vmatpush2.bf16.msra.mxu0 %v16535_v49  ;;  %20104 = vst [vmem:[#allocation27_spill] sm:$0xff] %v16585_v33  ;;  %20107 = vst [vmem:[#allocation30_spill] sm:$0xff] %v16615_v55 }
 0x3d0   :  { %5308 = vmatprep.subr.bf16.mxu0 %v16540_v63  ;;  %5268 = vmatpush2.bf16.msra.mxu1 %v16555_v18 }
 0x3d1   :  { %5269 = vmatprep.subr.bf16.mxu1 %v16561_v61 }
 0x3d3   :  { %5309 = vmatpush2.bf16.msra.mxu0 %v16559_v42 }
 0x3d4   :  { %5310 = vmatprep.subr.bf16.mxu0 %v16564_v12  ;;  %5270 = vmatpush2.bf16.msra.mxu1 %v16579_v45 }
 0x3d5   :  { %5271 = vmatprep.subr.bf16.mxu1 %v16585_v33 }
 0x3d7   :  { %5311 = vmatpush2.bf16.msra.mxu0 %v16583_v5 }
 0x3d8   :  { %5312 = vmatprep.subr.bf16.mxu0 %v16588_v4  ;;  %5272 = vmatpush2.bf16.msra.mxu1 %v16603_v58 }
 0x3d9   :  { %5273 = vmatprep.subr.bf16.mxu1 %v16609_v9 }
 0x3db   :  { %5313 = vmatpush2.bf16.msra.mxu0 %v16607_v48 }
 0x3dc   :  { %5314 = vmatprep.subr.bf16.mxu0 %v16612_v22  ;;  %5274 = vmatpush2.bf16.msra.mxu1 %v16615_v55 }
 0x3df   :  { %5315 = vmatpush2.bf16.msra.mxu0 %v16619_v7 }
 0x41f   :  { %v4236_v61 = vpop.f32.mrf.mxu1  ;;  %v4277_v18 = vpop.f32.mrf.mxu0 }
 0x421   :  { %v4238_v59 = vpop.f32.mrf.mxu1  ;;  %v4279_v50 = vpop.f32.mrf.mxu0 }
 0x422   :  { %v4378_v38 = vcombine.low %v4236_v61, %v4238_v59  ;;  %v4379_v45 = vcombine.low %v4277_v18, %v4279_v50 }
 0x423   :  { %v4240_v21 = vpop.f32.mrf.mxu1  ;;  %v4281_v1 = vpop.f32.mrf.mxu0 }
 0x424   :  { %v4388_v29 = vrot.slane %v4378_v38, %v16173_v32  ;;  %v4395_v33 = vrot.slane %v4379_v45, %v16173_v32  ;;  %v4533_v1 = vld [vmem:[%s19610_s6 + $0x1d0] sm:$0xff]  ;;  %v4534_v38 = vld [vmem:[%s19610_s6 + $0x1d8] sm:$0xff] }
 0x425   :  { %v4241_v59 = vpop.f32.mrf.mxu1  ;;  %v4282_v50 = vpop.f32.mrf.mxu0  ;;  %v16635_v61 = vcombine.high %v4533_v1, %v4537_v60  ;;  %v16640_v45 = vcombine.low %v4533_v1, %v4537_v60 }
 0x426   :  { %v4410_v18 = vcombine.low %v4388_v29, %v4395_v33  ;;  %v4538_v33 = vld [vmem:[%s19610_s6 + $0x1f8] sm:$0xff] }
 0x427   :  { %20108 = vst [vmem:[#allocation6_spill] sm:$0xff] %v16635_v61  ;;  %v16642_v52 = vcombine.low %v4534_v38, %v4538_v33  ;;  %v16644_v36 = vcombine.high %v4534_v38, %v4538_v33  ;;  %5325 = vmatprep.subr.bf16.mxu1 %v16635_v61  ;;  %v4368_v33 = vld [vmem:[#allocation2 + $0x1] ss:$8 sm:$0xf0] }
 0x428   :  { %v4418_v61 = vrot.slane %v4410_v18, %v16173_v32  ;;  %v4369_v24 = vor.u32 %v4368_v33, %v4367_v62 }
 0x429   :  { %5366 = vmatprep.subr.bf16.mxu0 %v16644_v36 }
 0x45f   :  { %v4318_v43 = vpop.f32.mrf.mxu1  ;;  %v4359_v21 = vpop.f32.mrf.mxu0 }
 0x461   :  { %v4320_v29 = vpop.f32.mrf.mxu1  ;;  %v4361_v59 = vpop.f32.mrf.mxu0 }
 0x462   :  { %v4380_v50 = vcombine.low %v4318_v43, %v4320_v29  ;;  %v4381_v55 = vcombine.low %v4359_v21, %v4361_v59 }
 0x463   :  { %v4322_v9 = vpop.f32.mrf.mxu1  ;;  %v4363_v58 = vpop.f32.mrf.mxu0 }
 0x464   :  { %v4402_v13 = vrot.slane %v4380_v50, %v16173_v32  ;;  %v4409_v1 = vrot.slane %v4381_v55, %v16173_v32 }
 0x465   :  { %v4323_v60 = vpop.f32.mrf.mxu1  ;;  %v4364_v41 = vpop.f32.mrf.mxu0 }
 0x466   :  { %v4411_v38 = vcombine.low %v4402_v13, %v4409_v1 }
 0x468   :  { %v4425_v15 = vrot.slane %v4411_v38, %v16173_v32 }
 0x46a   :  { %v4426_v0 = vcombine.low %v4418_v61, %v4425_v15 }
 0x46c   :  { %v4428_v47 = vadd.f32 %v4426_v0, %v4369_v24 }
 0x46e   :  { %v12767_v43 = vmul.f32 -1.442695, %v4428_v47  ;;  %v4436_v21 = vrot.slane %v4428_v47, 2  ;;  %v4447_v58 = vrot.slane %v4428_v47, 6  ;;  %v4444_v59 = vrot.slane %v4428_v47, 4 }
 0x470   :  { %14106 = vpow2.f32 %v12767_v43  ;;  %v12768_v9 = vmul.f32 -1.442695, %v4436_v21  ;;  %v12769_v29 = vmul.f32 -1.442695, %v4447_v58  ;;  %v4526_v58 = vld [vmem:[%s19610_s6 + $0x198] sm:$0xff] }
 0x472   :  { %14108 = vpow2.f32 %v12768_v9  ;;  %v4525_v9 = vld [vmem:[%s19610_s6 + $0x190] sm:$0xff] }
 0x473   :  { %14110 = vpow2.f32 %v12769_v29  ;;  %v4530_v29 = vld [vmem:[%s19610_s6 + $0x1b8] sm:$0xff] }
 0x47d   :  { %v14107_v55 = vpop.eup %14106 }
 0x47e   :  { %v4432_v41 = vadd.f32 1.0, %v14107_v55 }
 0x47f   :  { %v14109_v13 = vpop.eup %14108 }
 0x480   :  { %14112 = vrcp.f32 %v4432_v41  ;;  %v4441_v18 = vadd.f32 1.0, %v14109_v13  ;;  %v14111_v50 = vpop.eup %14110  ;;  %v4517_v41 = vld [vmem:[%s19610_s6 + $0x150] sm:$0xff] }
 0x481   :  { %14114 = vtanh.f32 %v4444_v59  ;;  %v4452_v24 = vadd.f32 1.0, %v14111_v50  ;;  %v4521_v50 = vld [vmem:[%s19610_s6 + $0x170] sm:$0xff] }
 0x482   :  { %14116 = vrcp.f32 %v4441_v18  ;;  %v16677_v18 = vcombine.high %v4526_v58, %v4530_v29 }
 0x483   :  { %14118 = vrcp.f32 %v4452_v24  ;;  %v16694_v24 = vcombine.low %v4526_v58, %v4530_v29  ;;  %v4501_v29 = vld [vmem:[%s19610_s6 + $0xd0] sm:$0xff] }
 0x485   :  { %20109 = vst [vmem:[#allocation5_spill] sm:$0xff] %v16694_v24 }
 0x48d   :  { %v14113_v62 = vpop.eup %14112 }
 0x48e   :  { %v14115_v15 = vpop.eup %14114 }
 0x48f   :  { %v14117_v0 = vpop.eup %14116  ;;  %v4456_v1 = vmul.f32 %v14115_v15, %v14113_v62  ;;  %v4518_v62 = vld [vmem:[%s19610_s6 + $0x158] sm:$0xff] }
 0x490   :  { %v4455_v61 = vmul.f32 %v14117_v0, %v16187_v57  ;;  %v14119_v47 = vpop.eup %14118  ;;  %v4529_v57 = vld [vmem:[%s19610_s6 + $0x1b0] sm:$0xff]  ;;  %v4522_v15 = vld [vmem:[%s19610_s6 + $0x178] sm:$0xff] }
 0x491   :  { %v16675_v13 = vcombine.high %v4525_v9, %v4529_v57  ;;  %v16692_v0 = vcombine.low %v4525_v9, %v4529_v57  ;;  %v16718_v9 = vcombine.low %v4518_v62, %v4522_v15 }
 0x492   :  { %v16653_v60 = vadd.f32 %v4456_v1, %v4455_v61  ;;  %v16696_v61 = vcombine.high %v4517_v41, %v4521_v50  ;;  %v16698_v1 = vcombine.high %v4518_v62, %v4522_v15 }
 0x493   :  { %20113 = vst [vmem:[#allocation34_spill] sm:$0xff] %v16718_v9 }
 0x494   :  { %14120 = vtanh.f32 %v16653_v60  ;;  %20110 = vst [vmem:[#allocation31_spill] sm:$0xff] %v16696_v61  ;;  %20111 = vst [vmem:[#allocation32_spill] sm:$0xff] %v16698_v1 }
 0x4a1   :  { %v14121_v38 = vpop.eup %14120 }
 0x4a2   :  { %v4459_v33 = vmul.f32 %v14121_v38, %v14119_v47  ;;  %v4509_v47 = vld [vmem:[%s19610_s6 + $0x110] sm:$0xff] }
 0x4a3   :  { %v4513_v38 = vld [vmem:[%s19610_s6 + $0x130] sm:$0xff] }
 0x4a4   :  { %4460 = vst [vmem:[#allocation3 + $0x1] sm:$0x1] %v4459_v33  ;;  %v4465_v43 = vrot.slane %v4459_v33, %v20030_v8  ;;  %v4471_v21 = vrot.slane %v4459_v33, %v20031_v19  ;;  %v4510_v33 = vld [vmem:[%s19610_s6 + $0x118] sm:$0xff]  ;;  %v16722_v57 = vcombine.high %v4509_v47, %v4513_v38  ;;  %v16740_v62 = vcombine.low %v4509_v47, %v4513_v38 }
 0x4a5   :  { %v4494_v47 = vld [vmem:[%s19610_s6 + $0x98] sm:$0xff] }
 0x4a6   :  { %4467 = vst [vmem:[#allocation3 + $0xe] sm:$0x1] %v4465_v43  ;;  %v4474_v55 = vpack.c.bf16 %v4465_v43, %v4465_v43  ;;  %v16670_v59 = vpack.c.bf16 %v4471_v21, %v4471_v21  ;;  %v4514_v43 = vld [vmem:[%s19610_s6 + $0x138] sm:$0xff]  ;;  %v16716_v21 = vcombine.low %v4517_v41, %v4521_v50  ;;  %20114 = vst [vmem:[#allocation35_spill] sm:$0xff] %v16722_v57 }
 0x4a7   :  { %v16724_v58 = vcombine.high %v4510_v33, %v4514_v43  ;;  %v4502_v41 = vld [vmem:[%s19610_s6 + $0xd8] sm:$0xff]  ;;  %20116 = vst [vmem:[#allocation36_spill] sm:$0xff] %v16740_v62  ;;  %v16742_v15 = vcombine.low %v4510_v33, %v4514_v43 }
 0x4a8   :  { %5275 = vmatprep.mubr.bf16.mxu1 %v4474_v55  ;;  %5316 = vmatprep.mubr.bf16.mxu0 %v4474_v55  ;;  %20112 = vst [vmem:[#allocation33_spill] sm:$0xff] %v16716_v21  ;;  %v4506_v50 = vld [vmem:[%s19610_s6 + $0xf8] sm:$0xff] }
 0x4a9   :  { %5276 = vmatmul.mubr.bf16.vlgmr.msra.gmra.mxu1 %v16670_v59  ;;  %5317 = vmatmul.mubr.bf16.vlgmr.msra.gmra.mxu0 %v16670_v59  ;;  %20115 = vst [vmem:[#allocation40_spill] sm:$0xff] %v16724_v58  ;;  %20117 = vst [vmem:[#allocation42_spill] sm:$0xff] %v16742_v15  ;;  %v4498_v38 = vld [vmem:[%s19610_s6 + $0xb8] sm:$0xff]  ;;  %v16766_v43 = vcombine.low %v4502_v41, %v4506_v50 }
 0x4aa   :  { %5326 = vmatpush1.bf16.msra.mxu1 %v16640_v45  ;;  %5367 = vmatpush1.bf16.msra.mxu0 %v16642_v52 }
 0x4ab   :  { %5357 = vmatprep.mubr.bf16.mxu1 %v4474_v55  ;;  %5398 = vmatprep.mubr.bf16.mxu0 %v4474_v55  ;;  %v4505_v55 = vld [vmem:[%s19610_s6 + $0xf0] sm:$0xff]  ;;  %20121 = vst [vmem:[#allocation46_spill] sm:$0xff] %v16766_v43 }
 0x4ac   :  { %5327 = vmatprep.subr.bf16.mxu1 %v16675_v13  ;;  %5368 = vmatprep.subr.bf16.mxu0 %v16677_v18  ;;  %v16764_v33 = vcombine.low %v4501_v29, %v4505_v55 }
 0x4ae   :  { %5328 = vmatpush1.bf16.msra.mxu1 %v16692_v0  ;;  %5369 = vmatpush1.bf16.msra.mxu0 %v16694_v24  ;;  %v4493_v24 = vld [vmem:[%s19610_s6 + $0x90] sm:$0xff]  ;;  %20120 = vst [vmem:[#allocation38_spill] sm:$0xff] %v16764_v33 }
 0x4af   :  { %5329 = vmatprep.subr.bf16.mxu1 %v16696_v61  ;;  %5370 = vmatprep.subr.bf16.mxu0 %v16698_v1  ;;  %v16746_v1 = vcombine.high %v4501_v29, %v4505_v55  ;;  %v16748_v61 = vcombine.high %v4502_v41, %v4506_v50  ;;  %v4486_v29 = vld [vmem:[%s19610_s6 + $0x58] sm:$0xff]  ;;  %v16790_v50 = vcombine.low %v4494_v47, %v4498_v38 }
 0x4b0   :  { %v4490_v55 = vld [vmem:[%s19610_s6 + $0x78] sm:$0xff] }
 0x4b1   :  { %20118 = vst [vmem:[#allocation37_spill] sm:$0xff] %v16746_v1  ;;  %20119 = vst [vmem:[#allocation44_spill] sm:$0xff] %v16748_v61 }
 0x4b2   :  { %5330 = vmatpush1.bf16.msra.mxu1 %v16716_v21  ;;  %5371 = vmatpush1.bf16.msra.mxu0 %v16718_v9  ;;  %v4497_v9 = vld [vmem:[%s19610_s6 + $0xb0] sm:$0xff]  ;;  %20125 = vst [vmem:[#allocation50_spill] sm:$0xff] %v16790_v50 }
 0x4b3   :  { %5331 = vmatprep.subr.bf16.mxu1 %v16722_v57  ;;  %5372 = vmatprep.subr.bf16.mxu0 %v16724_v58  ;;  %v16770_v58 = vcombine.high %v4493_v24, %v4497_v9  ;;  %v16772_v57 = vcombine.high %v4494_v47, %v4498_v38  ;;  %v4485_v21 = vld [vmem:[%s19610_s6 + $0x50] sm:$0xff]  ;;  %v16788_v41 = vcombine.low %v4493_v24, %v4497_v9  ;;  %v4478_v24 = vld [vmem:[%s19610_s6 + $0x18] sm:$0xff] }
 0x4b4   :  { %v4482_v9 = vld [vmem:[%s19610_s6 + $0x38] sm:$0xff]  ;;  %v16814_v38 = vcombine.low %v4486_v29, %v4490_v55 }
 0x4b5   :  { %20122 = vst [vmem:[#allocation39_spill] sm:$0xff] %v16770_v58  ;;  %20123 = vst [vmem:[#allocation48_spill] sm:$0xff] %v16772_v57 }
 0x4b6   :  { %5332 = vmatpush1.bf16.msra.mxu1 %v16740_v62  ;;  %5373 = vmatpush1.bf16.msra.mxu0 %v16742_v15  ;;  %v4489_v15 = vld [vmem:[%s19610_s6 + $0x70] sm:$0xff]  ;;  %20124 = vst [vmem:[#allocation41_spill] sm:$0xff] %v16788_v41  ;;  %20129 = vst [vmem:[#allocation54_spill] sm:$0xff] %v16814_v38 }
 0x4b7   :  { %5333 = vmatprep.subr.bf16.mxu1 %v16746_v1  ;;  %5374 = vmatprep.subr.bf16.mxu0 %v16748_v61  ;;  %v16794_v61 = vcombine.high %v4485_v21, %v4489_v15  ;;  %v16796_v1 = vcombine.high %v4486_v29, %v4490_v55  ;;  %v4477_v62 = vld [vmem:[%s19610_s6 + $0x10] sm:$0xff]  ;;  %v16812_v47 = vcombine.low %v4485_v21, %v4489_v15  ;;  %v4598_v21 = vld [vmem:[%s19610_s6 + $0x3d8] sm:$0xff] }
 0x4b8   :  { %v4602_v15 = vld [vmem:[%s19610_s6 + $0x3f8] sm:$0xff]  ;;  %v16838_v55 = vcombine.low %v4478_v24, %v4482_v9 }
 0x4b9   :  { %20126 = vst [vmem:[#allocation43_spill] sm:$0xff] %v16794_v61  ;;  %20127 = vst [vmem:[#allocation52_spill] sm:$0xff] %v16796_v1 }
 0x4ba   :  { %5334 = vmatpush1.bf16.msra.mxu1 %v16764_v33  ;;  %5375 = vmatpush1.bf16.msra.mxu0 %v16766_v43  ;;  %v4481_v43 = vld [vmem:[%s19610_s6 + $0x30] sm:$0xff]  ;;  %20128 = vst [vmem:[#allocation45_spill] sm:$0xff] %v16812_v47  ;;  %20133 = vst [vmem:[#allocation58_spill] sm:$0xff] %v16838_v55 }
 0x4bb   :  { %5335 = vmatprep.subr.bf16.mxu1 %v16770_v58  ;;  %5376 = vmatprep.subr.bf16.mxu0 %v16772_v57  ;;  %v16818_v57 = vcombine.high %v4477_v62, %v4481_v43  ;;  %v16820_v58 = vcombine.high %v4478_v24, %v4482_v9  ;;  %v4597_v33 = vld [vmem:[%s19610_s6 + $0x3d0] sm:$0xff]  ;;  %v16836_v29 = vcombine.low %v4477_v62, %v4481_v43  ;;  %v4590_v62 = vld [vmem:[%s19610_s6 + $0x398] sm:$0xff] }
 0x4bc   :  { %v4594_v43 = vld [vmem:[%s19610_s6 + $0x3b8] sm:$0xff]  ;;  %v16862_v9 = vcombine.low %v4598_v21, %v4602_v15 }
 0x4bd   :  { %20130 = vst [vmem:[#allocation47_spill] sm:$0xff] %v16818_v57  ;;  %20131 = vst [vmem:[#allocation56_spill] sm:$0xff] %v16820_v58 }
 0x4be   :  { %5336 = vmatpush1.bf16.msra.mxu1 %v16788_v41  ;;  %5377 = vmatpush1.bf16.msra.mxu0 %v16790_v50  ;;  %v4601_v50 = vld [vmem:[%s19610_s6 + $0x3f0] sm:$0xff]  ;;  %20132 = vst [vmem:[#allocation49_spill] sm:$0xff] %v16836_v29  ;;  %20137 = vst [vmem:[#allocation62_spill] sm:$0xff] %v16862_v9 }
 0x4bf   :  { %5337 = vmatprep.subr.bf16.mxu1 %v16794_v61  ;;  %5378 = vmatprep.subr.bf16.mxu0 %v16796_v1  ;;  %v16842_v1 = vcombine.high %v4597_v33, %v4601_v50  ;;  %v16844_v61 = vcombine.high %v4598_v21, %v4602_v15  ;;  %v4589_v41 = vld [vmem:[%s19610_s6 + $0x390] sm:$0xff]  ;;  %v16860_v24 = vcombine.low %v4597_v33, %v4601_v50  ;;  %v4582_v33 = vld [vmem:[%s19610_s6 + $0x358] sm:$0xff] }
 0x4c0   :  { %v4586_v50 = vld [vmem:[%s19610_s6 + $0x378] sm:$0xff]  ;;  %v16886_v15 = vcombine.low %v4590_v62, %v4594_v43 }
 0x4c1   :  { %20134 = vst [vmem:[#allocation51_spill] sm:$0xff] %v16842_v1  ;;  %20135 = vst [vmem:[#allocation60_spill] sm:$0xff] %v16844_v61 }
 0x4c2   :  { %5338 = vmatpush1.bf16.msra.mxu1 %v16812_v47  ;;  %5379 = vmatpush1.bf16.msra.mxu0 %v16814_v38  ;;  %v4593_v38 = vld [vmem:[%s19610_s6 + $0x3b0] sm:$0xff]  ;;  %20136 = vst [vmem:[#allocation53_spill] sm:$0xff] %v16860_v24  ;;  %20141 = vst [vmem:[#allocation66_spill] sm:$0xff] %v16886_v15 }
 0x4c3   :  { %5339 = vmatprep.subr.bf16.mxu1 %v16818_v57  ;;  %5380 = vmatprep.subr.bf16.mxu0 %v16820_v58  ;;  %v16866_v58 = vcombine.high %v4589_v41, %v4593_v38  ;;  %v16868_v57 = vcombine.high %v4590_v62, %v4594_v43  ;;  %v4581_v47 = vld [vmem:[%s19610_s6 + $0x350] sm:$0xff]  ;;  %v16884_v21 = vcombine.low %v4589_v41, %v4593_v38  ;;  %v4574_v41 = vld [vmem:[%s19610_s6 + $0x318] sm:$0xff] }
 0x4c4   :  { %v4578_v38 = vld [vmem:[%s19610_s6 + $0x338] sm:$0xff]  ;;  %v16910_v43 = vcombine.low %v4582_v33, %v4586_v50 }
 0x4c5   :  { %20138 = vst [vmem:[#allocation55_spill] sm:$0xff] %v16866_v58  ;;  %20139 = vst [vmem:[#allocation64_spill] sm:$0xff] %v16868_v57 }
 0x4c6   :  { %5340 = vmatpush1.bf16.msra.mxu1 %v16836_v29  ;;  %5381 = vmatpush1.bf16.msra.mxu0 %v16838_v55  ;;  %v4585_v55 = vld [vmem:[%s19610_s6 + $0x370] sm:$0xff]  ;;  %20140 = vst [vmem:[#allocation57_spill] sm:$0xff] %v16884_v21  ;;  %20145 = vst [vmem:[#allocation70_spill] sm:$0xff] %v16910_v43 }
 0x4c7   :  { %5341 = vmatprep.subr.bf16.mxu1 %v16842_v1  ;;  %5382 = vmatprep.subr.bf16.mxu0 %v16844_v61  ;;  %v16890_v61 = vcombine.high %v4581_v47, %v4585_v55  ;;  %v16892_v1 = vcombine.high %v4582_v33, %v4586_v50  ;;  %v4573_v29 = vld [vmem:[%s19610_s6 + $0x310] sm:$0xff]  ;;  %v16908_v62 = vcombine.low %v4581_v47, %v4585_v55  ;;  %v4566_v47 = vld [vmem:[%s19610_s6 + $0x2d8] sm:$0xff] }
 0x4c8   :  { %v4570_v55 = vld [vmem:[%s19610_s6 + $0x2f8] sm:$0xff]  ;;  %v16934_v50 = vcombine.low %v4574_v41, %v4578_v38 }
 0x4c9   :  { %20142 = vst [vmem:[#allocation59_spill] sm:$0xff] %v16890_v61  ;;  %20143 = vst [vmem:[#allocation68_spill] sm:$0xff] %v16892_v1 }
 0x4ca   :  { %5342 = vmatpush2.bf16.msra.mxu1 %v16860_v24  ;;  %5383 = vmatpush2.bf16.msra.mxu0 %v16862_v9  ;;  %v4577_v9 = vld [vmem:[%s19610_s6 + $0x330] sm:$0xff]  ;;  %20144 = vst [vmem:[#allocation61_spill] sm:$0xff] %v16908_v62  ;;  %20149 = vst [vmem:[#allocation67_spill] sm:$0xff] %v16934_v50 }
 0x4cb   :  { %5343 = vmatprep.subr.bf16.mxu1 %v16866_v58  ;;  %5384 = vmatprep.subr.bf16.mxu0 %v16868_v57  ;;  %v16914_v57 = vcombine.high %v4573_v29, %v4577_v9  ;;  %v16916_v58 = vcombine.high %v4574_v41, %v4578_v38  ;;  %v4565_v24 = vld [vmem:[%s19610_s6 + $0x2d0] sm:$0xff]  ;;  %v16932_v33 = vcombine.low %v4573_v29, %v4577_v9  ;;  %v4558_v29 = vld [vmem:[%s19610_s6 + $0x298] sm:$0xff] }
 0x4cc   :  { %v4562_v9 = vld [vmem:[%s19610_s6 + $0x2b8] sm:$0xff]  ;;  %v16958_v38 = vcombine.low %v4566_v47, %v4570_v55 }
 0x4cd   :  { %20146 = vst [vmem:[#allocation63_spill] sm:$0xff] %v16914_v57  ;;  %20147 = vst [vmem:[#allocation72_spill] sm:$0xff] %v16916_v58 }
 0x4ce   :  { %5344 = vmatpush2.bf16.msra.mxu1 %v16884_v21  ;;  %5385 = vmatpush2.bf16.msra.mxu0 %v16886_v15  ;;  %v4569_v15 = vld [vmem:[%s19610_s6 + $0x2f0] sm:$0xff]  ;;  %20148 = vst [vmem:[#allocation65_spill] sm:$0xff] %v16932_v33  ;;  %20153 = vst [vmem:[#allocation73_spill] sm:$0xff] %v16958_v38 }
 0x4cf   :  { %5345 = vmatprep.subr.bf16.mxu1 %v16890_v61  ;;  %5386 = vmatprep.subr.bf16.mxu0 %v16892_v1  ;;  %v16938_v1 = vcombine.high %v4565_v24, %v4569_v15  ;;  %v16940_v61 = vcombine.high %v4566_v47, %v4570_v55  ;;  %v4557_v21 = vld [vmem:[%s19610_s6 + $0x290] sm:$0xff]  ;;  %v16956_v41 = vcombine.low %v4565_v24, %v4569_v15  ;;  %v4550_v24 = vld [vmem:[%s19610_s6 + $0x258] sm:$0xff] }
 0x4d0   :  { %v4554_v15 = vld [vmem:[%s19610_s6 + $0x278] sm:$0xff]  ;;  %v16982_v55 = vcombine.low %v4558_v29, %v4562_v9 }
 0x4d1   :  { %20150 = vst [vmem:[#allocation69_spill] sm:$0xff] %v16938_v1  ;;  %20151 = vst [vmem:[#allocation71_spill] sm:$0xff] %v16940_v61 }
 0x4d2   :  { %5346 = vmatpush2.bf16.msra.mxu1 %v16908_v62  ;;  %5387 = vmatpush2.bf16.msra.mxu0 %v16910_v43  ;;  %v4561_v43 = vld [vmem:[%s19610_s6 + $0x2b0] sm:$0xff]  ;;  %20152 = vst [vmem:[#allocation77_spill] sm:$0xff] %v16956_v41 }
 0x4d3   :  { %5347 = vmatprep.subr.bf16.mxu1 %v16914_v57  ;;  %5388 = vmatprep.subr.bf16.mxu0 %v16916_v58  ;;  %v16962_v58 = vcombine.high %v4557_v21, %v4561_v43  ;;  %v16964_v57 = vcombine.high %v4558_v29, %v4562_v9  ;;  %v4549_v62 = vld [vmem:[%s19610_s6 + $0x250] sm:$0xff]  ;;  %v16980_v47 = vcombine.low %v4557_v21, %v4561_v43  ;;  %v4542_v21 = vld [vmem:[%s19610_s6 + $0x218] sm:$0xff] }
 0x4d4   :  { %v4546_v43 = vld [vmem:[%s19610_s6 + $0x238] sm:$0xff]  ;;  %v17006_v9 = vcombine.low %v4550_v24, %v4554_v15 }
 0x4d5   :  { %20154 = vst [vmem:[#allocation79_spill] sm:$0xff] %v16962_v58  ;;  %20155 = vst [vmem:[#allocation74_spill] sm:$0xff] %v16964_v57 }
 0x4d6   :  { %5348 = vmatpush2.bf16.msra.mxu1 %v16932_v33  ;;  %5389 = vmatpush2.bf16.msra.mxu0 %v16934_v50  ;;  %v4553_v50 = vld [vmem:[%s19610_s6 + $0x270] sm:$0xff]  ;;  %20156 = vst [vmem:[#allocation80_spill] sm:$0xff] %v16980_v47 }
 0x4d7   :  { %5349 = vmatprep.subr.bf16.mxu1 %v16938_v1  ;;  %5390 = vmatprep.subr.bf16.mxu0 %v16940_v61  ;;  %v16986_v61 = vcombine.high %v4549_v62, %v4553_v50  ;;  %v16988_v1 = vcombine.high %v4550_v24, %v4554_v15  ;;  %v4541_v33 = vld [vmem:[%s19610_s6 + $0x210] sm:$0xff]  ;;  %v17004_v29 = vcombine.low %v4549_v62, %v4553_v50  ;;  %v20179_v62 = vld [vmem:[#allocation29_spill] sm:$0xff] }
 0x4da   :  { %5350 = vmatpush2.bf16.msra.mxu1 %v16956_v41  ;;  %5391 = vmatpush2.bf16.msra.mxu0 %v16958_v38  ;;  %v4545_v38 = vld [vmem:[%s19610_s6 + $0x230] sm:$0xff] }
 0x4db   :  { %5351 = vmatprep.subr.bf16.mxu1 %v16962_v58  ;;  %5392 = vmatprep.subr.bf16.mxu0 %v16964_v57  ;;  %v17010_v57 = vcombine.high %v4541_v33, %v4545_v38  ;;  %v17012_v58 = vcombine.high %v4542_v21, %v4546_v43  ;;  %v17016_v41 = vcombine.low %v4541_v33, %v4545_v38 }
 0x4de   :  { %5352 = vmatpush2.bf16.msra.mxu1 %v16980_v47  ;;  %5393 = vmatpush2.bf16.msra.mxu0 %v16982_v55  ;;  %v17018_v47 = vcombine.low %v4542_v21, %v4546_v43  ;;  %v20180_v21 = vld [vmem:[#allocation30_spill] sm:$0xff] }
 0x4df   :  { %5353 = vmatprep.subr.bf16.mxu1 %v16986_v61  ;;  %5394 = vmatprep.subr.bf16.mxu0 %v16988_v1  ;;  %v20181_v43 = vld [vmem:[#allocation6_spill] sm:$0xff] }
 0x4e2   :  { %5354 = vmatpush2.bf16.msra.mxu1 %v17004_v29  ;;  %5395 = vmatpush2.bf16.msra.mxu0 %v17006_v9 }
 0x4e3   :  { %5355 = vmatprep.subr.bf16.mxu1 %v17010_v57  ;;  %5396 = vmatprep.subr.bf16.mxu0 %v17012_v58 }
 0x4e6   :  { %5356 = vmatpush2.bf16.msra.mxu1 %v17016_v41  ;;  %5397 = vmatpush2.bf16.msra.mxu0 %v17018_v47 }
 0x4e7   :  { %6325 = vmatprep.subr.bf16.mxu0 %v16270_v6  ;;  %v5572_v6 = vld [vmem:[%s19610_s6 + $0x1c0] sm:$0xff] }
 0x4e9   :  { %5358 = vmatmul.mubr.bf16.vlgmr.msra.gmra.mxu1 %v16670_v59  ;;  %5399 = vmatmul.mubr.bf16.vlgmr.msra.gmra.mxu0 %v16670_v59 }
 0x4ea   :  { %6326 = vmatpush1.bf16.msra.mxu0 %v16272_v51  ;;  %v5576_v51 = vld [vmem:[%s19610_s6 + $0x1e0] sm:$0xff] }
 0x4eb   :  { %6327 = vmatprep.subr.bf16.mxu0 %v16282_v14  ;;  %v17065_v14 = vcombine.high %v5572_v6, %v5576_v51 }
 0x4ed   :  { %6284 = vmatprep.subr.bf16.mxu1 %v17065_v14 }
 0x4ee   :  { %6328 = vmatpush1.bf16.msra.mxu0 %v16284_v30  ;;  %v5564_v30 = vld [vmem:[%s19610_s6 + $0x180] sm:$0xff] }
 0x4ef   :  { %6329 = vmatprep.subr.bf16.mxu0 %v16306_v16 }
 0x4f2   :  { %6330 = vmatpush1.bf16.msra.mxu0 %v16304_v20  ;;  %v5568_v20 = vld [vmem:[%s19610_s6 + $0x1a0] sm:$0xff] }
 0x4f3   :  { %6331 = vmatprep.subr.bf16.mxu0 %v16330_v44  ;;  %v17077_v16 = vcombine.high %v5564_v30, %v5568_v20  ;;  %v20157_v44 = vld [vmem:[#allocation7_spill] sm:$0xff] }
 0x4f6   :  { %6332 = vmatpush1.bf16.msra.mxu0 %v16328_v34  ;;  %v17079_v34 = vcombine.low %v5564_v30, %v5568_v20 }
 0x4f7   :  { %6333 = vmatprep.subr.bf16.mxu0 %v16354_v17  ;;  %v20159_v17 = vld [vmem:[#allocation9_spill] sm:$0xff] }
 0x4fa   :  { %6334 = vmatpush1.bf16.msra.mxu0 %v16352_v54  ;;  %v20158_v54 = vld [vmem:[#allocation8_spill] sm:$0xff] }
 0x4fb   :  { %6335 = vmatprep.subr.bf16.mxu0 %v16378_v10  ;;  %v20161_v10 = vld [vmem:[#allocation11_spill] sm:$0xff] }
 0x4fe   :  { %6336 = vmatpush1.bf16.msra.mxu0 %v16376_v11  ;;  %v20160_v11 = vld [vmem:[#allocation10_spill] sm:$0xff] }
 0x4ff   :  { %6337 = vmatprep.subr.bf16.mxu0 %v16402_v46  ;;  %v20163_v46 = vld [vmem:[#allocation14_spill] sm:$0xff] }
 0x502   :  { %6338 = vmatpush1.bf16.msra.mxu0 %v16400_v37  ;;  %v20162_v37 = vld [vmem:[#allocation12_spill] sm:$0xff] }
 0x503   :  { %6339 = vmatprep.subr.bf16.mxu0 %v16432_v27  ;;  %v20169_v27 = vld [vmem:[#allocation19_spill] sm:$0xff] }
 0x506   :  { %6340 = vmatpush1.bf16.msra.mxu0 %v16430_v26  ;;  %v20168_v26 = vld [vmem:[#allocation18_spill] sm:$0xff] }
 0x507   :  { %6341 = vmatprep.subr.bf16.mxu0 %v16446_v40  ;;  %v20170_v40 = vld [vmem:[#allocation20_spill] sm:$0xff] }
 0x50a   :  { %6342 = vmatpush2.bf16.msra.mxu0 %v16463_v25  ;;  %v20171_v25 = vld [vmem:[#allocation21_spill] sm:$0xff] }
 0x50b   :  { %6343 = vmatprep.subr.bf16.mxu0 %v16468_v53  ;;  %v20172_v53 = vld [vmem:[#allocation22_spill] sm:$0xff] }
 0x50e   :  { %6344 = vmatpush2.bf16.msra.mxu0 %v16487_v23  ;;  %v20174_v23 = vld [vmem:[#allocation24_spill] sm:$0xff] }
 0x50f   :  { %6345 = vmatprep.subr.bf16.mxu0 %v16492_v35  ;;  %v20175_v35 = vld [vmem:[#allocation25_spill] sm:$0xff] }
 0x512   :  { %6346 = vmatpush2.bf16.msra.mxu0 %v16511_v3 }
 0x513   :  { %6347 = vmatprep.subr.bf16.mxu0 %v16516_v28 }
 0x516   :  { %6348 = vmatpush2.bf16.msra.mxu0 %v16535_v49 }
 0x517   :  { %6349 = vmatprep.subr.bf16.mxu0 %v16540_v63 }
 0x51a   :  { %6350 = vmatpush2.bf16.msra.mxu0 %v16559_v42 }
 0x51b   :  { %6351 = vmatprep.subr.bf16.mxu0 %v16564_v12 }
 0x51e   :  { %6352 = vmatpush2.bf16.msra.mxu0 %v16583_v5  ;;  %v17067_v5 = vcombine.low %v5572_v6, %v5576_v51 }
 0x51f   :  { %6353 = vmatprep.subr.bf16.mxu0 %v16588_v4  ;;  %v20177_v4 = vld [vmem:[#allocation27_spill] sm:$0xff] }
 0x520   :  { %6285 = vmatpush1.bf16.msra.mxu1 %v17067_v5 }
 0x521   :  { %6286 = vmatprep.subr.bf16.mxu1 %v17077_v16 }
 0x522   :  { %6354 = vmatpush2.bf16.msra.mxu0 %v16607_v48  ;;  %v20176_v48 = vld [vmem:[#allocation26_spill] sm:$0xff] }
 0x523   :  { %6355 = vmatprep.subr.bf16.mxu0 %v16612_v22  ;;  %v20173_v22 = vld [vmem:[#allocation23_spill] sm:$0xff] }
 0x524   :  { %6287 = vmatpush1.bf16.msra.mxu1 %v17079_v34 }
 0x525   :  { %6288 = vmatprep.subr.bf16.mxu1 %v16297_v56  ;;  %v20164_v56 = vld [vmem:[#allocation13_spill] sm:$0xff] }
 0x526   :  { %6356 = vmatpush2.bf16.msra.mxu0 %v16619_v7  ;;  %v20178_v7 = vld [vmem:[#allocation28_spill] sm:$0xff] }
 0x527   :  { %6407 = vmatprep.subr.bf16.mxu0 %v16644_v36 }
 0x528   :  { %6289 = vmatpush1.bf16.msra.mxu1 %v16302_v2  ;;  %v20165_v2 = vld [vmem:[#allocation15_spill] sm:$0xff] }
 0x529   :  { %6290 = vmatprep.subr.bf16.mxu1 %v16321_v39  ;;  %v20166_v39 = vld [vmem:[#allocation16_spill] sm:$0xff] }
 0x52c   :  { %6291 = vmatpush1.bf16.msra.mxu1 %v16326_v31  ;;  %v20167_v31 = vld [vmem:[#allocation17_spill] sm:$0xff] }
 0x52d   :  { %6292 = vmatprep.subr.bf16.mxu1 %v20157_v44 }
 0x530   :  { %6293 = vmatpush1.bf16.msra.mxu1 %v20158_v54 }
 0x531   :  { %6294 = vmatprep.subr.bf16.mxu1 %v20159_v17 }
 0x534   :  { %6295 = vmatpush1.bf16.msra.mxu1 %v20160_v11 }
 0x535   :  { %6296 = vmatprep.subr.bf16.mxu1 %v20161_v10 }
 0x538   :  { %6297 = vmatpush1.bf16.msra.mxu1 %v20162_v37 }
 0x539   :  { %6298 = vmatprep.subr.bf16.mxu1 %v20163_v46 }
 0x53c   :  { %6299 = vmatpush1.bf16.msra.mxu1 %v20164_v56 }
 0x53d   :  { %6300 = vmatprep.subr.bf16.mxu1 %v20165_v2 }
 0x540   :  { %6301 = vmatpush2.bf16.msra.mxu1 %v20166_v39  ;;  %v5409_v39 = vld [vmem:[#allocation2 + $0x2] ss:$8 sm:$0xf0] }
 0x541   :  { %6302 = vmatprep.subr.bf16.mxu1 %v20167_v31 }
 0x544   :  { %6303 = vmatpush2.bf16.msra.mxu1 %v20168_v26 }
 0x545   :  { %6304 = vmatprep.subr.bf16.mxu1 %v20169_v27  ;;  %v5408_v27 = vld [vmem:[#allocation2 + $0x2] ss:$8 sm:$0xf] }
 0x548   :  { %6305 = vmatpush2.bf16.msra.mxu1 %v20170_v40  ;;  %v5410_v40 = vor.u32 %v5409_v39, %v5408_v27  ;;  %v20198_v39 = vld [vmem:[#allocation50_spill] sm:$0xff]  ;;  %v20201_v27 = vld [vmem:[#allocation45_spill] sm:$0xff] }
 0x549   :  { %6306 = vmatprep.subr.bf16.mxu1 %v20171_v25 }
 0x54c   :  { %6307 = vmatpush2.bf16.msra.mxu1 %v20172_v53 }
 0x54d   :  { %6308 = vmatprep.subr.bf16.mxu1 %v20173_v22 }
 0x550   :  { %6309 = vmatpush2.bf16.msra.mxu1 %v20174_v23 }
 0x551   :  { %6310 = vmatprep.subr.bf16.mxu1 %v20175_v35 }
 0x554   :  { %6311 = vmatpush2.bf16.msra.mxu1 %v20176_v48 }
 0x555   :  { %6312 = vmatprep.subr.bf16.mxu1 %v20177_v4 }
 0x558   :  { %6313 = vmatpush2.bf16.msra.mxu1 %v20178_v7 }
 0x559   :  { %6314 = vmatprep.subr.bf16.mxu1 %v20179_v62 }
 0x55c   :  { %6315 = vmatpush2.bf16.msra.mxu1 %v20180_v21 }
 0x55d   :  { %6366 = vmatprep.subr.bf16.mxu1 %v20181_v43 }
 0x569   :  { %v5277_v3 = vpop.f32.mrf.mxu1  ;;  %v5318_v28 = vpop.f32.mrf.mxu0 }
 0x56b   :  { %v5279_v49 = vpop.f32.mrf.mxu1  ;;  %v5320_v63 = vpop.f32.mrf.mxu0 }
 0x56c   :  { %v5419_v42 = vcombine.low %v5277_v3, %v5279_v49  ;;  %v5420_v12 = vcombine.low %v5318_v28, %v5320_v63 }
 0x56d   :  { %v5281_v36 = vpop.f32.mrf.mxu1  ;;  %v5322_v59 = vpop.f32.mrf.mxu0 }
 0x56e   :  { %v5429_v33 = vrot.slane %v5419_v42, %v16173_v32  ;;  %v5436_v50 = vrot.slane %v5420_v12, %v16173_v32 }
 0x56f   :  { %v5282_v38 = vpop.f32.mrf.mxu1  ;;  %v5323_v24 = vpop.f32.mrf.mxu0 }
 0x570   :  { %v5451_v15 = vcombine.low %v5429_v33, %v5436_v50 }
 0x572   :  { %v5459_v31 = vrot.slane %v5451_v15, %v16173_v32 }
 0x5a9   :  { %v5359_v6 = vpop.f32.mrf.mxu1  ;;  %v5400_v51 = vpop.f32.mrf.mxu0 }
 0x5ab   :  { %v5361_v30 = vpop.f32.mrf.mxu1  ;;  %v5402_v20 = vpop.f32.mrf.mxu0 }
 0x5ac   :  { %v5421_v44 = vcombine.low %v5359_v6, %v5361_v30  ;;  %v5422_v54 = vcombine.low %v5400_v51, %v5402_v20  ;;  %v20183_v20 = vld [vmem:[#allocation31_spill] sm:$0xff] }
 0x5ad   :  { %v5363_v17 = vpop.f32.mrf.mxu1  ;;  %v5404_v11 = vpop.f32.mrf.mxu0 }
 0x5ae   :  { %v5443_v10 = vrot.slane %v5421_v44, %v16173_v32  ;;  %v5450_v37 = vrot.slane %v5422_v54, %v16173_v32  ;;  %v20184_v44 = vld [vmem:[#allocation32_spill] sm:$0xff]  ;;  %v20185_v54 = vld [vmem:[#allocation33_spill] sm:$0xff]  ;;  %v20186_v17 = vld [vmem:[#allocation34_spill] sm:$0xff] }
 0x5af   :  { %v5364_v46 = vpop.f32.mrf.mxu1  ;;  %v5405_v56 = vpop.f32.mrf.mxu0  ;;  %v20189_v11 = vld [vmem:[#allocation36_spill] sm:$0xff] }
 0x5b0   :  { %v5452_v2 = vcombine.low %v5443_v10, %v5450_v37  ;;  %v20193_v10 = vld [vmem:[#allocation38_spill] sm:$0xff]  ;;  %v20195_v46 = vld [vmem:[#allocation39_spill] sm:$0xff]  ;;  %v20196_v56 = vld [vmem:[#allocation48_spill] sm:$0xff] }
 0x5b1   :  { %v20194_v37 = vld [vmem:[#allocation46_spill] sm:$0xff] }
 0x5b2   :  { %v5466_v26 = vrot.slane %v5452_v2, %v16173_v32  ;;  %v20197_v2 = vld [vmem:[#allocation41_spill] sm:$0xff] }
 0x5b4   :  { %v5467_v25 = vcombine.low %v5459_v31, %v5466_v26  ;;  %v20199_v31 = vld [vmem:[#allocation43_spill] sm:$0xff]  ;;  %v20200_v26 = vld [vmem:[#allocation52_spill] sm:$0xff] }
 0x5b6   :  { %v5469_v53 = vadd.f32 %v5467_v25, %v5410_v40  ;;  %v20202_v40 = vld [vmem:[#allocation54_spill] sm:$0xff]  ;;  %v20203_v25 = vld [vmem:[#allocation47_spill] sm:$0xff] }
 0x5b8   :  { %v12898_v22 = vmul.f32 -1.442695, %v5469_v53  ;;  %v5477_v23 = vrot.slane %v5469_v53, 2  ;;  %v5488_v48 = vrot.slane %v5469_v53, 6  ;;  %v5485_v4 = vrot.slane %v5469_v53, 4  ;;  %v20204_v53 = vld [vmem:[#allocation56_spill] sm:$0xff] }
 0x5ba   :  { %14122 = vpow2.f32 %v12898_v22  ;;  %v12899_v35 = vmul.f32 -1.442695, %v5477_v23  ;;  %v12900_v3 = vmul.f32 -1.442695, %v5488_v48  ;;  %v20205_v22 = vld [vmem:[#allocation49_spill] sm:$0xff]  ;;  %v20206_v23 = vld [vmem:[#allocation58_spill] sm:$0xff] }
 0x5bb   :  { %v20208_v48 = vld [vmem:[#allocation60_spill] sm:$0xff] }
 0x5bc   :  { %14124 = vpow2.f32 %v12899_v35  ;;  %v20207_v35 = vld [vmem:[#allocation51_spill] sm:$0xff] }
 0x5bd   :  { %14126 = vpow2.f32 %v12900_v3  ;;  %v20209_v3 = vld [vmem:[#allocation53_spill] sm:$0xff] }
 0x5c7   :  { %v14123_v28 = vpop.eup %14122 }
 0x5c8   :  { %v5473_v49 = vadd.f32 1.0, %v14123_v28  ;;  %v20210_v28 = vld [vmem:[#allocation62_spill] sm:$0xff] }
 0x5c9   :  { %v14125_v63 = vpop.eup %14124 }
 0x5ca   :  { %14128 = vrcp.f32 %v5473_v49  ;;  %v5482_v42 = vadd.f32 1.0, %v14125_v63  ;;  %v14127_v12 = vpop.eup %14126  ;;  %v20212_v49 = vld [vmem:[#allocation64_spill] sm:$0xff]  ;;  %v20213_v63 = vld [vmem:[#allocation57_spill] sm:$0xff] }
 0x5cb   :  { %14130 = vtanh.f32 %v5485_v4  ;;  %v5493_v62 = vadd.f32 1.0, %v14127_v12  ;;  %v20211_v4 = vld [vmem:[#allocation55_spill] sm:$0xff] }
 0x5cc   :  { %14132 = vrcp.f32 %v5482_v42  ;;  %v20214_v42 = vld [vmem:[#allocation66_spill] sm:$0xff]  ;;  %v20215_v12 = vld [vmem:[#allocation59_spill] sm:$0xff] }
 0x5cd   :  { %14134 = vrcp.f32 %v5493_v62  ;;  %v20219_v62 = vld [vmem:[#allocation63_spill] sm:$0xff] }
 0x5d7   :  { %v14129_v7 = vpop.eup %14128 }
 0x5d8   :  { %v14131_v36 = vpop.eup %14130 }
 0x5d9   :  { %v14133_v59 = vpop.eup %14132  ;;  %v5497_v50 = vmul.f32 %v14131_v36, %v14129_v7  ;;  %v20216_v7 = vld [vmem:[#allocation68_spill] sm:$0xff]  ;;  %v20217_v36 = vld [vmem:[#allocation61_spill] sm:$0xff] }
 0x5da   :  { %v5496_v33 = vmul.f32 %v14133_v59, %v16653_v60  ;;  %v14135_v24 = vpop.eup %14134  ;;  %v20182_v60 = vld [vmem:[#allocation5_spill] sm:$0xff]  ;;  %v20218_v59 = vld [vmem:[#allocation70_spill] sm:$0xff] }
 0x5dc   :  { %v17119_v38 = vadd.f32 %v5497_v50, %v5496_v33  ;;  %v20220_v33 = vld [vmem:[#allocation72_spill] sm:$0xff]  ;;  %v20221_v50 = vld [vmem:[#allocation65_spill] sm:$0xff] }
 0x5de   :  { %14136 = vtanh.f32 %v17119_v38 }
 0x5eb   :  { %v14137_v15 = vpop.eup %14136 }
 0x5ec   :  { %v5500_v21 = vmul.f32 %v14137_v15, %v14135_v24  ;;  %v20222_v24 = vld [vmem:[#allocation67_spill] sm:$0xff]  ;;  %v20223_v15 = vld [vmem:[#allocation69_spill] sm:$0xff] }
 0x5ee   :  { %5501 = vst [vmem:[#allocation3 + $0x2] sm:$0x1] %v5500_v21  ;;  %v5506_v43 = vrot.slane %v5500_v21, %v20030_v8  ;;  %v5512_v6 = vrot.slane %v5500_v21, %v20031_v19  ;;  %v20224_v21 = vld [vmem:[#allocation71_spill] sm:$0xff] }
 0x5f0   :  { %5508 = vst [vmem:[#allocation3 + $0xd] sm:$0x1] %v5506_v43  ;;  %v5515_v51 = vpack.c.bf16 %v5506_v43, %v5506_v43  ;;  %v17124_v30 = vpack.c.bf16 %v5512_v6, %v5512_v6  ;;  %v20225_v43 = vld [vmem:[#allocation77_spill] sm:$0xff] }
 0x5f1   :  { %v20226_v6 = vld [vmem:[#allocation73_spill] sm:$0xff] }
 0x5f2   :  { %6316 = vmatprep.mubr.bf16.mxu1 %v5515_v51  ;;  %6357 = vmatprep.mubr.bf16.mxu0 %v5515_v51 }
 0x5f3   :  { %6317 = vmatmul.mubr.bf16.vlgmr.msra.gmra.mxu1 %v17124_v30  ;;  %6358 = vmatmul.mubr.bf16.vlgmr.msra.gmra.mxu0 %v17124_v30 }
 0x5f4   :  { %6367 = vmatpush1.bf16.msra.mxu1 %v16640_v45  ;;  %6408 = vmatpush1.bf16.msra.mxu0 %v16642_v52  ;;  %v20187_v45 = vld [vmem:[#allocation35_spill] sm:$0xff]  ;;  %v20188_v52 = vld [vmem:[#allocation40_spill] sm:$0xff] }
 0x5f5   :  { %6398 = vmatprep.mubr.bf16.mxu1 %v5515_v51  ;;  %6439 = vmatprep.mubr.bf16.mxu0 %v5515_v51  ;;  %v20227_v51 = vld [vmem:[#allocation79_spill] sm:$0xff] }
 0x5f6   :  { %6368 = vmatprep.subr.bf16.mxu1 %v16675_v13  ;;  %6409 = vmatprep.subr.bf16.mxu0 %v16677_v18  ;;  %v20190_v13 = vld [vmem:[#allocation42_spill] sm:$0xff]  ;;  %v20191_v18 = vld [vmem:[#allocation37_spill] sm:$0xff] }
 0x5f8   :  { %6369 = vmatpush1.bf16.msra.mxu1 %v16692_v0  ;;  %6410 = vmatpush1.bf16.msra.mxu0 %v20182_v60  ;;  %v20192_v0 = vld [vmem:[#allocation44_spill] sm:$0xff]  ;;  %v20228_v60 = vld [vmem:[#allocation74_spill] sm:$0xff] }
 0x5f9   :  { %6370 = vmatprep.subr.bf16.mxu1 %v20183_v20  ;;  %6411 = vmatprep.subr.bf16.mxu0 %v20184_v44  ;;  %v20229_v20 = vld [vmem:[#allocation80_spill] sm:$0xff] }
 0x5fc   :  { %6371 = vmatpush1.bf16.msra.mxu1 %v20185_v54  ;;  %6412 = vmatpush1.bf16.msra.mxu0 %v20186_v17  ;;  %v6589_v17 = vld [vmem:[%s19610_s6 + $0x100] sm:$0xff] }
 0x5fd   :  { %6372 = vmatprep.subr.bf16.mxu1 %v20187_v45  ;;  %6413 = vmatprep.subr.bf16.mxu0 %v20188_v52  ;;  %v6593_v45 = vld [vmem:[%s19610_s6 + $0x120] sm:$0xff]  ;;  %v6590_v52 = vld [vmem:[%s19610_s6 + $0x108] sm:$0xff] }
 0x600   :  { %6373 = vmatpush1.bf16.msra.mxu1 %v20189_v11  ;;  %6414 = vmatpush1.bf16.msra.mxu0 %v20190_v13  ;;  %v17253_v11 = vcombine.high %v6589_v17, %v6593_v45  ;;  %v6594_v13 = vld [vmem:[%s19610_s6 + $0x128] sm:$0xff] }
 0x601   :  { %6374 = vmatprep.subr.bf16.mxu1 %v20191_v18  ;;  %6415 = vmatprep.subr.bf16.mxu0 %v20192_v0  ;;  %v17258_v18 = vcombine.low %v6589_v17, %v6593_v45  ;;  %v17260_v0 = vcombine.low %v6590_v52, %v6594_v13 }
 0x604   :  { %6375 = vmatpush1.bf16.msra.mxu1 %v20193_v10  ;;  %6416 = vmatpush1.bf16.msra.mxu0 %v20194_v37  ;;  %v17262_v10 = vcombine.high %v6590_v52, %v6594_v13  ;;  %v6581_v37 = vld [vmem:[%s19610_s6 + $0xc0] sm:$0xff] }
 0x605   :  { %6376 = vmatprep.subr.bf16.mxu1 %v20195_v46  ;;  %6417 = vmatprep.subr.bf16.mxu0 %v20196_v56  ;;  %v6585_v46 = vld [vmem:[%s19610_s6 + $0xe0] sm:$0xff]  ;;  %v6582_v56 = vld [vmem:[%s19610_s6 + $0xc8] sm:$0xff] }
 0x606   :  { %v6661_v52 = vld [vmem:[%s19610_s6 + $0x340] sm:$0xff] }
 0x607   :  { %v6665_v13 = vld [vmem:[%s19610_s6 + $0x360] sm:$0xff] }
 0x608   :  { %6377 = vmatpush1.bf16.msra.mxu1 %v20197_v2  ;;  %6418 = vmatpush1.bf16.msra.mxu0 %v20198_v39  ;;  %v17277_v2 = vcombine.high %v6581_v37, %v6585_v46  ;;  %v6586_v39 = vld [vmem:[%s19610_s6 + $0xe8] sm:$0xff] }
 0x609   :  { %6378 = vmatprep.subr.bf16.mxu1 %v20199_v31  ;;  %6419 = vmatprep.subr.bf16.mxu0 %v20200_v26  ;;  %v17282_v31 = vcombine.low %v6581_v37, %v6585_v46  ;;  %v17284_v26 = vcombine.low %v6582_v56, %v6586_v39  ;;  %v6662_v37 = vld [vmem:[%s19610_s6 + $0x348] sm:$0xff] }
 0x60a   :  { %20230 = vst [vmem:[#allocation75_spill] sm:$0xff] %v17277_v2  ;;  %v6666_v46 = vld [vmem:[%s19610_s6 + $0x368] sm:$0xff] }
 0x60b   :  { %20231 = vst [vmem:[#allocation81_spill] sm:$0xff] %v17282_v31 }
 0x60c   :  { %6379 = vmatpush1.bf16.msra.mxu1 %v20201_v27  ;;  %6420 = vmatpush1.bf16.msra.mxu0 %v20202_v40  ;;  %v17286_v27 = vcombine.high %v6582_v56, %v6586_v39  ;;  %v6573_v40 = vld [vmem:[%s19610_s6 + $0x80] sm:$0xff] }
 0x60d   :  { %6380 = vmatprep.subr.bf16.mxu1 %v20203_v25  ;;  %6421 = vmatprep.subr.bf16.mxu0 %v20204_v53  ;;  %v6577_v25 = vld [vmem:[%s19610_s6 + $0xa0] sm:$0xff]  ;;  %v6574_v53 = vld [vmem:[%s19610_s6 + $0x88] sm:$0xff] }
 0x610   :  { %6381 = vmatpush1.bf16.msra.mxu1 %v20205_v22  ;;  %6422 = vmatpush1.bf16.msra.mxu0 %v20206_v23  ;;  %v17301_v22 = vcombine.high %v6573_v40, %v6577_v25  ;;  %v6578_v23 = vld [vmem:[%s19610_s6 + $0xa8] sm:$0xff] }
 0x611   :  { %6382 = vmatprep.subr.bf16.mxu1 %v20207_v35  ;;  %6423 = vmatprep.subr.bf16.mxu0 %v20208_v48  ;;  %v17306_v35 = vcombine.low %v6573_v40, %v6577_v25  ;;  %v17308_v48 = vcombine.low %v6574_v53, %v6578_v23  ;;  %v17421_v40 = vcombine.high %v6661_v52, %v6665_v13 }
 0x612   :  { %20232 = vst [vmem:[#allocation76_spill] sm:$0xff] %v17301_v22  ;;  %v17424_v25 = vcombine.high %v6662_v37, %v6666_v46 }
 0x613   :  { %20233 = vst [vmem:[#allocation82_spill] sm:$0xff] %v17306_v35  ;;  %20242 = vst [vmem:[#allocation13_spill] sm:$0xff] %v17421_v40 }
 0x614   :  { %6383 = vmatpush2.bf16.msra.mxu1 %v20209_v3  ;;  %6424 = vmatpush2.bf16.msra.mxu0 %v20210_v28  ;;  %v17310_v3 = vcombine.high %v6574_v53, %v6578_v23  ;;  %v6565_v28 = vld [vmem:[%s19610_s6 + $0x40] sm:$0xff] }
 0x615   :  { %6384 = vmatprep.subr.bf16.mxu1 %v20211_v4  ;;  %6425 = vmatprep.subr.bf16.mxu0 %v20212_v49  ;;  %v6569_v4 = vld [vmem:[%s19610_s6 + $0x60] sm:$0xff]  ;;  %v6566_v49 = vld [vmem:[%s19610_s6 + $0x48] sm:$0xff] }
 0x616   :  { %v6653_v53 = vld [vmem:[%s19610_s6 + $0x300] sm:$0xff] }
 0x617   :  { %v6657_v23 = vld [vmem:[%s19610_s6 + $0x320] sm:$0xff] }
 0x618   :  { %6385 = vmatpush2.bf16.msra.mxu1 %v20213_v63  ;;  %6426 = vmatpush2.bf16.msra.mxu0 %v20214_v42  ;;  %v17325_v63 = vcombine.high %v6565_v28, %v6569_v4  ;;  %v6570_v42 = vld [vmem:[%s19610_s6 + $0x68] sm:$0xff] }
 0x619   :  { %6386 = vmatprep.subr.bf16.mxu1 %v20215_v12  ;;  %6427 = vmatprep.subr.bf16.mxu0 %v20216_v7  ;;  %v17330_v12 = vcombine.low %v6565_v28, %v6569_v4  ;;  %v17332_v7 = vcombine.low %v6566_v49, %v6570_v42  ;;  %v6654_v28 = vld [vmem:[%s19610_s6 + $0x308] sm:$0xff] }
 0x61a   :  { %20234 = vst [vmem:[#allocation78_spill] sm:$0xff] %v17325_v63  ;;  %v6658_v4 = vld [vmem:[%s19610_s6 + $0x328] sm:$0xff] }
 0x61b   :  { %20235 = vst [vmem:[#allocation7_spill] sm:$0xff] %v17330_v12 }
 0x61c   :  { %6387 = vmatpush2.bf16.msra.mxu1 %v20217_v36  ;;  %6428 = vmatpush2.bf16.msra.mxu0 %v20218_v59  ;;  %v17334_v36 = vcombine.high %v6566_v49, %v6570_v42  ;;  %v6557_v59 = vld [vmem:[%s19610_s6] sm:$0xff]  ;;  %v17439_v49 = vcombine.low %v6661_v52, %v6665_v13  ;;  %v17443_v42 = vcombine.low %v6662_v37, %v6666_v46  ;;  %v6638_v52 = vld [vmem:[%s19610_s6 + $0x288] sm:$0xff] }
 0x61d   :  { %6388 = vmatprep.subr.bf16.mxu1 %v20219_v62  ;;  %6429 = vmatprep.subr.bf16.mxu0 %v20220_v33  ;;  %v6561_v62 = vld [vmem:[%s19610_s6 + $0x20] sm:$0xff]  ;;  %v6558_v33 = vld [vmem:[%s19610_s6 + $0x8] sm:$0xff] }
 0x61e   :  { %20243 = vst [vmem:[#allocation15_spill] sm:$0xff] %v17439_v49  ;;  %v6642_v13 = vld [vmem:[%s19610_s6 + $0x2a8] sm:$0xff] }
 0x620   :  { %6389 = vmatpush2.bf16.msra.mxu1 %v20221_v50  ;;  %6430 = vmatpush2.bf16.msra.mxu0 %v20222_v24  ;;  %v17349_v50 = vcombine.low %v6557_v59, %v6561_v62  ;;  %v17351_v24 = vcombine.high %v6557_v59, %v6561_v62  ;;  %v17445_v59 = vcombine.high %v6653_v53, %v6657_v23 }
 0x621   :  { %6390 = vmatprep.subr.bf16.mxu1 %v20223_v15  ;;  %6431 = vmatprep.subr.bf16.mxu0 %v20224_v21  ;;  %v6562_v15 = vld [vmem:[%s19610_s6 + $0x28] sm:$0xff]  ;;  %v6677_v21 = vld [vmem:[%s19610_s6 + $0x3c0] sm:$0xff]  ;;  %v17448_v62 = vcombine.high %v6654_v28, %v6658_v4 }
 0x622   :  { %20236 = vst [vmem:[#allocation8_spill] sm:$0xff] %v17349_v50  ;;  %20237 = vst [vmem:[#allocation9_spill] sm:$0xff] %v17351_v24 }
 0x623   :  { %20244 = vst [vmem:[#allocation16_spill] sm:$0xff] %v17445_v59 }
 0x624   :  { %6391 = vmatpush2.bf16.msra.mxu1 %v20225_v43  ;;  %6432 = vmatpush2.bf16.msra.mxu0 %v20226_v6  ;;  %v6681_v43 = vld [vmem:[%s19610_s6 + $0x3e0] sm:$0xff]  ;;  %v17362_v6 = vcombine.low %v6558_v33, %v6562_v15 }
 0x625   :  { %6392 = vmatprep.subr.bf16.mxu1 %v20227_v51  ;;  %6433 = vmatprep.subr.bf16.mxu0 %v20228_v60  ;;  %v17364_v51 = vcombine.high %v6558_v33, %v6562_v15  ;;  %v17366_v60 = vcombine.high %v6677_v21, %v6681_v43  ;;  %v6645_v33 = vld [vmem:[%s19610_s6 + $0x2c0] sm:$0xff] }
 0x626   :  { %v6649_v15 = vld [vmem:[%s19610_s6 + $0x2e0] sm:$0xff] }
 0x627   :  { %20238 = vst [vmem:[#allocation10_spill] sm:$0xff] %v17366_v60  ;;  %v17487_v37 = vcombine.low %v6645_v33, %v6649_v15 }
 0x628   :  { %6393 = vmatpush2.bf16.msra.mxu1 %v20229_v20  ;;  %6434 = vmatpush2.bf16.msra.mxu0 %v16982_v55  ;;  %v6678_v20 = vld [vmem:[%s19610_s6 + $0x3c8] sm:$0xff] }
 0x629   :  { %6394 = vmatprep.subr.bf16.mxu1 %v16986_v61  ;;  %6435 = vmatprep.subr.bf16.mxu0 %v16988_v1  ;;  %v6614_v61 = vld [vmem:[%s19610_s6 + $0x1c8] sm:$0xff]  ;;  %20247 = vst [vmem:[#allocation19_spill] sm:$0xff] %v17487_v37 }
 0x62a   :  { %v6618_v1 = vld [vmem:[%s19610_s6 + $0x1e8] sm:$0xff] }
 0x62c   :  { %6395 = vmatpush2.bf16.msra.mxu1 %v17004_v29  ;;  %6436 = vmatpush2.bf16.msra.mxu0 %v17006_v9  ;;  %v6597_v9 = vld [vmem:[%s19610_s6 + $0x140] sm:$0xff] }
 0x62d   :  { %6396 = vmatprep.subr.bf16.mxu1 %v17010_v57  ;;  %6437 = vmatprep.subr.bf16.mxu0 %v17012_v58  ;;  %v17202_v57 = vcombine.high %v6614_v61, %v6618_v1  ;;  %v17204_v58 = vcombine.low %v6614_v61, %v6618_v1  ;;  %v6682_v61 = vld [vmem:[%s19610_s6 + $0x3e8] sm:$0xff]  ;;  %v6669_v1 = vld [vmem:[%s19610_s6 + $0x380] sm:$0xff] }
 0x630   :  { %6397 = vmatpush2.bf16.msra.mxu1 %v17016_v41  ;;  %6438 = vmatpush2.bf16.msra.mxu0 %v17018_v47  ;;  %v6606_v41 = vld [vmem:[%s19610_s6 + $0x188] sm:$0xff] }
 0x631   :  { %7325 = vmatprep.subr.bf16.mxu1 %v17065_v14  ;;  %7366 = vmatprep.subr.bf16.mxu0 %v17202_v57  ;;  %v6610_v47 = vld [vmem:[%s19610_s6 + $0x1a8] sm:$0xff]  ;;  %v6601_v14 = vld [vmem:[%s19610_s6 + $0x160] sm:$0xff] }
 0x632   :  { %v17214_v55 = vcombine.high %v6606_v41, %v6610_v47  ;;  %v17216_v29 = vcombine.low %v6606_v41, %v6610_v47  ;;  %v17378_v41 = vcombine.high %v6678_v20, %v6682_v61  ;;  %v6673_v47 = vld [vmem:[%s19610_s6 + $0x3a0] sm:$0xff] }
 0x633   :  { %6399 = vmatmul.mubr.bf16.vlgmr.msra.gmra.mxu1 %v17124_v30  ;;  %6440 = vmatmul.mubr.bf16.vlgmr.msra.gmra.mxu0 %v17124_v30  ;;  %v17234_v30 = vcombine.low %v6597_v9, %v6601_v14  ;;  %v17397_v17 = vcombine.high %v6669_v1, %v6673_v47  ;;  %v17415_v56 = vcombine.low %v6669_v1, %v6673_v47 }
 0x634   :  { %7326 = vmatpush1.bf16.msra.mxu1 %v17067_v5  ;;  %7367 = vmatpush1.bf16.msra.mxu0 %v17204_v58  ;;  %v6598_v5 = vld [vmem:[%s19610_s6 + $0x148] sm:$0xff]  ;;  %v17469_v1 = vcombine.high %v6645_v33, %v6649_v15 }
 0x635   :  { %7327 = vmatprep.subr.bf16.mxu1 %v17077_v16  ;;  %7368 = vmatprep.subr.bf16.mxu0 %v17214_v55  ;;  %v17229_v16 = vcombine.high %v6597_v9, %v6601_v14  ;;  %v6670_v9 = vld [vmem:[%s19610_s6 + $0x388] sm:$0xff]  ;;  %20240 = vst [vmem:[#allocation12_spill] sm:$0xff] %v17397_v17  ;;  %20241 = vst [vmem:[#allocation14_spill] sm:$0xff] %v17415_v56 }
 0x636   :  { %v6674_v14 = vld [vmem:[%s19610_s6 + $0x3a8] sm:$0xff]  ;;  %20246 = vst [vmem:[#allocation18_spill] sm:$0xff] %v17469_v1 }
 0x637   :  { %v17400_v45 = vcombine.high %v6670_v9, %v6674_v14  ;;  %v17419_v39 = vcombine.low %v6670_v9, %v6674_v14  ;;  %v6637_v9 = vld [vmem:[%s19610_s6 + $0x280] sm:$0xff]  ;;  %v6630_v33 = vld [vmem:[%s19610_s6 + $0x248] sm:$0xff] }
 0x638   :  { %7328 = vmatpush1.bf16.msra.mxu1 %v17079_v34  ;;  %7369 = vmatpush1.bf16.msra.mxu0 %v17216_v29  ;;  %v6602_v34 = vld [vmem:[%s19610_s6 + $0x168] sm:$0xff]  ;;  %v6641_v14 = vld [vmem:[%s19610_s6 + $0x2a0] sm:$0xff] }
 0x639   :  { %v17236_v44 = vcombine.low %v6598_v5, %v6602_v34  ;;  %v17238_v54 = vcombine.high %v6598_v5, %v6602_v34  ;;  %7329 = vmatprep.subr.bf16.mxu1 %v17229_v16  ;;  %v17391_v5 = vcombine.low %v6677_v21, %v6681_v43  ;;  %v17395_v34 = vcombine.low %v6678_v20, %v6682_v61  ;;  %v6646_v21 = vld [vmem:[%s19610_s6 + $0x2c8] sm:$0xff] }
 0x63a   :  { %v6650_v43 = vld [vmem:[%s19610_s6 + $0x2e8] sm:$0xff]  ;;  %v17463_v20 = vcombine.low %v6653_v53, %v6657_v23  ;;  %v17467_v61 = vcombine.low %v6654_v28, %v6658_v4  ;;  %v17493_v53 = vcombine.high %v6637_v9, %v6641_v14  ;;  %v17496_v23 = vcombine.high %v6638_v52, %v6642_v13  ;;  %v6629_v28 = vld [vmem:[%s19610_s6 + $0x240] sm:$0xff] }
 0x63b   :  { %7370 = vmatprep.subr.bf16.mxu0 %v17238_v54  ;;  %20239 = vst [vmem:[#allocation11_spill] sm:$0xff] %v17391_v5  ;;  %v17472_v47 = vcombine.high %v6646_v21, %v6650_v43  ;;  %v17491_v46 = vcombine.low %v6646_v21, %v6650_v43  ;;  %v6633_v4 = vld [vmem:[%s19610_s6 + $0x260] sm:$0xff]  ;;  %v6634_v15 = vld [vmem:[%s19610_s6 + $0x268] sm:$0xff]  ;;  %v17511_v21 = vcombine.low %v6637_v9, %v6641_v14 }
 0x63c   :  { %7330 = vmatpush1.bf16.msra.mxu1 %v17234_v30  ;;  %7371 = vmatpush1.bf16.msra.mxu0 %v17236_v44  ;;  %20245 = vst [vmem:[#allocation17_spill] sm:$0xff] %v17463_v20  ;;  %20248 = vst [vmem:[#allocation20_spill] sm:$0xff] %v17493_v53  ;;  %v17515_v43 = vcombine.low %v6638_v52, %v6642_v13  ;;  %v6625_v9 = vld [vmem:[%s19610_s6 + $0x220] sm:$0xff]  ;;  %v6622_v14 = vld [vmem:[%s19610_s6 + $0x208] sm:$0xff]  ;;  %v17535_v13 = vcombine.low %v6629_v28, %v6633_v4 }
 0x63d   :  { %7331 = vmatprep.subr.bf16.mxu1 %v17253_v11  ;;  %7372 = vmatprep.subr.bf16.mxu0 %v17262_v10  ;;  %20249 = vst [vmem:[#allocation21_spill] sm:$0xff] %v17511_v21  ;;  %v6626_v52 = vld [vmem:[%s19610_s6 + $0x228] sm:$0xff] }
 0x63e   :  { %20251 = vst [vmem:[#allocation23_spill] sm:$0xff] %v17535_v13 }
 0x640   :  { %7332 = vmatpush1.bf16.msra.mxu1 %v17258_v18  ;;  %7373 = vmatpush1.bf16.msra.mxu0 %v17260_v0 }
 0x641   :  { %7333 = vmatprep.subr.bf16.mxu1 %v17277_v2  ;;  %7374 = vmatprep.subr.bf16.mxu0 %v17286_v27 }
 0x644   :  { %7334 = vmatpush1.bf16.msra.mxu1 %v17282_v31  ;;  %7375 = vmatpush1.bf16.msra.mxu0 %v17284_v26 }
 0x645   :  { %7335 = vmatprep.subr.bf16.mxu1 %v17301_v22  ;;  %7376 = vmatprep.subr.bf16.mxu0 %v17310_v3 }
 0x648   :  { %7336 = vmatpush1.bf16.msra.mxu1 %v17306_v35  ;;  %7377 = vmatpush1.bf16.msra.mxu0 %v17308_v48  ;;  %v6449_v35 = vld [vmem:[#allocation2 + $0x3] ss:$8 sm:$0xf] }
 0x649   :  { %7337 = vmatprep.subr.bf16.mxu1 %v17325_v63  ;;  %7378 = vmatprep.subr.bf16.mxu0 %v17334_v36 }
 0x64c   :  { %7338 = vmatpush1.bf16.msra.mxu1 %v17330_v12  ;;  %7379 = vmatpush1.bf16.msra.mxu0 %v17332_v7 }
 0x64d   :  { %7339 = vmatprep.subr.bf16.mxu1 %v17351_v24  ;;  %7380 = vmatprep.subr.bf16.mxu0 %v17364_v51 }
 0x650   :  { %7340 = vmatpush1.bf16.msra.mxu1 %v17349_v50  ;;  %7381 = vmatpush1.bf16.msra.mxu0 %v17362_v6 }
 0x651   :  { %7341 = vmatprep.subr.bf16.mxu1 %v17366_v60  ;;  %7382 = vmatprep.subr.bf16.mxu0 %v17378_v41 }
 0x654   :  { %7342 = vmatpush2.bf16.msra.mxu1 %v17391_v5  ;;  %7383 = vmatpush2.bf16.msra.mxu0 %v17395_v34 }
 0x655   :  { %7343 = vmatprep.subr.bf16.mxu1 %v17397_v17  ;;  %7384 = vmatprep.subr.bf16.mxu0 %v17400_v45 }
 0x658   :  { %7344 = vmatpush2.bf16.msra.mxu1 %v17415_v56  ;;  %7385 = vmatpush2.bf16.msra.mxu0 %v17419_v39  ;;  %v17544_v56 = vcombine.high %v6622_v14, %v6626_v52 }
 0x659   :  { %7345 = vmatprep.subr.bf16.mxu1 %v17421_v40  ;;  %7386 = vmatprep.subr.bf16.mxu0 %v17424_v25 }
 0x65c   :  { %7346 = vmatpush2.bf16.msra.mxu1 %v17439_v49  ;;  %7387 = vmatpush2.bf16.msra.mxu0 %v17443_v42  ;;  %v17539_v49 = vcombine.low %v6630_v33, %v6634_v15 }
 0x65d   :  { %7347 = vmatprep.subr.bf16.mxu1 %v17445_v59  ;;  %7388 = vmatprep.subr.bf16.mxu0 %v17448_v62  ;;  %v6621_v59 = vld [vmem:[%s19610_s6 + $0x200] sm:$0xff] }
 0x65e   :  { %v17541_v40 = vcombine.high %v6621_v59, %v6625_v9 }
 0x660   :  { %7348 = vmatpush2.bf16.msra.mxu1 %v17463_v20  ;;  %7389 = vmatpush2.bf16.msra.mxu0 %v17467_v61  ;;  %v17520_v20 = vcombine.high %v6630_v33, %v6634_v15  ;;  %20252 = vst [vmem:[#allocation24_spill] sm:$0xff] %v17541_v40  ;;  %v17551_v33 = vcombine.low %v6622_v14, %v6626_v52 }
 0x661   :  { %7349 = vmatprep.subr.bf16.mxu1 %v17469_v1  ;;  %7390 = vmatprep.subr.bf16.mxu0 %v17472_v47  ;;  %v17517_v1 = vcombine.high %v6629_v28, %v6633_v4  ;;  %v17547_v28 = vcombine.low %v6621_v59, %v6625_v9  ;;  %v6619_v59 = vld [vmem:[%s19610_s6 + $0x1f0] sm:$0xff] }
 0x663   :  { %20250 = vst [vmem:[#allocation22_spill] sm:$0xff] %v17517_v1  ;;  %20253 = vst [vmem:[#allocation25_spill] sm:$0xff] %v17547_v28 }
 0x664   :  { %7350 = vmatpush2.bf16.msra.mxu1 %v17487_v37  ;;  %7391 = vmatpush2.bf16.msra.mxu0 %v17491_v46 }
 0x665   :  { %7351 = vmatprep.subr.bf16.mxu1 %v17493_v53  ;;  %7392 = vmatprep.subr.bf16.mxu0 %v17496_v23 }
 0x668   :  { %7352 = vmatpush2.bf16.msra.mxu1 %v17511_v21  ;;  %7393 = vmatpush2.bf16.msra.mxu0 %v17515_v43 }
 0x669   :  { %7353 = vmatprep.subr.bf16.mxu1 %v17517_v1  ;;  %7394 = vmatprep.subr.bf16.mxu0 %v17520_v20 }
 0x66c   :  { %7354 = vmatpush2.bf16.msra.mxu1 %v17535_v13  ;;  %7395 = vmatpush2.bf16.msra.mxu0 %v17539_v49 }
 0x66d   :  { %7355 = vmatprep.subr.bf16.mxu1 %v17541_v40  ;;  %7396 = vmatprep.subr.bf16.mxu0 %v17544_v56 }
 0x670   :  { %7356 = vmatpush2.bf16.msra.mxu1 %v17547_v28  ;;  %7397 = vmatpush2.bf16.msra.mxu0 %v17551_v33 }
 0x6b3   :  { %v6318_v53 = vpop.f32.mrf.mxu1  ;;  %v6359_v37 = vpop.f32.mrf.mxu0 }
 0x6b5   :  { %v6320_v17 = vpop.f32.mrf.mxu1  ;;  %v6361_v5 = vpop.f32.mrf.mxu0 }
 0x6b6   :  { %v6460_v60 = vcombine.low %v6318_v53, %v6320_v17  ;;  %v6461_v21 = vcombine.low %v6359_v37, %v6361_v5 }
 0x6b7   :  { %v6322_v4 = vpop.f32.mrf.mxu1  ;;  %v6363_v50 = vpop.f32.mrf.mxu0 }
 0x6b8   :  { %v6470_v15 = vrot.slane %v6460_v60, %v16173_v32  ;;  %v6477_v1 = vrot.slane %v6461_v21, %v16173_v32  ;;  %v6615_v50 = vld [vmem:[%s19610_s6 + $0x1d0] sm:$0xff]  ;;  %v6616_v60 = vld [vmem:[%s19610_s6 + $0x1d8] sm:$0xff] }
 0x6b9   :  { %v6323_v17 = vpop.f32.mrf.mxu1  ;;  %v6364_v5 = vpop.f32.mrf.mxu0  ;;  %v17567_v53 = vcombine.high %v6615_v50, %v6619_v59  ;;  %v17572_v21 = vcombine.low %v6615_v50, %v6619_v59 }
 0x6ba   :  { %v6492_v37 = vcombine.low %v6470_v15, %v6477_v1  ;;  %v6620_v1 = vld [vmem:[%s19610_s6 + $0x1f8] sm:$0xff] }
 0x6bb   :  { %20254 = vst [vmem:[#allocation26_spill] sm:$0xff] %v17567_v53  ;;  %v17574_v9 = vcombine.low %v6616_v60, %v6620_v1  ;;  %v17576_v14 = vcombine.high %v6616_v60, %v6620_v1  ;;  %7407 = vmatprep.subr.bf16.mxu1 %v17567_v53  ;;  %v6450_v1 = vld [vmem:[#allocation2 + $0x3] ss:$8 sm:$0xf0] }
 0x6bc   :  { %v6500_v53 = vrot.slane %v6492_v37, %v16173_v32  ;;  %v6451_v22 = vor.u32 %v6450_v1, %v6449_v35 }
 0x6bd   :  { %7448 = vmatprep.subr.bf16.mxu0 %v17576_v14 }
 0x6f3   :  { %v6400_v52 = vpop.f32.mrf.mxu1  ;;  %v6441_v4 = vpop.f32.mrf.mxu0 }
 0x6f5   :  { %v6402_v15 = vpop.f32.mrf.mxu1  ;;  %v6443_v17 = vpop.f32.mrf.mxu0 }
 0x6f6   :  { %v6462_v5 = vcombine.low %v6400_v52, %v6402_v15  ;;  %v6463_v28 = vcombine.low %v6441_v4, %v6443_v17 }
 0x6f7   :  { %v6404_v40 = vpop.f32.mrf.mxu1  ;;  %v6445_v13 = vpop.f32.mrf.mxu0 }
 0x6f8   :  { %v6484_v24 = vrot.slane %v6462_v5, %v16173_v32  ;;  %v6491_v50 = vrot.slane %v6463_v28, %v16173_v32 }
 0x6f9   :  { %v6405_v59 = vpop.f32.mrf.mxu1  ;;  %v6446_v12 = vpop.f32.mrf.mxu0 }
 0x6fa   :  { %v6493_v60 = vcombine.low %v6484_v24, %v6491_v50 }
 0x6fc   :  { %v6507_v63 = vrot.slane %v6493_v60, %v16173_v32 }
 0x6fe   :  { %v6508_v31 = vcombine.low %v6500_v53, %v6507_v63 }
 0x700   :  { %v6510_v2 = vadd.f32 %v6508_v31, %v6451_v22 }
 0x702   :  { %v13029_v52 = vmul.f32 -1.442695, %v6510_v2  ;;  %v6518_v4 = vrot.slane %v6510_v2, 2  ;;  %v6529_v13 = vrot.slane %v6510_v2, 6  ;;  %v6526_v17 = vrot.slane %v6510_v2, 4 }
 0x704   :  { %14138 = vpow2.f32 %v13029_v52  ;;  %v13030_v40 = vmul.f32 -1.442695, %v6518_v4  ;;  %v13031_v15 = vmul.f32 -1.442695, %v6529_v13  ;;  %v6608_v13 = vld [vmem:[%s19610_s6 + $0x198] sm:$0xff] }
 0x706   :  { %14140 = vpow2.f32 %v13030_v40  ;;  %v6607_v40 = vld [vmem:[%s19610_s6 + $0x190] sm:$0xff] }
 0x707   :  { %14142 = vpow2.f32 %v13031_v15  ;;  %v6612_v15 = vld [vmem:[%s19610_s6 + $0x1b8] sm:$0xff] }
 0x711   :  { %v14139_v28 = vpop.eup %14138 }
 0x712   :  { %v6514_v12 = vadd.f32 1.0, %v14139_v28 }
 0x713   :  { %v14141_v24 = vpop.eup %14140 }
 0x714   :  { %14144 = vrcp.f32 %v6514_v12  ;;  %v6523_v37 = vadd.f32 1.0, %v14141_v24  ;;  %v14143_v5 = vpop.eup %14142  ;;  %v6599_v12 = vld [vmem:[%s19610_s6 + $0x150] sm:$0xff] }
 0x715   :  { %14146 = vtanh.f32 %v6526_v17  ;;  %v6534_v22 = vadd.f32 1.0, %v14143_v5  ;;  %v6603_v5 = vld [vmem:[%s19610_s6 + $0x170] sm:$0xff] }
 0x716   :  { %14148 = vrcp.f32 %v6523_v37  ;;  %v17609_v37 = vcombine.high %v6608_v13, %v6612_v15 }
 0x717   :  { %14150 = vrcp.f32 %v6534_v22  ;;  %v17626_v22 = vcombine.low %v6608_v13, %v6612_v15  ;;  %v6583_v15 = vld [vmem:[%s19610_s6 + $0xd0] sm:$0xff] }
 0x719   :  { %20255 = vst [vmem:[#allocation27_spill] sm:$0xff] %v17626_v22 }
 0x721   :  { %v14145_v35 = vpop.eup %14144 }
 0x722   :  { %v14147_v63 = vpop.eup %14146 }
 0x723   :  { %v14149_v31 = vpop.eup %14148  ;;  %v6538_v50 = vmul.f32 %v14147_v63, %v14145_v35  ;;  %v6600_v35 = vld [vmem:[%s19610_s6 + $0x158] sm:$0xff] }
 0x724   :  { %v6537_v53 = vmul.f32 %v14149_v31, %v17119_v38  ;;  %v14151_v2 = vpop.eup %14150  ;;  %v6611_v38 = vld [vmem:[%s19610_s6 + $0x1b0] sm:$0xff]  ;;  %v6604_v63 = vld [vmem:[%s19610_s6 + $0x178] sm:$0xff] }
 0x725   :  { %v17607_v24 = vcombine.high %v6607_v40, %v6611_v38  ;;  %v17624_v31 = vcombine.low %v6607_v40, %v6611_v38  ;;  %v17650_v40 = vcombine.low %v6600_v35, %v6604_v63 }
 0x726   :  { %v17585_v59 = vadd.f32 %v6538_v50, %v6537_v53  ;;  %v17628_v53 = vcombine.high %v6599_v12, %v6603_v5  ;;  %v17630_v50 = vcombine.high %v6600_v35, %v6604_v63 }
 0x727   :  { %20259 = vst [vmem:[#allocation6_spill] sm:$0xff] %v17650_v40 }
 0x728   :  { %14152 = vtanh.f32 %v17585_v59  ;;  %20256 = vst [vmem:[#allocation28_spill] sm:$0xff] %v17628_v53  ;;  %20257 = vst [vmem:[#allocation29_spill] sm:$0xff] %v17630_v50 }
 0x735   :  { %v14153_v60 = vpop.eup %14152 }
 0x736   :  { %v6541_v1 = vmul.f32 %v14153_v60, %v14151_v2  ;;  %v6591_v2 = vld [vmem:[%s19610_s6 + $0x110] sm:$0xff] }
 0x737   :  { %v6595_v60 = vld [vmem:[%s19610_s6 + $0x130] sm:$0xff] }
 0x738   :  { %6542 = vst [vmem:[#allocation3 + $0x3] sm:$0x1] %v6541_v1  ;;  %v6547_v52 = vrot.slane %v6541_v1, %v20030_v8  ;;  %v6553_v4 = vrot.slane %v6541_v1, %v20031_v19  ;;  %v6592_v1 = vld [vmem:[%s19610_s6 + $0x118] sm:$0xff]  ;;  %v17654_v38 = vcombine.high %v6591_v2, %v6595_v60  ;;  %v17672_v35 = vcombine.low %v6591_v2, %v6595_v60 }
 0x739   :  { %v6576_v2 = vld [vmem:[%s19610_s6 + $0x98] sm:$0xff] }
 0x73a   :  { %6549 = vst [vmem:[#allocation3 + $0xc] sm:$0x1] %v6547_v52  ;;  %v6556_v28 = vpack.c.bf16 %v6547_v52, %v6547_v52  ;;  %v17602_v17 = vpack.c.bf16 %v6553_v4, %v6553_v4  ;;  %v6596_v52 = vld [vmem:[%s19610_s6 + $0x138] sm:$0xff]  ;;  %v17648_v4 = vcombine.low %v6599_v12, %v6603_v5  ;;  %20260 = vst [vmem:[#allocation5_spill] sm:$0xff] %v17654_v38 }
 0x73b   :  { %v17656_v13 = vcombine.high %v6592_v1, %v6596_v52  ;;  %v6584_v12 = vld [vmem:[%s19610_s6 + $0xd8] sm:$0xff]  ;;  %20262 = vst [vmem:[#allocation32_spill] sm:$0xff] %v17672_v35  ;;  %v17674_v63 = vcombine.low %v6592_v1, %v6596_v52 }
 0x73c   :  { %7357 = vmatprep.mubr.bf16.mxu1 %v6556_v28  ;;  %7398 = vmatprep.mubr.bf16.mxu0 %v6556_v28  ;;  %20258 = vst [vmem:[#allocation30_spill] sm:$0xff] %v17648_v4  ;;  %v6588_v5 = vld [vmem:[%s19610_s6 + $0xf8] sm:$0xff] }
 0x73d   :  { %7358 = vmatmul.mubr.bf16.vlgmr.msra.gmra.mxu1 %v17602_v17  ;;  %7399 = vmatmul.mubr.bf16.vlgmr.msra.gmra.mxu0 %v17602_v17  ;;  %20261 = vst [vmem:[#allocation31_spill] sm:$0xff] %v17656_v13  ;;  %20263 = vst [vmem:[#allocation33_spill] sm:$0xff] %v17674_v63  ;;  %v6580_v60 = vld [vmem:[%s19610_s6 + $0xb8] sm:$0xff]  ;;  %v17698_v52 = vcombine.low %v6584_v12, %v6588_v5 }
 0x73e   :  { %7408 = vmatpush1.bf16.msra.mxu1 %v17572_v21  ;;  %7449 = vmatpush1.bf16.msra.mxu0 %v17574_v9 }
 0x73f   :  { %7439 = vmatprep.mubr.bf16.mxu1 %v6556_v28  ;;  %7480 = vmatprep.mubr.bf16.mxu0 %v6556_v28  ;;  %v6587_v28 = vld [vmem:[%s19610_s6 + $0xf0] sm:$0xff]  ;;  %20267 = vst [vmem:[#allocation36_spill] sm:$0xff] %v17698_v52 }
 0x740   :  { %7409 = vmatprep.subr.bf16.mxu1 %v17607_v24  ;;  %7450 = vmatprep.subr.bf16.mxu0 %v17609_v37  ;;  %v17696_v1 = vcombine.low %v6583_v15, %v6587_v28 }
 0x742   :  { %7410 = vmatpush1.bf16.msra.mxu1 %v17624_v31  ;;  %7451 = vmatpush1.bf16.msra.mxu0 %v17626_v22  ;;  %v6575_v22 = vld [vmem:[%s19610_s6 + $0x90] sm:$0xff]  ;;  %20266 = vst [vmem:[#allocation40_spill] sm:$0xff] %v17696_v1 }
 0x743   :  { %7411 = vmatprep.subr.bf16.mxu1 %v17628_v53  ;;  %7452 = vmatprep.subr.bf16.mxu0 %v17630_v50  ;;  %v17678_v50 = vcombine.high %v6583_v15, %v6587_v28  ;;  %v17680_v53 = vcombine.high %v6584_v12, %v6588_v5  ;;  %v6568_v15 = vld [vmem:[%s19610_s6 + $0x58] sm:$0xff]  ;;  %v17722_v5 = vcombine.low %v6576_v2, %v6580_v60 }
 0x744   :  { %v6572_v28 = vld [vmem:[%s19610_s6 + $0x78] sm:$0xff] }
 0x745   :  { %20264 = vst [vmem:[#allocation34_spill] sm:$0xff] %v17678_v50  ;;  %20265 = vst [vmem:[#allocation35_spill] sm:$0xff] %v17680_v53 }
 0x746   :  { %7412 = vmatpush1.bf16.msra.mxu1 %v17648_v4  ;;  %7453 = vmatpush1.bf16.msra.mxu0 %v17650_v40  ;;  %v6579_v40 = vld [vmem:[%s19610_s6 + $0xb0] sm:$0xff]  ;;  %20271 = vst [vmem:[#allocation38_spill] sm:$0xff] %v17722_v5 }
 0x747   :  { %7413 = vmatprep.subr.bf16.mxu1 %v17654_v38  ;;  %7454 = vmatprep.subr.bf16.mxu0 %v17656_v13  ;;  %v17702_v13 = vcombine.high %v6575_v22, %v6579_v40  ;;  %v17704_v38 = vcombine.high %v6576_v2, %v6580_v60  ;;  %v6567_v4 = vld [vmem:[%s19610_s6 + $0x50] sm:$0xff]  ;;  %v17720_v12 = vcombine.low %v6575_v22, %v6579_v40  ;;  %v6560_v22 = vld [vmem:[%s19610_s6 + $0x18] sm:$0xff] }
 0x748   :  { %v6564_v40 = vld [vmem:[%s19610_s6 + $0x38] sm:$0xff]  ;;  %v17746_v60 = vcombine.low %v6568_v15, %v6572_v28 }
 0x749   :  { %20268 = vst [vmem:[#allocation42_spill] sm:$0xff] %v17702_v13  ;;  %20269 = vst [vmem:[#allocation37_spill] sm:$0xff] %v17704_v38 }
 0x74a   :  { %7414 = vmatpush1.bf16.msra.mxu1 %v17672_v35  ;;  %7455 = vmatpush1.bf16.msra.mxu0 %v17674_v63  ;;  %v6571_v63 = vld [vmem:[%s19610_s6 + $0x70] sm:$0xff]  ;;  %20270 = vst [vmem:[#allocation44_spill] sm:$0xff] %v17720_v12  ;;  %20275 = vst [vmem:[#allocation41_spill] sm:$0xff] %v17746_v60 }
 0x74b   :  { %7415 = vmatprep.subr.bf16.mxu1 %v17678_v50  ;;  %7456 = vmatprep.subr.bf16.mxu0 %v17680_v53  ;;  %v17726_v53 = vcombine.high %v6567_v4, %v6571_v63  ;;  %v17728_v50 = vcombine.high %v6568_v15, %v6572_v28  ;;  %v6559_v35 = vld [vmem:[%s19610_s6 + $0x10] sm:$0xff]  ;;  %v17744_v2 = vcombine.low %v6567_v4, %v6571_v63  ;;  %v6680_v4 = vld [vmem:[%s19610_s6 + $0x3d8] sm:$0xff] }
 0x74c   :  { %v6684_v63 = vld [vmem:[%s19610_s6 + $0x3f8] sm:$0xff]  ;;  %v17770_v28 = vcombine.low %v6560_v22, %v6564_v40 }
 0x74d   :  { %20272 = vst [vmem:[#allocation46_spill] sm:$0xff] %v17726_v53  ;;  %20273 = vst [vmem:[#allocation39_spill] sm:$0xff] %v17728_v50 }
 0x74e   :  { %7416 = vmatpush1.bf16.msra.mxu1 %v17696_v1  ;;  %7457 = vmatpush1.bf16.msra.mxu0 %v17698_v52  ;;  %v6563_v52 = vld [vmem:[%s19610_s6 + $0x30] sm:$0xff]  ;;  %20274 = vst [vmem:[#allocation48_spill] sm:$0xff] %v17744_v2  ;;  %20279 = vst [vmem:[#allocation45_spill] sm:$0xff] %v17770_v28 }
 0x74f   :  { %7417 = vmatprep.subr.bf16.mxu1 %v17702_v13  ;;  %7458 = vmatprep.subr.bf16.mxu0 %v17704_v38  ;;  %v17750_v38 = vcombine.high %v6559_v35, %v6563_v52  ;;  %v17752_v13 = vcombine.high %v6560_v22, %v6564_v40  ;;  %v6679_v1 = vld [vmem:[%s19610_s6 + $0x3d0] sm:$0xff]  ;;  %v17768_v15 = vcombine.low %v6559_v35, %v6563_v52  ;;  %v6672_v35 = vld [vmem:[%s19610_s6 + $0x398] sm:$0xff] }
 0x750   :  { %v6676_v52 = vld [vmem:[%s19610_s6 + $0x3b8] sm:$0xff]  ;;  %v17794_v40 = vcombine.low %v6680_v4, %v6684_v63 }
 0x751   :  { %20276 = vst [vmem:[#allocation50_spill] sm:$0xff] %v17750_v38  ;;  %20277 = vst [vmem:[#allocation43_spill] sm:$0xff] %v17752_v13 }
 0x752   :  { %7418 = vmatpush1.bf16.msra.mxu1 %v17720_v12  ;;  %7459 = vmatpush1.bf16.msra.mxu0 %v17722_v5  ;;  %v6683_v5 = vld [vmem:[%s19610_s6 + $0x3f0] sm:$0xff]  ;;  %20278 = vst [vmem:[#allocation52_spill] sm:$0xff] %v17768_v15  ;;  %20283 = vst [vmem:[#allocation49_spill] sm:$0xff] %v17794_v40 }
 0x753   :  { %7419 = vmatprep.subr.bf16.mxu1 %v17726_v53  ;;  %7460 = vmatprep.subr.bf16.mxu0 %v17728_v50  ;;  %v17774_v50 = vcombine.high %v6679_v1, %v6683_v5  ;;  %v17776_v53 = vcombine.high %v6680_v4, %v6684_v63  ;;  %v6671_v12 = vld [vmem:[%s19610_s6 + $0x390] sm:$0xff]  ;;  %v17792_v22 = vcombine.low %v6679_v1, %v6683_v5  ;;  %v6664_v1 = vld [vmem:[%s19610_s6 + $0x358] sm:$0xff] }
 0x754   :  { %v6668_v5 = vld [vmem:[%s19610_s6 + $0x378] sm:$0xff]  ;;  %v17818_v63 = vcombine.low %v6672_v35, %v6676_v52 }
 0x755   :  { %20280 = vst [vmem:[#allocation54_spill] sm:$0xff] %v17774_v50  ;;  %20281 = vst [vmem:[#allocation47_spill] sm:$0xff] %v17776_v53 }
 0x756   :  { %7420 = vmatpush1.bf16.msra.mxu1 %v17744_v2  ;;  %7461 = vmatpush1.bf16.msra.mxu0 %v17746_v60  ;;  %v6675_v60 = vld [vmem:[%s19610_s6 + $0x3b0] sm:$0xff]  ;;  %20282 = vst [vmem:[#allocation56_spill] sm:$0xff] %v17792_v22  ;;  %20287 = vst [vmem:[#allocation53_spill] sm:$0xff] %v17818_v63 }
 0x757   :  { %7421 = vmatprep.subr.bf16.mxu1 %v17750_v38  ;;  %7462 = vmatprep.subr.bf16.mxu0 %v17752_v13  ;;  %v17798_v13 = vcombine.high %v6671_v12, %v6675_v60  ;;  %v17800_v38 = vcombine.high %v6672_v35, %v6676_v52  ;;  %v6663_v2 = vld [vmem:[%s19610_s6 + $0x350] sm:$0xff]  ;;  %v17816_v4 = vcombine.low %v6671_v12, %v6675_v60  ;;  %v6656_v12 = vld [vmem:[%s19610_s6 + $0x318] sm:$0xff] }
 0x758   :  { %v6660_v60 = vld [vmem:[%s19610_s6 + $0x338] sm:$0xff]  ;;  %v17842_v52 = vcombine.low %v6664_v1, %v6668_v5 }
 0x759   :  { %20284 = vst [vmem:[#allocation58_spill] sm:$0xff] %v17798_v13  ;;  %20285 = vst [vmem:[#allocation51_spill] sm:$0xff] %v17800_v38 }
 0x75a   :  { %7422 = vmatpush1.bf16.msra.mxu1 %v17768_v15  ;;  %7463 = vmatpush1.bf16.msra.mxu0 %v17770_v28  ;;  %v6667_v28 = vld [vmem:[%s19610_s6 + $0x370] sm:$0xff]  ;;  %20286 = vst [vmem:[#allocation60_spill] sm:$0xff] %v17816_v4  ;;  %20291 = vst [vmem:[#allocation57_spill] sm:$0xff] %v17842_v52 }
 0x75b   :  { %7423 = vmatprep.subr.bf16.mxu1 %v17774_v50  ;;  %7464 = vmatprep.subr.bf16.mxu0 %v17776_v53  ;;  %v17822_v53 = vcombine.high %v6663_v2, %v6667_v28  ;;  %v17824_v50 = vcombine.high %v6664_v1, %v6668_v5  ;;  %v6655_v15 = vld [vmem:[%s19610_s6 + $0x310] sm:$0xff]  ;;  %v17840_v35 = vcombine.low %v6663_v2, %v6667_v28  ;;  %v6648_v2 = vld [vmem:[%s19610_s6 + $0x2d8] sm:$0xff] }
 0x75c   :  { %v6652_v28 = vld [vmem:[%s19610_s6 + $0x2f8] sm:$0xff]  ;;  %v17866_v5 = vcombine.low %v6656_v12, %v6660_v60 }
 0x75d   :  { %20288 = vst [vmem:[#allocation62_spill] sm:$0xff] %v17822_v53  ;;  %20289 = vst [vmem:[#allocation55_spill] sm:$0xff] %v17824_v50 }
 0x75e   :  { %7424 = vmatpush2.bf16.msra.mxu1 %v17792_v22  ;;  %7465 = vmatpush2.bf16.msra.mxu0 %v17794_v40  ;;  %v6659_v40 = vld [vmem:[%s19610_s6 + $0x330] sm:$0xff]  ;;  %20290 = vst [vmem:[#allocation64_spill] sm:$0xff] %v17840_v35  ;;  %20295 = vst [vmem:[#allocation61_spill] sm:$0xff] %v17866_v5 }
 0x75f   :  { %7425 = vmatprep.subr.bf16.mxu1 %v17798_v13  ;;  %7466 = vmatprep.subr.bf16.mxu0 %v17800_v38  ;;  %v17846_v38 = vcombine.high %v6655_v15, %v6659_v40  ;;  %v17848_v13 = vcombine.high %v6656_v12, %v6660_v60  ;;  %v6647_v22 = vld [vmem:[%s19610_s6 + $0x2d0] sm:$0xff]  ;;  %v17864_v1 = vcombine.low %v6655_v15, %v6659_v40  ;;  %v6640_v15 = vld [vmem:[%s19610_s6 + $0x298] sm:$0xff] }
 0x760   :  { %v6644_v40 = vld [vmem:[%s19610_s6 + $0x2b8] sm:$0xff]  ;;  %v17890_v60 = vcombine.low %v6648_v2, %v6652_v28 }
 0x761   :  { %20292 = vst [vmem:[#allocation66_spill] sm:$0xff] %v17846_v38  ;;  %20293 = vst [vmem:[#allocation59_spill] sm:$0xff] %v17848_v13 }
 0x762   :  { %7426 = vmatpush2.bf16.msra.mxu1 %v17816_v4  ;;  %7467 = vmatpush2.bf16.msra.mxu0 %v17818_v63  ;;  %v6651_v63 = vld [vmem:[%s19610_s6 + $0x2f0] sm:$0xff]  ;;  %20294 = vst [vmem:[#allocation68_spill] sm:$0xff] %v17864_v1  ;;  %20299 = vst [vmem:[#allocation65_spill] sm:$0xff] %v17890_v60 }
 0x763   :  { %7427 = vmatprep.subr.bf16.mxu1 %v17822_v53  ;;  %7468 = vmatprep.subr.bf16.mxu0 %v17824_v50  ;;  %v17870_v50 = vcombine.high %v6647_v22, %v6651_v63  ;;  %v17872_v53 = vcombine.high %v6648_v2, %v6652_v28  ;;  %v6639_v4 = vld [vmem:[%s19610_s6 + $0x290] sm:$0xff]  ;;  %v17888_v12 = vcombine.low %v6647_v22, %v6651_v63  ;;  %v6632_v22 = vld [vmem:[%s19610_s6 + $0x258] sm:$0xff] }
 0x764   :  { %v6636_v63 = vld [vmem:[%s19610_s6 + $0x278] sm:$0xff]  ;;  %v17914_v28 = vcombine.low %v6640_v15, %v6644_v40 }
 0x765   :  { %20296 = vst [vmem:[#allocation70_spill] sm:$0xff] %v17870_v50  ;;  %20297 = vst [vmem:[#allocation63_spill] sm:$0xff] %v17872_v53 }
 0x766   :  { %7428 = vmatpush2.bf16.msra.mxu1 %v17840_v35  ;;  %7469 = vmatpush2.bf16.msra.mxu0 %v17842_v52  ;;  %v6643_v52 = vld [vmem:[%s19610_s6 + $0x2b0] sm:$0xff]  ;;  %20298 = vst [vmem:[#allocation72_spill] sm:$0xff] %v17888_v12 }
 0x767   :  { %7429 = vmatprep.subr.bf16.mxu1 %v17846_v38  ;;  %7470 = vmatprep.subr.bf16.mxu0 %v17848_v13  ;;  %v17894_v13 = vcombine.high %v6639_v4, %v6643_v52  ;;  %v17896_v38 = vcombine.high %v6640_v15, %v6644_v40  ;;  %v6631_v35 = vld [vmem:[%s19610_s6 + $0x250] sm:$0xff]  ;;  %v17912_v2 = vcombine.low %v6639_v4, %v6643_v52  ;;  %v6624_v4 = vld [vmem:[%s19610_s6 + $0x218] sm:$0xff] }
 0x768   :  { %v6628_v52 = vld [vmem:[%s19610_s6 + $0x238] sm:$0xff]  ;;  %v17938_v40 = vcombine.low %v6632_v22, %v6636_v63 }
 0x769   :  { %20300 = vst [vmem:[#allocation67_spill] sm:$0xff] %v17894_v13  ;;  %20301 = vst [vmem:[#allocation69_spill] sm:$0xff] %v17896_v38 }
 0x76a   :  { %7430 = vmatpush2.bf16.msra.mxu1 %v17864_v1  ;;  %7471 = vmatpush2.bf16.msra.mxu0 %v17866_v5  ;;  %v6635_v5 = vld [vmem:[%s19610_s6 + $0x270] sm:$0xff]  ;;  %20302 = vst [vmem:[#allocation71_spill] sm:$0xff] %v17912_v2 }
 0x76b   :  { %7431 = vmatprep.subr.bf16.mxu1 %v17870_v50  ;;  %7472 = vmatprep.subr.bf16.mxu0 %v17872_v53  ;;  %v17918_v53 = vcombine.high %v6631_v35, %v6635_v5  ;;  %v17920_v50 = vcombine.high %v6632_v22, %v6636_v63  ;;  %v6623_v1 = vld [vmem:[%s19610_s6 + $0x210] sm:$0xff]  ;;  %v17936_v15 = vcombine.low %v6631_v35, %v6635_v5 }
 0x76c   :  { %v20325_v35 = vld [vmem:[#allocation24_spill] sm:$0xff] }
 0x76e   :  { %7432 = vmatpush2.bf16.msra.mxu1 %v17888_v12  ;;  %7473 = vmatpush2.bf16.msra.mxu0 %v17890_v60  ;;  %v6627_v60 = vld [vmem:[%s19610_s6 + $0x230] sm:$0xff] }
 0x76f   :  { %7433 = vmatprep.subr.bf16.mxu1 %v17894_v13  ;;  %7474 = vmatprep.subr.bf16.mxu0 %v17896_v38  ;;  %v17942_v38 = vcombine.high %v6623_v1, %v6627_v60  ;;  %v17944_v13 = vcombine.high %v6624_v4, %v6628_v52  ;;  %v17948_v12 = vcombine.low %v6623_v1, %v6627_v60 }
 0x772   :  { %7434 = vmatpush2.bf16.msra.mxu1 %v17912_v2  ;;  %7475 = vmatpush2.bf16.msra.mxu0 %v17914_v28  ;;  %v17950_v2 = vcombine.low %v6624_v4, %v6628_v52  ;;  %v20326_v4 = vld [vmem:[#allocation25_spill] sm:$0xff]  ;;  %v20327_v52 = vld [vmem:[#allocation26_spill] sm:$0xff] }
 0x773   :  { %7435 = vmatprep.subr.bf16.mxu1 %v17918_v53  ;;  %7476 = vmatprep.subr.bf16.mxu0 %v17920_v50 }
 0x776   :  { %7436 = vmatpush2.bf16.msra.mxu1 %v17936_v15  ;;  %7477 = vmatpush2.bf16.msra.mxu0 %v17938_v40 }
 0x777   :  { %7437 = vmatprep.subr.bf16.mxu1 %v17942_v38  ;;  %7478 = vmatprep.subr.bf16.mxu0 %v17944_v13 }
 0x77a   :  { %7438 = vmatpush2.bf16.msra.mxu1 %v17948_v12  ;;  %7479 = vmatpush2.bf16.msra.mxu0 %v17950_v2 }
 0x77b   :  { %8407 = vmatprep.subr.bf16.mxu0 %v17202_v57  ;;  %v7654_v57 = vld [vmem:[%s19610_s6 + $0x1c0] sm:$0xff] }
 0x77d   :  { %7440 = vmatmul.mubr.bf16.vlgmr.msra.gmra.mxu1 %v17602_v17  ;;  %7481 = vmatmul.mubr.bf16.vlgmr.msra.gmra.mxu0 %v17602_v17 }
 0x77e   :  { %8408 = vmatpush1.bf16.msra.mxu0 %v17204_v58  ;;  %v7658_v58 = vld [vmem:[%s19610_s6 + $0x1e0] sm:$0xff] }
 0x77f   :  { %8409 = vmatprep.subr.bf16.mxu0 %v17214_v55  ;;  %v17997_v55 = vcombine.high %v7654_v57, %v7658_v58 }
 0x781   :  { %8366 = vmatprep.subr.bf16.mxu1 %v17997_v55 }
 0x782   :  { %8410 = vmatpush1.bf16.msra.mxu0 %v17216_v29  ;;  %v17999_v29 = vcombine.low %v7654_v57, %v7658_v58 }
 0x783   :  { %8411 = vmatprep.subr.bf16.mxu0 %v17238_v54  ;;  %v7650_v54 = vld [vmem:[%s19610_s6 + $0x1a0] sm:$0xff] }
 0x784   :  { %8367 = vmatpush1.bf16.msra.mxu1 %v17999_v29 }
 0x786   :  { %8412 = vmatpush1.bf16.msra.mxu0 %v17236_v44  ;;  %v7646_v44 = vld [vmem:[%s19610_s6 + $0x180] sm:$0xff] }
 0x787   :  { %8413 = vmatprep.subr.bf16.mxu0 %v17262_v10  ;;  %v18011_v10 = vcombine.low %v7646_v44, %v7650_v54 }
 0x78a   :  { %8414 = vmatpush1.bf16.msra.mxu0 %v17260_v0  ;;  %v18009_v0 = vcombine.high %v7646_v44, %v7650_v54 }
 0x78b   :  { %8415 = vmatprep.subr.bf16.mxu0 %v17286_v27  ;;  %v20304_v27 = vld [vmem:[#allocation81_spill] sm:$0xff] }
 0x78c   :  { %8368 = vmatprep.subr.bf16.mxu1 %v18009_v0 }
 0x78d   :  { %8369 = vmatpush1.bf16.msra.mxu1 %v18011_v10 }
 0x78e   :  { %8416 = vmatpush1.bf16.msra.mxu0 %v17284_v26  ;;  %8370 = vmatprep.subr.bf16.mxu1 %v17229_v16  ;;  %v20303_v26 = vld [vmem:[#allocation75_spill] sm:$0xff]  ;;  %v20310_v16 = vld [vmem:[#allocation8_spill] sm:$0xff] }
 0x78f   :  { %8417 = vmatprep.subr.bf16.mxu0 %v17310_v3  ;;  %v20306_v3 = vld [vmem:[#allocation82_spill] sm:$0xff] }
 0x791   :  { %8371 = vmatpush1.bf16.msra.mxu1 %v17234_v30  ;;  %v20311_v30 = vld [vmem:[#allocation10_spill] sm:$0xff] }
 0x792   :  { %8418 = vmatpush1.bf16.msra.mxu0 %v17308_v48  ;;  %8372 = vmatprep.subr.bf16.mxu1 %v17253_v11  ;;  %v20305_v48 = vld [vmem:[#allocation76_spill] sm:$0xff]  ;;  %v20312_v11 = vld [vmem:[#allocation11_spill] sm:$0xff] }
 0x793   :  { %8419 = vmatprep.subr.bf16.mxu0 %v17334_v36  ;;  %v20308_v36 = vld [vmem:[#allocation7_spill] sm:$0xff] }
 0x795   :  { %8373 = vmatpush1.bf16.msra.mxu1 %v17258_v18  ;;  %v20313_v18 = vld [vmem:[#allocation12_spill] sm:$0xff] }
 0x796   :  { %8420 = vmatpush1.bf16.msra.mxu0 %v17332_v7  ;;  %8374 = vmatprep.subr.bf16.mxu1 %v20303_v26  ;;  %v20307_v7 = vld [vmem:[#allocation78_spill] sm:$0xff] }
 0x797   :  { %8421 = vmatprep.subr.bf16.mxu0 %v17364_v51  ;;  %v20314_v51 = vld [vmem:[#allocation14_spill] sm:$0xff] }
 0x799   :  { %8375 = vmatpush1.bf16.msra.mxu1 %v20304_v27 }
 0x79a   :  { %8422 = vmatpush1.bf16.msra.mxu0 %v17362_v6  ;;  %8376 = vmatprep.subr.bf16.mxu1 %v20305_v48  ;;  %v20309_v6 = vld [vmem:[#allocation9_spill] sm:$0xff] }
 0x79b   :  { %8423 = vmatprep.subr.bf16.mxu0 %v17378_v41  ;;  %v20315_v41 = vld [vmem:[#allocation13_spill] sm:$0xff] }
 0x79d   :  { %8377 = vmatpush1.bf16.msra.mxu1 %v20306_v3 }
 0x79e   :  { %8424 = vmatpush2.bf16.msra.mxu0 %v17395_v34  ;;  %8378 = vmatprep.subr.bf16.mxu1 %v20307_v7  ;;  %v20316_v34 = vld [vmem:[#allocation15_spill] sm:$0xff] }
 0x79f   :  { %8425 = vmatprep.subr.bf16.mxu0 %v17400_v45  ;;  %v20317_v45 = vld [vmem:[#allocation16_spill] sm:$0xff] }
 0x7a1   :  { %8379 = vmatpush1.bf16.msra.mxu1 %v20308_v36 }
 0x7a2   :  { %8426 = vmatpush2.bf16.msra.mxu0 %v17419_v39  ;;  %8380 = vmatprep.subr.bf16.mxu1 %v20309_v6  ;;  %v20319_v39 = vld [vmem:[#allocation18_spill] sm:$0xff] }
 0x7a3   :  { %8427 = vmatprep.subr.bf16.mxu0 %v17424_v25  ;;  %v20320_v25 = vld [vmem:[#allocation19_spill] sm:$0xff] }
 0x7a5   :  { %8381 = vmatpush1.bf16.msra.mxu1 %v20310_v16 }
 0x7a6   :  { %8428 = vmatpush2.bf16.msra.mxu0 %v17443_v42  ;;  %8382 = vmatprep.subr.bf16.mxu1 %v20311_v30  ;;  %v20322_v42 = vld [vmem:[#allocation21_spill] sm:$0xff] }
 0x7a7   :  { %8429 = vmatprep.subr.bf16.mxu0 %v17448_v62 }
 0x7a9   :  { %8383 = vmatpush2.bf16.msra.mxu1 %v20312_v11  ;;  %v7491_v11 = vld [vmem:[#allocation2 + $0x4] ss:$8 sm:$0xf0] }
 0x7aa   :  { %8430 = vmatpush2.bf16.msra.mxu0 %v17467_v61  ;;  %8384 = vmatprep.subr.bf16.mxu1 %v20313_v18  ;;  %v20323_v61 = vld [vmem:[#allocation22_spill] sm:$0xff] }
 0x7ab   :  { %8431 = vmatprep.subr.bf16.mxu0 %v17472_v47 }
 0x7ad   :  { %8385 = vmatpush2.bf16.msra.mxu1 %v20314_v51 }
 0x7ae   :  { %8432 = vmatpush2.bf16.msra.mxu0 %v17491_v46  ;;  %8386 = vmatprep.subr.bf16.mxu1 %v20315_v41  ;;  %v7490_v41 = vld [vmem:[#allocation2 + $0x4] ss:$8 sm:$0xf] }
 0x7af   :  { %8433 = vmatprep.subr.bf16.mxu0 %v17496_v23 }
 0x7b1   :  { %8387 = vmatpush2.bf16.msra.mxu1 %v20316_v34  ;;  %v7492_v34 = vor.u32 %v7491_v11, %v7490_v41  ;;  %v20344_v11 = vld [vmem:[#allocation38_spill] sm:$0xff]  ;;  %v20347_v41 = vld [vmem:[#allocation48_spill] sm:$0xff] }
 0x7b2   :  { %8434 = vmatpush2.bf16.msra.mxu0 %v17515_v43  ;;  %8388 = vmatprep.subr.bf16.mxu1 %v20317_v45 }
 0x7b3   :  { %8435 = vmatprep.subr.bf16.mxu0 %v17520_v20 }
 0x7b6   :  { %8436 = vmatpush2.bf16.msra.mxu0 %v17539_v49  ;;  %v20321_v49 = vld [vmem:[#allocation20_spill] sm:$0xff] }
 0x7b7   :  { %8437 = vmatprep.subr.bf16.mxu0 %v17544_v56  ;;  %v20318_v56 = vld [vmem:[#allocation17_spill] sm:$0xff] }
 0x7b8   :  { %8389 = vmatpush2.bf16.msra.mxu1 %v20318_v56 }
 0x7b9   :  { %8390 = vmatprep.subr.bf16.mxu1 %v20319_v39 }
 0x7ba   :  { %8438 = vmatpush2.bf16.msra.mxu0 %v17551_v33  ;;  %v20324_v33 = vld [vmem:[#allocation23_spill] sm:$0xff] }
 0x7bb   :  { %8489 = vmatprep.subr.bf16.mxu0 %v17576_v14 }
 0x7bc   :  { %8391 = vmatpush2.bf16.msra.mxu1 %v20320_v25 }
 0x7bd   :  { %8392 = vmatprep.subr.bf16.mxu1 %v20321_v49 }
 0x7c0   :  { %8393 = vmatpush2.bf16.msra.mxu1 %v20322_v42 }
 0x7c1   :  { %8394 = vmatprep.subr.bf16.mxu1 %v20323_v61 }
 0x7c4   :  { %8395 = vmatpush2.bf16.msra.mxu1 %v20324_v33 }
 0x7c5   :  { %8396 = vmatprep.subr.bf16.mxu1 %v20325_v35 }
 0x7c8   :  { %8397 = vmatpush2.bf16.msra.mxu1 %v20326_v4 }
 0x7c9   :  { %8448 = vmatprep.subr.bf16.mxu1 %v20327_v52 }
 0x7fd   :  { %v7359_v62 = vpop.f32.mrf.mxu1  ;;  %v7400_v20 = vpop.f32.mrf.mxu0 }
 0x7ff   :  { %v7361_v47 = vpop.f32.mrf.mxu1  ;;  %v7402_v46 = vpop.f32.mrf.mxu0 }
 0x800   :  { %v7501_v23 = vcombine.low %v7359_v62, %v7361_v47  ;;  %v7502_v43 = vcombine.low %v7400_v20, %v7402_v46 }
 0x801   :  { %v7363_v14 = vpop.f32.mrf.mxu1  ;;  %v7404_v17 = vpop.f32.mrf.mxu0 }
 0x802   :  { %v7511_v1 = vrot.slane %v7501_v23, %v16173_v32  ;;  %v7518_v5 = vrot.slane %v7502_v43, %v16173_v32 }
 0x803   :  { %v7364_v60 = vpop.f32.mrf.mxu1  ;;  %v7405_v22 = vpop.f32.mrf.mxu0 }
 0x804   :  { %v7533_v63 = vcombine.low %v7511_v1, %v7518_v5 }
 0x806   :  { %v7541_v18 = vrot.slane %v7533_v63, %v16173_v32 }
 0x83d   :  { %v7441_v57 = vpop.f32.mrf.mxu1  ;;  %v7482_v58 = vpop.f32.mrf.mxu0 }
 0x83f   :  { %v7443_v44 = vpop.f32.mrf.mxu1  ;;  %v7484_v54 = vpop.f32.mrf.mxu0 }
 0x840   :  { %v7503_v26 = vcombine.low %v7441_v57, %v7443_v44  ;;  %v7504_v27 = vcombine.low %v7482_v58, %v7484_v54  ;;  %v20329_v54 = vld [vmem:[#allocation28_spill] sm:$0xff] }
 0x841   :  { %v7445_v48 = vpop.f32.mrf.mxu1  ;;  %v7486_v3 = vpop.f32.mrf.mxu0 }
 0x842   :  { %v7525_v7 = vrot.slane %v7503_v26, %v16173_v32  ;;  %v7532_v36 = vrot.slane %v7504_v27, %v16173_v32  ;;  %v20330_v26 = vld [vmem:[#allocation29_spill] sm:$0xff]  ;;  %v20331_v27 = vld [vmem:[#allocation30_spill] sm:$0xff]  ;;  %v20335_v3 = vld [vmem:[#allocation32_spill] sm:$0xff] }
 0x843   :  { %v7446_v6 = vpop.f32.mrf.mxu1  ;;  %v7487_v16 = vpop.f32.mrf.mxu0  ;;  %v20332_v48 = vld [vmem:[#allocation6_spill] sm:$0xff] }
 0x844   :  { %v7534_v30 = vcombine.low %v7525_v7, %v7532_v36  ;;  %v20339_v7 = vld [vmem:[#allocation40_spill] sm:$0xff]  ;;  %v20341_v6 = vld [vmem:[#allocation42_spill] sm:$0xff]  ;;  %v20342_v16 = vld [vmem:[#allocation37_spill] sm:$0xff] }
 0x845   :  { %v20340_v36 = vld [vmem:[#allocation36_spill] sm:$0xff] }
 0x846   :  { %v7548_v51 = vrot.slane %v7534_v30, %v16173_v32  ;;  %v20343_v30 = vld [vmem:[#allocation44_spill] sm:$0xff] }
 0x848   :  { %v7549_v45 = vcombine.low %v7541_v18, %v7548_v51  ;;  %v20345_v18 = vld [vmem:[#allocation46_spill] sm:$0xff]  ;;  %v20346_v51 = vld [vmem:[#allocation39_spill] sm:$0xff] }
 0x84a   :  { %v7551_v56 = vadd.f32 %v7549_v45, %v7492_v34  ;;  %v20348_v34 = vld [vmem:[#allocation41_spill] sm:$0xff]  ;;  %v20349_v45 = vld [vmem:[#allocation50_spill] sm:$0xff] }
 0x84c   :  { %v13160_v39 = vmul.f32 -1.442695, %v7551_v56  ;;  %v7559_v25 = vrot.slane %v7551_v56, 2  ;;  %v7570_v42 = vrot.slane %v7551_v56, 6  ;;  %v7567_v61 = vrot.slane %v7551_v56, 4  ;;  %v20350_v56 = vld [vmem:[#allocation43_spill] sm:$0xff] }
 0x84e   :  { %14154 = vpow2.f32 %v13160_v39  ;;  %v13161_v49 = vmul.f32 -1.442695, %v7559_v25  ;;  %v13162_v62 = vmul.f32 -1.442695, %v7570_v42  ;;  %v20351_v39 = vld [vmem:[#allocation52_spill] sm:$0xff]  ;;  %v20352_v25 = vld [vmem:[#allocation45_spill] sm:$0xff] }
 0x84f   :  { %v20354_v42 = vld [vmem:[#allocation47_spill] sm:$0xff] }
 0x850   :  { %14156 = vpow2.f32 %v13161_v49  ;;  %v20353_v49 = vld [vmem:[#allocation54_spill] sm:$0xff] }
 0x851   :  { %14158 = vpow2.f32 %v13162_v62  ;;  %v20355_v62 = vld [vmem:[#allocation56_spill] sm:$0xff] }
 0x85b   :  { %v14155_v20 = vpop.eup %14154 }
 0x85c   :  { %v7555_v47 = vadd.f32 1.0, %v14155_v20  ;;  %v20356_v20 = vld [vmem:[#allocation49_spill] sm:$0xff] }
 0x85d   :  { %v14157_v46 = vpop.eup %14156 }
 0x85e   :  { %14160 = vrcp.f32 %v7555_v47  ;;  %v7564_v23 = vadd.f32 1.0, %v14157_v46  ;;  %v14159_v43 = vpop.eup %14158  ;;  %v20358_v47 = vld [vmem:[#allocation51_spill] sm:$0xff]  ;;  %v20359_v46 = vld [vmem:[#allocation60_spill] sm:$0xff] }
 0x85f   :  { %14162 = vtanh.f32 %v7567_v61  ;;  %v7575_v35 = vadd.f32 1.0, %v14159_v43  ;;  %v20357_v61 = vld [vmem:[#allocation58_spill] sm:$0xff] }
 0x860   :  { %14164 = vrcp.f32 %v7564_v23  ;;  %v20360_v23 = vld [vmem:[#allocation53_spill] sm:$0xff]  ;;  %v20361_v43 = vld [vmem:[#allocation62_spill] sm:$0xff] }
 0x861   :  { %14166 = vrcp.f32 %v7575_v35  ;;  %v20365_v35 = vld [vmem:[#allocation66_spill] sm:$0xff] }
 0x86b   :  { %v14161_v33 = vpop.eup %14160 }
 0x86c   :  { %v14163_v14 = vpop.eup %14162 }
 0x86d   :  { %v14165_v17 = vpop.eup %14164  ;;  %v7579_v5 = vmul.f32 %v14163_v14, %v14161_v33  ;;  %v20362_v33 = vld [vmem:[#allocation55_spill] sm:$0xff]  ;;  %v20363_v14 = vld [vmem:[#allocation64_spill] sm:$0xff] }
 0x86e   :  { %v7578_v1 = vmul.f32 %v14165_v17, %v17585_v59  ;;  %v14167_v22 = vpop.eup %14166  ;;  %v20328_v59 = vld [vmem:[#allocation27_spill] sm:$0xff]  ;;  %v20364_v17 = vld [vmem:[#allocation57_spill] sm:$0xff] }
 0x870   :  { %v18051_v60 = vadd.f32 %v7579_v5, %v7578_v1  ;;  %v20366_v1 = vld [vmem:[#allocation59_spill] sm:$0xff]  ;;  %v20367_v5 = vld [vmem:[#allocation68_spill] sm:$0xff] }
 0x872   :  { %14168 = vtanh.f32 %v18051_v60 }
 0x87f   :  { %v14169_v63 = vpop.eup %14168 }
 0x880   :  { %v7582_v4 = vmul.f32 %v14169_v63, %v14167_v22  ;;  %v20368_v22 = vld [vmem:[#allocation61_spill] sm:$0xff]  ;;  %v20369_v63 = vld [vmem:[#allocation70_spill] sm:$0xff] }
 0x882   :  { %7583 = vst [vmem:[#allocation3 + $0x4] sm:$0x1] %v7582_v4  ;;  %v7588_v52 = vrot.slane %v7582_v4, %v20030_v8  ;;  %v7594_v57 = vrot.slane %v7582_v4, %v20031_v19  ;;  %v20370_v4 = vld [vmem:[#allocation63_spill] sm:$0xff] }
 0x884   :  { %7590 = vst [vmem:[#allocation3 + $0xb] sm:$0x1] %v7588_v52  ;;  %v7597_v58 = vpack.c.bf16 %v7588_v52, %v7588_v52  ;;  %v18056_v44 = vpack.c.bf16 %v7594_v57, %v7594_v57  ;;  %v20371_v52 = vld [vmem:[#allocation72_spill] sm:$0xff]  ;;  %v20372_v57 = vld [vmem:[#allocation65_spill] sm:$0xff] }
 0x886   :  { %8398 = vmatprep.mubr.bf16.mxu1 %v7597_v58  ;;  %8439 = vmatprep.mubr.bf16.mxu0 %v7597_v58 }
 0x887   :  { %8399 = vmatmul.mubr.bf16.vlgmr.msra.gmra.mxu1 %v18056_v44  ;;  %8440 = vmatmul.mubr.bf16.vlgmr.msra.gmra.mxu0 %v18056_v44 }
 0x888   :  { %8449 = vmatpush1.bf16.msra.mxu1 %v17572_v21  ;;  %8490 = vmatpush1.bf16.msra.mxu0 %v17574_v9  ;;  %v20333_v21 = vld [vmem:[#allocation5_spill] sm:$0xff]  ;;  %v20334_v9 = vld [vmem:[#allocation31_spill] sm:$0xff] }
 0x889   :  { %8480 = vmatprep.mubr.bf16.mxu1 %v7597_v58  ;;  %8521 = vmatprep.mubr.bf16.mxu0 %v7597_v58  ;;  %v20373_v58 = vld [vmem:[#allocation67_spill] sm:$0xff] }
 0x88a   :  { %8450 = vmatprep.subr.bf16.mxu1 %v17607_v24  ;;  %8491 = vmatprep.subr.bf16.mxu0 %v17609_v37  ;;  %v20336_v24 = vld [vmem:[#allocation33_spill] sm:$0xff]  ;;  %v20337_v37 = vld [vmem:[#allocation34_spill] sm:$0xff] }
 0x88c   :  { %8451 = vmatpush1.bf16.msra.mxu1 %v17624_v31  ;;  %8492 = vmatpush1.bf16.msra.mxu0 %v20328_v59  ;;  %v20338_v31 = vld [vmem:[#allocation35_spill] sm:$0xff]  ;;  %v20374_v59 = vld [vmem:[#allocation69_spill] sm:$0xff] }
 0x88d   :  { %8452 = vmatprep.subr.bf16.mxu1 %v20329_v54  ;;  %8493 = vmatprep.subr.bf16.mxu0 %v20330_v26  ;;  %v20375_v54 = vld [vmem:[#allocation71_spill] sm:$0xff] }
 0x890   :  { %8453 = vmatpush1.bf16.msra.mxu1 %v20331_v27  ;;  %8494 = vmatpush1.bf16.msra.mxu0 %v20332_v48  ;;  %v8671_v48 = vld [vmem:[%s19610_s6 + $0x100] sm:$0xff] }
 0x891   :  { %8454 = vmatprep.subr.bf16.mxu1 %v20333_v21  ;;  %8495 = vmatprep.subr.bf16.mxu0 %v20334_v9  ;;  %v8675_v21 = vld [vmem:[%s19610_s6 + $0x120] sm:$0xff]  ;;  %v8672_v9 = vld [vmem:[%s19610_s6 + $0x108] sm:$0xff] }
 0x894   :  { %8455 = vmatpush1.bf16.msra.mxu1 %v20335_v3  ;;  %8496 = vmatpush1.bf16.msra.mxu0 %v20336_v24  ;;  %v18185_v3 = vcombine.high %v8671_v48, %v8675_v21  ;;  %v8676_v24 = vld [vmem:[%s19610_s6 + $0x128] sm:$0xff] }
 0x895   :  { %8456 = vmatprep.subr.bf16.mxu1 %v20337_v37  ;;  %8497 = vmatprep.subr.bf16.mxu0 %v20338_v31  ;;  %v18190_v37 = vcombine.low %v8671_v48, %v8675_v21  ;;  %v18192_v31 = vcombine.low %v8672_v9, %v8676_v24 }
 0x898   :  { %8457 = vmatpush1.bf16.msra.mxu1 %v20339_v7  ;;  %8498 = vmatpush1.bf16.msra.mxu0 %v20340_v36  ;;  %v18194_v7 = vcombine.high %v8672_v9, %v8676_v24  ;;  %v8663_v36 = vld [vmem:[%s19610_s6 + $0xc0] sm:$0xff] }
 0x899   :  { %8458 = vmatprep.subr.bf16.mxu1 %v20341_v6  ;;  %8499 = vmatprep.subr.bf16.mxu0 %v20342_v16  ;;  %v8667_v6 = vld [vmem:[%s19610_s6 + $0xe0] sm:$0xff]  ;;  %v8664_v16 = vld [vmem:[%s19610_s6 + $0xc8] sm:$0xff] }
 0x89a   :  { %v8743_v9 = vld [vmem:[%s19610_s6 + $0x340] sm:$0xff] }
 0x89b   :  { %v8747_v24 = vld [vmem:[%s19610_s6 + $0x360] sm:$0xff] }
 0x89c   :  { %8459 = vmatpush1.bf16.msra.mxu1 %v20343_v30  ;;  %8500 = vmatpush1.bf16.msra.mxu0 %v20344_v11  ;;  %v18209_v30 = vcombine.high %v8663_v36, %v8667_v6  ;;  %v8668_v11 = vld [vmem:[%s19610_s6 + $0xe8] sm:$0xff] }
 0x89d   :  { %8460 = vmatprep.subr.bf16.mxu1 %v20345_v18  ;;  %8501 = vmatprep.subr.bf16.mxu0 %v20346_v51  ;;  %v18214_v18 = vcombine.low %v8663_v36, %v8667_v6  ;;  %v18216_v51 = vcombine.low %v8664_v16, %v8668_v11  ;;  %v8744_v36 = vld [vmem:[%s19610_s6 + $0x348] sm:$0xff] }
 0x89e   :  { %20376 = vst [vmem:[#allocation77_spill] sm:$0xff] %v18209_v30  ;;  %v8748_v6 = vld [vmem:[%s19610_s6 + $0x368] sm:$0xff] }
 0x89f   :  { %20377 = vst [vmem:[#allocation73_spill] sm:$0xff] %v18214_v18 }
 0x8a0   :  { %8461 = vmatpush1.bf16.msra.mxu1 %v20347_v41  ;;  %8502 = vmatpush1.bf16.msra.mxu0 %v20348_v34  ;;  %v18218_v41 = vcombine.high %v8664_v16, %v8668_v11  ;;  %v8655_v34 = vld [vmem:[%s19610_s6 + $0x80] sm:$0xff] }
 0x8a1   :  { %8462 = vmatprep.subr.bf16.mxu1 %v20349_v45  ;;  %8503 = vmatprep.subr.bf16.mxu0 %v20350_v56  ;;  %v8659_v45 = vld [vmem:[%s19610_s6 + $0xa0] sm:$0xff]  ;;  %v8656_v56 = vld [vmem:[%s19610_s6 + $0x88] sm:$0xff] }
 0x8a4   :  { %8463 = vmatpush1.bf16.msra.mxu1 %v20351_v39  ;;  %8504 = vmatpush1.bf16.msra.mxu0 %v20352_v25  ;;  %v18233_v39 = vcombine.high %v8655_v34, %v8659_v45  ;;  %v8660_v25 = vld [vmem:[%s19610_s6 + $0xa8] sm:$0xff] }
 0x8a5   :  { %8464 = vmatprep.subr.bf16.mxu1 %v20353_v49  ;;  %8505 = vmatprep.subr.bf16.mxu0 %v20354_v42  ;;  %v18238_v49 = vcombine.low %v8655_v34, %v8659_v45  ;;  %v18240_v42 = vcombine.low %v8656_v56, %v8660_v25  ;;  %v18353_v34 = vcombine.high %v8743_v9, %v8747_v24 }
 0x8a6   :  { %20378 = vst [vmem:[#allocation79_spill] sm:$0xff] %v18233_v39  ;;  %v18356_v45 = vcombine.high %v8744_v36, %v8748_v6 }
 0x8a7   :  { %20379 = vst [vmem:[#allocation74_spill] sm:$0xff] %v18238_v49  ;;  %20388 = vst [vmem:[#allocation8_spill] sm:$0xff] %v18353_v34 }
 0x8a8   :  { %8465 = vmatpush2.bf16.msra.mxu1 %v20355_v62  ;;  %8506 = vmatpush2.bf16.msra.mxu0 %v20356_v20  ;;  %v18242_v62 = vcombine.high %v8656_v56, %v8660_v25  ;;  %v8647_v20 = vld [vmem:[%s19610_s6 + $0x40] sm:$0xff] }
 0x8a9   :  { %8466 = vmatprep.subr.bf16.mxu1 %v20357_v61  ;;  %8507 = vmatprep.subr.bf16.mxu0 %v20358_v47  ;;  %v8651_v61 = vld [vmem:[%s19610_s6 + $0x60] sm:$0xff]  ;;  %v8648_v47 = vld [vmem:[%s19610_s6 + $0x48] sm:$0xff] }
 0x8aa   :  { %v8735_v56 = vld [vmem:[%s19610_s6 + $0x300] sm:$0xff] }
 0x8ab   :  { %v8739_v25 = vld [vmem:[%s19610_s6 + $0x320] sm:$0xff] }
 0x8ac   :  { %8467 = vmatpush2.bf16.msra.mxu1 %v20359_v46  ;;  %8508 = vmatpush2.bf16.msra.mxu0 %v20360_v23  ;;  %v18257_v46 = vcombine.high %v8647_v20, %v8651_v61  ;;  %v8652_v23 = vld [vmem:[%s19610_s6 + $0x68] sm:$0xff] }
 0x8ad   :  { %8468 = vmatprep.subr.bf16.mxu1 %v20361_v43  ;;  %8509 = vmatprep.subr.bf16.mxu0 %v20362_v33  ;;  %v18262_v43 = vcombine.low %v8647_v20, %v8651_v61  ;;  %v18264_v33 = vcombine.low %v8648_v47, %v8652_v23  ;;  %v8736_v20 = vld [vmem:[%s19610_s6 + $0x308] sm:$0xff] }
 0x8ae   :  { %20380 = vst [vmem:[#allocation80_spill] sm:$0xff] %v18257_v46  ;;  %v8740_v61 = vld [vmem:[%s19610_s6 + $0x328] sm:$0xff] }
 0x8af   :  { %20381 = vst [vmem:[#allocation75_spill] sm:$0xff] %v18262_v43 }
 0x8b0   :  { %8469 = vmatpush2.bf16.msra.mxu1 %v20363_v14  ;;  %8510 = vmatpush2.bf16.msra.mxu0 %v20364_v17  ;;  %v18266_v14 = vcombine.high %v8648_v47, %v8652_v23  ;;  %v8639_v17 = vld [vmem:[%s19610_s6] sm:$0xff]  ;;  %v18371_v47 = vcombine.low %v8743_v9, %v8747_v24  ;;  %v18375_v23 = vcombine.low %v8744_v36, %v8748_v6  ;;  %v8720_v9 = vld [vmem:[%s19610_s6 + $0x288] sm:$0xff] }
 0x8b1   :  { %8470 = vmatprep.subr.bf16.mxu1 %v20365_v35  ;;  %8511 = vmatprep.subr.bf16.mxu0 %v20366_v1  ;;  %v8643_v35 = vld [vmem:[%s19610_s6 + $0x20] sm:$0xff]  ;;  %v8640_v1 = vld [vmem:[%s19610_s6 + $0x8] sm:$0xff] }
 0x8b2   :  { %20389 = vst [vmem:[#allocation10_spill] sm:$0xff] %v18371_v47  ;;  %v8724_v24 = vld [vmem:[%s19610_s6 + $0x2a8] sm:$0xff] }
 0x8b4   :  { %8471 = vmatpush2.bf16.msra.mxu1 %v20367_v5  ;;  %8512 = vmatpush2.bf16.msra.mxu0 %v20368_v22  ;;  %v18281_v5 = vcombine.low %v8639_v17, %v8643_v35  ;;  %v18283_v22 = vcombine.high %v8639_v17, %v8643_v35  ;;  %v18377_v17 = vcombine.high %v8735_v56, %v8739_v25 }
 0x8b5   :  { %8472 = vmatprep.subr.bf16.mxu1 %v20369_v63  ;;  %8513 = vmatprep.subr.bf16.mxu0 %v20370_v4  ;;  %v8644_v63 = vld [vmem:[%s19610_s6 + $0x28] sm:$0xff]  ;;  %v8759_v4 = vld [vmem:[%s19610_s6 + $0x3c0] sm:$0xff]  ;;  %v18380_v35 = vcombine.high %v8736_v20, %v8740_v61 }
 0x8b6   :  { %20382 = vst [vmem:[#allocation81_spill] sm:$0xff] %v18281_v5  ;;  %20383 = vst [vmem:[#allocation76_spill] sm:$0xff] %v18283_v22 }
 0x8b7   :  { %20390 = vst [vmem:[#allocation11_spill] sm:$0xff] %v18377_v17 }
 0x8b8   :  { %8473 = vmatpush2.bf16.msra.mxu1 %v20371_v52  ;;  %8514 = vmatpush2.bf16.msra.mxu0 %v20372_v57  ;;  %v8763_v52 = vld [vmem:[%s19610_s6 + $0x3e0] sm:$0xff]  ;;  %v18294_v57 = vcombine.low %v8640_v1, %v8644_v63 }
 0x8b9   :  { %8474 = vmatprep.subr.bf16.mxu1 %v20373_v58  ;;  %8515 = vmatprep.subr.bf16.mxu0 %v20374_v59  ;;  %v18296_v58 = vcombine.high %v8640_v1, %v8644_v63  ;;  %v18298_v59 = vcombine.high %v8759_v4, %v8763_v52  ;;  %v8727_v1 = vld [vmem:[%s19610_s6 + $0x2c0] sm:$0xff] }
 0x8ba   :  { %v8731_v63 = vld [vmem:[%s19610_s6 + $0x2e0] sm:$0xff] }
 0x8bb   :  { %20384 = vst [vmem:[#allocation82_spill] sm:$0xff] %v18298_v59  ;;  %v18419_v36 = vcombine.low %v8727_v1, %v8731_v63 }
 0x8bc   :  { %8475 = vmatpush2.bf16.msra.mxu1 %v20375_v54  ;;  %8516 = vmatpush2.bf16.msra.mxu0 %v17914_v28  ;;  %v8760_v54 = vld [vmem:[%s19610_s6 + $0x3c8] sm:$0xff] }
 0x8bd   :  { %8476 = vmatprep.subr.bf16.mxu1 %v17918_v53  ;;  %8517 = vmatprep.subr.bf16.mxu0 %v17920_v50  ;;  %v8696_v53 = vld [vmem:[%s19610_s6 + $0x1c8] sm:$0xff]  ;;  %20393 = vst [vmem:[#allocation13_spill] sm:$0xff] %v18419_v36 }
 0x8be   :  { %v8700_v50 = vld [vmem:[%s19610_s6 + $0x1e8] sm:$0xff] }
 0x8c0   :  { %8477 = vmatpush2.bf16.msra.mxu1 %v17936_v15  ;;  %8518 = vmatpush2.bf16.msra.mxu0 %v17938_v40  ;;  %v8679_v40 = vld [vmem:[%s19610_s6 + $0x140] sm:$0xff] }
 0x8c1   :  { %8478 = vmatprep.subr.bf16.mxu1 %v17942_v38  ;;  %8519 = vmatprep.subr.bf16.mxu0 %v17944_v13  ;;  %v18134_v38 = vcombine.high %v8696_v53, %v8700_v50  ;;  %v18136_v13 = vcombine.low %v8696_v53, %v8700_v50  ;;  %v8764_v53 = vld [vmem:[%s19610_s6 + $0x3e8] sm:$0xff]  ;;  %v8751_v50 = vld [vmem:[%s19610_s6 + $0x380] sm:$0xff] }
 0x8c4   :  { %8479 = vmatpush2.bf16.msra.mxu1 %v17948_v12  ;;  %8520 = vmatpush2.bf16.msra.mxu0 %v17950_v2  ;;  %v8688_v12 = vld [vmem:[%s19610_s6 + $0x188] sm:$0xff] }
 0x8c5   :  { %9407 = vmatprep.subr.bf16.mxu1 %v17997_v55  ;;  %9448 = vmatprep.subr.bf16.mxu0 %v18134_v38  ;;  %v8692_v2 = vld [vmem:[%s19610_s6 + $0x1a8] sm:$0xff]  ;;  %v8683_v55 = vld [vmem:[%s19610_s6 + $0x160] sm:$0xff] }
 0x8c6   :  { %v18146_v28 = vcombine.high %v8688_v12, %v8692_v2  ;;  %v18148_v15 = vcombine.low %v8688_v12, %v8692_v2  ;;  %v18310_v12 = vcombine.high %v8760_v54, %v8764_v53  ;;  %v8755_v2 = vld [vmem:[%s19610_s6 + $0x3a0] sm:$0xff] }
 0x8c7   :  { %8481 = vmatmul.mubr.bf16.vlgmr.msra.gmra.mxu1 %v18056_v44  ;;  %8522 = vmatmul.mubr.bf16.vlgmr.msra.gmra.mxu0 %v18056_v44  ;;  %v18166_v44 = vcombine.low %v8679_v40, %v8683_v55  ;;  %v18329_v48 = vcombine.high %v8751_v50, %v8755_v2  ;;  %v18347_v16 = vcombine.low %v8751_v50, %v8755_v2 }
 0x8c8   :  { %9408 = vmatpush1.bf16.msra.mxu1 %v17999_v29  ;;  %9449 = vmatpush1.bf16.msra.mxu0 %v18136_v13  ;;  %v8680_v29 = vld [vmem:[%s19610_s6 + $0x148] sm:$0xff]  ;;  %v18401_v50 = vcombine.high %v8727_v1, %v8731_v63 }
 0x8c9   :  { %9409 = vmatprep.subr.bf16.mxu1 %v18009_v0  ;;  %9450 = vmatprep.subr.bf16.mxu0 %v18146_v28  ;;  %v18161_v0 = vcombine.high %v8679_v40, %v8683_v55  ;;  %v8752_v40 = vld [vmem:[%s19610_s6 + $0x388] sm:$0xff]  ;;  %20386 = vst [vmem:[#allocation7_spill] sm:$0xff] %v18329_v48  ;;  %20387 = vst [vmem:[#allocation9_spill] sm:$0xff] %v18347_v16 }
 0x8ca   :  { %v8756_v55 = vld [vmem:[%s19610_s6 + $0x3a8] sm:$0xff]  ;;  %20392 = vst [vmem:[#allocation14_spill] sm:$0xff] %v18401_v50 }
 0x8cb   :  { %v18332_v21 = vcombine.high %v8752_v40, %v8756_v55  ;;  %v18351_v11 = vcombine.low %v8752_v40, %v8756_v55  ;;  %v8719_v40 = vld [vmem:[%s19610_s6 + $0x280] sm:$0xff]  ;;  %v8712_v1 = vld [vmem:[%s19610_s6 + $0x248] sm:$0xff] }
 0x8cc   :  { %9410 = vmatpush1.bf16.msra.mxu1 %v18011_v10  ;;  %9451 = vmatpush1.bf16.msra.mxu0 %v18148_v15  ;;  %v8684_v10 = vld [vmem:[%s19610_s6 + $0x168] sm:$0xff]  ;;  %v8723_v55 = vld [vmem:[%s19610_s6 + $0x2a0] sm:$0xff] }
 0x8cd   :  { %v18168_v26 = vcombine.low %v8680_v29, %v8684_v10  ;;  %v18170_v27 = vcombine.high %v8680_v29, %v8684_v10  ;;  %9411 = vmatprep.subr.bf16.mxu1 %v18161_v0  ;;  %v18323_v29 = vcombine.low %v8759_v4, %v8763_v52  ;;  %v18327_v10 = vcombine.low %v8760_v54, %v8764_v53  ;;  %v8728_v4 = vld [vmem:[%s19610_s6 + $0x2c8] sm:$0xff] }
 0x8ce   :  { %v8732_v52 = vld [vmem:[%s19610_s6 + $0x2e8] sm:$0xff]  ;;  %v18395_v54 = vcombine.low %v8735_v56, %v8739_v25  ;;  %v18399_v53 = vcombine.low %v8736_v20, %v8740_v61  ;;  %v18425_v56 = vcombine.high %v8719_v40, %v8723_v55  ;;  %v18428_v25 = vcombine.high %v8720_v9, %v8724_v24  ;;  %v8711_v20 = vld [vmem:[%s19610_s6 + $0x240] sm:$0xff] }
 0x8cf   :  { %9452 = vmatprep.subr.bf16.mxu0 %v18170_v27  ;;  %20385 = vst [vmem:[#allocation78_spill] sm:$0xff] %v18323_v29  ;;  %v18404_v2 = vcombine.high %v8728_v4, %v8732_v52  ;;  %v18423_v6 = vcombine.low %v8728_v4, %v8732_v52  ;;  %v8715_v61 = vld [vmem:[%s19610_s6 + $0x260] sm:$0xff]  ;;  %v8716_v63 = vld [vmem:[%s19610_s6 + $0x268] sm:$0xff]  ;;  %v18443_v4 = vcombine.low %v8719_v40, %v8723_v55 }
 0x8d0   :  { %9412 = vmatpush1.bf16.msra.mxu1 %v18166_v44  ;;  %9453 = vmatpush1.bf16.msra.mxu0 %v18168_v26  ;;  %20391 = vst [vmem:[#allocation12_spill] sm:$0xff] %v18395_v54  ;;  %20394 = vst [vmem:[#allocation15_spill] sm:$0xff] %v18425_v56  ;;  %v18447_v52 = vcombine.low %v8720_v9, %v8724_v24  ;;  %v8707_v40 = vld [vmem:[%s19610_s6 + $0x220] sm:$0xff]  ;;  %v8704_v55 = vld [vmem:[%s19610_s6 + $0x208] sm:$0xff]  ;;  %v18467_v24 = vcombine.low %v8711_v20, %v8715_v61 }
 0x8d1   :  { %9413 = vmatprep.subr.bf16.mxu1 %v18185_v3  ;;  %9454 = vmatprep.subr.bf16.mxu0 %v18194_v7  ;;  %20395 = vst [vmem:[#allocation16_spill] sm:$0xff] %v18443_v4  ;;  %v8708_v9 = vld [vmem:[%s19610_s6 + $0x228] sm:$0xff] }
 0x8d2   :  { %20397 = vst [vmem:[#allocation18_spill] sm:$0xff] %v18467_v24 }
 0x8d4   :  { %9414 = vmatpush1.bf16.msra.mxu1 %v18190_v37  ;;  %9455 = vmatpush1.bf16.msra.mxu0 %v18192_v31 }
 0x8d5   :  { %9415 = vmatprep.subr.bf16.mxu1 %v18209_v30  ;;  %9456 = vmatprep.subr.bf16.mxu0 %v18218_v41 }
 0x8d8   :  { %9416 = vmatpush1.bf16.msra.mxu1 %v18214_v18  ;;  %9457 = vmatpush1.bf16.msra.mxu0 %v18216_v51 }
 0x8d9   :  { %9417 = vmatprep.subr.bf16.mxu1 %v18233_v39  ;;  %9458 = vmatprep.subr.bf16.mxu0 %v18242_v62 }
 0x8dc   :  { %9418 = vmatpush1.bf16.msra.mxu1 %v18238_v49  ;;  %9459 = vmatpush1.bf16.msra.mxu0 %v18240_v42  ;;  %v8531_v49 = vld [vmem:[#allocation2 + $0x5] ss:$8 sm:$0xf] }
 0x8dd   :  { %9419 = vmatprep.subr.bf16.mxu1 %v18257_v46  ;;  %9460 = vmatprep.subr.bf16.mxu0 %v18266_v14 }
 0x8e0   :  { %9420 = vmatpush1.bf16.msra.mxu1 %v18262_v43  ;;  %9461 = vmatpush1.bf16.msra.mxu0 %v18264_v33 }
 0x8e1   :  { %9421 = vmatprep.subr.bf16.mxu1 %v18283_v22  ;;  %9462 = vmatprep.subr.bf16.mxu0 %v18296_v58 }
 0x8e4   :  { %9422 = vmatpush1.bf16.msra.mxu1 %v18281_v5  ;;  %9463 = vmatpush1.bf16.msra.mxu0 %v18294_v57 }
 0x8e5   :  { %9423 = vmatprep.subr.bf16.mxu1 %v18298_v59  ;;  %9464 = vmatprep.subr.bf16.mxu0 %v18310_v12 }
 0x8e8   :  { %9424 = vmatpush2.bf16.msra.mxu1 %v18323_v29  ;;  %9465 = vmatpush2.bf16.msra.mxu0 %v18327_v10 }
 0x8e9   :  { %9425 = vmatprep.subr.bf16.mxu1 %v18329_v48  ;;  %9466 = vmatprep.subr.bf16.mxu0 %v18332_v21 }
 0x8ec   :  { %9426 = vmatpush2.bf16.msra.mxu1 %v18347_v16  ;;  %9467 = vmatpush2.bf16.msra.mxu0 %v18351_v11  ;;  %v18476_v16 = vcombine.high %v8704_v55, %v8708_v9 }
 0x8ed   :  { %9427 = vmatprep.subr.bf16.mxu1 %v18353_v34  ;;  %9468 = vmatprep.subr.bf16.mxu0 %v18356_v45 }
 0x8f0   :  { %9428 = vmatpush2.bf16.msra.mxu1 %v18371_v47  ;;  %9469 = vmatpush2.bf16.msra.mxu0 %v18375_v23  ;;  %v18471_v47 = vcombine.low %v8712_v1, %v8716_v63 }
 0x8f1   :  { %9429 = vmatprep.subr.bf16.mxu1 %v18377_v17  ;;  %9470 = vmatprep.subr.bf16.mxu0 %v18380_v35  ;;  %v8703_v17 = vld [vmem:[%s19610_s6 + $0x200] sm:$0xff] }
 0x8f2   :  { %v18473_v34 = vcombine.high %v8703_v17, %v8707_v40 }
 0x8f4   :  { %9430 = vmatpush2.bf16.msra.mxu1 %v18395_v54  ;;  %9471 = vmatpush2.bf16.msra.mxu0 %v18399_v53  ;;  %v18452_v54 = vcombine.high %v8712_v1, %v8716_v63  ;;  %20398 = vst [vmem:[#allocation19_spill] sm:$0xff] %v18473_v34  ;;  %v18483_v1 = vcombine.low %v8704_v55, %v8708_v9 }
 0x8f5   :  { %9431 = vmatprep.subr.bf16.mxu1 %v18401_v50  ;;  %9472 = vmatprep.subr.bf16.mxu0 %v18404_v2  ;;  %v18449_v50 = vcombine.high %v8711_v20, %v8715_v61  ;;  %v18479_v20 = vcombine.low %v8703_v17, %v8707_v40  ;;  %v8701_v17 = vld [vmem:[%s19610_s6 + $0x1f0] sm:$0xff] }
 0x8f7   :  { %20396 = vst [vmem:[#allocation17_spill] sm:$0xff] %v18449_v50  ;;  %20399 = vst [vmem:[#allocation20_spill] sm:$0xff] %v18479_v20 }
 0x8f8   :  { %9432 = vmatpush2.bf16.msra.mxu1 %v18419_v36  ;;  %9473 = vmatpush2.bf16.msra.mxu0 %v18423_v6 }
 0x8f9   :  { %9433 = vmatprep.subr.bf16.mxu1 %v18425_v56  ;;  %9474 = vmatprep.subr.bf16.mxu0 %v18428_v25 }
 0x8fc   :  { %9434 = vmatpush2.bf16.msra.mxu1 %v18443_v4  ;;  %9475 = vmatpush2.bf16.msra.mxu0 %v18447_v52 }
 0x8fd   :  { %9435 = vmatprep.subr.bf16.mxu1 %v18449_v50  ;;  %9476 = vmatprep.subr.bf16.mxu0 %v18452_v54 }
 0x900   :  { %9436 = vmatpush2.bf16.msra.mxu1 %v18467_v24  ;;  %9477 = vmatpush2.bf16.msra.mxu0 %v18471_v47 }
 0x901   :  { %9437 = vmatprep.subr.bf16.mxu1 %v18473_v34  ;;  %9478 = vmatprep.subr.bf16.mxu0 %v18476_v16 }
 0x904   :  { %9438 = vmatpush2.bf16.msra.mxu1 %v18479_v20  ;;  %9479 = vmatpush2.bf16.msra.mxu0 %v18483_v1 }
 0x947   :  { %v8400_v56 = vpop.f32.mrf.mxu1  ;;  %v8441_v36 = vpop.f32.mrf.mxu0 }
 0x949   :  { %v8402_v48 = vpop.f32.mrf.mxu1  ;;  %v8443_v29 = vpop.f32.mrf.mxu0 }
 0x94a   :  { %v8542_v59 = vcombine.low %v8400_v56, %v8402_v48  ;;  %v8543_v4 = vcombine.low %v8441_v36, %v8443_v29 }
 0x94b   :  { %v8404_v61 = vpop.f32.mrf.mxu1  ;;  %v8445_v5 = vpop.f32.mrf.mxu0 }
 0x94c   :  { %v8552_v63 = vrot.slane %v8542_v59, %v16173_v32  ;;  %v8559_v50 = vrot.slane %v8543_v4, %v16173_v32  ;;  %v8697_v5 = vld [vmem:[%s19610_s6 + $0x1d0] sm:$0xff]  ;;  %v8698_v59 = vld [vmem:[%s19610_s6 + $0x1d8] sm:$0xff] }
 0x94d   :  { %v8405_v48 = vpop.f32.mrf.mxu1  ;;  %v8446_v29 = vpop.f32.mrf.mxu0  ;;  %v18499_v56 = vcombine.high %v8697_v5, %v8701_v17  ;;  %v18504_v4 = vcombine.low %v8697_v5, %v8701_v17 }
 0x94e   :  { %v8574_v36 = vcombine.low %v8552_v63, %v8559_v50  ;;  %v8702_v50 = vld [vmem:[%s19610_s6 + $0x1f8] sm:$0xff] }
 0x94f   :  { %20400 = vst [vmem:[#allocation21_spill] sm:$0xff] %v18499_v56  ;;  %v18506_v40 = vcombine.low %v8698_v59, %v8702_v50  ;;  %v18508_v55 = vcombine.high %v8698_v59, %v8702_v50  ;;  %9489 = vmatprep.subr.bf16.mxu1 %v18499_v56  ;;  %v8532_v50 = vld [vmem:[#allocation2 + $0x5] ss:$8 sm:$0xf0] }
 0x950   :  { %v8582_v56 = vrot.slane %v8574_v36, %v16173_v32  ;;  %v8533_v39 = vor.u32 %v8532_v50, %v8531_v49 }
 0x951   :  { %9530 = vmatprep.subr.bf16.mxu0 %v18508_v55 }
 0x987   :  { %v8482_v9 = vpop.f32.mrf.mxu1  ;;  %v8523_v61 = vpop.f32.mrf.mxu0 }
 0x989   :  { %v8484_v63 = vpop.f32.mrf.mxu1  ;;  %v8525_v48 = vpop.f32.mrf.mxu0 }
 0x98a   :  { %v8544_v29 = vcombine.low %v8482_v9, %v8484_v63  ;;  %v8545_v20 = vcombine.low %v8523_v61, %v8525_v48 }
 0x98b   :  { %v8486_v34 = vpop.f32.mrf.mxu1  ;;  %v8527_v24 = vpop.f32.mrf.mxu0 }
 0x98c   :  { %v8566_v22 = vrot.slane %v8544_v29, %v16173_v32  ;;  %v8573_v5 = vrot.slane %v8545_v20, %v16173_v32 }
 0x98d   :  { %v8487_v17 = vpop.f32.mrf.mxu1  ;;  %v8528_v43 = vpop.f32.mrf.mxu0 }
 0x98e   :  { %v8575_v59 = vcombine.low %v8566_v22, %v8573_v5 }
 0x990   :  { %v8589_v46 = vrot.slane %v8575_v59, %v16173_v32 }
 0x992   :  { %v8590_v18 = vcombine.low %v8582_v56, %v8589_v46 }
 0x994   :  { %v8592_v30 = vadd.f32 %v8590_v18, %v8533_v39 }
 0x996   :  { %v13291_v9 = vmul.f32 -1.442695, %v8592_v30  ;;  %v8600_v61 = vrot.slane %v8592_v30, 2  ;;  %v8611_v24 = vrot.slane %v8592_v30, 6  ;;  %v8608_v48 = vrot.slane %v8592_v30, 4 }
 0x998   :  { %14170 = vpow2.f32 %v13291_v9  ;;  %v13292_v34 = vmul.f32 -1.442695, %v8600_v61  ;;  %v13293_v63 = vmul.f32 -1.442695, %v8611_v24  ;;  %v8690_v24 = vld [vmem:[%s19610_s6 + $0x198] sm:$0xff] }
 0x99a   :  { %14172 = vpow2.f32 %v13292_v34  ;;  %v8689_v34 = vld [vmem:[%s19610_s6 + $0x190] sm:$0xff] }
 0x99b   :  { %14174 = vpow2.f32 %v13293_v63  ;;  %v8694_v63 = vld [vmem:[%s19610_s6 + $0x1b8] sm:$0xff] }
 0x9a5   :  { %v14171_v20 = vpop.eup %14170 }
 0x9a6   :  { %v8596_v43 = vadd.f32 1.0, %v14171_v20 }
 0x9a7   :  { %v14173_v22 = vpop.eup %14172 }
 0x9a8   :  { %14176 = vrcp.f32 %v8596_v43  ;;  %v8605_v36 = vadd.f32 1.0, %v14173_v22  ;;  %v14175_v29 = vpop.eup %14174  ;;  %v8681_v43 = vld [vmem:[%s19610_s6 + $0x150] sm:$0xff] }
 0x9a9   :  { %14178 = vtanh.f32 %v8608_v48  ;;  %v8616_v39 = vadd.f32 1.0, %v14175_v29  ;;  %v8685_v29 = vld [vmem:[%s19610_s6 + $0x170] sm:$0xff] }
 0x9aa   :  { %14180 = vrcp.f32 %v8605_v36  ;;  %v18541_v36 = vcombine.high %v8690_v24, %v8694_v63 }
 0x9ab   :  { %14182 = vrcp.f32 %v8616_v39  ;;  %v18558_v39 = vcombine.low %v8690_v24, %v8694_v63  ;;  %v8665_v63 = vld [vmem:[%s19610_s6 + $0xd0] sm:$0xff] }
 0x9ad   :  { %20401 = vst [vmem:[#allocation22_spill] sm:$0xff] %v18558_v39 }
 0x9b5   :  { %v14177_v49 = vpop.eup %14176 }
 0x9b6   :  { %v14179_v46 = vpop.eup %14178 }
 0x9b7   :  { %v14181_v18 = vpop.eup %14180  ;;  %v8620_v5 = vmul.f32 %v14179_v46, %v14177_v49  ;;  %v8682_v49 = vld [vmem:[%s19610_s6 + $0x158] sm:$0xff] }
 0x9b8   :  { %v8619_v56 = vmul.f32 %v14181_v18, %v18051_v60  ;;  %v14183_v30 = vpop.eup %14182  ;;  %v8693_v60 = vld [vmem:[%s19610_s6 + $0x1b0] sm:$0xff]  ;;  %v8686_v46 = vld [vmem:[%s19610_s6 + $0x178] sm:$0xff] }
 0x9b9   :  { %v18539_v22 = vcombine.high %v8689_v34, %v8693_v60  ;;  %v18556_v18 = vcombine.low %v8689_v34, %v8693_v60  ;;  %v18582_v34 = vcombine.low %v8682_v49, %v8686_v46 }
 0x9ba   :  { %v18517_v17 = vadd.f32 %v8620_v5, %v8619_v56  ;;  %v18560_v56 = vcombine.high %v8681_v43, %v8685_v29  ;;  %v18562_v5 = vcombine.high %v8682_v49, %v8686_v46 }
 0x9bb   :  { %20405 = vst [vmem:[#allocation26_spill] sm:$0xff] %v18582_v34 }
 0x9bc   :  { %14184 = vtanh.f32 %v18517_v17  ;;  %20402 = vst [vmem:[#allocation23_spill] sm:$0xff] %v18560_v56  ;;  %20403 = vst [vmem:[#allocation24_spill] sm:$0xff] %v18562_v5 }
 0x9c9   :  { %v14185_v59 = vpop.eup %14184 }
 0x9ca   :  { %v8623_v50 = vmul.f32 %v14185_v59, %v14183_v30  ;;  %v8673_v30 = vld [vmem:[%s19610_s6 + $0x110] sm:$0xff] }
 0x9cb   :  { %v8677_v59 = vld [vmem:[%s19610_s6 + $0x130] sm:$0xff] }
 0x9cc   :  { %8624 = vst [vmem:[#allocation3 + $0x5] sm:$0x1] %v8623_v50  ;;  %v8629_v9 = vrot.slane %v8623_v50, %v20030_v8  ;;  %v8635_v61 = vrot.slane %v8623_v50, %v20031_v19  ;;  %v8674_v50 = vld [vmem:[%s19610_s6 + $0x118] sm:$0xff]  ;;  %v18586_v60 = vcombine.high %v8673_v30, %v8677_v59  ;;  %v18604_v49 = vcombine.low %v8673_v30, %v8677_v59 }
 0x9cd   :  { %v8658_v30 = vld [vmem:[%s19610_s6 + $0x98] sm:$0xff] }
 0x9ce   :  { %8631 = vst [vmem:[#allocation3 + $0xa] sm:$0x1] %v8629_v9  ;;  %v8638_v20 = vpack.c.bf16 %v8629_v9, %v8629_v9  ;;  %v18534_v48 = vpack.c.bf16 %v8635_v61, %v8635_v61  ;;  %v8678_v9 = vld [vmem:[%s19610_s6 + $0x138] sm:$0xff]  ;;  %v18580_v61 = vcombine.low %v8681_v43, %v8685_v29  ;;  %20406 = vst [vmem:[#allocation27_spill] sm:$0xff] %v18586_v60 }
 0x9cf   :  { %v18588_v24 = vcombine.high %v8674_v50, %v8678_v9  ;;  %v8666_v43 = vld [vmem:[%s19610_s6 + $0xd8] sm:$0xff]  ;;  %20408 = vst [vmem:[#allocation29_spill] sm:$0xff] %v18604_v49  ;;  %v18606_v46 = vcombine.low %v8674_v50, %v8678_v9 }
 0x9d0   :  { %9439 = vmatprep.mubr.bf16.mxu1 %v8638_v20  ;;  %9480 = vmatprep.mubr.bf16.mxu0 %v8638_v20  ;;  %20404 = vst [vmem:[#allocation25_spill] sm:$0xff] %v18580_v61  ;;  %v8670_v29 = vld [vmem:[%s19610_s6 + $0xf8] sm:$0xff] }
 0x9d1   :  { %9440 = vmatmul.mubr.bf16.vlgmr.msra.gmra.mxu1 %v18534_v48  ;;  %9481 = vmatmul.mubr.bf16.vlgmr.msra.gmra.mxu0 %v18534_v48  ;;  %20407 = vst [vmem:[#allocation28_spill] sm:$0xff] %v18588_v24  ;;  %20409 = vst [vmem:[#allocation30_spill] sm:$0xff] %v18606_v46  ;;  %v8662_v59 = vld [vmem:[%s19610_s6 + $0xb8] sm:$0xff]  ;;  %v18630_v9 = vcombine.low %v8666_v43, %v8670_v29 }
 0x9d2   :  { %9490 = vmatpush1.bf16.msra.mxu1 %v18504_v4  ;;  %9531 = vmatpush1.bf16.msra.mxu0 %v18506_v40 }
 0x9d3   :  { %9521 = vmatprep.mubr.bf16.mxu1 %v8638_v20  ;;  %9562 = vmatprep.mubr.bf16.mxu0 %v8638_v20  ;;  %v8669_v20 = vld [vmem:[%s19610_s6 + $0xf0] sm:$0xff]  ;;  %20413 = vst [vmem:[#allocation32_spill] sm:$0xff] %v18630_v9 }
 0x9d4   :  { %9491 = vmatprep.subr.bf16.mxu1 %v18539_v22  ;;  %9532 = vmatprep.subr.bf16.mxu0 %v18541_v36  ;;  %v18628_v50 = vcombine.low %v8665_v63, %v8669_v20 }
 0x9d6   :  { %9492 = vmatpush1.bf16.msra.mxu1 %v18556_v18  ;;  %9533 = vmatpush1.bf16.msra.mxu0 %v18558_v39  ;;  %v8657_v39 = vld [vmem:[%s19610_s6 + $0x90] sm:$0xff]  ;;  %20412 = vst [vmem:[#allocation31_spill] sm:$0xff] %v18628_v50 }
 0x9d7   :  { %9493 = vmatprep.subr.bf16.mxu1 %v18560_v56  ;;  %9534 = vmatprep.subr.bf16.mxu0 %v18562_v5  ;;  %v18610_v5 = vcombine.high %v8665_v63, %v8669_v20  ;;  %v18612_v56 = vcombine.high %v8666_v43, %v8670_v29  ;;  %v8650_v63 = vld [vmem:[%s19610_s6 + $0x58] sm:$0xff]  ;;  %v18654_v29 = vcombine.low %v8658_v30, %v8662_v59 }
 0x9d8   :  { %v8654_v20 = vld [vmem:[%s19610_s6 + $0x78] sm:$0xff] }
 0x9d9   :  { %20410 = vst [vmem:[#allocation6_spill] sm:$0xff] %v18610_v5  ;;  %20411 = vst [vmem:[#allocation5_spill] sm:$0xff] %v18612_v56 }
 0x9da   :  { %9494 = vmatpush1.bf16.msra.mxu1 %v18580_v61  ;;  %9535 = vmatpush1.bf16.msra.mxu0 %v18582_v34  ;;  %v8661_v34 = vld [vmem:[%s19610_s6 + $0xb0] sm:$0xff]  ;;  %20417 = vst [vmem:[#allocation40_spill] sm:$0xff] %v18654_v29 }
 0x9db   :  { %9495 = vmatprep.subr.bf16.mxu1 %v18586_v60  ;;  %9536 = vmatprep.subr.bf16.mxu0 %v18588_v24  ;;  %v18634_v24 = vcombine.high %v8657_v39, %v8661_v34  ;;  %v18636_v60 = vcombine.high %v8658_v30, %v8662_v59  ;;  %v8649_v61 = vld [vmem:[%s19610_s6 + $0x50] sm:$0xff]  ;;  %v18652_v43 = vcombine.low %v8657_v39, %v8661_v34  ;;  %v8642_v39 = vld [vmem:[%s19610_s6 + $0x18] sm:$0xff] }
 0x9dc   :  { %v8646_v34 = vld [vmem:[%s19610_s6 + $0x38] sm:$0xff]  ;;  %v18678_v59 = vcombine.low %v8650_v63, %v8654_v20 }
 0x9dd   :  { %20414 = vst [vmem:[#allocation33_spill] sm:$0xff] %v18634_v24  ;;  %20415 = vst [vmem:[#allocation34_spill] sm:$0xff] %v18636_v60 }
 0x9de   :  { %9496 = vmatpush1.bf16.msra.mxu1 %v18604_v49  ;;  %9537 = vmatpush1.bf16.msra.mxu0 %v18606_v46  ;;  %v8653_v46 = vld [vmem:[%s19610_s6 + $0x70] sm:$0xff]  ;;  %20416 = vst [vmem:[#allocation35_spill] sm:$0xff] %v18652_v43  ;;  %20421 = vst [vmem:[#allocation44_spill] sm:$0xff] %v18678_v59 }
 0x9df   :  { %9497 = vmatprep.subr.bf16.mxu1 %v18610_v5  ;;  %9538 = vmatprep.subr.bf16.mxu0 %v18612_v56  ;;  %v18658_v56 = vcombine.high %v8649_v61, %v8653_v46  ;;  %v18660_v5 = vcombine.high %v8650_v63, %v8654_v20  ;;  %v8641_v49 = vld [vmem:[%s19610_s6 + $0x10] sm:$0xff]  ;;  %v18676_v30 = vcombine.low %v8649_v61, %v8653_v46  ;;  %v8762_v61 = vld [vmem:[%s19610_s6 + $0x3d8] sm:$0xff] }
 0x9e0   :  { %v8766_v46 = vld [vmem:[%s19610_s6 + $0x3f8] sm:$0xff]  ;;  %v18702_v20 = vcombine.low %v8642_v39, %v8646_v34 }
 0x9e1   :  { %20418 = vst [vmem:[#allocation36_spill] sm:$0xff] %v18658_v56  ;;  %20419 = vst [vmem:[#allocation42_spill] sm:$0xff] %v18660_v5 }
 0x9e2   :  { %9498 = vmatpush1.bf16.msra.mxu1 %v18628_v50  ;;  %9539 = vmatpush1.bf16.msra.mxu0 %v18630_v9  ;;  %v8645_v9 = vld [vmem:[%s19610_s6 + $0x30] sm:$0xff]  ;;  %20420 = vst [vmem:[#allocation37_spill] sm:$0xff] %v18676_v30  ;;  %20425 = vst [vmem:[#allocation48_spill] sm:$0xff] %v18702_v20 }
 0x9e3   :  { %9499 = vmatprep.subr.bf16.mxu1 %v18634_v24  ;;  %9540 = vmatprep.subr.bf16.mxu0 %v18636_v60  ;;  %v18682_v60 = vcombine.high %v8641_v49, %v8645_v9  ;;  %v18684_v24 = vcombine.high %v8642_v39, %v8646_v34  ;;  %v8761_v50 = vld [vmem:[%s19610_s6 + $0x3d0] sm:$0xff]  ;;  %v18700_v63 = vcombine.low %v8641_v49, %v8645_v9  ;;  %v8754_v49 = vld [vmem:[%s19610_s6 + $0x398] sm:$0xff] }
 0x9e4   :  { %v8758_v9 = vld [vmem:[%s19610_s6 + $0x3b8] sm:$0xff]  ;;  %v18726_v34 = vcombine.low %v8762_v61, %v8766_v46 }
 0x9e5   :  { %20422 = vst [vmem:[#allocation38_spill] sm:$0xff] %v18682_v60  ;;  %20423 = vst [vmem:[#allocation46_spill] sm:$0xff] %v18684_v24 }
 0x9e6   :  { %9500 = vmatpush1.bf16.msra.mxu1 %v18652_v43  ;;  %9541 = vmatpush1.bf16.msra.mxu0 %v18654_v29  ;;  %v8765_v29 = vld [vmem:[%s19610_s6 + $0x3f0] sm:$0xff]  ;;  %20424 = vst [vmem:[#allocation39_spill] sm:$0xff] %v18700_v63  ;;  %20429 = vst [vmem:[#allocation52_spill] sm:$0xff] %v18726_v34 }
 0x9e7   :  { %9501 = vmatprep.subr.bf16.mxu1 %v18658_v56  ;;  %9542 = vmatprep.subr.bf16.mxu0 %v18660_v5  ;;  %v18706_v5 = vcombine.high %v8761_v50, %v8765_v29  ;;  %v18708_v56 = vcombine.high %v8762_v61, %v8766_v46  ;;  %v8753_v43 = vld [vmem:[%s19610_s6 + $0x390] sm:$0xff]  ;;  %v18724_v39 = vcombine.low %v8761_v50, %v8765_v29  ;;  %v8746_v50 = vld [vmem:[%s19610_s6 + $0x358] sm:$0xff] }
 0x9e8   :  { %v8750_v29 = vld [vmem:[%s19610_s6 + $0x378] sm:$0xff]  ;;  %v18750_v46 = vcombine.low %v8754_v49, %v8758_v9 }
 0x9e9   :  { %20426 = vst [vmem:[#allocation41_spill] sm:$0xff] %v18706_v5  ;;  %20427 = vst [vmem:[#allocation50_spill] sm:$0xff] %v18708_v56 }
 0x9ea   :  { %9502 = vmatpush1.bf16.msra.mxu1 %v18676_v30  ;;  %9543 = vmatpush1.bf16.msra.mxu0 %v18678_v59  ;;  %v8757_v59 = vld [vmem:[%s19610_s6 + $0x3b0] sm:$0xff]  ;;  %20428 = vst [vmem:[#allocation43_spill] sm:$0xff] %v18724_v39  ;;  %20433 = vst [vmem:[#allocation56_spill] sm:$0xff] %v18750_v46 }
 0x9eb   :  { %9503 = vmatprep.subr.bf16.mxu1 %v18682_v60  ;;  %9544 = vmatprep.subr.bf16.mxu0 %v18684_v24  ;;  %v18730_v24 = vcombine.high %v8753_v43, %v8757_v59  ;;  %v18732_v60 = vcombine.high %v8754_v49, %v8758_v9  ;;  %v8745_v30 = vld [vmem:[%s19610_s6 + $0x350] sm:$0xff]  ;;  %v18748_v61 = vcombine.low %v8753_v43, %v8757_v59  ;;  %v8738_v43 = vld [vmem:[%s19610_s6 + $0x318] sm:$0xff] }
 0x9ec   :  { %v8742_v59 = vld [vmem:[%s19610_s6 + $0x338] sm:$0xff]  ;;  %v18774_v9 = vcombine.low %v8746_v50, %v8750_v29 }
 0x9ed   :  { %20430 = vst [vmem:[#allocation45_spill] sm:$0xff] %v18730_v24  ;;  %20431 = vst [vmem:[#allocation54_spill] sm:$0xff] %v18732_v60 }
 0x9ee   :  { %9504 = vmatpush1.bf16.msra.mxu1 %v18700_v63  ;;  %9545 = vmatpush1.bf16.msra.mxu0 %v18702_v20  ;;  %v8749_v20 = vld [vmem:[%s19610_s6 + $0x370] sm:$0xff]  ;;  %20432 = vst [vmem:[#allocation47_spill] sm:$0xff] %v18748_v61  ;;  %20437 = vst [vmem:[#allocation60_spill] sm:$0xff] %v18774_v9 }
 0x9ef   :  { %9505 = vmatprep.subr.bf16.mxu1 %v18706_v5  ;;  %9546 = vmatprep.subr.bf16.mxu0 %v18708_v56  ;;  %v18754_v56 = vcombine.high %v8745_v30, %v8749_v20  ;;  %v18756_v5 = vcombine.high %v8746_v50, %v8750_v29  ;;  %v8737_v63 = vld [vmem:[%s19610_s6 + $0x310] sm:$0xff]  ;;  %v18772_v49 = vcombine.low %v8745_v30, %v8749_v20  ;;  %v8730_v30 = vld [vmem:[%s19610_s6 + $0x2d8] sm:$0xff] }
 0x9f0   :  { %v8734_v20 = vld [vmem:[%s19610_s6 + $0x2f8] sm:$0xff]  ;;  %v18798_v29 = vcombine.low %v8738_v43, %v8742_v59 }
 0x9f1   :  { %20434 = vst [vmem:[#allocation49_spill] sm:$0xff] %v18754_v56  ;;  %20435 = vst [vmem:[#allocation58_spill] sm:$0xff] %v18756_v5 }
 0x9f2   :  { %9506 = vmatpush2.bf16.msra.mxu1 %v18724_v39  ;;  %9547 = vmatpush2.bf16.msra.mxu0 %v18726_v34  ;;  %v8741_v34 = vld [vmem:[%s19610_s6 + $0x330] sm:$0xff]  ;;  %20436 = vst [vmem:[#allocation51_spill] sm:$0xff] %v18772_v49  ;;  %20441 = vst [vmem:[#allocation64_spill] sm:$0xff] %v18798_v29 }
 0x9f3   :  { %9507 = vmatprep.subr.bf16.mxu1 %v18730_v24  ;;  %9548 = vmatprep.subr.bf16.mxu0 %v18732_v60  ;;  %v18778_v60 = vcombine.high %v8737_v63, %v8741_v34  ;;  %v18780_v24 = vcombine.high %v8738_v43, %v8742_v59  ;;  %v8729_v39 = vld [vmem:[%s19610_s6 + $0x2d0] sm:$0xff]  ;;  %v18796_v50 = vcombine.low %v8737_v63, %v8741_v34  ;;  %v8722_v63 = vld [vmem:[%s19610_s6 + $0x298] sm:$0xff] }
 0x9f4   :  { %v8726_v34 = vld [vmem:[%s19610_s6 + $0x2b8] sm:$0xff]  ;;  %v18822_v59 = vcombine.low %v8730_v30, %v8734_v20 }
 0x9f5   :  { %20438 = vst [vmem:[#allocation53_spill] sm:$0xff] %v18778_v60  ;;  %20439 = vst [vmem:[#allocation62_spill] sm:$0xff] %v18780_v24 }
 0x9f6   :  { %9508 = vmatpush2.bf16.msra.mxu1 %v18748_v61  ;;  %9549 = vmatpush2.bf16.msra.mxu0 %v18750_v46  ;;  %v8733_v46 = vld [vmem:[%s19610_s6 + $0x2f0] sm:$0xff]  ;;  %20440 = vst [vmem:[#allocation55_spill] sm:$0xff] %v18796_v50  ;;  %20445 = vst [vmem:[#allocation68_spill] sm:$0xff] %v18822_v59 }
 0x9f7   :  { %9509 = vmatprep.subr.bf16.mxu1 %v18754_v56  ;;  %9550 = vmatprep.subr.bf16.mxu0 %v18756_v5  ;;  %v18802_v5 = vcombine.high %v8729_v39, %v8733_v46  ;;  %v18804_v56 = vcombine.high %v8730_v30, %v8734_v20  ;;  %v8721_v61 = vld [vmem:[%s19610_s6 + $0x290] sm:$0xff]  ;;  %v18820_v43 = vcombine.low %v8729_v39, %v8733_v46  ;;  %v8714_v39 = vld [vmem:[%s19610_s6 + $0x258] sm:$0xff] }
 0x9f8   :  { %v8718_v46 = vld [vmem:[%s19610_s6 + $0x278] sm:$0xff]  ;;  %v18846_v20 = vcombine.low %v8722_v63, %v8726_v34 }
 0x9f9   :  { %20442 = vst [vmem:[#allocation57_spill] sm:$0xff] %v18802_v5  ;;  %20443 = vst [vmem:[#allocation66_spill] sm:$0xff] %v18804_v56 }
 0x9fa   :  { %9510 = vmatpush2.bf16.msra.mxu1 %v18772_v49  ;;  %9551 = vmatpush2.bf16.msra.mxu0 %v18774_v9  ;;  %v8725_v9 = vld [vmem:[%s19610_s6 + $0x2b0] sm:$0xff]  ;;  %20444 = vst [vmem:[#allocation59_spill] sm:$0xff] %v18820_v43 }
 0x9fb   :  { %9511 = vmatprep.subr.bf16.mxu1 %v18778_v60  ;;  %9552 = vmatprep.subr.bf16.mxu0 %v18780_v24  ;;  %v18826_v24 = vcombine.high %v8721_v61, %v8725_v9  ;;  %v18828_v60 = vcombine.high %v8722_v63, %v8726_v34  ;;  %v8713_v49 = vld [vmem:[%s19610_s6 + $0x250] sm:$0xff]  ;;  %v18844_v30 = vcombine.low %v8721_v61, %v8725_v9  ;;  %v8706_v61 = vld [vmem:[%s19610_s6 + $0x218] sm:$0xff] }
 0x9fc   :  { %v8710_v9 = vld [vmem:[%s19610_s6 + $0x238] sm:$0xff]  ;;  %v18870_v34 = vcombine.low %v8714_v39, %v8718_v46 }
 0x9fd   :  { %20446 = vst [vmem:[#allocation61_spill] sm:$0xff] %v18826_v24  ;;  %20447 = vst [vmem:[#allocation70_spill] sm:$0xff] %v18828_v60 }
 0x9fe   :  { %9512 = vmatpush2.bf16.msra.mxu1 %v18796_v50  ;;  %9553 = vmatpush2.bf16.msra.mxu0 %v18798_v29  ;;  %v8717_v29 = vld [vmem:[%s19610_s6 + $0x270] sm:$0xff]  ;;  %20448 = vst [vmem:[#allocation63_spill] sm:$0xff] %v18844_v30 }
 0x9ff   :  { %9513 = vmatprep.subr.bf16.mxu1 %v18802_v5  ;;  %9554 = vmatprep.subr.bf16.mxu0 %v18804_v56  ;;  %v18850_v56 = vcombine.high %v8713_v49, %v8717_v29  ;;  %v18852_v5 = vcombine.high %v8714_v39, %v8718_v46  ;;  %v8705_v50 = vld [vmem:[%s19610_s6 + $0x210] sm:$0xff]  ;;  %v18868_v63 = vcombine.low %v8713_v49, %v8717_v29  ;;  %v20471_v49 = vld [vmem:[#allocation19_spill] sm:$0xff] }
 0xa02   :  { %9514 = vmatpush2.bf16.msra.mxu1 %v18820_v43  ;;  %9555 = vmatpush2.bf16.msra.mxu0 %v18822_v59  ;;  %v8709_v59 = vld [vmem:[%s19610_s6 + $0x230] sm:$0xff] }
 0xa03   :  { %9515 = vmatprep.subr.bf16.mxu1 %v18826_v24  ;;  %9556 = vmatprep.subr.bf16.mxu0 %v18828_v60  ;;  %v18874_v60 = vcombine.high %v8705_v50, %v8709_v59  ;;  %v18876_v24 = vcombine.high %v8706_v61, %v8710_v9  ;;  %v18880_v43 = vcombine.low %v8705_v50, %v8709_v59 }
 0xa06   :  { %9516 = vmatpush2.bf16.msra.mxu1 %v18844_v30  ;;  %9557 = vmatpush2.bf16.msra.mxu0 %v18846_v20  ;;  %v18882_v30 = vcombine.low %v8706_v61, %v8710_v9  ;;  %v20472_v61 = vld [vmem:[#allocation20_spill] sm:$0xff]  ;;  %v20473_v9 = vld [vmem:[#allocation21_spill] sm:$0xff] }
 0xa07   :  { %9517 = vmatprep.subr.bf16.mxu1 %v18850_v56  ;;  %9558 = vmatprep.subr.bf16.mxu0 %v18852_v5 }
 0xa0a   :  { %9518 = vmatpush2.bf16.msra.mxu1 %v18868_v63  ;;  %9559 = vmatpush2.bf16.msra.mxu0 %v18870_v34 }
 0xa0b   :  { %9519 = vmatprep.subr.bf16.mxu1 %v18874_v60  ;;  %9560 = vmatprep.subr.bf16.mxu0 %v18876_v24 }
 0xa0e   :  { %9520 = vmatpush2.bf16.msra.mxu1 %v18880_v43  ;;  %9561 = vmatpush2.bf16.msra.mxu0 %v18882_v30 }
 0xa0f   :  { %10489 = vmatprep.subr.bf16.mxu0 %v18134_v38  ;;  %v9736_v38 = vld [vmem:[%s19610_s6 + $0x1c0] sm:$0xff] }
 0xa11   :  { %9522 = vmatmul.mubr.bf16.vlgmr.msra.gmra.mxu1 %v18534_v48  ;;  %9563 = vmatmul.mubr.bf16.vlgmr.msra.gmra.mxu0 %v18534_v48 }
 0xa12   :  { %10490 = vmatpush1.bf16.msra.mxu0 %v18136_v13  ;;  %v9740_v13 = vld [vmem:[%s19610_s6 + $0x1e0] sm:$0xff] }
 0xa13   :  { %10491 = vmatprep.subr.bf16.mxu0 %v18146_v28  ;;  %v13482_v28 = vcombine.high %v9736_v38, %v9740_v13 }
 0xa15   :  { %10448 = vmatprep.subr.bf16.mxu1 %v13482_v28 }
 0xa16   :  { %10492 = vmatpush1.bf16.msra.mxu0 %v18148_v15  ;;  %v13481_v15 = vcombine.low %v9736_v38, %v9740_v13 }
 0xa17   :  { %10493 = vmatprep.subr.bf16.mxu0 %v18170_v27  ;;  %v9732_v27 = vld [vmem:[%s19610_s6 + $0x1a0] sm:$0xff] }
 0xa18   :  { %10449 = vmatpush1.bf16.msra.mxu1 %v13481_v15 }
 0xa1a   :  { %10494 = vmatpush1.bf16.msra.mxu0 %v18168_v26  ;;  %v9728_v26 = vld [vmem:[%s19610_s6 + $0x180] sm:$0xff] }
 0xa1b   :  { %10495 = vmatprep.subr.bf16.mxu0 %v18194_v7  ;;  %v13473_v7 = vcombine.low %v9728_v26, %v9732_v27 }
 0xa1e   :  { %10496 = vmatpush1.bf16.msra.mxu0 %v18192_v31  ;;  %v13474_v31 = vcombine.high %v9728_v26, %v9732_v27 }
 0xa1f   :  { %10497 = vmatprep.subr.bf16.mxu0 %v18218_v41  ;;  %v20450_v41 = vld [vmem:[#allocation73_spill] sm:$0xff] }
 0xa20   :  { %10450 = vmatprep.subr.bf16.mxu1 %v13474_v31 }
 0xa21   :  { %10451 = vmatpush1.bf16.msra.mxu1 %v13473_v7 }
 0xa22   :  { %10498 = vmatpush1.bf16.msra.mxu0 %v18216_v51  ;;  %10452 = vmatprep.subr.bf16.mxu1 %v18161_v0  ;;  %v20449_v51 = vld [vmem:[#allocation77_spill] sm:$0xff] }
 0xa23   :  { %10499 = vmatprep.subr.bf16.mxu0 %v18242_v62  ;;  %v20452_v62 = vld [vmem:[#allocation74_spill] sm:$0xff]  ;;  %v20456_v0 = vld [vmem:[#allocation81_spill] sm:$0xff] }
 0xa25   :  { %10453 = vmatpush1.bf16.msra.mxu1 %v18166_v44  ;;  %v20457_v44 = vld [vmem:[#allocation82_spill] sm:$0xff] }
 0xa26   :  { %10500 = vmatpush1.bf16.msra.mxu0 %v18240_v42  ;;  %10454 = vmatprep.subr.bf16.mxu1 %v18185_v3  ;;  %v20451_v42 = vld [vmem:[#allocation79_spill] sm:$0xff]  ;;  %v20458_v3 = vld [vmem:[#allocation78_spill] sm:$0xff] }
 0xa27   :  { %10501 = vmatprep.subr.bf16.mxu0 %v18266_v14  ;;  %v20454_v14 = vld [vmem:[#allocation75_spill] sm:$0xff] }
 0xa29   :  { %10455 = vmatpush1.bf16.msra.mxu1 %v18190_v37  ;;  %v20459_v37 = vld [vmem:[#allocation7_spill] sm:$0xff] }
 0xa2a   :  { %10502 = vmatpush1.bf16.msra.mxu0 %v18264_v33  ;;  %10456 = vmatprep.subr.bf16.mxu1 %v20449_v51  ;;  %v20453_v33 = vld [vmem:[#allocation80_spill] sm:$0xff] }
 0xa2b   :  { %10503 = vmatprep.subr.bf16.mxu0 %v18296_v58  ;;  %v20460_v58 = vld [vmem:[#allocation9_spill] sm:$0xff] }
 0xa2d   :  { %10457 = vmatpush1.bf16.msra.mxu1 %v20450_v41 }
 0xa2e   :  { %10504 = vmatpush1.bf16.msra.mxu0 %v18294_v57  ;;  %10458 = vmatprep.subr.bf16.mxu1 %v20451_v42  ;;  %v20455_v57 = vld [vmem:[#allocation76_spill] sm:$0xff] }
 0xa2f   :  { %10505 = vmatprep.subr.bf16.mxu0 %v18310_v12  ;;  %v20461_v12 = vld [vmem:[#allocation8_spill] sm:$0xff] }
 0xa31   :  { %10459 = vmatpush1.bf16.msra.mxu1 %v20452_v62 }
 0xa32   :  { %10506 = vmatpush2.bf16.msra.mxu0 %v18327_v10  ;;  %10460 = vmatprep.subr.bf16.mxu1 %v20453_v33  ;;  %v20462_v10 = vld [vmem:[#allocation10_spill] sm:$0xff] }
 0xa33   :  { %10507 = vmatprep.subr.bf16.mxu0 %v18332_v21  ;;  %v20463_v21 = vld [vmem:[#allocation11_spill] sm:$0xff] }
 0xa35   :  { %10461 = vmatpush1.bf16.msra.mxu1 %v20454_v14  ;;  %v9573_v14 = vld [vmem:[#allocation2 + $0x6] ss:$8 sm:$0xf0] }
 0xa36   :  { %10508 = vmatpush2.bf16.msra.mxu0 %v18351_v11  ;;  %10462 = vmatprep.subr.bf16.mxu1 %v20455_v57  ;;  %v20465_v11 = vld [vmem:[#allocation14_spill] sm:$0xff] }
 0xa37   :  { %10509 = vmatprep.subr.bf16.mxu0 %v18356_v45  ;;  %v20466_v45 = vld [vmem:[#allocation13_spill] sm:$0xff] }
 0xa39   :  { %10463 = vmatpush1.bf16.msra.mxu1 %v20456_v0 }
 0xa3a   :  { %10510 = vmatpush2.bf16.msra.mxu0 %v18375_v23  ;;  %10464 = vmatprep.subr.bf16.mxu1 %v20457_v44  ;;  %v20468_v23 = vld [vmem:[#allocation16_spill] sm:$0xff] }
 0xa3b   :  { %10511 = vmatprep.subr.bf16.mxu0 %v18380_v35  ;;  %v9572_v44 = vld [vmem:[#allocation2 + $0x6] ss:$8 sm:$0xf] }
 0xa3d   :  { %10465 = vmatpush2.bf16.msra.mxu1 %v20458_v3  ;;  %v9574_v3 = vor.u32 %v9573_v14, %v9572_v44  ;;  %v20494_v14 = vld [vmem:[#allocation44_spill] sm:$0xff]  ;;  %v20497_v44 = vld [vmem:[#allocation39_spill] sm:$0xff] }
 0xa3e   :  { %10512 = vmatpush2.bf16.msra.mxu0 %v18399_v53  ;;  %10466 = vmatprep.subr.bf16.mxu1 %v20459_v37  ;;  %v20469_v53 = vld [vmem:[#allocation17_spill] sm:$0xff] }
 0xa3f   :  { %10513 = vmatprep.subr.bf16.mxu0 %v18404_v2 }
 0xa41   :  { %10467 = vmatpush2.bf16.msra.mxu1 %v20460_v58 }
 0xa42   :  { %10514 = vmatpush2.bf16.msra.mxu0 %v18423_v6  ;;  %10468 = vmatprep.subr.bf16.mxu1 %v20461_v12 }
 0xa43   :  { %10515 = vmatprep.subr.bf16.mxu0 %v18428_v25 }
 0xa45   :  { %10469 = vmatpush2.bf16.msra.mxu1 %v20462_v10 }
 0xa46   :  { %10516 = vmatpush2.bf16.msra.mxu0 %v18447_v52  ;;  %10470 = vmatprep.subr.bf16.mxu1 %v20463_v21 }
 0xa47   :  { %10517 = vmatprep.subr.bf16.mxu0 %v18452_v54 }
 0xa4a   :  { %10518 = vmatpush2.bf16.msra.mxu0 %v18471_v47  ;;  %v20467_v47 = vld [vmem:[#allocation15_spill] sm:$0xff] }
 0xa4b   :  { %10519 = vmatprep.subr.bf16.mxu0 %v18476_v16  ;;  %v20464_v16 = vld [vmem:[#allocation12_spill] sm:$0xff] }
 0xa4c   :  { %10471 = vmatpush2.bf16.msra.mxu1 %v20464_v16 }
 0xa4d   :  { %10472 = vmatprep.subr.bf16.mxu1 %v20465_v11 }
 0xa4e   :  { %10520 = vmatpush2.bf16.msra.mxu0 %v18483_v1  ;;  %v20470_v1 = vld [vmem:[#allocation18_spill] sm:$0xff] }
 0xa4f   :  { %10571 = vmatprep.subr.bf16.mxu0 %v18508_v55 }
 0xa50   :  { %10473 = vmatpush2.bf16.msra.mxu1 %v20466_v45 }
 0xa51   :  { %10474 = vmatprep.subr.bf16.mxu1 %v20467_v47 }
 0xa54   :  { %10475 = vmatpush2.bf16.msra.mxu1 %v20468_v23 }
 0xa55   :  { %10476 = vmatprep.subr.bf16.mxu1 %v20469_v53 }
 0xa58   :  { %10477 = vmatpush2.bf16.msra.mxu1 %v20470_v1 }
 0xa59   :  { %10478 = vmatprep.subr.bf16.mxu1 %v20471_v49 }
 0xa5c   :  { %10479 = vmatpush2.bf16.msra.mxu1 %v20472_v61 }
 0xa5d   :  { %10530 = vmatprep.subr.bf16.mxu1 %v20473_v9  ;;  %v20475_v9 = vld [vmem:[#allocation23_spill] sm:$0xff] }
 0xa91   :  { %v9441_v35 = vpop.f32.mrf.mxu1  ;;  %v9482_v54 = vpop.f32.mrf.mxu0 }
 0xa93   :  { %v9443_v2 = vpop.f32.mrf.mxu1  ;;  %v9484_v6 = vpop.f32.mrf.mxu0 }
 0xa94   :  { %v9583_v25 = vcombine.low %v9441_v35, %v9443_v2  ;;  %v9584_v52 = vcombine.low %v9482_v54, %v9484_v6 }
 0xa95   :  { %v9445_v55 = vpop.f32.mrf.mxu1  ;;  %v9486_v48 = vpop.f32.mrf.mxu0 }
 0xa96   :  { %v9593_v50 = vrot.slane %v9583_v25, %v16173_v32  ;;  %v9600_v29 = vrot.slane %v9584_v52, %v16173_v32 }
 0xa97   :  { %v9446_v59 = vpop.f32.mrf.mxu1  ;;  %v9487_v39 = vpop.f32.mrf.mxu0 }
 0xa98   :  { %v9615_v46 = vcombine.low %v9593_v50, %v9600_v29 }
 0xa9a   :  { %v9623_v57 = vrot.slane %v9615_v46, %v16173_v32 }
 0xad1   :  { %v9523_v38 = vpop.f32.mrf.mxu1  ;;  %v9564_v13 = vpop.f32.mrf.mxu0 }
 0xad3   :  { %v9525_v28 = vpop.f32.mrf.mxu1  ;;  %v9566_v15 = vpop.f32.mrf.mxu0 }
 0xad4   :  { %v9585_v26 = vcombine.low %v9523_v38, %v9525_v28  ;;  %v9586_v27 = vcombine.low %v9564_v13, %v9566_v15  ;;  %v20476_v38 = vld [vmem:[#allocation24_spill] sm:$0xff]  ;;  %v20477_v13 = vld [vmem:[#allocation25_spill] sm:$0xff]  ;;  %v20478_v28 = vld [vmem:[#allocation26_spill] sm:$0xff] }
 0xad5   :  { %v9527_v31 = vpop.f32.mrf.mxu1  ;;  %v9568_v7 = vpop.f32.mrf.mxu0  ;;  %v20481_v15 = vld [vmem:[#allocation29_spill] sm:$0xff] }
 0xad6   :  { %v9607_v51 = vrot.slane %v9585_v26, %v16173_v32  ;;  %v9614_v41 = vrot.slane %v9586_v27, %v16173_v32  ;;  %v20485_v26 = vld [vmem:[#allocation31_spill] sm:$0xff]  ;;  %v20486_v27 = vld [vmem:[#allocation32_spill] sm:$0xff]  ;;  %v20487_v31 = vld [vmem:[#allocation33_spill] sm:$0xff] }
 0xad7   :  { %v9528_v42 = vpop.f32.mrf.mxu1  ;;  %v9569_v62 = vpop.f32.mrf.mxu0  ;;  %v20488_v7 = vld [vmem:[#allocation34_spill] sm:$0xff] }
 0xad8   :  { %v9616_v33 = vcombine.low %v9607_v51, %v9614_v41  ;;  %v20489_v51 = vld [vmem:[#allocation35_spill] sm:$0xff]  ;;  %v20490_v41 = vld [vmem:[#allocation40_spill] sm:$0xff]  ;;  %v20492_v62 = vld [vmem:[#allocation42_spill] sm:$0xff] }
 0xad9   :  { %v20491_v42 = vld [vmem:[#allocation36_spill] sm:$0xff] }
 0xada   :  { %v9630_v0 = vrot.slane %v9616_v33, %v16173_v32  ;;  %v20493_v33 = vld [vmem:[#allocation37_spill] sm:$0xff] }
 0xadc   :  { %v9631_v37 = vcombine.low %v9623_v57, %v9630_v0  ;;  %v20495_v57 = vld [vmem:[#allocation38_spill] sm:$0xff] }
 0xadd   :  { %v20496_v0 = vld [vmem:[#allocation46_spill] sm:$0xff] }
 0xade   :  { %v9633_v58 = vadd.f32 %v9631_v37, %v9574_v3  ;;  %v20498_v3 = vld [vmem:[#allocation48_spill] sm:$0xff]  ;;  %v20499_v37 = vld [vmem:[#allocation41_spill] sm:$0xff] }
 0xae0   :  { %v13422_v12 = vmul.f32 -1.442695, %v9633_v58  ;;  %v9641_v10 = vrot.slane %v9633_v58, 2  ;;  %v9652_v16 = vrot.slane %v9633_v58, 6  ;;  %v9649_v47 = vrot.slane %v9633_v58, 4  ;;  %v20500_v58 = vld [vmem:[#allocation50_spill] sm:$0xff] }
 0xae2   :  { %14186 = vpow2.f32 %v13422_v12  ;;  %v13423_v21 = vmul.f32 -1.442695, %v9641_v10  ;;  %v13424_v11 = vmul.f32 -1.442695, %v9652_v16  ;;  %v20501_v12 = vld [vmem:[#allocation43_spill] sm:$0xff]  ;;  %v20502_v10 = vld [vmem:[#allocation52_spill] sm:$0xff] }
 0xae3   :  { %v20504_v16 = vld [vmem:[#allocation54_spill] sm:$0xff] }
 0xae4   :  { %14188 = vpow2.f32 %v13423_v21  ;;  %v20503_v21 = vld [vmem:[#allocation45_spill] sm:$0xff] }
 0xae5   :  { %14190 = vpow2.f32 %v13424_v11  ;;  %v20505_v11 = vld [vmem:[#allocation47_spill] sm:$0xff] }
 0xaef   :  { %v14187_v45 = vpop.eup %14186 }
 0xaf0   :  { %v9637_v23 = vadd.f32 1.0, %v14187_v45  ;;  %v20506_v45 = vld [vmem:[#allocation56_spill] sm:$0xff] }
 0xaf1   :  { %v14189_v35 = vpop.eup %14188 }
 0xaf2   :  { %14192 = vrcp.f32 %v9637_v23  ;;  %v9646_v54 = vadd.f32 1.0, %v14189_v35  ;;  %v14191_v53 = vpop.eup %14190  ;;  %v20508_v23 = vld [vmem:[#allocation58_spill] sm:$0xff]  ;;  %v20509_v35 = vld [vmem:[#allocation51_spill] sm:$0xff] }
 0xaf3   :  { %14194 = vtanh.f32 %v9649_v47  ;;  %v9657_v52 = vadd.f32 1.0, %v14191_v53  ;;  %v20507_v47 = vld [vmem:[#allocation49_spill] sm:$0xff] }
 0xaf4   :  { %14196 = vrcp.f32 %v9646_v54  ;;  %v20510_v54 = vld [vmem:[#allocation60_spill] sm:$0xff]  ;;  %v20511_v53 = vld [vmem:[#allocation53_spill] sm:$0xff] }
 0xaf5   :  { %14198 = vrcp.f32 %v9657_v52  ;;  %v20515_v52 = vld [vmem:[#allocation57_spill] sm:$0xff] }
 0xaff   :  { %v14193_v2 = vpop.eup %14192 }
 0xb00   :  { %v14195_v6 = vpop.eup %14194 }
 0xb01   :  { %v14197_v25 = vpop.eup %14196  ;;  %v9661_v55 = vmul.f32 %v14195_v6, %v14193_v2  ;;  %v20512_v2 = vld [vmem:[#allocation62_spill] sm:$0xff]  ;;  %v20513_v6 = vld [vmem:[#allocation55_spill] sm:$0xff] }
 0xb02   :  { %v9660_v1 = vmul.f32 %v14197_v25, %v18517_v17  ;;  %v14199_v49 = vpop.eup %14198  ;;  %v20474_v17 = vld [vmem:[#allocation22_spill] sm:$0xff]  ;;  %v20514_v25 = vld [vmem:[#allocation64_spill] sm:$0xff] }
 0xb04   :  { %v18971_v48 = vadd.f32 %v9661_v55, %v9660_v1  ;;  %v20516_v1 = vld [vmem:[#allocation66_spill] sm:$0xff]  ;;  %v20517_v55 = vld [vmem:[#allocation59_spill] sm:$0xff] }
 0xb06   :  { %14200 = vtanh.f32 %v18971_v48 }
 0xb13   :  { %v14201_v50 = vpop.eup %14200 }
 0xb14   :  { %v9664_v29 = vmul.f32 %v14201_v50, %v14199_v49  ;;  %v20518_v49 = vld [vmem:[#allocation68_spill] sm:$0xff]  ;;  %v20519_v50 = vld [vmem:[#allocation61_spill] sm:$0xff] }
 0xb16   :  { %9665 = vst [vmem:[#allocation3 + $0x6] sm:$0x1] %v9664_v29  ;;  %v9670_v59 = vrot.slane %v9664_v29, %v20030_v8  ;;  %v9676_v39 = vrot.slane %v9664_v29, %v20031_v19  ;;  %v20520_v29 = vld [vmem:[#allocation70_spill] sm:$0xff] }
 0xb18   :  { %9672 = vst [vmem:[#allocation3 + $0x9] sm:$0x1] %v9670_v59  ;;  %v9679_v46 = vpack.c.bf16 %v9670_v59, %v9670_v59  ;;  %v18976_v61 = vpack.c.bf16 %v9676_v39, %v9676_v39  ;;  %v20521_v59 = vld [vmem:[#allocation63_spill] sm:$0xff] }
 0xb19   :  { %v13894_v39 = vld [vmem:[%s19612_s7 + $0xf0] ss:$24 sps:$4 sm:$0xff]  }
 0xb1a   :  { %10480 = vmatprep.mubr.bf16.mxu1 %v9679_v46  ;;  %10521 = vmatprep.mubr.bf16.mxu0 %v9679_v46 }
 0xb1b   :  { %10481 = vmatmul.mubr.bf16.vlgmr.msra.gmra.mxu1 %v18976_v61  ;;  %10522 = vmatmul.mubr.bf16.vlgmr.msra.gmra.mxu0 %v18976_v61 }
 0xb1c   :  { %10531 = vmatpush1.bf16.msra.mxu1 %v18504_v4  ;;  %10572 = vmatpush1.bf16.msra.mxu0 %v18506_v40  ;;  %v20479_v4 = vld [vmem:[#allocation27_spill] sm:$0xff]  ;;  %v20480_v40 = vld [vmem:[#allocation28_spill] sm:$0xff] }
 0xb1d   :  { %10562 = vmatprep.mubr.bf16.mxu1 %v9679_v46  ;;  %10603 = vmatprep.mubr.bf16.mxu0 %v9679_v46  ;;  %v13899_v46 = vld [vmem:[%s19612_s7 + $0xfc] ss:$24 sps:$4 sm:$0xff]  }
 0xb1e   :  { %10532 = vmatprep.subr.bf16.mxu1 %v18539_v22  ;;  %10573 = vmatprep.subr.bf16.mxu0 %v18541_v36  ;;  %v20482_v22 = vld [vmem:[#allocation30_spill] sm:$0xff] }
 0xb1f   :  { %v20483_v36 = vld [vmem:[#allocation6_spill] sm:$0xff] }
 0xb20   :  { %10533 = vmatpush1.bf16.msra.mxu1 %v18556_v18  ;;  %10574 = vmatpush1.bf16.msra.mxu0 %v20474_v17  ;;  %v20484_v18 = vld [vmem:[#allocation5_spill] sm:$0xff] }
 0xb21   :  { %10534 = vmatprep.subr.bf16.mxu1 %v20475_v9  ;;  %10575 = vmatprep.subr.bf16.mxu0 %v20476_v38  ;;  %v13902_v17 = vld [vmem:[%s19612_s7 + $0xc4] ss:$24 sps:$4 sm:$0xff]   ;;  %v13900_v9 = vld [vmem:[%s19612_s7 + $0xc0] ss:$24 sps:$4 sm:$0xff]  }
 0xb22   :  { %v13905_v38 = vld [vmem:[%s19612_s7 + $0xcc] ss:$24 sps:$4 sm:$0xff]  }
 0xb24   :  { %10535 = vmatpush1.bf16.msra.mxu1 %v20477_v13  ;;  %10576 = vmatpush1.bf16.msra.mxu0 %v20478_v28  ;;  %v13903_v13 = vld [vmem:[%s19612_s7 + $0xc8] ss:$24 sps:$4 sm:$0xff]   ;;  %v13908_v28 = vld [vmem:[%s19612_s7 + $0x94] ss:$24 sps:$4 sm:$0xff]  }
 0xb25   :  { %10536 = vmatprep.subr.bf16.mxu1 %v20479_v4  ;;  %10577 = vmatprep.subr.bf16.mxu0 %v20480_v40  ;;  %v13906_v4 = vld [vmem:[%s19612_s7 + $0x90] ss:$24 sps:$4 sm:$0xff]   ;;  %v13911_v40 = vld [vmem:[%s19612_s7 + $0x9c] ss:$24 sps:$4 sm:$0xff]  }
 0xb28   :  { %10537 = vmatpush1.bf16.msra.mxu1 %v20481_v15  ;;  %10578 = vmatpush1.bf16.msra.mxu0 %v20482_v22  ;;  %v13909_v15 = vld [vmem:[%s19612_s7 + $0x98] ss:$24 sps:$4 sm:$0xff]   ;;  %v13914_v22 = vld [vmem:[%s19612_s7 + $0x64] ss:$24 sps:$4 sm:$0xff]  }
 0xb29   :  { %10538 = vmatprep.subr.bf16.mxu1 %v20483_v36  ;;  %10579 = vmatprep.subr.bf16.mxu0 %v20484_v18  ;;  %v13912_v36 = vld [vmem:[%s19612_s7 + $0x60] ss:$24 sps:$4 sm:$0xff]   ;;  %v13917_v18 = vld [vmem:[%s19612_s7 + $0x6c] ss:$24 sps:$4 sm:$0xff]  }
 0xb2c   :  { %10539 = vmatpush1.bf16.msra.mxu1 %v20485_v26  ;;  %10580 = vmatpush1.bf16.msra.mxu0 %v20486_v27  ;;  %v13915_v26 = vld [vmem:[%s19612_s7 + $0x68] ss:$24 sps:$4 sm:$0xff]   ;;  %v13920_v27 = vld [vmem:[%s19612_s7 + $0x34] ss:$24 sps:$4 sm:$0xff]  }
 0xb2d   :  { %10540 = vmatprep.subr.bf16.mxu1 %v20487_v31  ;;  %10581 = vmatprep.subr.bf16.mxu0 %v20488_v7  ;;  %v13918_v31 = vld [vmem:[%s19612_s7 + $0x30] ss:$24 sps:$4 sm:$0xff]   ;;  %v13923_v7 = vld [vmem:[%s19612_s7 + $0x3c] ss:$24 sps:$4 sm:$0xff]  }
 0xb30   :  { %10541 = vmatpush1.bf16.msra.mxu1 %v20489_v51  ;;  %10582 = vmatpush1.bf16.msra.mxu0 %v20490_v41  ;;  %v13921_v51 = vld [vmem:[%s19612_s7 + $0x38] ss:$24 sps:$4 sm:$0xff]   ;;  %v13926_v41 = vld [vmem:[%s19612_s7 + $0x4] ss:$24 sps:$4 sm:$0xff]  }
 0xb31   :  { %10542 = vmatprep.subr.bf16.mxu1 %v20491_v42  ;;  %10583 = vmatprep.subr.bf16.mxu0 %v20492_v62  ;;  %v13924_v42 = vld [vmem:[%s19612_s7] ss:$24 sps:$4 sm:$0xff]   ;;  %v13929_v62 = vld [vmem:[%s19612_s7 + $0xc] ss:$24 sps:$4 sm:$0xff]  }
 0xb34   :  { %10543 = vmatpush1.bf16.msra.mxu1 %v20493_v33  ;;  %10584 = vmatpush1.bf16.msra.mxu0 %v20494_v14  ;;  %v13927_v33 = vld [vmem:[%s19612_s7 + $0x8] ss:$24 sps:$4 sm:$0xff]  }
 0xb35   :  { %10544 = vmatprep.subr.bf16.mxu1 %v20495_v57  ;;  %10585 = vmatprep.subr.bf16.mxu0 %v20496_v0  ;;  %v13932_v0 = vld [vmem:[%s19612_s7 + $0x2d4] ss:$24 sps:$4 sm:$0xff]  }
 0xb38   :  { %10545 = vmatpush1.bf16.msra.mxu1 %v20497_v44  ;;  %10586 = vmatpush1.bf16.msra.mxu0 %v20498_v3  ;;  %v13930_v44 = vld [vmem:[%s19612_s7 + $0x2d0] ss:$24 sps:$4 sm:$0xff]   ;;  %v13935_v3 = vld [vmem:[%s19612_s7 + $0x2dc] ss:$24 sps:$4 sm:$0xff]  }
 0xb39   :  { %10546 = vmatprep.subr.bf16.mxu1 %v20499_v37  ;;  %10587 = vmatprep.subr.bf16.mxu0 %v20500_v58 }
 0xb3c   :  { %10547 = vmatpush2.bf16.msra.mxu1 %v20501_v12  ;;  %10588 = vmatpush2.bf16.msra.mxu0 %v20502_v10  ;;  %v13933_v12 = vld [vmem:[%s19612_s7 + $0x2d8] ss:$24 sps:$4 sm:$0xff]  }
 0xb3d   :  { %10548 = vmatprep.subr.bf16.mxu1 %v20503_v21  ;;  %10589 = vmatprep.subr.bf16.mxu0 %v20504_v16 }
 0xb40   :  { %10549 = vmatpush2.bf16.msra.mxu1 %v20505_v11  ;;  %10590 = vmatpush2.bf16.msra.mxu0 %v20506_v45  ;;  %v13938_v45 = vld [vmem:[%s19612_s7 + $0x2a4] ss:$24 sps:$4 sm:$0xff]  }
 0xb41   :  { %10550 = vmatprep.subr.bf16.mxu1 %v20507_v47  ;;  %10591 = vmatprep.subr.bf16.mxu0 %v20508_v23 }
 0xb44   :  { %10551 = vmatpush2.bf16.msra.mxu1 %v20509_v35  ;;  %10592 = vmatpush2.bf16.msra.mxu0 %v20510_v54  ;;  %v13936_v35 = vld [vmem:[%s19612_s7 + $0x2a0] ss:$24 sps:$4 sm:$0xff]   ;;  %v13941_v54 = vld [vmem:[%s19612_s7 + $0x2ac] ss:$24 sps:$4 sm:$0xff]  }
 0xb45   :  { %10552 = vmatprep.subr.bf16.mxu1 %v20511_v53  ;;  %10593 = vmatprep.subr.bf16.mxu0 %v20512_v2 }
 0xb48   :  { %10553 = vmatpush2.bf16.msra.mxu1 %v20513_v6  ;;  %10594 = vmatpush2.bf16.msra.mxu0 %v20514_v25  ;;  %v13939_v6 = vld [vmem:[%s19612_s7 + $0x2a8] ss:$24 sps:$4 sm:$0xff]  }
 0xb49   :  { %10554 = vmatprep.subr.bf16.mxu1 %v20515_v52  ;;  %10595 = vmatprep.subr.bf16.mxu0 %v20516_v1  ;;  %v13942_v52 = vld [vmem:[%s19612_s7 + $0x270] ss:$24 sps:$4 sm:$0xff]   ;;  %v13944_v1 = vld [vmem:[%s19612_s7 + $0x274] ss:$24 sps:$4 sm:$0xff]  }
 0xb4c   :  { %10555 = vmatpush2.bf16.msra.mxu1 %v20517_v55  ;;  %10596 = vmatpush2.bf16.msra.mxu0 %v20518_v49  ;;  %v13947_v55 = vld [vmem:[%s19612_s7 + $0x27c] ss:$24 sps:$4 sm:$0xff]  }
 0xb4d   :  { %10556 = vmatprep.subr.bf16.mxu1 %v20519_v50  ;;  %10597 = vmatprep.subr.bf16.mxu0 %v20520_v29  ;;  %v13950_v49 = vld [vmem:[%s19612_s7 + $0x244] ss:$24 sps:$4 sm:$0xff]   ;;  %v13945_v50 = vld [vmem:[%s19612_s7 + $0x278] ss:$24 sps:$4 sm:$0xff]  }
 0xb4e   :  { %v13953_v29 = vld [vmem:[%s19612_s7 + $0x24c] ss:$24 sps:$4 sm:$0xff]  }
 0xb50   :  { %10557 = vmatpush2.bf16.msra.mxu1 %v20521_v59  ;;  %10598 = vmatpush2.bf16.msra.mxu0 %v18846_v20  ;;  %v13893_v20 = vld [vmem:[%s19612_s7 + $0x12c] ss:$24 sps:$4 sm:$0xff]   ;;  %v13948_v59 = vld [vmem:[%s19612_s7 + $0x240] ss:$24 sps:$4 sm:$0xff]  }
 0xb51   :  { %10558 = vmatprep.subr.bf16.mxu1 %v18850_v56  ;;  %10599 = vmatprep.subr.bf16.mxu0 %v18852_v5  ;;  %v13884_v56 = vld [vmem:[%s19612_s7 + $0x154] ss:$24 sps:$4 sm:$0xff]   ;;  %v13882_v5 = vld [vmem:[%s19612_s7 + $0x150] ss:$24 sps:$4 sm:$0xff]  }
 0xb54   :  { %10559 = vmatpush2.bf16.msra.mxu1 %v18868_v63  ;;  %10600 = vmatpush2.bf16.msra.mxu0 %v18870_v34  ;;  %v13891_v63 = vld [vmem:[%s19612_s7 + $0x128] ss:$24 sps:$4 sm:$0xff]   ;;  %v13896_v34 = vld [vmem:[%s19612_s7 + $0xf4] ss:$24 sps:$4 sm:$0xff]  }
 0xb55   :  { %10560 = vmatprep.subr.bf16.mxu1 %v18874_v60  ;;  %10601 = vmatprep.subr.bf16.mxu0 %v18876_v24  ;;  %v13885_v60 = vld [vmem:[%s19612_s7 + $0x158] ss:$24 sps:$4 sm:$0xff]   ;;  %v13887_v24 = vld [vmem:[%s19612_s7 + $0x15c] ss:$24 sps:$4 sm:$0xff]  }
 0xb58   :  { %10561 = vmatpush2.bf16.msra.mxu1 %v18880_v43  ;;  %10602 = vmatpush2.bf16.msra.mxu0 %v18882_v30  ;;  %v13890_v43 = vld [vmem:[%s19612_s7 + $0x124] ss:$24 sps:$4 sm:$0xff]   ;;  %v13888_v30 = vld [vmem:[%s19612_s7 + $0x120] ss:$24 sps:$4 sm:$0xff]  }
 0xb59   :  { %11330 = vmatprep.subr.bf16.mxu1 %v13884_v56  ;;  %11371 = vmatprep.subr.bf16.mxu0 %v13887_v24  ;;  %v13956_v56 = vld [vmem:[%s19612_s7 + $0x214] ss:$24 sps:$4 sm:$0xff]  }
 0xb5a   :  { %v13959_v24 = vld [vmem:[%s19612_s7 + $0x21c] ss:$24 sps:$4 sm:$0xff]  }
 0xb5b   :  { %10563 = vmatmul.mubr.bf16.vlgmr.msra.gmra.mxu1 %v18976_v61  ;;  %10604 = vmatmul.mubr.bf16.vlgmr.msra.gmra.mxu0 %v18976_v61  ;;  %v13897_v61 = vld [vmem:[%s19612_s7 + $0xf8] ss:$24 sps:$4 sm:$0xff]  }
 0xb5c   :  { %11331 = vmatpush1.bf16.msra.mxu1 %v13882_v5  ;;  %11372 = vmatpush1.bf16.msra.mxu0 %v13885_v60  ;;  %v13951_v5 = vld [vmem:[%s19612_s7 + $0x248] ss:$24 sps:$4 sm:$0xff]  }
 0xb5d   :  { %11332 = vmatprep.subr.bf16.mxu1 %v13890_v43  ;;  %11373 = vmatprep.subr.bf16.mxu0 %v13893_v20  ;;  %v13954_v60 = vld [vmem:[%s19612_s7 + $0x210] ss:$24 sps:$4 sm:$0xff]   ;;  %v13962_v43 = vld [vmem:[%s19612_s7 + $0x1e4] ss:$24 sps:$4 sm:$0xff]  }
 0xb5e   :  { %v13965_v20 = vld [vmem:[%s19612_s7 + $0x1ec] ss:$24 sps:$4 sm:$0xff]  }
 0xb60   :  { %11333 = vmatpush1.bf16.msra.mxu1 %v13888_v30  ;;  %11374 = vmatpush1.bf16.msra.mxu0 %v13891_v63  ;;  %v13957_v30 = vld [vmem:[%s19612_s7 + $0x218] ss:$24 sps:$4 sm:$0xff]  }
 0xb61   :  { %11334 = vmatprep.subr.bf16.mxu1 %v13896_v34  ;;  %11375 = vmatprep.subr.bf16.mxu0 %v13899_v46  ;;  %v13960_v63 = vld [vmem:[%s19612_s7 + $0x1e0] ss:$24 sps:$4 sm:$0xff]   ;;  %v13968_v34 = vld [vmem:[%s19612_s7 + $0x1b4] ss:$24 sps:$4 sm:$0xff]  }
 0xb62   :  { %v13971_v46 = vld [vmem:[%s19612_s7 + $0x1bc] ss:$24 sps:$4 sm:$0xff]  }
 0xb64   :  { %11335 = vmatpush1.bf16.msra.mxu1 %v13894_v39  ;;  %11376 = vmatpush1.bf16.msra.mxu0 %v13897_v61  ;;  %v13963_v39 = vld [vmem:[%s19612_s7 + $0x1e8] ss:$24 sps:$4 sm:$0xff]  }
 0xb65   :  { %11336 = vmatprep.subr.bf16.mxu1 %v13902_v17  ;;  %11377 = vmatprep.subr.bf16.mxu0 %v13905_v38  ;;  %v13966_v61 = vld [vmem:[%s19612_s7 + $0x1b0] ss:$24 sps:$4 sm:$0xff]   ;;  %v13974_v17 = vld [vmem:[%s19612_s7 + $0x184] ss:$24 sps:$4 sm:$0xff]  }
 0xb66   :  { %v13977_v38 = vld [vmem:[%s19612_s7 + $0x18c] ss:$24 sps:$4 sm:$0xff]  }
 0xb68   :  { %11337 = vmatpush1.bf16.msra.mxu1 %v13900_v9  ;;  %11378 = vmatpush1.bf16.msra.mxu0 %v13903_v13  ;;  %v13969_v9 = vld [vmem:[%s19612_s7 + $0x1b8] ss:$24 sps:$4 sm:$0xff]  }
 0xb69   :  { %11338 = vmatprep.subr.bf16.mxu1 %v13908_v28  ;;  %11379 = vmatprep.subr.bf16.mxu0 %v13911_v40  ;;  %v13972_v13 = vld [vmem:[%s19612_s7 + $0x180] ss:$24 sps:$4 sm:$0xff]  }
 0xb6a   :  { %v13975_v28 = vld [vmem:[%s19612_s7 + $0x188] ss:$24 sps:$4 sm:$0xff]  }
 0xb6c   :  { %11339 = vmatpush1.bf16.msra.mxu1 %v13906_v4  ;;  %11380 = vmatpush1.bf16.msra.mxu0 %v13909_v15  ;;  %v13980_v4 = vld [vmem:[%s19612_s7 + $0x164] ss:$24 sps:$4 sm:$0xff]  }
 0xb6d   :  { %11340 = vmatprep.subr.bf16.mxu1 %v13914_v22  ;;  %11381 = vmatprep.subr.bf16.mxu0 %v13917_v18 }
 0xb70   :  { %11341 = vmatpush1.bf16.msra.mxu1 %v13912_v36  ;;  %11382 = vmatpush1.bf16.msra.mxu0 %v13915_v26 }
 0xb71   :  { %11342 = vmatprep.subr.bf16.mxu1 %v13920_v27  ;;  %11383 = vmatprep.subr.bf16.mxu0 %v13923_v7 }
 0xb74   :  { %11343 = vmatpush1.bf16.msra.mxu1 %v13918_v31  ;;  %11384 = vmatpush1.bf16.msra.mxu0 %v13921_v51 }
 0xb75   :  { %11344 = vmatprep.subr.bf16.mxu1 %v13926_v41  ;;  %11385 = vmatprep.subr.bf16.mxu0 %v13929_v62 }
 0xb78   :  { %11345 = vmatpush1.bf16.msra.mxu1 %v13924_v42  ;;  %11386 = vmatpush1.bf16.msra.mxu0 %v13927_v33  ;;  %v10614_v33 = vld [vmem:[#allocation2 + $0x7] ss:$8 sm:$0xf0] }
 0xb79   :  { %11346 = vmatprep.subr.bf16.mxu1 %v13932_v0  ;;  %11387 = vmatprep.subr.bf16.mxu0 %v13935_v3  ;;  %v10613_v0 = vld [vmem:[#allocation2 + $0x7] ss:$8 sm:$0xf] }
 0xb7c   :  { %11347 = vmatpush2.bf16.msra.mxu1 %v13930_v44  ;;  %11388 = vmatpush2.bf16.msra.mxu0 %v13933_v12  ;;  %v10615_v44 = vor.u32 %v10614_v33, %v10613_v0  ;;  %v14019_v33 = vld [vmem:[%s19612_s7 + $0x1f4] ss:$24 sps:$4 sm:$0xff]   ;;  %v14020_v0 = vld [vmem:[%s19612_s7 + $0x1c0] ss:$24 sps:$4 sm:$0xff]  }
 0xb7d   :  { %11348 = vmatprep.subr.bf16.mxu1 %v13938_v45  ;;  %11389 = vmatprep.subr.bf16.mxu0 %v13941_v54 }
 0xb80   :  { %11349 = vmatpush2.bf16.msra.mxu1 %v13936_v35  ;;  %11390 = vmatpush2.bf16.msra.mxu0 %v13939_v6 }
 0xb81   :  { %11350 = vmatprep.subr.bf16.mxu1 %v13944_v1  ;;  %11391 = vmatprep.subr.bf16.mxu0 %v13947_v55 }
 0xb84   :  { %11351 = vmatpush2.bf16.msra.mxu1 %v13942_v52  ;;  %11392 = vmatpush2.bf16.msra.mxu0 %v13945_v50 }
 0xb85   :  { %11352 = vmatprep.subr.bf16.mxu1 %v13950_v49  ;;  %11393 = vmatprep.subr.bf16.mxu0 %v13953_v29 }
 0xb88   :  { %11353 = vmatpush2.bf16.msra.mxu1 %v13948_v59  ;;  %11394 = vmatpush2.bf16.msra.mxu0 %v13951_v5 }
 0xb89   :  { %11354 = vmatprep.subr.bf16.mxu1 %v13956_v56  ;;  %11395 = vmatprep.subr.bf16.mxu0 %v13959_v24 }
 0xb8c   :  { %11355 = vmatpush2.bf16.msra.mxu1 %v13954_v60  ;;  %11396 = vmatpush2.bf16.msra.mxu0 %v13957_v30  ;;  %v13978_v30 = vld [vmem:[%s19612_s7 + $0x160] ss:$24 sps:$4 sm:$0xff]  }
 0xb8d   :  { %11356 = vmatprep.subr.bf16.mxu1 %v13962_v43  ;;  %11397 = vmatprep.subr.bf16.mxu0 %v13965_v20 }
 0xb90   :  { %11357 = vmatpush2.bf16.msra.mxu1 %v13960_v63  ;;  %11398 = vmatpush2.bf16.msra.mxu0 %v13963_v39  ;;  %v13983_v63 = vld [vmem:[%s19612_s7 + $0x134] ss:$24 sps:$4 sm:$0xff]   ;;  %v13986_v39 = vld [vmem:[%s19612_s7 + $0x104] ss:$24 sps:$4 sm:$0xff]  }
 0xb91   :  { %11358 = vmatprep.subr.bf16.mxu1 %v13968_v34  ;;  %11399 = vmatprep.subr.bf16.mxu0 %v13971_v46  ;;  %v13981_v34 = vld [vmem:[%s19612_s7 + $0x130] ss:$24 sps:$4 sm:$0xff]   ;;  %v13984_v46 = vld [vmem:[%s19612_s7 + $0x100] ss:$24 sps:$4 sm:$0xff]  }
 0xb94   :  { %11359 = vmatpush2.bf16.msra.mxu1 %v13966_v61  ;;  %11400 = vmatpush2.bf16.msra.mxu0 %v13969_v9  ;;  %v13989_v61 = vld [vmem:[%s19612_s7 + $0xd4] ss:$24 sps:$4 sm:$0xff]   ;;  %v13992_v9 = vld [vmem:[%s19612_s7 + $0xa4] ss:$24 sps:$4 sm:$0xff]  }
 0xb95   :  { %11360 = vmatprep.subr.bf16.mxu1 %v13974_v17  ;;  %11401 = vmatprep.subr.bf16.mxu0 %v13977_v38  ;;  %v13987_v17 = vld [vmem:[%s19612_s7 + $0xd0] ss:$24 sps:$4 sm:$0xff]   ;;  %v13990_v38 = vld [vmem:[%s19612_s7 + $0xa0] ss:$24 sps:$4 sm:$0xff]  }
 0xb98   :  { %11361 = vmatpush2.bf16.msra.mxu1 %v13972_v13  ;;  %11402 = vmatpush2.bf16.msra.mxu0 %v13975_v28  ;;  %v13995_v13 = vld [vmem:[%s19612_s7 + $0x74] ss:$24 sps:$4 sm:$0xff]   ;;  %v13993_v28 = vld [vmem:[%s19612_s7 + $0x70] ss:$24 sps:$4 sm:$0xff]  }
 0xb99   :  { %11412 = vmatprep.subr.bf16.mxu1 %v13980_v4  ;;  %v13998_v4 = vld [vmem:[%s19612_s7 + $0x44] ss:$24 sps:$4 sm:$0xff]  }
 0xbdb   :  { %v10482_v14 = vpop.f32.mrf.mxu1  ;;  %v10523_v57 = vpop.f32.mrf.mxu0 }
 0xbdd   :  { %v10484_v37 = vpop.f32.mrf.mxu1  ;;  %v10525_v58 = vpop.f32.mrf.mxu0 }
 0xbde   :  { %v10624_v10 = vcombine.low %v10482_v14, %v10484_v37  ;;  %v10625_v21 = vcombine.low %v10523_v57, %v10525_v58 }
 0xbdf   :  { %v10486_v16 = vpop.f32.mrf.mxu1  ;;  %v10527_v11 = vpop.f32.mrf.mxu0 }
 0xbe0   :  { %v19156_v47 = vrot.slane %v10624_v10, %v16173_v32  ;;  %v19159_v23 = vrot.slane %v10625_v21, %v16173_v32 }
 0xbe1   :  { %v10487_v53 = vpop.f32.mrf.mxu1  ;;  %v10528_v2 = vpop.f32.mrf.mxu0 }
 0xbe2   :  { %v10656_v25 = vcombine.low %v19156_v47, %v19159_v23 }
 0xbe4   :  { %v10664_v14 = vrot.slane %v10656_v25, %v16173_v32 }
 0xc1b   :  { %v10564_v40 = vpop.f32.mrf.mxu1  ;;  %v10605_v15 = vpop.f32.mrf.mxu0 }
 0xc1d   :  { %v10566_v22 = vpop.f32.mrf.mxu1  ;;  %v10607_v36 = vpop.f32.mrf.mxu0 }
 0xc1e   :  { %v10626_v18 = vcombine.low %v10564_v40, %v10566_v22  ;;  %v10627_v26 = vcombine.low %v10605_v15, %v10607_v36  ;;  %v13996_v40 = vld [vmem:[%s19612_s7 + $0x40] ss:$24 sps:$4 sm:$0xff]   ;;  %v14001_v15 = vld [vmem:[%s19612_s7 + $0x14] ss:$24 sps:$4 sm:$0xff]   ;;  %v13999_v22 = vld [vmem:[%s19612_s7 + $0x10] ss:$24 sps:$4 sm:$0xff]  }
 0xc1f   :  { %v10568_v27 = vpop.f32.mrf.mxu1  ;;  %v10609_v31 = vpop.f32.mrf.mxu0  ;;  %v14004_v36 = vld [vmem:[%s19612_s7 + $0x2e4] ss:$24 sps:$4 sm:$0xff]  }
 0xc20   :  { %v10648_v7 = vrot.slane %v10626_v18, %v16173_v32  ;;  %v10655_v51 = vrot.slane %v10627_v26, %v16173_v32  ;;  %v14002_v18 = vld [vmem:[%s19612_s7 + $0x2e0] ss:$24 sps:$4 sm:$0xff]   ;;  %v14007_v26 = vld [vmem:[%s19612_s7 + $0x2b4] ss:$24 sps:$4 sm:$0xff]   ;;  %v14005_v27 = vld [vmem:[%s19612_s7 + $0x2b0] ss:$24 sps:$4 sm:$0xff]  }
 0xc21   :  { %v10569_v41 = vpop.f32.mrf.mxu1  ;;  %v10610_v42 = vpop.f32.mrf.mxu0  ;;  %v14010_v31 = vld [vmem:[%s19612_s7 + $0x284] ss:$24 sps:$4 sm:$0xff]  }
 0xc22   :  { %v10657_v62 = vcombine.low %v10648_v7, %v10655_v51  ;;  %v14008_v7 = vld [vmem:[%s19612_s7 + $0x280] ss:$24 sps:$4 sm:$0xff]   ;;  %v14013_v51 = vld [vmem:[%s19612_s7 + $0x254] ss:$24 sps:$4 sm:$0xff]   ;;  %v14011_v41 = vld [vmem:[%s19612_s7 + $0x250] ss:$24 sps:$4 sm:$0xff]  }
 0xc23   :  { %v14016_v42 = vld [vmem:[%s19612_s7 + $0x224] ss:$24 sps:$4 sm:$0xff]  }
 0xc24   :  { %v10671_v57 = vrot.slane %v10657_v62, %v16173_v32  ;;  %v14014_v62 = vld [vmem:[%s19612_s7 + $0x220] ss:$24 sps:$4 sm:$0xff]  }
 0xc26   :  { %v10672_v3 = vcombine.low %v10664_v14, %v10671_v57  ;;  %v14017_v14 = vld [vmem:[%s19612_s7 + $0x1f0] ss:$24 sps:$4 sm:$0xff]   ;;  %v14022_v57 = vld [vmem:[%s19612_s7 + $0x1c4] ss:$24 sps:$4 sm:$0xff]  }
 0xc28   :  { %v10674_v37 = vadd.f32 %v10672_v3, %v10615_v44  ;;  %v14025_v44 = vld [vmem:[%s19612_s7 + $0x194] ss:$24 sps:$4 sm:$0xff]   ;;  %v14023_v3 = vld [vmem:[%s19612_s7 + $0x190] ss:$24 sps:$4 sm:$0xff]  }
 0xc2a   :  { %v13553_v58 = vmul.f32 -1.442695, %v10674_v37  ;;  %v10682_v12 = vrot.slane %v10674_v37, 2  ;;  %v10693_v21 = vrot.slane %v10674_v37, 6  ;;  %v10690_v45 = vrot.slane %v10674_v37, 4 }
 0xc2c   :  { %14202 = vpow2.f32 %v13553_v58  ;;  %v13554_v10 = vmul.f32 -1.442695, %v10682_v12  ;;  %v13555_v16 = vmul.f32 -1.442695, %v10693_v21 }
 0xc2e   :  { %14204 = vpow2.f32 %v13554_v10 }
 0xc2f   :  { %14206 = vpow2.f32 %v13555_v16 }
 0xc39   :  { %v14203_v11 = vpop.eup %14202 }
 0xc3a   :  { %v10678_v35 = vadd.f32 1.0, %v14203_v11 }
 0xc3b   :  { %v14205_v54 = vpop.eup %14204 }
 0xc3c   :  { %14208 = vrcp.f32 %v10678_v35  ;;  %v10687_v47 = vadd.f32 1.0, %v14205_v54  ;;  %v14207_v32 = vpop.eup %14206  ;;  %v10818_v35 = vld [vmem:[%s19613_s8] sm:$0x3f]  ;;  %v20522_v54 = vld [vmem:[#allocation4_spill] sm:$0xff] }
 0xc3d   :  { %14210 = vtanh.f32 %v10690_v45  ;;  %v10698_v6 = vadd.f32 1.0, %v14207_v32 }
 0xc3e   :  { %14212 = vrcp.f32 %v10687_v47  ;;  %v20523_v47 = vsub.s32 4, %v20522_v54 }
 0xc3f   :  { %14214 = vrcp.f32 %v10698_v6 }
 0xc40   :  { %v10839_v32 = vrot.slane %v10818_v35, %v20523_v47  ;;  %v14039_v47 = vld [vmem:[%s19614_s10 + $0x20] sm:$0xff]  }
 0xc49   :  { %v14209_v23 = vpop.eup %14208 }
 0xc4a   :  { %v14211_v53 = vpop.eup %14210 }
 0xc4b   :  { %v14213_v2 = vpop.eup %14212  ;;  %v10702_v52 = vmul.f32 %v14211_v53, %v14209_v23  ;;  %v10823_v23 = vrot.slane %v10818_v35, %v20031_v19  ;;  %v10827_v53 = vrot.slane %v10818_v35, %v20030_v8 }
 0xc4c   :  { %v10701_v25 = vmul.f32 %v14213_v2, %v18971_v48  ;;  %v14215_v55 = vpop.eup %14214  ;;  %v20524_v2 = vsub.s32 3, %v20522_v54 }
 0xc4e   :  { %v10703_v1 = vadd.f32 %v10702_v52, %v10701_v25  ;;  %v10835_v6 = vrot.slane %v10818_v35, %v20524_v2  ;;  %v20525_v25 = vsub.s32 5, %v20522_v54  ;;  %v14043_v2 = vld [vmem:[%s19614_s10 + $0x18] sm:$0xff]  }
 0xc50   :  { %14216 = vtanh.f32 %v10703_v1  ;;  %v10843_v52 = vrot.slane %v10818_v35, %v20525_v25  ;;  %v14046_v25 = vld [vmem:[%s19614_s10 + $0x50] sm:$0xff]  }
 0xc5d   :  { %v14217_v49 = vpop.eup %14216 }
 0xc5e   :  { %v10705_v50 = vmul.f32 %v14217_v49, %v14215_v55  ;;  %v20526_v55 = vsub.s32 2, %v20522_v54  ;;  %v14038_v54 = vld [vmem:[%s19614_s10 + $0x60] sm:$0xff]  }
 0xc60   :  { %10706 = vst [vmem:[#allocation3 + $0x7] sm:$0x1] %v10705_v50  ;;  %v10711_v29 = vrot.slane %v10705_v50, %v20030_v8  ;;  %v10831_v49 = vrot.slane %v10818_v35, %v20526_v55  ;;  %v14037_v35 = vld [vmem:[%s19614_s10 + $0x128] sm:$0xff]   ;;  %v14048_v55 = vld [vmem:[%s19614_s10 + $0x150] sm:$0xff]  }
 0xc62   :  { %10713 = vst [vmem:[#allocation3 + $0x8] sm:$0x1] %v10711_v29 }
 0xc67   :  { %v10714_v59 = vld [vmem:[#allocation3] sm:$0xff] }
 0xc68   :  { %14218 = vtanh.f32 %v10714_v59 }
 0xc69   :  { %v10715_v56 = vld [vmem:[#allocation3 + $0x8] sm:$0xff] }
 0xc6a   :  { %14220 = vtanh.f32 %v10715_v56 }
 0xc75   :  { %v14219_v5 = vpop.eup %14218 }
 0xc76   :  { %v10718_v24 = vmax.f32 %v14219_v5, 0.0 }
 0xc77   :  { %v14221_v60 = vpop.eup %14220 }
 0xc78   :  { %v10719_v43 = vmax.f32 %v14221_v60, 0.0  ;;  %v19261_v20 = vpack.c.bf16 %v10718_v24, %v10718_v24 }
 0xc7a   :  { %v19256_v48 = vpack.c.bf16 %v10719_v43, %v10719_v43 }
 0xc7c   :  { %11362 = vmatprep.mubr.bf16.mxu1 %v19256_v48  ;;  %11403 = vmatprep.mubr.bf16.mxu0 %v19256_v48 }
 0xc7d   :  { %11363 = vmatmul.mubr.bf16.vlgmr.msra.gmra.mxu1 %v19261_v20  ;;  %11404 = vmatmul.mubr.bf16.vlgmr.msra.gmra.mxu0 %v19261_v20 }
 0xc7e   :  { %11413 = vmatpush1.bf16.msra.mxu1 %v13978_v30  ;;  %11444 = vmatprep.mubr.bf16.mxu1 %v19256_v48 }
 0xc7f   :  { %11414 = vmatprep.subr.bf16.mxu1 %v13983_v63 }
 0xc82   :  { %11415 = vmatpush1.bf16.msra.mxu1 %v13981_v34 }
 0xc83   :  { %11416 = vmatprep.subr.bf16.mxu1 %v13986_v39 }
 0xc86   :  { %11417 = vmatpush1.bf16.msra.mxu1 %v13984_v46  ;;  %v14026_v46 = vld [vmem:[%s19614_s10 + $0x78] sm:$0xff]  }
 0xc87   :  { %11418 = vmatprep.subr.bf16.mxu1 %v13989_v61  ;;  %v14027_v61 = vld [vmem:[%s19614_s10 + $0x38] sm:$0xff]   ;;  %13717 = vmatprep.subr.bf16.mxu0 %v14026_v46  ;;  %v11496_v46 = vld [vmem:[%s19616_s1 + $0x20] sm:$0xff] }
 0xc88   :  { %13718 = vmatpush3.bf16.msra.mxu0 %v14027_v61 }
 0xc8a   :  { %11419 = vmatpush1.bf16.msra.mxu1 %v13987_v17  ;;  %v14028_v17 = vld [vmem:[%s19614_s10 + $0x178] sm:$0xff]  }
 0xc8b   :  { %11420 = vmatprep.subr.bf16.mxu1 %v13992_v9  ;;  %v14029_v9 = vld [vmem:[%s19614_s10 + $0x138] sm:$0xff]  }
 0xc8e   :  { %11421 = vmatpush1.bf16.msra.mxu1 %v13990_v38  ;;  %v14030_v38 = vld [vmem:[%s19614_s10 + $0x70] sm:$0xff]  }
 0xc8f   :  { %11422 = vmatprep.subr.bf16.mxu1 %v13995_v13  ;;  %v14031_v13 = vld [vmem:[%s19614_s10 + $0x30] sm:$0xff]   ;;  %13719 = vmatprep.subr.bf16.mxu0 %v14030_v38 }
 0xc90   :  { %13720 = vmatpush3.bf16.msra.mxu0 %v14031_v13  ;;  %v11495_v13 = vld [vmem:[%s19616_s1 + $0x18] sm:$0xff] }
 0xc92   :  { %11423 = vmatpush1.bf16.msra.mxu1 %v13993_v28  ;;  %v14032_v28 = vld [vmem:[%s19614_s10 + $0x170] sm:$0xff]  }
 0xc93   :  { %11424 = vmatprep.subr.bf16.mxu1 %v13998_v4  ;;  %v14033_v4 = vld [vmem:[%s19614_s10 + $0x130] sm:$0xff]  }
 0xc96   :  { %11425 = vmatpush1.bf16.msra.mxu1 %v13996_v40  ;;  %v14034_v40 = vld [vmem:[%s19614_s10 + $0x68] sm:$0xff]  }
 0xc97   :  { %11426 = vmatprep.subr.bf16.mxu1 %v14001_v15  ;;  %v14035_v15 = vld [vmem:[%s19614_s10 + $0x28] sm:$0xff]   ;;  %13721 = vmatprep.subr.bf16.mxu0 %v14034_v40 }
 0xc98   :  { %13722 = vmatpush3.bf16.msra.mxu0 %v14035_v15 }
 0xc99   :  { %13723 = vmatprep.subr.bf16.mxu0 %v14038_v54  ;;  %v11494_v54 = vld [vmem:[%s19616_s1 + $0x10] sm:$0xff] }
 0xc9a   :  { %11427 = vmatpush1.bf16.msra.mxu1 %v13999_v22  ;;  %v14036_v22 = vld [vmem:[%s19614_s10 + $0x168] sm:$0xff]  }
 0xc9b   :  { %11428 = vmatprep.subr.bf16.mxu1 %v14004_v36 }
 0xc9c   :  { %13724 = vmatpush3.bf16.msra.mxu0 %v14039_v47  ;;  %v14071_v47 = vld [vmem:[%s19614_s10 + $0x88] sm:$0xff]  }
 0xc9e   :  { %11429 = vmatpush2.bf16.msra.mxu1 %v14002_v18 }
 0xc9f   :  { %11430 = vmatprep.subr.bf16.mxu1 %v14007_v26 }
 0xca2   :  { %11431 = vmatpush2.bf16.msra.mxu1 %v14005_v27 }
 0xca3   :  { %11432 = vmatprep.subr.bf16.mxu1 %v14010_v31 }
 0xca6   :  { %11433 = vmatpush2.bf16.msra.mxu1 %v14008_v7 }
 0xca7   :  { %11434 = vmatprep.subr.bf16.mxu1 %v14013_v51 }
 0xcaa   :  { %11435 = vmatpush2.bf16.msra.mxu1 %v14011_v41 }
 0xcab   :  { %11436 = vmatprep.subr.bf16.mxu1 %v14016_v42 }
 0xcae   :  { %11437 = vmatpush2.bf16.msra.mxu1 %v14014_v62 }
 0xcaf   :  { %11438 = vmatprep.subr.bf16.mxu1 %v14019_v33 }
 0xcb2   :  { %11439 = vmatpush2.bf16.msra.mxu1 %v14017_v14 }
 0xcb3   :  { %11440 = vmatprep.subr.bf16.mxu1 %v14022_v57 }
 0xcb6   :  { %11441 = vmatpush2.bf16.msra.mxu1 %v14020_v0 }
 0xcb7   :  { %11442 = vmatprep.subr.bf16.mxu1 %v14025_v44 }
 0xcba   :  { %11443 = vmatpush2.bf16.msra.mxu1 %v14023_v3 }
 0xcbb   :  { %13761 = vmatprep.subr.bf16.mxu1 %v14028_v17 }
 0xcbd   :  { %11445 = vmatmul.mubr.bf16.vlgmr.msra.gmra.mxu1 %v19261_v20 }
 0xcbe   :  { %13762 = vmatpush3.bf16.msra.mxu1 %v14029_v9 }
 0xcbf   :  { %13763 = vmatprep.subr.bf16.mxu1 %v14032_v28 }
 0xcc2   :  { %13764 = vmatpush3.bf16.msra.mxu1 %v14033_v4 }
 0xcc3   :  { %13765 = vmatprep.subr.bf16.mxu1 %v14036_v22 }
 0xcc6   :  { %13766 = vmatpush3.bf16.msra.mxu1 %v14037_v35 }
 0xd3d   :  { %v11364_v37 = vpop.f32.mrf.mxu1  ;;  %v11405_v58 = vpop.f32.mrf.mxu0 }
 0xd3e   :  { %v11365_v59 = vadd.f32 %v11364_v37, %v10823_v23  ;;  %v11406_v19 = vadd.f32 %v11405_v58, %v10831_v49  ;;  %v14042_v23 = vld [vmem:[%s19614_s10 + $0x58] sm:$0xff]   ;;  %v14050_v49 = vld [vmem:[%s19614_s10 + $0x48] sm:$0xff]  }
 0xd3f   :  { %v11366_v12 = vpop.f32.mrf.mxu1  ;;  %v11407_v10 = vpop.f32.mrf.mxu0  ;;  %13725 = vmatprep.subr.bf16.mxu0 %v14042_v23 }
 0xd40   :  { %v11367_v56 = vadd.f32 %v11366_v12, %v10827_v53  ;;  %v11408_v5 = vadd.f32 %v11407_v10, %v10835_v6  ;;  %v14041_v53 = vld [vmem:[%s19614_s10 + $0x120] sm:$0xff]   ;;  %v14044_v6 = vld [vmem:[%s19614_s10 + $0x158] sm:$0xff]   ;;  %13726 = vmatpush3.bf16.msra.mxu0 %v14043_v2 }
 0xd41   :  { %v11368_v21 = vpop.f32.mrf.mxu1  ;;  %v11409_v16 = vpop.f32.mrf.mxu0  ;;  %13727 = vmatprep.subr.bf16.mxu0 %v14046_v25  ;;  %v14074_v2 = vld [vmem:[%s19615_s9 + $0x78] sm:$0xff]  }
 0xd42   :  { %v11456_v34 = vmax.f32 %v11406_v19, %v11408_v5 }
 0xd43   :  { %v11369_v11 = vpop.f32.mrf.mxu1  ;;  %v11410_v45 = vpop.f32.mrf.mxu0 }
 0xd7d   :  { %v11446_v1 = vpop.f32.mrf.mxu1 }
 0xd7e   :  { %v11447_v50 = vadd.f32 %v11446_v1, %v10839_v32  ;;  %v14040_v32 = vld [vmem:[%s19614_s10 + $0x160] sm:$0xff]   ;;  %v14047_v1 = vld [vmem:[%s19614_s10 + $0x10] sm:$0xff]  }
 0xd7f   :  { %v11448_v29 = vpop.f32.mrf.mxu1  ;;  %13767 = vmatprep.subr.bf16.mxu1 %v14040_v32  ;;  %13728 = vmatpush3.bf16.msra.mxu0 %v14047_v1  ;;  %v14072_v32 = vld [vmem:[%s19614_s10 + $0xc0] sm:$0xff]   ;;  %v14077_v1 = vld [vmem:[%s19615_s9 + $0x30] sm:$0xff]  }
 0xd80   :  { %v11449_v60 = vadd.f32 %v11448_v29, %v10843_v52  ;;  %v11453_v43 = vmax.f32 %v11365_v59, %v11447_v50  ;;  %13768 = vmatpush3.bf16.msra.mxu1 %v14041_v53  ;;  %v14045_v52 = vld [vmem:[%s19614_s10 + $0x118] sm:$0xff]   ;;  %v14051_v29 = vld [vmem:[%s19614_s10 + $0x8] sm:$0xff]   ;;  %13729 = vmatprep.subr.bf16.mxu0 %v14050_v49 }
 0xd81   :  { %v11450_v24 = vpop.f32.mrf.mxu1  ;;  %13769 = vmatprep.subr.bf16.mxu1 %v14044_v6  ;;  %v14075_v6 = vld [vmem:[%s19615_s9 + $0x38] sm:$0xff]   ;;  %v14079_v49 = vld [vmem:[%s19615_s9 + $0x28] sm:$0xff]  }
 0xd82   :  { %v11454_v8 = vmax.f32 %v11367_v56, %v11449_v60  ;;  %v14056_v24 = vld [vmem:[%s19614_s10 + $0x140] sm:$0xff]  }
 0xd83   :  { %v11451_v30 = vpop.f32.mrf.mxu1  ;;  %13730 = vmatpush3.bf16.msra.mxu0 %v14051_v29  ;;  %v14082_v29 = vld [vmem:[%s19615_s9 + $0x58] sm:$0xff]  }
 0xd84   :  { %v11455_v63 = vmax.f32 %v11453_v43, %v11454_v8  ;;  %13770 = vmatpush3.bf16.msra.mxu1 %v14045_v52  ;;  %v14058_v43 = vld [vmem:[%s19614_s10 + $0xf8] sm:$0xff]   ;;  %v11493_v30 = vld [vmem:[%s19616_s1 + $0x8] sm:$0xff]  ;;  %v14076_v52 = vld [vmem:[%s19615_s9 + $0x70] sm:$0xff]  }
 0xd85   :  { %13771 = vmatprep.subr.bf16.mxu1 %v14048_v55  ;;  %v14078_v55 = vld [vmem:[%s19615_s9 + $0x68] sm:$0xff]  }
 0xd86   :  { %v11457_v39 = vmax.f32 %v11455_v63, %v11456_v34  ;;  %v11497_v34 = vld [vmem:[%s19616_s1 + $0x28] sm:$0xff] }
 0xd88   :  { %11458 = vmax.xlane.f32.xlu0 %v11457_v39  ;;  %v11492_v39 = vld [vmem:[%s19616_s1] sm:$0xff] }
 0xe11   :  { %v11459_v36 = vpop.xlane.xlu0 %11458 }
 0xe12   :  { %v11460_v18 = vsub.f32 %v11365_v59, %v11459_v36  ;;  %v11461_v26 = vsub.f32 %v11367_v56, %v11459_v36  ;;  %v11462_v27 = vsub.f32 %v11406_v19, %v11459_v36  ;;  %v11463_v31 = vsub.f32 %v11408_v5, %v11459_v36  ;;  %v14052_v59 = vld [vmem:[%s19614_s10 + $0x148] sm:$0xff]   ;;  %v14054_v56 = vld [vmem:[%s19614_s10 + $0x40] sm:$0xff]  }
 0xe13   :  { %v11464_v41 = vsub.f32 %v11447_v50, %v11459_v36  ;;  %v11465_v62 = vsub.f32 %v11449_v60, %v11459_v36  ;;  %v14049_v50 = vld [vmem:[%s19614_s10 + $0x110] sm:$0xff]   ;;  %v14053_v5 = vld [vmem:[%s19614_s10 + $0x108] sm:$0xff]   ;;  %v14055_v60 = vld [vmem:[%s19614_s10] sm:$0xff]   ;;  %13731 = vmatprep.subr.bf16.mxu0 %v14054_v56 }
 0xe14   :  { %v11466_v7 = vmul.f32 1.442695, %v11460_v18  ;;  %v11468_v51 = vmul.f32 1.442695, %v11461_v26  ;;  %v11470_v42 = vmul.f32 1.442695, %v11462_v27  ;;  %13772 = vmatpush3.bf16.msra.mxu1 %v14049_v50  ;;  %13732 = vmatpush3.bf16.msra.mxu0 %v14055_v60 }
 0xe15   :  { %v11472_v33 = vmul.f32 1.442695, %v11463_v31  ;;  %v11474_v14 = vmul.f32 1.442695, %v11464_v41  ;;  %v11476_v57 = vmul.f32 1.442695, %v11465_v62  ;;  %13773 = vmatprep.subr.bf16.mxu1 %v14052_v59  ;;  %13739 = vmatprep.subr.bf16.mxu0 %v14058_v43 }
 0xe16   :  { %14222 = vpow2.f32 %v11466_v7  ;;  %v14057_v19 = vld [vmem:[%s19614_s10 + $0x100] sm:$0xff]   ;;  %v14059_v62 = vld [vmem:[%s19614_s10 + $0xb8] sm:$0xff]   ;;  %v14084_v56 = vld [vmem:[%s19615_s9 + $0x50] sm:$0xff]  }
 0xe17   :  { %14224 = vpow2.f32 %v11468_v51  ;;  %v14080_v50 = vld [vmem:[%s19615_s9 + $0x60] sm:$0xff]   ;;  %v14083_v59 = vld [vmem:[%s19615_s9 + $0x18] sm:$0xff]   ;;  %v14086_v60 = vld [vmem:[%s19615_s9 + $0x48] sm:$0xff]  }
 0xe18   :  { %14226 = vpow2.f32 %v11470_v42  ;;  %13774 = vmatpush3.bf16.msra.mxu1 %v14053_v5  ;;  %v14085_v5 = vld [vmem:[%s19615_s9 + $0x10] sm:$0xff]   ;;  %v14089_v43 = vld [vmem:[%s19615_s9] sm:$0xff]  }
 0xe19   :  { %14228 = vpow2.f32 %v11472_v33  ;;  %13775 = vmatprep.subr.bf16.mxu1 %v14056_v24  ;;  %v14087_v24 = vld [vmem:[%s19615_s9 + $0x8] sm:$0xff]  }
 0xe1a   :  { %14230 = vpow2.f32 %v11474_v14  ;;  %v14060_v14 = vld [vmem:[%s19614_s10 + $0xf0] sm:$0xff]  }
 0xe1b   :  { %14232 = vpow2.f32 %v11476_v57 }
 0xe1c   :  { %13776 = vmatpush3.bf16.msra.mxu1 %v14057_v19  ;;  %v14088_v19 = vld [vmem:[%s19615_s9 + $0x40] sm:$0xff]  }
 0xe23   :  { %v19405_v0 = vpop.eup %14222 }
 0xe24   :  { %v19407_v44 = vpop.eup %14224 }
 0xe25   :  { %v11478_v3 = vadd.f32 %v19407_v44, %v19405_v0  ;;  %v19411_v37 = vpop.eup %14226 }
 0xe26   :  { %v19414_v12 = vpop.eup %14228 }
 0xe27   :  { %v11479_v58 = vadd.f32 %v19411_v37, %v11478_v3  ;;  %v14231_v21 = vpop.eup %14230  ;;  %v14063_v3 = vld [vmem:[%s19614_s10 + $0xa8] sm:$0xff]  }
 0xe28   :  { %v14233_v11 = vpop.eup %14232 }
 0xe29   :  { %v11480_v10 = vadd.f32 %v19414_v12, %v11479_v58  ;;  %v14064_v58 = vld [vmem:[%s19614_s10 + $0xe0] sm:$0xff]  }
 0xe2b   :  { %v11481_v16 = vadd.f32 %v14231_v21, %v11480_v10  ;;  %v14066_v10 = vld [vmem:[%s19614_s10 + $0xd8] sm:$0xff]  }
 0xe2d   :  { %v11482_v45 = vadd.f32 %v14233_v11, %v11481_v16  ;;  %v14068_v16 = vld [vmem:[%s19614_s10 + $0xd0] sm:$0xff]  }
 0xe2f   :  { %11483 = vadd.xlane.f32.xlu0 %v11482_v45  ;;  %v14070_v45 = vld [vmem:[%s19614_s10 + $0xc8] sm:$0xff]  }
 0xeb8   :  { %v11484_v8 = vpop.xlane.xlu0 %11483 }
 0xeb9   :  { %14234 = vrcp.f32 %v11484_v8 }
 0xec6   :  { %v14235_v63 = vpop.eup %14234 }
 0xec7   :  { %v11487_v61 = vmul.f32 %v14235_v63, %v19407_v44  ;;  %v11491_v17 = vmul.f32 %v14235_v63, %v14233_v11  ;;  %v11486_v9 = vmul.f32 %v14235_v63, %v19405_v0  ;;  %v11490_v38 = vmul.f32 %v14235_v63, %v14231_v21  ;;  %v14061_v0 = vld [vmem:[%s19614_s10 + $0xb0] sm:$0xff]   ;;  %v14062_v44 = vld [vmem:[%s19614_s10 + $0xe8] sm:$0xff]   ;;  %v14067_v21 = vld [vmem:[%s19614_s10 + $0x98] sm:$0xff]  }
 0xec8   :  { %v11489_v28 = vmul.f32 %v14235_v63, %v19414_v12  ;;  %v14065_v12 = vld [vmem:[%s19614_s10 + $0xa0] sm:$0xff]   ;;  %v14069_v11 = vld [vmem:[%s19614_s10 + $0x90] sm:$0xff]   ;;  %v11488_v35 = vmul.f32 %v14235_v63, %v19411_v37 }
 0xec9   :  { %v11499_v4 = vmul.f32 %v11493_v30, %v11487_v61  ;;  %v11503_v40 = vmul.f32 %v11497_v34, %v11491_v17  ;;  %v11498_v15 = vmul.f32 %v11492_v39, %v11486_v9  ;;  %v11502_v22 = vmul.f32 %v11496_v46, %v11490_v38  ;;  %v14073_v37 = vld [vmem:[%s19614_s10 + $0x80] sm:$0xff]  }
 0xeca   :  { %v11501_v36 = vmul.f32 %v11495_v13, %v11489_v28  ;;  %v11500_v23 = vmul.f32 %v11494_v54, %v11488_v35 }
 0xecb   :  { %v11505_v18 = vmax.f32 %v11499_v4, 0.0  ;;  %v11509_v26 = vmax.f32 %v11503_v40, 0.0  ;;  %v11504_v27 = vmax.f32 %v11498_v15, 0.0  ;;  %v11508_v31 = vmax.f32 %v11502_v22, 0.0 }
 0xecc   :  { %v11507_v7 = vmax.f32 %v11501_v36, 0.0  ;;  %v11506_v53 = vmax.f32 %v11500_v23, 0.0 }
 0xecd   :  { %v11543_v51 = vpack.c.bf16 %v11505_v18, %v11505_v18  ;;  %v11547_v41 = vpack.c.bf16 %v11509_v26, %v11509_v26  ;;  %v11542_v42 = vpack.c.bf16 %v11504_v27, %v11504_v27  ;;  %v11546_v33 = vpack.c.bf16 %v11508_v31, %v11508_v31  ;;  %v13716_v27 = vld [vmem:[%s19617_s11] ss:$0 sm:$0xff] }
 0xece   :  { %v11545_v57 = vpack.c.bf16 %v11507_v7, %v11507_v7  ;;  %v11544_v25 = vpack.c.bf16 %v11506_v53, %v11506_v53 }
 0xecf   :  { %11964 = vmatprep.mubr.bf16.mxu0 %v11543_v51  ;;  %12044 = vmatprep.mubr.bf16.mxu1 %v11547_v41 }
 0xed0   :  { %11965 = vmatmul.mubr.bf16.vlgmr.msra.gmra.mxu0 %v11542_v42  ;;  %12045 = vmatmul.mubr.bf16.vlgmr.msra.gmra.mxu1 %v11546_v33 }
 0xed1   :  { %13740 = vmatpush3.bf16.msra.mxu0 %v14059_v62  ;;  %12004 = vmatprep.mubr.bf16.mxu0 %v11545_v57 }
 0xed2   :  { %13741 = vmatprep.subr.bf16.mxu0 %v14060_v14 }
 0xed5   :  { %13742 = vmatpush3.bf16.msra.mxu0 %v14061_v0 }
 0xed6   :  { %13743 = vmatprep.subr.bf16.mxu0 %v14062_v44 }
 0xed9   :  { %13744 = vmatpush3.bf16.msra.mxu0 %v14063_v3 }
 0xeda   :  { %13745 = vmatprep.subr.bf16.mxu0 %v14064_v58 }
 0xedd   :  { %13746 = vmatpush3.bf16.msra.mxu0 %v14065_v12 }
 0xede   :  { %13747 = vmatprep.subr.bf16.mxu0 %v14066_v10 }
 0xee1   :  { %13748 = vmatpush3.bf16.msra.mxu0 %v14067_v21 }
 0xee2   :  { %13749 = vmatprep.subr.bf16.mxu0 %v14068_v16 }
 0xee5   :  { %13750 = vmatpush3.bf16.msra.mxu0 %v14069_v11 }
 0xee6   :  { %13751 = vmatprep.subr.bf16.mxu0 %v14070_v45 }
 0xee9   :  { %13752 = vmatpush3.bf16.msra.mxu0 %v14071_v47 }
 0xeea   :  { %13753 = vmatprep.subr.bf16.mxu0 %v14072_v32 }
 0xeed   :  { %13754 = vmatpush3.bf16.msra.mxu0 %v14073_v37 }
 0xeee   :  { %13783 = vmatprep.subr.bf16.mxu0 %v14074_v2 }
 0xef0   :  { %12005 = vmatmul.mubr.bf16.vlgmr.msra.gmra.mxu0 %v11544_v25 }
 0xef1   :  { %13784 = vmatpush3.bf16.msra.mxu0 %v14075_v6  ;;  %12180 = vmatprep.mubr.bf16.mxu0 %v19256_v48  ;;  %v14081_v48 = vld [vmem:[%s19615_s9 + $0x20] sm:$0xff]  }
 0xef2   :  { %13785 = vmatprep.subr.bf16.mxu0 %v14076_v52 }
 0xef5   :  { %13786 = vmatpush3.bf16.msra.mxu0 %v14077_v1 }
 0xef6   :  { %13787 = vmatprep.subr.bf16.mxu0 %v14078_v55 }
 0xef9   :  { %13788 = vmatpush3.bf16.msra.mxu0 %v14079_v49 }
 0xefa   :  { %13789 = vmatprep.subr.bf16.mxu0 %v14080_v50 }
 0xefd   :  { %13790 = vmatpush3.bf16.msra.mxu0 %v14081_v48 }
 0xefe   :  { %13791 = vmatprep.subr.bf16.mxu0 %v14082_v29 }
 0xf01   :  { %13792 = vmatpush3.bf16.msra.mxu0 %v14083_v59 }
 0xf02   :  { %13793 = vmatprep.subr.bf16.mxu0 %v14084_v56 }
 0xf05   :  { %13794 = vmatpush3.bf16.msra.mxu0 %v14085_v5 }
 0xf06   :  { %13795 = vmatprep.subr.bf16.mxu0 %v14086_v60 }
 0xf09   :  { %13796 = vmatpush3.bf16.msra.mxu0 %v14087_v24 }
 0xf0a   :  { %13797 = vmatprep.subr.bf16.mxu0 %v14088_v19 }
 0xf0d   :  { %13798 = vmatpush3.bf16.msra.mxu0 %v14089_v43 }
 0xf10   :  { %12181 = vmatmul.mubr.bf16.vlgmr.msra.gmra.mxu0 %v19261_v20 }
 0xf90   :  { %v13733_v8 = vpop.f32.mrf.mxu0  ;;  %v13777_v30 = vpop.f32.mrf.mxu1 }
 0xf92   :  { %v13734_v63 = vpop.f32.mrf.mxu0  ;;  %v13778_v34 = vpop.f32.mrf.mxu1 }
 0xf93   :  { %v13735_v40 = vadd.f32 %v13734_v63, %v13733_v8  ;;  %v13779_v36 = vadd.f32 %v13778_v34, %v13777_v30 }
 0xf94   :  { %v13736_v39 = vpop.f32.mrf.mxu0  ;;  %v13780_v46 = vpop.f32.mrf.mxu1 }
 0xf96   :  { %v13737_v61 = vpop.f32.mrf.mxu0  ;;  %v13781_v17 = vpop.f32.mrf.mxu1 }
 0xfb0   :  { %v13755_v9 = vpop.f32.mrf.mxu0 }
 0xfb2   :  { %v13756_v38 = vpop.f32.mrf.mxu0 }
 0xfb3   :  { %v13757_v4 = vadd.f32 %v13756_v38, %v13755_v9 }
 0xfb4   :  { %v13758_v13 = vpop.f32.mrf.mxu0 }
 0xfb5   :  { %v12007_v15 = vadd.f32 %v13757_v4, %v13735_v40 }
 0xfb6   :  { %v13759_v28 = vpop.f32.mrf.mxu0 }
 0xfb7   :  { %v12047_v26 = vadd.f32 %v13779_v36, %v12007_v15 }
 0xfd0   :  { %v13799_v22 = vpop.f32.mrf.mxu0 }
 0xfd2   :  { %v13800_v18 = vpop.f32.mrf.mxu0 }
 0xfd3   :  { %v13801_v20 = vadd.f32 %v13800_v18, %v13799_v22 }
 0xfd4   :  { %v13802_v31 = vpop.f32.mrf.mxu0 }
 0xfd5   :  { %v12183_v7 = vadd.f32 %v13801_v20, %v12047_v26 }
 0xfd6   :  { %v13803_v51 = vpop.f32.mrf.mxu0 }
 0xfd7   :  { %v12195_v41 = vadd.f32 %v13716_v27, %v12183_v7 }
 0xfd9   :  { %12196 = vst [vmem:[%s19618_s12] sm:$0xff] %v12195_v41 }

</bundles_post_ra>
